<compile_context>
chip_gen: v7x
topology: tpu7x:2x2x1
jax: 0.10.0
libtpu: 0.0.40
codegen_flags: <defaults>
</compile_context>

<pallas_src>
import functools

import jax
import jax.numpy as jnp
from jax import lax
from jax.experimental import pallas as pl
from jax.experimental.pallas import tpu as pltpu


def _round_up(x, m):
    return -(-x // m) * m


@functools.lru_cache(maxsize=None)
def _hw_config():
    """Generation-aware tiling / scoped-VMEM budget.

    v5e/v6e have 128 MiB VMEM -> big tiles + 96 MiB scoped limit.
    v7x has 64 MiB per TensorCore -> 4096-row tiles + 44 MiB limit.
    Falls back to the conservative (v7x-safe) config if detection fails.
    """
    vmem_bytes = None
    try:
        info = pltpu.get_tpu_info()
        vmem_bytes = (getattr(info, "vmem_capacity_bytes", None)
                      or getattr(info, "vmem_size_bytes", None))
    except Exception:
        vmem_bytes = None
    kind = ""
    try:
        kind = jax.devices()[0].device_kind.lower()
    except Exception:
        kind = ""
    big = bool(vmem_bytes) and int(vmem_bytes) >= 100 * 1024 * 1024
    if ("v7" in kind) or ("7x" in kind):   # belt-and-suspenders: never oversize v7x
        big = False
    if big:
        return {"vmem_limit": 96 * 1024 * 1024, "sa_rows": 8192, "fp_rows": 2048}
    return {"vmem_limit": 44 * 1024 * 1024, "sa_rows": 4096, "fp_rows": 1024}


def _compiler_params():
    return pltpu.CompilerParams(
        dimension_semantics=("parallel",),
        vmem_limit_bytes=_hw_config()["vmem_limit"],
    )


# ----------------------------------------------------------------------------
# Pallas kernels
# ----------------------------------------------------------------------------
def _sa_xyz_kernel(xyz_ref, w1_ref, w2_ref, w3_ref, out_ref, *, nsample):
    """Shared MLP over grouped xyz only (no point features), fused max+avg pool.

    xyz_ref: (rows, 3) f32, rows = group_tile * nsample (groups contiguous).
    Layer 1 (K=3) runs as three VPU broadcast FMAs (no tiny MXU matmul).
    out_ref: (group_tile, 2*C3) bf16 -> [max-pool | avg-pool] over nsample.
    """
    gt = xyz_ref.shape[0] // nsample
    xz = xyz_ref[...]
    h = xz[:, 0:1] * w1_ref[0:1, :]
    h = h + xz[:, 1:2] * w1_ref[1:2, :]
    h = h + xz[:, 2:3] * w1_ref[2:3, :]
    h = jnp.maximum(h, 0.0).astype(jnp.bfloat16)
    h = jnp.dot(h, w2_ref[...], preferred_element_type=jnp.float32)
    h = jnp.maximum(h, 0.0).astype(jnp.bfloat16)
    h = jnp.dot(h, w3_ref[...], preferred_element_type=jnp.float32)
    h = jnp.maximum(h, 0.0)
    c3 = h.shape[-1]
    h3 = h.reshape(gt, nsample, c3)
    # axis=1 == sublane axis of each (nsample, c3) tile -> native sublane reductions.
    out_ref[:, :c3] = jnp.max(h3, axis=1).astype(out_ref.dtype)
    out_ref[:, c3:] = (jnp.sum(h3, axis=1) * (1.0 / nsample)).astype(out_ref.dtype)


def _sa_xyzfeat_kernel(xyz_ref, f1_ref, w1x_ref, w2_ref, w3_ref, out_ref, *, nsample):
    """Shared MLP over grouped [xyz | features], fused max+avg pool.

    f1_ref holds the PRE-GATHERED layer-1 feature contribution
    (features @ W1_feat, gathered per neighbor, bf16), so the K=Cf matmul never
    runs per (group, sample).  The xyz half of layer 1 is 3 VPU broadcast FMAs.
    xyz_ref: (rows, 3) f32;  f1_ref: (rows, C1) bf16;  out_ref: (gt, 2*C3) bf16.
    """
    gt = xyz_ref.shape[0] // nsample
    xz = xyz_ref[...]
    h = f1_ref[...].astype(jnp.float32)
    h = h + xz[:, 0:1] * w1x_ref[0:1, :]
    h = h + xz[:, 1:2] * w1x_ref[1:2, :]
    h = h + xz[:, 2:3] * w1x_ref[2:3, :]
    h = jnp.maximum(h, 0.0).astype(jnp.bfloat16)
    h = jnp.dot(h, w2_ref[...], preferred_element_type=jnp.float32)
    h = jnp.maximum(h, 0.0).astype(jnp.bfloat16)
    h = jnp.dot(h, w3_ref[...], preferred_element_type=jnp.float32)
    h = jnp.maximum(h, 0.0)
    c3 = h.shape[-1]
    h3 = h.reshape(gt, nsample, c3)
    out_ref[:, :c3] = jnp.max(h3, axis=1).astype(out_ref.dtype)
    out_ref[:, c3:] = (jnp.sum(h3, axis=1) * (1.0 / nsample)).astype(out_ref.dtype)


def sa_mlp_pool(grouped_xyz, grouped_f1, w1x, w2, w3):
    """grouped_xyz: (B, npoint, S, 3) f32; grouped_f1: (B, npoint, S, C1) or None.
    w1x: (3, C1) xyz half of layer 1.  Returns (B, npoint, 2*C3) bf16."""
    B, npoint, S, _ = grouped_xyz.shape
    G = B * npoint
    C3 = w3.shape[1]
    cfg = _hw_config()

    sub = 16  # bf16-friendly sublane granularity
    group_tile = max(sub, min(max(cfg["sa_rows"] // S, sub), G))
    group_tile = _round_up(group_tile, sub)
    if G > sub and group_tile >= G:
        # keep >=2 grid steps so v7x's two TensorCores both get work
        group_tile = _round_up(-(-G // 2), sub)
    Gp = _round_up(G, group_tile)
    row_block = group_tile * S
    grid = (Gp // group_tile,)

    xyz = grouped_xyz.reshape(G * S, 3).astype(jnp.float32)
    if Gp != G:
        xyz = jnp.pad(xyz, ((0, (Gp - G) * S), (0, 0)))
    w1xf = w1x.astype(jnp.float32)
    w2b = w2.astype(jnp.bfloat16)
    w3b = w3.astype(jnp.bfloat16)

    if grouped_f1 is None:
        kernel = functools.partial(_sa_xyz_kernel, nsample=S)
        operands = (xyz, w1xf, w2b, w3b)
        in_specs = [
            pl.BlockSpec((row_block, 3), lambda g: (g, 0)),
            pl.BlockSpec(w1xf.shape, lambda g: (0, 0)),
            pl.BlockSpec(w2b.shape, lambda g: (0, 0)),
            pl.BlockSpec(w3b.shape, lambda g: (0, 0)),
        ]
    else:
        C1 = grouped_f1.shape[-1]
        f1 = grouped_f1.reshape(G * S, C1).astype(jnp.bfloat16)
        if Gp != G:
            f1 = jnp.pad(f1, ((0, (Gp - G) * S), (0, 0)))
        kernel = functools.partial(_sa_xyzfeat_kernel, nsample=S)
        operands = (xyz, f1, w1xf, w2b, w3b)
        in_specs = [
            pl.BlockSpec((row_block, 3), lambda g: (g, 0)),
            pl.BlockSpec((row_block, C1), lambda g: (g, 0)),
            pl.BlockSpec(w1xf.shape, lambda g: (0, 0)),
            pl.BlockSpec(w2b.shape, lambda g: (0, 0)),
            pl.BlockSpec(w3b.shape, lambda g: (0, 0)),
        ]

    out = pl.pallas_call(
        kernel,
        out_shape=jax.ShapeDtypeStruct((Gp, 2 * C3), jnp.bfloat16),
        grid=grid,
        in_specs=in_specs,
        out_specs=pl.BlockSpec((group_tile, 2 * C3), lambda g: (g, 0)),
        compiler_params=_compiler_params(),
    )(*operands)
    return out[:G].reshape(B, npoint, 2 * C3)


def _make_pointwise_kernel(num_layers, relu_last):
    def kernel(x_ref, *refs):
        w_refs = refs[:num_layers]
        out_ref = refs[num_layers]
        h = x_ref[...]
        for li in range(num_layers):
            h = jnp.dot(h.astype(jnp.bfloat16), w_refs[li][...],
                        preferred_element_type=jnp.float32)
            if li + 1 < num_layers or relu_last:
                h = jnp.maximum(h, 0.0)
        out_ref[...] = h.astype(out_ref.dtype)
    return kernel


def pointwise_mlp(x, weights, *, relu_last=True, out_dtype=jnp.float32,
                  row_tile=None):
    """x: (M, Cin) -> (M, Cout) through 1x1-conv layers (bf16 MXU, f32 accum)."""
    M = x.shape[0]
    Cout = weights[-1].shape[1]
    cfg = _hw_config()
    if row_tile is None:
        row_tile = cfg["fp_rows"]
    sub = 16
    row_tile = max(sub, min(row_tile, _round_up(M, sub)))
    if M > sub and row_tile >= M:
        row_tile = _round_up(-(-M // 2), sub)   # keep >=2 grid steps (v7x dual-TC)
    Mp = _round_up(M, row_tile)

    xb = x.astype(jnp.bfloat16)
    if Mp != M:
        xb = jnp.pad(xb, ((0, Mp - M), (0, 0)))
    wbs = tuple(w.astype(jnp.bfloat16) for w in weights)

    out = pl.pallas_call(
        _make_pointwise_kernel(len(wbs), relu_last),
        out_shape=jax.ShapeDtypeStruct((Mp, Cout), out_dtype),
        grid=(Mp // row_tile,),
        in_specs=[pl.BlockSpec((row_tile, xb.shape[1]), lambda i: (i, 0))]
        + [pl.BlockSpec(w.shape, lambda i: (0, 0)) for w in wbs],
        out_specs=pl.BlockSpec((row_tile, Cout), lambda i: (i, 0)),
        compiler_params=_compiler_params(),
    )(xb, *wbs)
    return out[:M]


# ----------------------------------------------------------------------------
# Plain-JAX glue: FPS, ball query, gathers, 3-NN interpolation
# (data-dependent gathers / sequential selection; no clean Pallas equivalent).
# ----------------------------------------------------------------------------
def gather_points(points, idx):
    """points: (B, N, C); idx: (B, ...) int -> (B, ..., C)."""
    return jax.vmap(lambda p, i: p[i])(points, idx)


def farthest_point_sample(xyz, npoint):
    """xyz: (B, N, 3) -> (B, npoint) int32 (starts at index 0, as the CUDA op)."""
    B, N, _ = xyz.shape

    def body(i, state):
        dists, inds, farthest = state
        inds = inds.at[:, i].set(farthest)
        centroid = jnp.take_along_axis(xyz, farthest[:, None, None], axis=1)
        d = jnp.sum((xyz - centroid) ** 2, axis=-1)
        dists = jnp.minimum(dists, d)
        farthest = jnp.argmax(dists, axis=-1).astype(jnp.int32)
        return dists, inds, farthest

    dists = jnp.full((B, N), 1e10, jnp.float32)
    inds = jnp.zeros((B, npoint), jnp.int32)
    farthest = jnp.zeros((B,), jnp.int32)
    _, inds, _ = lax.fori_loop(0, npoint, body, (dists, inds, farthest))
    return inds


def ball_query(xyz, new_xyz, radius, nsample):
    """Returns (B, npoint, nsample) int32 indices into xyz (first-in-order,
    padded with the first in-ball index), matching the CUDA ball_query."""
    # TODO(synk): tile this (B, npoint, N) distance + top_k in Pallas; it
    # dominates end-to-end time at production point counts.
    B, N, _ = xyz.shape
    d2 = jnp.sum((new_xyz[:, :, None, :] - xyz[:, None, :, :]) ** 2, axis=-1)
    in_ball = d2 < radius * radius
    order = jnp.where(in_ball, jnp.arange(N, dtype=jnp.int32)[None, None, :], N)
    neg_key, sort_idx = lax.top_k(-order, nsample)   # smallest `order` values
    sort_key = -neg_key
    sort_idx = sort_idx.astype(jnp.int32)
    first = sort_idx[..., :1]
    return jnp.where(sort_key < N, sort_idx, first)


# ----------------------------------------------------------------------------
# SA / FP modules
# ----------------------------------------------------------------------------
def sa_module(xyz, features, weights, npoint, radius, nsample):
    """PointnetPlaneVotes-style SA layer (use_xyz=True, normalize_xyz=True)."""
    w1, w2, w3 = weights
    fps_inds = farthest_point_sample(xyz, npoint)              # (B, npoint)
    new_xyz = gather_points(xyz, fps_inds)                     # (B, npoint, 3)
    idx = ball_query(xyz, new_xyz, radius, nsample)            # (B, npoint, nsample)
    grouped_xyz = (gather_points(xyz, idx) - new_xyz[:, :, None, :]) / radius

    if features is not None:
        B, N, Cf = features.shape
        C1 = w1.shape[1]
        # Gather commutes with the 1x1 conv: run layer-1's feature half once per
        # input point (Pallas pointwise kernel, no ReLU yet) and gather the
        # (N, C1) bf16 result -> ~nsample x fewer layer-1 MXU flops and half the
        # grouped tensor's HBM round trip vs. gathering raw (N, Cf) features.
        f1 = pointwise_mlp(features.reshape(B * N, Cf), (w1[3:],),
                           relu_last=False, out_dtype=jnp.bfloat16)
        grouped_f1 = gather_points(f1.reshape(B, N, C1), idx)  # (B,npoint,S,C1) bf16
        w1x = w1[:3]
    else:
        grouped_f1 = None
        w1x = w1   # whole first layer acts on xyz only

    new_features = sa_mlp_pool(grouped_xyz, grouped_f1, w1x, w2, w3)
    return new_xyz, new_features, fps_inds


def fp_module(unknown_xyz, known_xyz, unknown_feats, known_feats, weights):
    """PointnetFPModule: 3-NN inverse-distance interpolation + pointwise MLP."""
    # TODO(synk): tile the (B, n, m) distance + top_k in Pallas for production sizes.
    B, n, _ = unknown_xyz.shape
    d2 = jnp.sum((unknown_xyz[:, :, None, :] - known_xyz[:, None, :, :]) ** 2, axis=-1)
    neg_d2, idx = lax.top_k(-d2, 3)                            # 3 nearest
    dist2 = -neg_d2
    recip = 1.0 / (dist2 + 1e-8)
    weight = recip / jnp.sum(recip, axis=-1, keepdims=True)    # (B, n, 3)
    gathered = gather_points(known_feats, idx).astype(jnp.float32)
    interpolated = jnp.sum(gathered * weight[..., None], axis=2)
    new_feats = jnp.concatenate(
        [interpolated.astype(jnp.bfloat16), unknown_feats.astype(jnp.bfloat16)],
        axis=-1)
    M, Cin = B * n, new_feats.shape[-1]
    out = pointwise_mlp(new_feats.reshape(M, Cin), weights,
                        relu_last=True, out_dtype=jnp.float32)
    return out.reshape(B, n, -1)


# ----------------------------------------------------------------------------
# Backbone
# ----------------------------------------------------------------------------
# Scaled-down SA configuration for a small synthetic run
# (original module: npoint 2048/1024/512/256, nsample 64/32/16/16).
# Channel widths match the reference exactly.
SA_CFG = (
    dict(npoint=32, radius=0.2, nsample=16),
    dict(npoint=16, radius=0.4, nsample=8),
    dict(npoint=8,  radius=0.8, nsample=8),
    dict(npoint=4,  radius=1.2, nsample=8),
)


def init_backbone_params(key, input_feature_dim=0):
    keys = iter(jax.random.split(key, 32))

    def w(cin, cout):
        return jax.random.normal(next(keys), (cin, cout), jnp.float32) * jnp.sqrt(
            2.0 / cin
        )

    def mlp(chans):
        return tuple(w(a, b) for a, b in zip(chans[:-1], chans[1:]))

    return {
        "sa1": mlp([input_feature_dim + 3, 64, 64, 128]),
        "sa2": mlp([128 * 2 + 3, 128, 128, 128]),
        "sa3": mlp([256 + 3, 128, 128, 128]),
        "sa4": mlp([256 + 3, 128, 128, 128]),
        "fp1": mlp([256 + 256, 256, 256]),
        "fp2": mlp([256 + 256, 256, 256]),
    }


def backbone_forward(pointcloud, params, mode="plane"):
    end_points = {}
    xyz = pointcloud[..., 0:3]
    # NOTE: features kept channel-last (B, N, C); the reference stores (B, C, N).
    features = pointcloud[..., 3:] if pointcloud.shape[-1] > 3 else None
    end_points["sa0_xyz" + mode] = xyz
    end_points["sa0_features" + mode] = features

    cur_xyz, cur_feat = xyz, features
    for i, (name, cfg) in enumerate(zip(("sa1", "sa2", "sa3", "sa4"), SA_CFG)):
        cur_xyz, cur_feat, inds = sa_module(cur_xyz, cur_feat, params[name], **cfg)
        if i < 2:  # reference stores inds for sa1 and sa2 only
            end_points[name + "_inds" + mode] = inds
        end_points[name + "_xyz" + mode] = cur_xyz
        end_points[name + "_features" + mode] = cur_feat

    feat = fp_module(
        end_points["sa3_xyz" + mode], end_points["sa4_xyz" + mode],
        end_points["sa3_features" + mode], end_points["sa4_features" + mode],
        params["fp1"],
    )
    feat = fp_module(
        end_points["sa2_xyz" + mode], end_points["sa3_xyz" + mode],
        end_points["sa2_features" + mode], feat,
        params["fp2"],
    )
    end_points["fp2_features" + mode] = feat
    end_points["fp2_xyz" + mode] = end_points["sa2_xyz" + mode]
    num_seed = end_points["fp2_xyz" + mode].shape[1]
    end_points["fp2_inds" + mode] = end_points["sa1_inds" + mode][:, 0:num_seed]
    return end_points


if __name__ == "__main__":
    key = jax.random.PRNGKey(0)
    k_pc, k_par = jax.random.split(key)

    B, N, input_feature_dim = 2, 64, 0
    pointcloud = jax.random.uniform(
        k_pc, (B, N, 3 + input_feature_dim), jnp.float32, minval=-1.0, maxval=1.0
    )
    params = init_backbone_params(k_par, input_feature_dim)

    fwd = jax.jit(functools.partial(backbone_forward, mode="plane"))
    end_points = fwd(pointcloud, params)
    jax.block_until_ready(end_points["fp2_featuresplane"])

    # sanity checks on shapes implied by the reference forward
    assert end_points["sa1_xyzplane"].shape == (B, 32, 3)
    assert end_points["sa1_featuresplane"].shape == (B, 32, 256)
    assert end_points["sa4_featuresplane"].shape == (B, 4, 256)
    assert end_points["fp2_featuresplane"].shape == (B, 16, 256)
    assert end_points["fp2_xyzplane"].shape == (B, 16, 3)
    assert end_points["fp2_indsplane"].shape == (B, 16)
    assert bool(jnp.all(jnp.isfinite(end_points["fp2_featuresplane"])))

    print("KERNEL_OK")
</pallas_src>

<mosaic_0001>
module attributes {stable_mosaic.version = 11 : i64} {
  func.func @_sa_xyz_kernel(%arg0: i32, %arg1: memref<512x3xf32, #tpu.memory_space<vmem>>, %arg2: memref<3x64xf32, #tpu.memory_space<vmem>>, %arg3: memref<64x64xbf16, #tpu.memory_space<vmem>>, %arg4: memref<64x128xbf16, #tpu.memory_space<vmem>>, %arg5: memref<32x256xbf16, #tpu.memory_space<vmem>>) attributes {dimension_semantics = [#tpu.dimension_semantics<parallel>], iteration_bounds = array<i64: 2>, scalar_prefetch = 0 : i64, scratch_operands = 0 : i64, tpu.core_type = #tpu.core_type<tc>, window_params = [{transform_indices = @transform_0, window_bounds = array<i64: 512, 3>}, {pipeline_mode = #tpu.pipeline_mode<synchronous>, transform_indices = @transform_1, window_bounds = array<i64: 3, 64>}, {pipeline_mode = #tpu.pipeline_mode<synchronous>, transform_indices = @transform_2, window_bounds = array<i64: 64, 64>}, {pipeline_mode = #tpu.pipeline_mode<synchronous>, transform_indices = @transform_3, window_bounds = array<i64: 64, 128>}, {transform_indices = @transform_4, window_bounds = array<i64: 32, 256>}]} {
    %c0 = arith.constant 0 : index
    %c0_0 = arith.constant 0 : index
    %0 = vector.load %arg1[%c0, %c0_0] : memref<512x3xf32, #tpu.memory_space<vmem>>, vector<512x3xf32>
    %1 = vector.extract_strided_slice %0 {offsets = [0, 0], sizes = [512, 1], strides = [1, 1]} : vector<512x3xf32> to vector<512x1xf32>
    %c0_1 = arith.constant 0 : index
    %c0_2 = arith.constant 0 : index
    %2 = vector.load %arg2[%c0_1, %c0_2] : memref<3x64xf32, #tpu.memory_space<vmem>>, vector<1x64xf32>
    %3 = vector.broadcast %1 : vector<512x1xf32> to vector<512x64xf32>
    %4 = vector.broadcast %2 : vector<1x64xf32> to vector<512x64xf32>
    %5 = arith.mulf %3, %4 : vector<512x64xf32>
    %6 = vector.extract_strided_slice %0 {offsets = [0, 1], sizes = [512, 1], strides = [1, 1]} : vector<512x3xf32> to vector<512x1xf32>
    %c1 = arith.constant 1 : index
    %c0_3 = arith.constant 0 : index
    %7 = vector.load %arg2[%c1, %c0_3] : memref<3x64xf32, #tpu.memory_space<vmem>>, vector<1x64xf32>
    %8 = vector.broadcast %6 : vector<512x1xf32> to vector<512x64xf32>
    %9 = vector.broadcast %7 : vector<1x64xf32> to vector<512x64xf32>
    %10 = arith.mulf %8, %9 : vector<512x64xf32>
    %11 = arith.addf %5, %10 : vector<512x64xf32>
    %12 = vector.extract_strided_slice %0 {offsets = [0, 2], sizes = [512, 1], strides = [1, 1]} : vector<512x3xf32> to vector<512x1xf32>
    %c2 = arith.constant 2 : index
    %c0_4 = arith.constant 0 : index
    %13 = vector.load %arg2[%c2, %c0_4] : memref<3x64xf32, #tpu.memory_space<vmem>>, vector<1x64xf32>
    %14 = vector.broadcast %12 : vector<512x1xf32> to vector<512x64xf32>
    %15 = vector.broadcast %13 : vector<1x64xf32> to vector<512x64xf32>
    %16 = arith.mulf %14, %15 : vector<512x64xf32>
    %17 = arith.addf %11, %16 : vector<512x64xf32>
    %cst = arith.constant 0.000000e+00 : f32
    %18 = vector.broadcast %cst : f32 to vector<512x64xf32>
    %19 = arith.maximumf %17, %18 : vector<512x64xf32>
    %20 = arith.truncf %19 : vector<512x64xf32> to vector<512x64xbf16>
    %c0_5 = arith.constant 0 : index
    %c0_6 = arith.constant 0 : index
    %21 = vector.load %arg3[%c0_5, %c0_6] : memref<64x64xbf16, #tpu.memory_space<vmem>>, vector<64x64xbf16>
    %cst_7 = arith.constant dense<0.000000e+00> : vector<512x64xf32>
    %22 = tpu.matmul %20, %21, %cst_7 {dimension_numbers = #tpu.dot_dimension_numbers<[1], [0], [0], [1], [0, 0, 1, 1], [], []>} : vector<512x64xbf16>, vector<64x64xbf16>, vector<512x64xf32> -> vector<512x64xf32>
    %cst_8 = arith.constant 0.000000e+00 : f32
    %23 = vector.broadcast %cst_8 : f32 to vector<512x64xf32>
    %24 = arith.maximumf %22, %23 : vector<512x64xf32>
    %25 = arith.truncf %24 : vector<512x64xf32> to vector<512x64xbf16>
    %c0_9 = arith.constant 0 : index
    %c0_10 = arith.constant 0 : index
    %26 = vector.load %arg4[%c0_9, %c0_10] : memref<64x128xbf16, #tpu.memory_space<vmem>>, vector<64x128xbf16>
    %cst_11 = arith.constant dense<0.000000e+00> : vector<512x128xf32>
    %27 = tpu.matmul %25, %26, %cst_11 {dimension_numbers = #tpu.dot_dimension_numbers<[1], [0], [0], [1], [0, 0, 1, 1], [], []>} : vector<512x64xbf16>, vector<64x128xbf16>, vector<512x128xf32> -> vector<512x128xf32>
    %cst_12 = arith.constant 0.000000e+00 : f32
    %28 = vector.broadcast %cst_12 : f32 to vector<512x128xf32>
    %29 = arith.maximumf %27, %28 : vector<512x128xf32>
    %30 = vector.shape_cast %29 : vector<512x128xf32> to vector<32x16x128xf32>
    %cst_13 = arith.constant dense<0xFF800000> : vector<32x128xf32>
    %31 = vector.multi_reduction <maximumf>, %30, %cst_13 [1] : vector<32x16x128xf32> to vector<32x128xf32>
    %32 = arith.truncf %31 : vector<32x128xf32> to vector<32x128xbf16>
    %c0_14 = arith.constant 0 : index
    %c0_15 = arith.constant 0 : index
    %33 = vector.load %arg5[%c0_14, %c0_15] : memref<32x256xbf16, #tpu.memory_space<vmem>>, vector<32x128xbf16>
    tpu.vector_store %arg5[%c0_14, %c0_15], %32 {strides = array<i32>} : memref<32x256xbf16, #tpu.memory_space<vmem>>, vector<32x128xbf16>,
    %cst_16 = arith.constant dense<0.000000e+00> : vector<32x128xf32>
    %34 = vector.multi_reduction <add>, %30, %cst_16 [1] : vector<32x16x128xf32> to vector<32x128xf32>
    %cst_17 = arith.constant 6.250000e-02 : f32
    %35 = vector.broadcast %cst_17 : f32 to vector<32x128xf32>
    %36 = arith.mulf %34, %35 : vector<32x128xf32>
    %37 = arith.truncf %36 : vector<32x128xf32> to vector<32x128xbf16>
    %c0_18 = arith.constant 0 : index
    %c128 = arith.constant 128 : index
    %38 = vector.load %arg5[%c0_18, %c128] : memref<32x256xbf16, #tpu.memory_space<vmem>>, vector<32x128xbf16>
    tpu.vector_store %arg5[%c0_18, %c128], %37 {strides = array<i32>} : memref<32x256xbf16, #tpu.memory_space<vmem>>, vector<32x128xbf16>,
    return
  }
  func.func @transform_0(%arg0: i32) -> (i32, i32) {
    %c0_i32 = arith.constant 0 : i32
    %c0_i32_0 = arith.constant 0 : i32
    return %arg0, %c0_i32 : i32, i32
  }
  func.func @transform_1(%arg0: i32) -> (i32, i32) {
    %c0_i32 = arith.constant 0 : i32
    %c0_i32_0 = arith.constant 0 : i32
    %c0_i32_1 = arith.constant 0 : i32
    return %c0_i32, %c0_i32_0 : i32, i32
  }
  func.func @transform_2(%arg0: i32) -> (i32, i32) {
    %c0_i32 = arith.constant 0 : i32
    %c0_i32_0 = arith.constant 0 : i32
    %c0_i32_1 = arith.constant 0 : i32
    return %c0_i32, %c0_i32_0 : i32, i32
  }
  func.func @transform_3(%arg0: i32) -> (i32, i32) {
    %c0_i32 = arith.constant 0 : i32
    %c0_i32_0 = arith.constant 0 : i32
    %c0_i32_1 = arith.constant 0 : i32
    return %c0_i32, %c0_i32_0 : i32, i32
  }
  func.func @transform_4(%arg0: i32) -> (i32, i32) {
    %c0_i32 = arith.constant 0 : i32
    %c0_i32_0 = arith.constant 0 : i32
    return %arg0, %c0_i32 : i32, i32
  }
}

module attributes {stable_mosaic.version = 11 : i64} {
  func.func @kernel(%arg0: i32, %arg1: memref<32x256xbf16, #tpu.memory_space<vmem>>, %arg2: memref<256x128xbf16, #tpu.memory_space<vmem>>, %arg3: memref<32x128xbf16, #tpu.memory_space<vmem>>) attributes {dimension_semantics = [#tpu.dimension_semantics<parallel>], iteration_bounds = array<i64: 2>, scalar_prefetch = 0 : i64, scratch_operands = 0 : i64, tpu.core_type = #tpu.core_type<tc>, window_params = [{transform_indices = @transform_0, window_bounds = array<i64: 32, 256>}, {pipeline_mode = #tpu.pipeline_mode<synchronous>, transform_indices = @transform_1, window_bounds = array<i64: 256, 128>}, {transform_indices = @transform_2, window_bounds = array<i64: 32, 128>}]} {
    %c0 = arith.constant 0 : index
    %c0_0 = arith.constant 0 : index
    %0 = vector.load %arg1[%c0, %c0_0] : memref<32x256xbf16, #tpu.memory_space<vmem>>, vector<32x256xbf16>
    %c0_1 = arith.constant 0 : index
    %c0_2 = arith.constant 0 : index
    %1 = vector.load %arg2[%c0_1, %c0_2] : memref<256x128xbf16, #tpu.memory_space<vmem>>, vector<256x128xbf16>
    %cst = arith.constant dense<0.000000e+00> : vector<32x128xf32>
    %2 = tpu.matmul %0, %1, %cst {dimension_numbers = #tpu.dot_dimension_numbers<[1], [0], [0], [1], [0, 0, 1, 1], [], []>} : vector<32x256xbf16>, vector<256x128xbf16>, vector<32x128xf32> -> vector<32x128xf32>
    %3 = arith.truncf %2 : vector<32x128xf32> to vector<32x128xbf16>
    %c0_3 = arith.constant 0 : index
    %c0_4 = arith.constant 0 : index
    %4 = vector.load %arg3[%c0_3, %c0_4] : memref<32x128xbf16, #tpu.memory_space<vmem>>, vector<32x128xbf16>
    tpu.vector_store %arg3[%c0_3, %c0_4], %3 {strides = array<i32>} : memref<32x128xbf16, #tpu.memory_space<vmem>>, vector<32x128xbf16>,
    return
  }
  func.func @transform_0(%arg0: i32) -> (i32, i32) {
    %c0_i32 = arith.constant 0 : i32
    %c0_i32_0 = arith.constant 0 : i32
    return %arg0, %c0_i32 : i32, i32
  }
  func.func @transform_1(%arg0: i32) -> (i32, i32) {
    %c0_i32 = arith.constant 0 : i32
    %c0_i32_0 = arith.constant 0 : i32
    %c0_i32_1 = arith.constant 0 : i32
    return %c0_i32, %c0_i32_0 : i32, i32
  }
  func.func @transform_2(%arg0: i32) -> (i32, i32) {
    %c0_i32 = arith.constant 0 : i32
    %c0_i32_0 = arith.constant 0 : i32
    return %arg0, %c0_i32 : i32, i32
  }
}

module attributes {stable_mosaic.version = 11 : i64} {
  func.func @_sa_xyzfeat_kernel(%arg0: i32, %arg1: memref<128x3xf32, #tpu.memory_space<vmem>>, %arg2: memref<128x128xbf16, #tpu.memory_space<vmem>>, %arg3: memref<3x128xf32, #tpu.memory_space<vmem>>, %arg4: memref<128x128xbf16, #tpu.memory_space<vmem>>, %arg5: memref<128x128xbf16, #tpu.memory_space<vmem>>, %arg6: memref<16x256xbf16, #tpu.memory_space<vmem>>) attributes {dimension_semantics = [#tpu.dimension_semantics<parallel>], iteration_bounds = array<i64: 2>, scalar_prefetch = 0 : i64, scratch_operands = 0 : i64, tpu.core_type = #tpu.core_type<tc>, window_params = [{transform_indices = @transform_0, window_bounds = array<i64: 128, 3>}, {transform_indices = @transform_1, window_bounds = array<i64: 128, 128>}, {pipeline_mode = #tpu.pipeline_mode<synchronous>, transform_indices = @transform_2, window_bounds = array<i64: 3, 128>}, {pipeline_mode = #tpu.pipeline_mode<synchronous>, transform_indices = @transform_3, window_bounds = array<i64: 128, 128>}, {pipeline_mode = #tpu.pipeline_mode<synchronous>, transform_indices = @transform_4, window_bounds = array<i64: 128, 128>}, {transform_indices = @transform_5, window_bounds = array<i64: 16, 256>}]} {
    %c0 = arith.constant 0 : index
    %c0_0 = arith.constant 0 : index
    %0 = vector.load %arg1[%c0, %c0_0] : memref<128x3xf32, #tpu.memory_space<vmem>>, vector<128x3xf32>
    %c0_1 = arith.constant 0 : index
    %c0_2 = arith.constant 0 : index
    %1 = vector.load %arg2[%c0_1, %c0_2] : memref<128x128xbf16, #tpu.memory_space<vmem>>, vector<128x128xbf16>
    %2 = arith.extf %1 : vector<128x128xbf16> to vector<128x128xf32>
    %3 = vector.extract_strided_slice %0 {offsets = [0, 0], sizes = [128, 1], strides = [1, 1]} : vector<128x3xf32> to vector<128x1xf32>
    %c0_3 = arith.constant 0 : index
    %c0_4 = arith.constant 0 : index
    %4 = vector.load %arg3[%c0_3, %c0_4] : memref<3x128xf32, #tpu.memory_space<vmem>>, vector<1x128xf32>
    %5 = vector.broadcast %3 : vector<128x1xf32> to vector<128x128xf32>
    %6 = vector.broadcast %4 : vector<1x128xf32> to vector<128x128xf32>
    %7 = arith.mulf %5, %6 : vector<128x128xf32>
    %8 = arith.addf %2, %7 : vector<128x128xf32>
    %9 = vector.extract_strided_slice %0 {offsets = [0, 1], sizes = [128, 1], strides = [1, 1]} : vector<128x3xf32> to vector<128x1xf32>
    %c1 = arith.constant 1 : index
    %c0_5 = arith.constant 0 : index
    %10 = vector.load %arg3[%c1, %c0_5] : memref<3x128xf32, #tpu.memory_space<vmem>>, vector<1x128xf32>
    %11 = vector.broadcast %9 : vector<128x1xf32> to vector<128x128xf32>
    %12 = vector.broadcast %10 : vector<1x128xf32> to vector<128x128xf32>
    %13 = arith.mulf %11, %12 : vector<128x128xf32>
    %14 = arith.addf %8, %13 : vector<128x128xf32>
    %15 = vector.extract_strided_slice %0 {offsets = [0, 2], sizes = [128, 1], strides = [1, 1]} : vector<128x3xf32> to vector<128x1xf32>
    %c2 = arith.constant 2 : index
    %c0_6 = arith.constant 0 : index
    %16 = vector.load %arg3[%c2, %c0_6] : memref<3x128xf32, #tpu.memory_space<vmem>>, vector<1x128xf32>
    %17 = vector.broadcast %15 : vector<128x1xf32> to vector<128x128xf32>
    %18 = vector.broadcast %16 : vector<1x128xf32> to vector<128x128xf32>
    %19 = arith.mulf %17, %18 : vector<128x128xf32>
    %20 = arith.addf %14, %19 : vector<128x128xf32>
    %cst = arith.constant 0.000000e+00 : f32
    %21 = vector.broadcast %cst : f32 to vector<128x128xf32>
    %22 = arith.maximumf %20, %21 : vector<128x128xf32>
    %23 = arith.truncf %22 : vector<128x128xf32> to vector<128x128xbf16>
    %c0_7 = arith.constant 0 : index
    %c0_8 = arith.constant 0 : index
    %24 = vector.load %arg4[%c0_7, %c0_8] : memref<128x128xbf16, #tpu.memory_space<vmem>>, vector<128x128xbf16>
    %cst_9 = arith.constant dense<0.000000e+00> : vector<128x128xf32>
    %25 = tpu.matmul %23, %24, %cst_9 {dimension_numbers = #tpu.dot_dimension_numbers<[1], [0], [0], [1], [0, 0, 1, 1], [], []>} : vector<128x128xbf16>, vector<128x128xbf16>, vector<128x128xf32> -> vector<128x128xf32>
    %cst_10 = arith.constant 0.000000e+00 : f32
    %26 = vector.broadcast %cst_10 : f32 to vector<128x128xf32>
    %27 = arith.maximumf %25, %26 : vector<128x128xf32>
    %28 = arith.truncf %27 : vector<128x128xf32> to vector<128x128xbf16>
    %c0_11 = arith.constant 0 : index
    %c0_12 = arith.constant 0 : index
    %29 = vector.load %arg5[%c0_11, %c0_12] : memref<128x128xbf16, #tpu.memory_space<vmem>>, vector<128x128xbf16>
    %cst_13 = arith.constant dense<0.000000e+00> : vector<128x128xf32>
    %30 = tpu.matmul %28, %29, %cst_13 {dimension_numbers = #tpu.dot_dimension_numbers<[1], [0], [0], [1], [0, 0, 1, 1], [], []>} : vector<128x128xbf16>, vector<128x128xbf16>, vector<128x128xf32> -> vector<128x128xf32>
    %cst_14 = arith.constant 0.000000e+00 : f32
    %31 = vector.broadcast %cst_14 : f32 to vector<128x128xf32>
    %32 = arith.maximumf %30, %31 : vector<128x128xf32>
    %33 = vector.shape_cast %32 : vector<128x128xf32> to vector<16x8x128xf32>
    %cst_15 = arith.constant dense<0xFF800000> : vector<16x128xf32>
    %34 = vector.multi_reduction <maximumf>, %33, %cst_15 [1] : vector<16x8x128xf32> to vector<16x128xf32>
    %35 = arith.truncf %34 : vector<16x128xf32> to vector<16x128xbf16>
    %c0_16 = arith.constant 0 : index
    %c0_17 = arith.constant 0 : index
    %36 = vector.load %arg6[%c0_16, %c0_17] : memref<16x256xbf16, #tpu.memory_space<vmem>>, vector<16x128xbf16>
    tpu.vector_store %arg6[%c0_16, %c0_17], %35 {strides = array<i32>} : memref<16x256xbf16, #tpu.memory_space<vmem>>, vector<16x128xbf16>,
    %cst_18 = arith.constant dense<0.000000e+00> : vector<16x128xf32>
    %37 = vector.multi_reduction <add>, %33, %cst_18 [1] : vector<16x8x128xf32> to vector<16x128xf32>
    %cst_19 = arith.constant 1.250000e-01 : f32
    %38 = vector.broadcast %cst_19 : f32 to vector<16x128xf32>
    %39 = arith.mulf %37, %38 : vector<16x128xf32>
    %40 = arith.truncf %39 : vector<16x128xf32> to vector<16x128xbf16>
    %c0_20 = arith.constant 0 : index
    %c128 = arith.constant 128 : index
    %41 = vector.load %arg6[%c0_20, %c128] : memref<16x256xbf16, #tpu.memory_space<vmem>>, vector<16x128xbf16>
    tpu.vector_store %arg6[%c0_20, %c128], %40 {strides = array<i32>} : memref<16x256xbf16, #tpu.memory_space<vmem>>, vector<16x128xbf16>,
    return
  }
  func.func @transform_0(%arg0: i32) -> (i32, i32) {
    %c0_i32 = arith.constant 0 : i32
    %c0_i32_0 = arith.constant 0 : i32
    return %arg0, %c0_i32 : i32, i32
  }
  func.func @transform_1(%arg0: i32) -> (i32, i32) {
    %c0_i32 = arith.constant 0 : i32
    %c0_i32_0 = arith.constant 0 : i32
    return %arg0, %c0_i32 : i32, i32
  }
  func.func @transform_2(%arg0: i32) -> (i32, i32) {
    %c0_i32 = arith.constant 0 : i32
    %c0_i32_0 = arith.constant 0 : i32
    %c0_i32_1 = arith.constant 0 : i32
    return %c0_i32, %c0_i32_0 : i32, i32
  }
  func.func @transform_3(%arg0: i32) -> (i32, i32) {
    %c0_i32 = arith.constant 0 : i32
    %c0_i32_0 = arith.constant 0 : i32
    %c0_i32_1 = arith.constant 0 : i32
    return %c0_i32, %c0_i32_0 : i32, i32
  }
  func.func @transform_4(%arg0: i32) -> (i32, i32) {
    %c0_i32 = arith.constant 0 : i32
    %c0_i32_0 = arith.constant 0 : i32
    %c0_i32_1 = arith.constant 0 : i32
    return %c0_i32, %c0_i32_0 : i32, i32
  }
  func.func @transform_5(%arg0: i32) -> (i32, i32) {
    %c0_i32 = arith.constant 0 : i32
    %c0_i32_0 = arith.constant 0 : i32
    return %arg0, %c0_i32 : i32, i32
  }
}

module attributes {stable_mosaic.version = 11 : i64} {
  func.func @kernel(%arg0: i32, %arg1: memref<16x256xbf16, #tpu.memory_space<vmem>>, %arg2: memref<256x128xbf16, #tpu.memory_space<vmem>>, %arg3: memref<16x128xbf16, #tpu.memory_space<vmem>>) attributes {dimension_semantics = [#tpu.dimension_semantics<parallel>], iteration_bounds = array<i64: 2>, scalar_prefetch = 0 : i64, scratch_operands = 0 : i64, tpu.core_type = #tpu.core_type<tc>, window_params = [{transform_indices = @transform_0, window_bounds = array<i64: 16, 256>}, {pipeline_mode = #tpu.pipeline_mode<synchronous>, transform_indices = @transform_1, window_bounds = array<i64: 256, 128>}, {transform_indices = @transform_2, window_bounds = array<i64: 16, 128>}]} {
    %c0 = arith.constant 0 : index
    %c0_0 = arith.constant 0 : index
    %0 = vector.load %arg1[%c0, %c0_0] : memref<16x256xbf16, #tpu.memory_space<vmem>>, vector<16x256xbf16>
    %c0_1 = arith.constant 0 : index
    %c0_2 = arith.constant 0 : index
    %1 = vector.load %arg2[%c0_1, %c0_2] : memref<256x128xbf16, #tpu.memory_space<vmem>>, vector<256x128xbf16>
    %cst = arith.constant dense<0.000000e+00> : vector<16x128xf32>
    %2 = tpu.matmul %0, %1, %cst {dimension_numbers = #tpu.dot_dimension_numbers<[1], [0], [0], [1], [0, 0, 1, 1], [], []>} : vector<16x256xbf16>, vector<256x128xbf16>, vector<16x128xf32> -> vector<16x128xf32>
    %3 = arith.truncf %2 : vector<16x128xf32> to vector<16x128xbf16>
    %c0_3 = arith.constant 0 : index
    %c0_4 = arith.constant 0 : index
    %4 = vector.load %arg3[%c0_3, %c0_4] : memref<16x128xbf16, #tpu.memory_space<vmem>>, vector<16x128xbf16>
    tpu.vector_store %arg3[%c0_3, %c0_4], %3 {strides = array<i32>} : memref<16x128xbf16, #tpu.memory_space<vmem>>, vector<16x128xbf16>,
    return
  }
  func.func @transform_0(%arg0: i32) -> (i32, i32) {
    %c0_i32 = arith.constant 0 : i32
    %c0_i32_0 = arith.constant 0 : i32
    return %arg0, %c0_i32 : i32, i32
  }
  func.func @transform_1(%arg0: i32) -> (i32, i32) {
    %c0_i32 = arith.constant 0 : i32
    %c0_i32_0 = arith.constant 0 : i32
    %c0_i32_1 = arith.constant 0 : i32
    return %c0_i32, %c0_i32_0 : i32, i32
  }
  func.func @transform_2(%arg0: i32) -> (i32, i32) {
    %c0_i32 = arith.constant 0 : i32
    %c0_i32_0 = arith.constant 0 : i32
    return %arg0, %c0_i32 : i32, i32
  }
}

module attributes {stable_mosaic.version = 11 : i64} {
  func.func @_sa_xyzfeat_kernel(%arg0: i32, %arg1: memref<128x3xf32, #tpu.memory_space<vmem>>, %arg2: memref<128x128xbf16, #tpu.memory_space<vmem>>, %arg3: memref<3x128xf32, #tpu.memory_space<vmem>>, %arg4: memref<128x128xbf16, #tpu.memory_space<vmem>>, %arg5: memref<128x128xbf16, #tpu.memory_space<vmem>>, %arg6: memref<16x256xbf16, #tpu.memory_space<vmem>>) attributes {dimension_semantics = [#tpu.dimension_semantics<parallel>], iteration_bounds = array<i64: 1>, scalar_prefetch = 0 : i64, scratch_operands = 0 : i64, tpu.core_type = #tpu.core_type<tc>, window_params = [{transform_indices = @transform_0, window_bounds = array<i64: 128, 3>}, {transform_indices = @transform_1, window_bounds = array<i64: 128, 128>}, {pipeline_mode = #tpu.pipeline_mode<synchronous>, transform_indices = @transform_2, window_bounds = array<i64: 3, 128>}, {pipeline_mode = #tpu.pipeline_mode<synchronous>, transform_indices = @transform_3, window_bounds = array<i64: 128, 128>}, {pipeline_mode = #tpu.pipeline_mode<synchronous>, transform_indices = @transform_4, window_bounds = array<i64: 128, 128>}, {transform_indices = @transform_5, window_bounds = array<i64: 16, 256>}]} {
    %c0 = arith.constant 0 : index
    %c0_0 = arith.constant 0 : index
    %0 = vector.load %arg1[%c0, %c0_0] : memref<128x3xf32, #tpu.memory_space<vmem>>, vector<128x3xf32>
    %c0_1 = arith.constant 0 : index
    %c0_2 = arith.constant 0 : index
    %1 = vector.load %arg2[%c0_1, %c0_2] : memref<128x128xbf16, #tpu.memory_space<vmem>>, vector<128x128xbf16>
    %2 = arith.extf %1 : vector<128x128xbf16> to vector<128x128xf32>
    %3 = vector.extract_strided_slice %0 {offsets = [0, 0], sizes = [128, 1], strides = [1, 1]} : vector<128x3xf32> to vector<128x1xf32>
    %c0_3 = arith.constant 0 : index
    %c0_4 = arith.constant 0 : index
    %4 = vector.load %arg3[%c0_3, %c0_4] : memref<3x128xf32, #tpu.memory_space<vmem>>, vector<1x128xf32>
    %5 = vector.broadcast %3 : vector<128x1xf32> to vector<128x128xf32>
    %6 = vector.broadcast %4 : vector<1x128xf32> to vector<128x128xf32>
    %7 = arith.mulf %5, %6 : vector<128x128xf32>
    %8 = arith.addf %2, %7 : vector<128x128xf32>
    %9 = vector.extract_strided_slice %0 {offsets = [0, 1], sizes = [128, 1], strides = [1, 1]} : vector<128x3xf32> to vector<128x1xf32>
    %c1 = arith.constant 1 : index
    %c0_5 = arith.constant 0 : index
    %10 = vector.load %arg3[%c1, %c0_5] : memref<3x128xf32, #tpu.memory_space<vmem>>, vector<1x128xf32>
    %11 = vector.broadcast %9 : vector<128x1xf32> to vector<128x128xf32>
    %12 = vector.broadcast %10 : vector<1x128xf32> to vector<128x128xf32>
    %13 = arith.mulf %11, %12 : vector<128x128xf32>
    %14 = arith.addf %8, %13 : vector<128x128xf32>
    %15 = vector.extract_strided_slice %0 {offsets = [0, 2], sizes = [128, 1], strides = [1, 1]} : vector<128x3xf32> to vector<128x1xf32>
    %c2 = arith.constant 2 : index
    %c0_6 = arith.constant 0 : index
    %16 = vector.load %arg3[%c2, %c0_6] : memref<3x128xf32, #tpu.memory_space<vmem>>, vector<1x128xf32>
    %17 = vector.broadcast %15 : vector<128x1xf32> to vector<128x128xf32>
    %18 = vector.broadcast %16 : vector<1x128xf32> to vector<128x128xf32>
    %19 = arith.mulf %17, %18 : vector<128x128xf32>
    %20 = arith.addf %14, %19 : vector<128x128xf32>
    %cst = arith.constant 0.000000e+00 : f32
    %21 = vector.broadcast %cst : f32 to vector<128x128xf32>
    %22 = arith.maximumf %20, %21 : vector<128x128xf32>
    %23 = arith.truncf %22 : vector<128x128xf32> to vector<128x128xbf16>
    %c0_7 = arith.constant 0 : index
    %c0_8 = arith.constant 0 : index
    %24 = vector.load %arg4[%c0_7, %c0_8] : memref<128x128xbf16, #tpu.memory_space<vmem>>, vector<128x128xbf16>
    %cst_9 = arith.constant dense<0.000000e+00> : vector<128x128xf32>
    %25 = tpu.matmul %23, %24, %cst_9 {dimension_numbers = #tpu.dot_dimension_numbers<[1], [0], [0], [1], [0, 0, 1, 1], [], []>} : vector<128x128xbf16>, vector<128x128xbf16>, vector<128x128xf32> -> vector<128x128xf32>
    %cst_10 = arith.constant 0.000000e+00 : f32
    %26 = vector.broadcast %cst_10 : f32 to vector<128x128xf32>
    %27 = arith.maximumf %25, %26 : vector<128x128xf32>
    %28 = arith.truncf %27 : vector<128x128xf32> to vector<128x128xbf16>
    %c0_11 = arith.constant 0 : index
    %c0_12 = arith.constant 0 : index
    %29 = vector.load %arg5[%c0_11, %c0_12] : memref<128x128xbf16, #tpu.memory_space<vmem>>, vector<128x128xbf16>
    %cst_13 = arith.constant dense<0.000000e+00> : vector<128x128xf32>
    %30 = tpu.matmul %28, %29, %cst_13 {dimension_numbers = #tpu.dot_dimension_numbers<[1], [0], [0], [1], [0, 0, 1, 1], [], []>} : vector<128x128xbf16>, vector<128x128xbf16>, vector<128x128xf32> -> vector<128x128xf32>
    %cst_14 = arith.constant 0.000000e+00 : f32
    %31 = vector.broadcast %cst_14 : f32 to vector<128x128xf32>
    %32 = arith.maximumf %30, %31 : vector<128x128xf32>
    %33 = vector.shape_cast %32 : vector<128x128xf32> to vector<16x8x128xf32>
    %cst_15 = arith.constant dense<0xFF800000> : vector<16x128xf32>
    %34 = vector.multi_reduction <maximumf>, %33, %cst_15 [1] : vector<16x8x128xf32> to vector<16x128xf32>
    %35 = arith.truncf %34 : vector<16x128xf32> to vector<16x128xbf16>
    %c0_16 = arith.constant 0 : index
    %c0_17 = arith.constant 0 : index
    %36 = vector.load %arg6[%c0_16, %c0_17] : memref<16x256xbf16, #tpu.memory_space<vmem>>, vector<16x128xbf16>
    tpu.vector_store %arg6[%c0_16, %c0_17], %35 {strides = array<i32>} : memref<16x256xbf16, #tpu.memory_space<vmem>>, vector<16x128xbf16>,
    %cst_18 = arith.constant dense<0.000000e+00> : vector<16x128xf32>
    %37 = vector.multi_reduction <add>, %33, %cst_18 [1] : vector<16x8x128xf32> to vector<16x128xf32>
    %cst_19 = arith.constant 1.250000e-01 : f32
    %38 = vector.broadcast %cst_19 : f32 to vector<16x128xf32>
    %39 = arith.mulf %37, %38 : vector<16x128xf32>
    %40 = arith.truncf %39 : vector<16x128xf32> to vector<16x128xbf16>
    %c0_20 = arith.constant 0 : index
    %c128 = arith.constant 128 : index
    %41 = vector.load %arg6[%c0_20, %c128] : memref<16x256xbf16, #tpu.memory_space<vmem>>, vector<16x128xbf16>
    tpu.vector_store %arg6[%c0_20, %c128], %40 {strides = array<i32>} : memref<16x256xbf16, #tpu.memory_space<vmem>>, vector<16x128xbf16>,
    return
  }
  func.func @transform_0(%arg0: i32) -> (i32, i32) {
    %c0_i32 = arith.constant 0 : i32
    %c0_i32_0 = arith.constant 0 : i32
    return %arg0, %c0_i32 : i32, i32
  }
  func.func @transform_1(%arg0: i32) -> (i32, i32) {
    %c0_i32 = arith.constant 0 : i32
    %c0_i32_0 = arith.constant 0 : i32
    return %arg0, %c0_i32 : i32, i32
  }
  func.func @transform_2(%arg0: i32) -> (i32, i32) {
    %c0_i32 = arith.constant 0 : i32
    %c0_i32_0 = arith.constant 0 : i32
    %c0_i32_1 = arith.constant 0 : i32
    return %c0_i32, %c0_i32_0 : i32, i32
  }
  func.func @transform_3(%arg0: i32) -> (i32, i32) {
    %c0_i32 = arith.constant 0 : i32
    %c0_i32_0 = arith.constant 0 : i32
    %c0_i32_1 = arith.constant 0 : i32
    return %c0_i32, %c0_i32_0 : i32, i32
  }
  func.func @transform_4(%arg0: i32) -> (i32, i32) {
    %c0_i32 = arith.constant 0 : i32
    %c0_i32_0 = arith.constant 0 : i32
    %c0_i32_1 = arith.constant 0 : i32
    return %c0_i32, %c0_i32_0 : i32, i32
  }
  func.func @transform_5(%arg0: i32) -> (i32, i32) {
    %c0_i32 = arith.constant 0 : i32
    %c0_i32_0 = arith.constant 0 : i32
    return %arg0, %c0_i32 : i32, i32
  }
}

module attributes {stable_mosaic.version = 11 : i64} {
  func.func @kernel(%arg0: i32, %arg1: memref<16x256xbf16, #tpu.memory_space<vmem>>, %arg2: memref<256x128xbf16, #tpu.memory_space<vmem>>, %arg3: memref<16x128xbf16, #tpu.memory_space<vmem>>) attributes {dimension_semantics = [#tpu.dimension_semantics<parallel>], iteration_bounds = array<i64: 1>, scalar_prefetch = 0 : i64, scratch_operands = 0 : i64, tpu.core_type = #tpu.core_type<tc>, window_params = [{transform_indices = @transform_0, window_bounds = array<i64: 16, 256>}, {pipeline_mode = #tpu.pipeline_mode<synchronous>, transform_indices = @transform_1, window_bounds = array<i64: 256, 128>}, {transform_indices = @transform_2, window_bounds = array<i64: 16, 128>}]} {
    %c0 = arith.constant 0 : index
    %c0_0 = arith.constant 0 : index
    %0 = vector.load %arg1[%c0, %c0_0] : memref<16x256xbf16, #tpu.memory_space<vmem>>, vector<16x256xbf16>
    %c0_1 = arith.constant 0 : index
    %c0_2 = arith.constant 0 : index
    %1 = vector.load %arg2[%c0_1, %c0_2] : memref<256x128xbf16, #tpu.memory_space<vmem>>, vector<256x128xbf16>
    %cst = arith.constant dense<0.000000e+00> : vector<16x128xf32>
    %2 = tpu.matmul %0, %1, %cst {dimension_numbers = #tpu.dot_dimension_numbers<[1], [0], [0], [1], [0, 0, 1, 1], [], []>} : vector<16x256xbf16>, vector<256x128xbf16>, vector<16x128xf32> -> vector<16x128xf32>
    %3 = arith.truncf %2 : vector<16x128xf32> to vector<16x128xbf16>
    %c0_3 = arith.constant 0 : index
    %c0_4 = arith.constant 0 : index
    %4 = vector.load %arg3[%c0_3, %c0_4] : memref<16x128xbf16, #tpu.memory_space<vmem>>, vector<16x128xbf16>
    tpu.vector_store %arg3[%c0_3, %c0_4], %3 {strides = array<i32>} : memref<16x128xbf16, #tpu.memory_space<vmem>>, vector<16x128xbf16>,
    return
  }
  func.func @transform_0(%arg0: i32) -> (i32, i32) {
    %c0_i32 = arith.constant 0 : i32
    %c0_i32_0 = arith.constant 0 : i32
    return %arg0, %c0_i32 : i32, i32
  }
  func.func @transform_1(%arg0: i32) -> (i32, i32) {
    %c0_i32 = arith.constant 0 : i32
    %c0_i32_0 = arith.constant 0 : i32
    %c0_i32_1 = arith.constant 0 : i32
    return %c0_i32, %c0_i32_0 : i32, i32
  }
  func.func @transform_2(%arg0: i32) -> (i32, i32) {
    %c0_i32 = arith.constant 0 : i32
    %c0_i32_0 = arith.constant 0 : i32
    return %arg0, %c0_i32 : i32, i32
  }
}

module attributes {stable_mosaic.version = 11 : i64} {
  func.func @kernel(%arg0: i32, %arg1: memref<16x512xbf16, #tpu.memory_space<vmem>>, %arg2: memref<512x256xbf16, #tpu.memory_space<vmem>>, %arg3: memref<256x256xbf16, #tpu.memory_space<vmem>>, %arg4: memref<16x256xf32, #tpu.memory_space<vmem>>) attributes {dimension_semantics = [#tpu.dimension_semantics<parallel>], iteration_bounds = array<i64: 1>, scalar_prefetch = 0 : i64, scratch_operands = 0 : i64, tpu.core_type = #tpu.core_type<tc>, window_params = [{transform_indices = @transform_0, window_bounds = array<i64: 16, 512>}, {pipeline_mode = #tpu.pipeline_mode<synchronous>, transform_indices = @transform_1, window_bounds = array<i64: 512, 256>}, {pipeline_mode = #tpu.pipeline_mode<synchronous>, transform_indices = @transform_2, window_bounds = array<i64: 256, 256>}, {transform_indices = @transform_3, window_bounds = array<i64: 16, 256>}]} {
    %c0 = arith.constant 0 : index
    %c0_0 = arith.constant 0 : index
    %0 = vector.load %arg1[%c0, %c0_0] : memref<16x512xbf16, #tpu.memory_space<vmem>>, vector<16x512xbf16>
    %c0_1 = arith.constant 0 : index
    %c0_2 = arith.constant 0 : index
    %1 = vector.load %arg2[%c0_1, %c0_2] : memref<512x256xbf16, #tpu.memory_space<vmem>>, vector<512x256xbf16>
    %cst = arith.constant dense<0.000000e+00> : vector<16x256xf32>
    %2 = tpu.matmul %0, %1, %cst {dimension_numbers = #tpu.dot_dimension_numbers<[1], [0], [0], [1], [0, 0, 1, 1], [], []>} : vector<16x512xbf16>, vector<512x256xbf16>, vector<16x256xf32> -> vector<16x256xf32>
    %cst_3 = arith.constant 0.000000e+00 : f32
    %3 = vector.broadcast %cst_3 : f32 to vector<16x256xf32>
    %4 = arith.maximumf %2, %3 : vector<16x256xf32>
    %5 = arith.truncf %4 : vector<16x256xf32> to vector<16x256xbf16>
    %c0_4 = arith.constant 0 : index
    %c0_5 = arith.constant 0 : index
    %6 = vector.load %arg3[%c0_4, %c0_5] : memref<256x256xbf16, #tpu.memory_space<vmem>>, vector<256x256xbf16>
    %cst_6 = arith.constant dense<0.000000e+00> : vector<16x256xf32>
    %7 = tpu.matmul %5, %6, %cst_6 {dimension_numbers = #tpu.dot_dimension_numbers<[1], [0], [0], [1], [0, 0, 1, 1], [], []>} : vector<16x256xbf16>, vector<256x256xbf16>, vector<16x256xf32> -> vector<16x256xf32>
    %cst_7 = arith.constant 0.000000e+00 : f32
    %8 = vector.broadcast %cst_7 : f32 to vector<16x256xf32>
    %9 = arith.maximumf %7, %8 : vector<16x256xf32>
    %c0_8 = arith.constant 0 : index
    %c0_9 = arith.constant 0 : index
    %10 = vector.load %arg4[%c0_8, %c0_9] : memref<16x256xf32, #tpu.memory_space<vmem>>, vector<16x256xf32>
    tpu.vector_store %arg4[%c0_8, %c0_9], %9 {strides = array<i32>} : memref<16x256xf32, #tpu.memory_space<vmem>>, vector<16x256xf32>,
    return
  }
  func.func @transform_0(%arg0: i32) -> (i32, i32) {
    %c0_i32 = arith.constant 0 : i32
    %c0_i32_0 = arith.constant 0 : i32
    return %arg0, %c0_i32 : i32, i32
  }
  func.func @transform_1(%arg0: i32) -> (i32, i32) {
    %c0_i32 = arith.constant 0 : i32
    %c0_i32_0 = arith.constant 0 : i32
    %c0_i32_1 = arith.constant 0 : i32
    return %c0_i32, %c0_i32_0 : i32, i32
  }
  func.func @transform_2(%arg0: i32) -> (i32, i32) {
    %c0_i32 = arith.constant 0 : i32
    %c0_i32_0 = arith.constant 0 : i32
    %c0_i32_1 = arith.constant 0 : i32
    return %c0_i32, %c0_i32_0 : i32, i32
  }
  func.func @transform_3(%arg0: i32) -> (i32, i32) {
    %c0_i32 = arith.constant 0 : i32
    %c0_i32_0 = arith.constant 0 : i32
    return %arg0, %c0_i32 : i32, i32
  }
}

module attributes {stable_mosaic.version = 11 : i64} {
  func.func @kernel(%arg0: i32, %arg1: memref<16x512xbf16, #tpu.memory_space<vmem>>, %arg2: memref<512x256xbf16, #tpu.memory_space<vmem>>, %arg3: memref<256x256xbf16, #tpu.memory_space<vmem>>, %arg4: memref<16x256xf32, #tpu.memory_space<vmem>>) attributes {dimension_semantics = [#tpu.dimension_semantics<parallel>], iteration_bounds = array<i64: 2>, scalar_prefetch = 0 : i64, scratch_operands = 0 : i64, tpu.core_type = #tpu.core_type<tc>, window_params = [{transform_indices = @transform_0, window_bounds = array<i64: 16, 512>}, {pipeline_mode = #tpu.pipeline_mode<synchronous>, transform_indices = @transform_1, window_bounds = array<i64: 512, 256>}, {pipeline_mode = #tpu.pipeline_mode<synchronous>, transform_indices = @transform_2, window_bounds = array<i64: 256, 256>}, {transform_indices = @transform_3, window_bounds = array<i64: 16, 256>}]} {
    %c0 = arith.constant 0 : index
    %c0_0 = arith.constant 0 : index
    %0 = vector.load %arg1[%c0, %c0_0] : memref<16x512xbf16, #tpu.memory_space<vmem>>, vector<16x512xbf16>
    %c0_1 = arith.constant 0 : index
    %c0_2 = arith.constant 0 : index
    %1 = vector.load %arg2[%c0_1, %c0_2] : memref<512x256xbf16, #tpu.memory_space<vmem>>, vector<512x256xbf16>
    %cst = arith.constant dense<0.000000e+00> : vector<16x256xf32>
    %2 = tpu.matmul %0, %1, %cst {dimension_numbers = #tpu.dot_dimension_numbers<[1], [0], [0], [1], [0, 0, 1, 1], [], []>} : vector<16x512xbf16>, vector<512x256xbf16>, vector<16x256xf32> -> vector<16x256xf32>
    %cst_3 = arith.constant 0.000000e+00 : f32
    %3 = vector.broadcast %cst_3 : f32 to vector<16x256xf32>
    %4 = arith.maximumf %2, %3 : vector<16x256xf32>
    %5 = arith.truncf %4 : vector<16x256xf32> to vector<16x256xbf16>
    %c0_4 = arith.constant 0 : index
    %c0_5 = arith.constant 0 : index
    %6 = vector.load %arg3[%c0_4, %c0_5] : memref<256x256xbf16, #tpu.memory_space<vmem>>, vector<256x256xbf16>
    %cst_6 = arith.constant dense<0.000000e+00> : vector<16x256xf32>
    %7 = tpu.matmul %5, %6, %cst_6 {dimension_numbers = #tpu.dot_dimension_numbers<[1], [0], [0], [1], [0, 0, 1, 1], [], []>} : vector<16x256xbf16>, vector<256x256xbf16>, vector<16x256xf32> -> vector<16x256xf32>
    %cst_7 = arith.constant 0.000000e+00 : f32
    %8 = vector.broadcast %cst_7 : f32 to vector<16x256xf32>
    %9 = arith.maximumf %7, %8 : vector<16x256xf32>
    %c0_8 = arith.constant 0 : index
    %c0_9 = arith.constant 0 : index
    %10 = vector.load %arg4[%c0_8, %c0_9] : memref<16x256xf32, #tpu.memory_space<vmem>>, vector<16x256xf32>
    tpu.vector_store %arg4[%c0_8, %c0_9], %9 {strides = array<i32>} : memref<16x256xf32, #tpu.memory_space<vmem>>, vector<16x256xf32>,
    return
  }
  func.func @transform_0(%arg0: i32) -> (i32, i32) {
    %c0_i32 = arith.constant 0 : i32
    %c0_i32_0 = arith.constant 0 : i32
    return %arg0, %c0_i32 : i32, i32
  }
  func.func @transform_1(%arg0: i32) -> (i32, i32) {
    %c0_i32 = arith.constant 0 : i32
    %c0_i32_0 = arith.constant 0 : i32
    %c0_i32_1 = arith.constant 0 : i32
    return %c0_i32, %c0_i32_0 : i32, i32
  }
  func.func @transform_2(%arg0: i32) -> (i32, i32) {
    %c0_i32 = arith.constant 0 : i32
    %c0_i32_0 = arith.constant 0 : i32
    %c0_i32_1 = arith.constant 0 : i32
    return %c0_i32, %c0_i32_0 : i32, i32
  }
  func.func @transform_3(%arg0: i32) -> (i32, i32) {
    %c0_i32 = arith.constant 0 : i32
    %c0_i32_0 = arith.constant 0 : i32
    return %arg0, %c0_i32 : i32, i32
  }
}

</mosaic_0001>

<bundles_post_ra>
// kernel: custom-call.34
= control target key start
LH: loop header
LB: loop body
LE: loop exit
PB: predicated region body
PF: predicated region fallthrough
CT: control target
= control target key end

     0   :  { %s6_s0 = inlined_call_operand.vmem [shape: f32[2,64], index: 0, kind: output, shape index: {}]  }

// kernel: custom-call.35
= control target key start
LH: loop header
LB: loop body
LE: loop exit
PB: predicated region body
PF: predicated region fallthrough
CT: control target
= control target key end

     0   :  { %s6_s0 = inlined_call_operand.vmem [shape: f32[2,32], index: 0, kind: output, shape index: {}]  }

// kernel: custom-call.36
= control target key start
LH: loop header
LB: loop body
LE: loop exit
PB: predicated region body
PF: predicated region fallthrough
CT: control target
= control target key end

     0   :  { %s6_s0 = inlined_call_operand.vmem [shape: f32[2,16], index: 0, kind: output, shape index: {}]  }

// kernel: backbone_forward.10
= control target key start
LH: loop header
LB: loop body
LE: loop exit
PB: predicated region body
PF: predicated region fallthrough
CT: control target
= control target key end

     0   :  { %s577_s9 = smov 0   ;;  %s646_s0 = inlined_call_operand.vmem [shape: bf16[64,256], index: 0, kind: input, shape index: {}]   ;;  %s647_s1 = inlined_call_operand.vmem [shape: bf16[256,128], index: 1, kind: input, shape index: {}]   ;;  %s648_s2 = inlined_call_operand.vmem [shape: bf16[64,128], index: 2, kind: output, shape index: {}]  }
   0x1 LB: > { %s428_s10 = sadd.s32 4294967295, %s560_s9   ;;  %p432_p0 = scmp.ge.s32.totalorder %s560_s9, 1  ;;  %s560_s9 = sphi %s577_s9, %s12_s9  }
   0x2   : > { %p114_p1 = scmp.lt.s32.totalorder %s560_s9, 3 }
   0x4   : > { %p115_p2 = pnand %p432_p0, %p114_p1 }
   0x5   : > { %v532_v0 = vld [vmem:[%s647_s1 + $0x40] sm:$0xff] (!%p115_p2)   ;;  %s433_s13 = sshll.u32 (!%p115_p2), %s428_s10, 2  ;;  %v534_v2 = vld [vmem:[%s647_s1 + $0x48] sm:$0xff] (!%p115_p2)   ;;  %v536_v4 = vld [vmem:[%s647_s1 + $0x50] sm:$0xff] (!%p115_p2)  }
   0x6   : > { %118 = sbr.rel (%p115_p2) target bundleno = 258 (0x102), region = 28  ;;  %v533_v1 = vld [vmem:[%s647_s1] sm:$0xff] (!%p115_p2)   ;;  %480 = vmatprep.subr.bf16.mxu0 (!%p115_p2), %v532_v0  ;;  %508 = vmatprep.subr.bf16.mxu1 (!%p115_p2), %v532_v0  ;;  %v535_v3 = vld [vmem:[%s647_s1 + $0x8] sm:$0xff] (!%p115_p2)   ;;  %p138_p3 = scmp.lt.s32.totalorder (!%p115_p2), %s433_s13, 7  ;;  %v537_v5 = vld [vmem:[%s647_s1 + $0x10] sm:$0xff] (!%p115_p2)  }
   0x7   : > { %481 = vmatpush3.bf16.msra.mxu0 (!%p115_p2), %v533_v1  ;;  %516 = vmatpush3.bf16.msra.mxu1 (!%p115_p2), %v533_v1  ;;  %v538_v6 = vld [vmem:[%s647_s1 + $0x58] sm:$0xff] (!%p115_p2)   ;;  %v540_v8 = vld [vmem:[%s647_s1 + $0x60] sm:$0xff] (!%p115_p2)   ;;  %v542_v10 = vld [vmem:[%s647_s1 + $0x68] sm:$0xff] (!%p115_p2)  }
   0x8   : > { %482 = vmatprep.subr.bf16.mxu0 (!%p115_p2), %v534_v2  ;;  %509 = vmatprep.subr.bf16.mxu1 (!%p115_p2), %v534_v2  ;;  %v539_v7 = vld [vmem:[%s647_s1 + $0x18] sm:$0xff] (!%p115_p2)   ;;  %v541_v9 = vld [vmem:[%s647_s1 + $0x20] sm:$0xff] (!%p115_p2)   ;;  %v543_v13 = vld [vmem:[%s647_s1 + $0x28] sm:$0xff] (!%p115_p2)  }
   0x9   : > { %v544_v14 = vld [vmem:[%s647_s1 + $0x70] sm:$0xff] (!%p115_p2)   ;;  %v546_v16 = vld [vmem:[%s647_s1 + $0x78] sm:$0xff] (!%p115_p2)  }
   0xa   : > { %v545_v15 = vld [vmem:[%s647_s1 + $0x30] sm:$0xff] (!%p115_p2)   ;;  %v547_v17 = vld [vmem:[%s647_s1 + $0x38] sm:$0xff] (!%p115_p2)  }
   0xb   : > { %483 = vmatpush3.bf16.msra.mxu0 (!%p115_p2), %v535_v3  ;;  %517 = vmatpush3.bf16.msra.mxu1 (!%p115_p2), %v535_v3 }
   0xc   : > { %484 = vmatprep.subr.bf16.mxu0 (!%p115_p2), %v536_v4  ;;  %510 = vmatprep.subr.bf16.mxu1 (!%p115_p2), %v536_v4 }
   0xd   : > { %s650_s13 = smov (!%p138_p3, %s433_s13), 7 }
   0xe   : > { %s464_s28 = sshll.u32 %s650_s13, 3  ;;  %s437_s22 = sshll.u32 %s650_s13, 2 }
   0xf   : > { %485 = vmatpush3.bf16.msra.mxu0 %v537_v5  ;;  %518 = vmatpush3.bf16.msra.mxu1 %v537_v5  ;;  %s142_s5 = scalar_lea.vmem %s646_s0, %s464_s28  ;;  %s148_s25 = scalar_lea.vmem %s648_s2, %s437_s22 }
  0x10   : > { %486 = vmatprep.subr.bf16.mxu0 %v538_v6  ;;  %511 = vmatprep.subr.bf16.mxu1 %v538_v6  ;;  %v550_v11 = vld [vmem:[%s142_s5 + $0x4] ss:$8 sps:$4 sm:$0xff]   ;;  %v553_v12 = vld [vmem:[%s142_s5 + $0x14] ss:$8 sps:$4 sm:$0xff]   ;;  %v548_v18 = vld [vmem:[%s142_s5] ss:$8 sps:$4 sm:$0xff]  }
  0x11   : > { %335 = vmatprep.mubr.bf16.mxu0 %v550_v11  ;;  %343 = vmatprep.mubr.bf16.mxu1 %v553_v12  ;;  %v551_v19 = vld [vmem:[%s142_s5 + $0x10] ss:$8 sps:$4 sm:$0xff]  }
  0x13   : > { %487 = vmatpush3.bf16.msra.mxu0 %v539_v7  ;;  %519 = vmatpush3.bf16.msra.mxu1 %v539_v7 }
  0x14   : > { %488 = vmatprep.subr.bf16.mxu0 %v540_v8  ;;  %512 = vmatprep.subr.bf16.mxu1 %v540_v8 }
  0x17   : > { %489 = vmatpush3.bf16.msra.mxu0 %v541_v9  ;;  %520 = vmatpush3.bf16.msra.mxu1 %v541_v9 }
  0x18   : > { %490 = vmatprep.subr.bf16.mxu0 %v542_v10  ;;  %513 = vmatprep.subr.bf16.mxu1 %v542_v10 }
  0x1b   : > { %491 = vmatpush3.bf16.msra.mxu0 %v543_v13  ;;  %521 = vmatpush3.bf16.msra.mxu1 %v543_v13 }
  0x1c   : > { %492 = vmatprep.subr.bf16.mxu0 %v544_v14  ;;  %514 = vmatprep.subr.bf16.mxu1 %v544_v14 }
  0x1f   : > { %493 = vmatpush3.bf16.msra.mxu0 %v545_v15  ;;  %522 = vmatpush3.bf16.msra.mxu1 %v545_v15 }
  0x20   : > { %494 = vmatprep.subr.bf16.mxu0 %v546_v16  ;;  %515 = vmatprep.subr.bf16.mxu1 %v546_v16 }
  0x23   : > { %495 = vmatpush3.bf16.msra.mxu0 %v547_v17  ;;  %523 = vmatpush3.bf16.msra.mxu1 %v547_v17 }
  0x26   : > { %336 = vmatmul.mubr.bf16.vlgmr.msra.gmra.mrb[0].mxu0 %v548_v18  ;;  %344 = vmatmul.mubr.bf16.vlgmr.msra.gmra.mrb[0].mxu1 %v551_v19 }
  0xf9   : > { %v496_v20 = vpop.f32.mrb[0].mxu0  ;;  %v502_v21 = vpop.f32.mrb[0].mxu1 }
  0xfa   : > { %v497_v22 = vpop.f32.mrb[1].mxu0  ;;  %v503_v23 = vpop.f32.mrb[1].mxu1 }
  0xfb   : > { %v498_v24 = vadd.f32 %v497_v22, %v496_v20  ;;  %v504_v25 = vadd.f32 %v503_v23, %v502_v21  ;;  %v499_v26 = vpop.f32.mrb[2].mxu0  ;;  %v505_v27 = vpop.f32.mrb[2].mxu1 }
  0xfc   : > { %v500_v28 = vpop.f32.mrb[3].mxu0  ;;  %v506_v29 = vpop.f32.mrb[3].mxu1 }
  0xfd   : > { %v501_v30 = vadd.f32 %v500_v28, %v499_v26  ;;  %v507_v31 = vadd.f32 %v506_v29, %v505_v27 }
  0xff   : > { %v472_v32 = vpack.c.bf16 %v501_v30, %v498_v24  ;;  %v477_v33 = vpack.c.bf16 %v507_v31, %v504_v25 }
 0x101   : > { %473 = vst [vmem:[%s148_s25] sm:$0xff] %v472_v32   ;;  %479 = vst [vmem:[%s148_s25 + $0x8] sm:$0xff] %v477_v33  }
 0x102 PF: > { %s12_s9 = sadd.s32 1, %s560_s9  }
 0x103   : > { %p9_p4 = scmp.ge.s32.totalorder %s12_s9, 4  }
 0x105   :  { %11 = sbr.rel (!%p9_p4) target bundleno = 1 (0x1), region = 58 }

// kernel: backbone_forward.9
= control target key start
LH: loop header
LB: loop body
LE: loop exit
PB: predicated region body
PF: predicated region fallthrough
CT: control target
= control target key end

     0   :  { %s4032_s15 = smov 0   ;;  %s5166_s0 = inlined_call_operand.vmem [shape: f32[1024,3], index: 0, kind: input, shape index: {}]   ;;  %s5167_s1 = inlined_call_operand.vmem [shape: f32[3,64], index: 1, kind: input, shape index: {}]   ;;  %s5168_s2 = inlined_call_operand.vmem [shape: bf16[64,64], index: 2, kind: input, shape index: {}]   ;;  %s5169_s3 = inlined_call_operand.vmem [shape: bf16[64,128], index: 3, kind: input, shape index: {}]   ;;  %s5170_s4 = inlined_call_operand.vmem [shape: bf16[64,256], index: 4, kind: output, shape index: {}]  }
   0x1 LB: > { %s3471_s16 = sadd.s32 4294967295, %s4002_s15   ;;  %p3475_p0 = scmp.ge.s32.totalorder %s4002_s15, 1  ;;  %s4002_s15 = sphi %s4032_s15, %s14_s15  }
   0x2   : > { %p163_p1 = scmp.lt.s32.totalorder %s4002_s15, 3 }
   0x4   : > { %p164_p2 = pnand %p3475_p0, %p163_p1 }
   0x6   : > { %167 = sbr.rel (%p164_p2) target bundleno = 1137 (0x471), region = 36 }
   0xd   : > { %s3476_s17 = sshll.u32 %s3471_s16, 6  ;;  %v5173_v0 = vmov 1   ;;  %v5175_v1 = vmov 0   ;;  %v5171_v27 = vmov 2   ;;  %v3979_v60 = vld [vmem:[%s5168_s2] sm:$0xff]   ;;  %v3980_v63 = vld [vmem:[%s5168_s2 + $0x8] sm:$0xff]  }
   0xe   : > { %3915 = vset.pattern.permute.xlu0 %v5173_v0  ;;  %3914 = vset.pattern.permute.xlu1 %v5175_v1  ;;  %p191_p3 = scmp.lt.s32.totalorder %s3476_s17, 127  ;;  %vm1563_vm0 = vcmask 523264   ;;  %vm2910_vm1 = vcmask 1041409   ;;  %vm2912_vm2 = vcmask 1042434   ;;  %vm2914_vm3 = vcmask 1043459   ;;  %s5041_s26 = sshll.u32 %s3471_s16, 2 }
   0xf   : > { %3759 = vmatprep.subr.bf16.mxu0 %v3979_v60  ;;  %vm2916_vm4 = vcmask 1044484   ;;  %vm2918_vm5 = vcmask 1045509   ;;  %vm2920_vm6 = vcmask 1046534   ;;  %p197_p4 = scmp.lt.s32.totalorder %s5041_s26, 7  ;;  %vm2922_vm7 = vcmask 1047559  }
  0x10   : > { %s5284_s17 = smov (!%p191_p3, %s3476_s17), 127  ;;  %3760 = vmatpush3.bf16.msra.mxu0 %v3979_v60 }
  0x11   : > { %s3477_s18 = sshll.u32 %s5284_s17, 3  ;;  %3761 = vmatprep.subr.bf16.mxu0 %v3980_v63  ;;  %s5286_s26 = smov (!%p197_p4, %s5041_s26), 7 }
  0x12   : > { %s4047_s21 = scalar_lea.vmem %s5166_s0, %s3477_s18  ;;  %s3622_s16 = sshll.u32 %s5286_s26, 3 }
  0x13   : > { %v4050_v2 = vld [vmem:[%s4047_s21 + $0x10] sm:$0xff]  ;;  %v4053_v3 = vld [vmem:[%s4047_s21] sm:$0xff]  ;;  %v207_v4 = vld [vmem:[%s4047_s21 + $0x18] sm:$0xff]  ;;  %s5079_s29 = scalar_lea.vmem %s5170_s4, %s3622_s16 }
  0x14   : > { %281 = vperm.xlu1 %3914, %v4050_v2   ;;  %659 = vperm.xlu0 %3915, %v4053_v3   ;;  %v4059_v5 = vld [vmem:[%s4047_s21 + $0x28] sm:$0xff]  ;;  %v4062_v6 = vld [vmem:[%s4047_s21 + $0x20] sm:$0xff]  ;;  %v4067_v7 = vld [vmem:[%s4047_s21 + $0x38] sm:$0xff] }
  0x15   : > { %v4072_v8 = vld [vmem:[%s4047_s21 + $0x48] sm:$0xff]  ;;  %v4075_v9 = vld [vmem:[%s4047_s21 + $0x40] sm:$0xff]  ;;  %v4080_v10 = vld [vmem:[%s4047_s21 + $0x58] sm:$0xff]  ;;  %3762 = vmatpush3.bf16.msra.mxu0 %v3980_v63 }
  0x16   : > { %v4085_v11 = vld [vmem:[%s4047_s21 + $0x68] sm:$0xff]  ;;  %v4088_v12 = vld [vmem:[%s4047_s21 + $0x60] sm:$0xff]  ;;  %v4093_v13 = vld [vmem:[%s4047_s21 + $0x78] sm:$0xff] }
  0x17   : > { %v4098_v14 = vld [vmem:[%s4047_s21 + $0x88] sm:$0xff]  ;;  %v4101_v15 = vld [vmem:[%s4047_s21 + $0x80] sm:$0xff]  ;;  %v4106_v16 = vld [vmem:[%s4047_s21 + $0x98] sm:$0xff] }
  0x18   : > { %286 = vperm.xlu1 %3914, %v207_v4   ;;  %671 = vperm.xlu0 %3915, %v207_v4   ;;  %v4111_v17 = vld [vmem:[%s4047_s21 + $0xa8] sm:$0xff]  ;;  %v4114_v18 = vld [vmem:[%s4047_s21 + $0xa0] sm:$0xff]  ;;  %v4119_v19 = vld [vmem:[%s4047_s21 + $0xb8] sm:$0xff] }
  0x19   : > { %v4124_v20 = vld [vmem:[%s4047_s21 + $0xc8] sm:$0xff]  ;;  %v4127_v21 = vld [vmem:[%s4047_s21 + $0xc0] sm:$0xff]  ;;  %v4132_v22 = vld [vmem:[%s4047_s21 + $0xd8] sm:$0xff] }
  0x1a   : > { %v4137_v23 = vld [vmem:[%s4047_s21 + $0xe8] sm:$0xff]  ;;  %v4146_v25 = vld [vmem:[%s4047_s21 + $0xf0] sm:$0xff]  ;;  %v4189_v32 = vld [vmem:[%s4047_s21 + $0xe0] sm:$0xff] }
  0x1b   : > { %v4140_v24 = vld [vmem:[%s4047_s21 + $0x8] sm:$0xff]  ;;  %v4151_v26 = vld [vmem:[%s4047_s21 + $0x110] sm:$0xff]  ;;  %v4194_v33 = vld [vmem:[%s4047_s21 + $0xf8] sm:$0xff] }
  0x1c   : > { %296 = vperm.xlu1 %3914, %v4059_v5   ;;  %675 = vperm.xlu0 %3915, %v4062_v6   ;;  %v4156_v28 = vld [vmem:[%s4047_s21 + $0x128] sm:$0xff]  ;;  %v4161_v29 = vld [vmem:[%s4047_s21 + $0x130] sm:$0xff]  ;;  %v4205_v35 = vld [vmem:[%s4047_s21 + $0x120] sm:$0xff] }
  0x1d   : > { %v4170_v30 = vld [vmem:[%s4047_s21 + $0x30] sm:$0xff]  ;;  %v4200_v34 = vld [vmem:[%s4047_s21 + $0x108] sm:$0xff]  ;;  %v4210_v36 = vld [vmem:[%s4047_s21 + $0x138] sm:$0xff] }
  0x1e   : > { %v4186_v31 = vld [vmem:[%s4047_s21 + $0x50] sm:$0xff]  ;;  %v4215_v37 = vld [vmem:[%s4047_s21 + $0x148] sm:$0xff]  ;;  %v4223_v39 = vld [vmem:[%s4047_s21 + $0x160] sm:$0xff] }
  0x1f   : > { %5192 = vst [vmem:[#allocation2_spill] sm:$0xff] %v4215_v37  ;;  %v4219_v38 = vld [vmem:[%s4047_s21 + $0x70] sm:$0xff]  ;;  %5193 = vst [vmem:[#allocation3_spill] sm:$0xff] %v4223_v39  ;;  %v4232_v42 = vld [vmem:[%s4047_s21 + $0x178] sm:$0xff] }
  0x20   : > { %306 = vperm.xlu1 %3914, %v4067_v7   ;;  %687 = vperm.xlu0 %3915, %v4067_v7   ;;  %5194 = vst [vmem:[#allocation4_spill] sm:$0xff] %v4232_v42  ;;  %v4242_v45 = vld [vmem:[%s4047_s21 + $0x188] sm:$0xff]  ;;  %v4251_v48 = vld [vmem:[%s4047_s21 + $0x1a0] sm:$0xff]  ;;  %v259_v51 = vld [vmem:[%s4047_s21 + $0x1b8] sm:$0xff] }
  0x21   : > { %v222_v54 = vld [vmem:[%s4047_s21 + $0x90] sm:$0xff]  ;;  %v4268_v55 = vld [vmem:[%s4047_s21 + $0x1c8] sm:$0xff] }
  0x24   : > { %316 = vperm.xlu1 %3914, %v4072_v8   ;;  %691 = vperm.xlu0 %3915, %v4075_v9  }
  0x28   : > { %326 = vperm.xlu1 %3914, %v4080_v10   ;;  %703 = vperm.xlu0 %3915, %v4080_v10  }
  0x2c   : > { %336 = vperm.xlu1 %3914, %v4085_v11   ;;  %707 = vperm.xlu0 %3915, %v4088_v12  }
  0x30   : > { %346 = vperm.xlu1 %3914, %v4093_v13   ;;  %719 = vperm.xlu0 %3915, %v4093_v13  }
  0x34   : > { %356 = vperm.xlu1 %3914, %v4098_v14   ;;  %723 = vperm.xlu0 %3915, %v4101_v15  }
  0x38   : > { %366 = vperm.xlu1 %3914, %v4106_v16   ;;  %735 = vperm.xlu0 %3915, %v4106_v16  }
  0x3c   : > { %376 = vperm.xlu1 %3914, %v4111_v17   ;;  %739 = vperm.xlu0 %3915, %v4114_v18  }
  0x40   : > { %386 = vperm.xlu1 %3914, %v4119_v19   ;;  %751 = vperm.xlu0 %3915, %v4119_v19  }
  0x44   : > { %396 = vperm.xlu1 %3914, %v4124_v20   ;;  %755 = vperm.xlu0 %3915, %v4127_v21  }
  0x48   : > { %406 = vperm.xlu1 %3914, %v4132_v22   ;;  %767 = vperm.xlu0 %3915, %v4132_v22  }
  0x4c   : > { %3916 = vset.pattern.permute.xlu1 %v5173_v0  ;;  %775 = vperm.xlu0 %3915, %v4137_v23  }
  0x4d   : > { %663 = vperm.xlu1 %3916, %v4140_v24  }
  0x50   : > { %779 = vperm.xlu0 %3915, %v4146_v25  }
  0x51   : > { %667 = vperm.xlu1 %3916, %v4050_v2  }
  0x54   : > { %795 = vperm.xlu0 %3915, %v4151_v26  }
  0x55   : > { %3917 = vset.pattern.permute.xlu1 %v5171_v27 }
  0x56   : > { %1048 = vperm.xlu1 %3917, %v4053_v3  }
  0x58   : > { %807 = vperm.xlu0 %3915, %v4156_v28  }
  0x5a   : > { %1056 = vperm.xlu1 %3917, %v4050_v2  }
  0x5c   : > { %811 = vperm.xlu0 %3915, %v4161_v29  }
  0x5e   : > { %1060 = vperm.xlu1 %3917, %v207_v4  }
  0x60   : > { %3943 = vset.pattern.permute.xlu0 %v5171_v27 }
  0x61   : > { %1052 = vperm.xlu0 %3943, %v4140_v24  }
  0x62   : > { %3918 = vset.pattern.permute.xlu1 %v5173_v0 }
  0x63   : > { %679 = vperm.xlu1 %3918, %v4059_v5  }
  0x65   : > { %1068 = vperm.xlu0 %3943, %v4059_v5  }
  0x67   : > { %683 = vperm.xlu1 %3918, %v4170_v30  }
  0x69   : > { %1084 = vperm.xlu0 %3943, %v4072_v8  }
  0x6b   : > { %3919 = vset.pattern.permute.xlu1 %v5171_v27 }
  0x6c   : > { %1064 = vperm.xlu1 %3919, %v4062_v6  }
  0x6d   : > { %1100 = vperm.xlu0 %3943, %v4085_v11  }
  0x70   : > { %1072 = vperm.xlu1 %3919, %v4170_v30  }
  0x71   : > { %1116 = vperm.xlu0 %3943, %v4098_v14  }
  0x74   : > { %1076 = vperm.xlu1 %3919, %v4067_v7  }
  0x75   : > { %1132 = vperm.xlu0 %3943, %v4111_v17  }
  0x78   : > { %3920 = vset.pattern.permute.xlu1 %v5173_v0 }
  0x79   : > { %695 = vperm.xlu1 %3920, %v4072_v8   ;;  %1148 = vperm.xlu0 %3943, %v4124_v20   ;;  %v3982_v8 = vld [vmem:[%s5168_s2 + $0x18] sm:$0xff]  }
  0x7d   : > { %699 = vperm.xlu1 %3920, %v4186_v31   ;;  %1160 = vperm.xlu0 %3943, %v4189_v32  }
  0x81   : > { %3921 = vset.pattern.permute.xlu1 %v5171_v27  ;;  %1172 = vperm.xlu0 %3943, %v4194_v33  }
  0x82   : > { %1080 = vperm.xlu1 %3921, %v4075_v9  }
  0x85   : > { %1180 = vperm.xlu0 %3943, %v4200_v34  }
  0x86   : > { %1088 = vperm.xlu1 %3921, %v4186_v31  }
  0x89   : > { %1192 = vperm.xlu0 %3943, %v4205_v35  }
  0x8a   : > { %1092 = vperm.xlu1 %3921, %v4080_v10  }
  0x8d   : > { %1204 = vperm.xlu0 %3943, %v4210_v36  }
  0x8e   : > { %3922 = vset.pattern.permute.xlu1 %v5173_v0 }
  0x8f   : > { %711 = vperm.xlu1 %3922, %v4085_v11  }
  0x91   : > { %1212 = vperm.xlu0 %3943, %v4215_v37  }
  0x93   : > { %v4225_v40 = vpop.permute.xlu1 %281  ;;  %715 = vperm.xlu1 %3922, %v4219_v38   ;;  %v4228_v41 = vpop.permute.xlu0 %659 }
  0x95   : > { %1224 = vperm.xlu0 %3943, %v4223_v39  }
  0x97   : > { %v4234_v43 = vpop.permute.xlu1 %286  ;;  %3923 = vset.pattern.permute.xlu1 %v5171_v27  ;;  %v4237_v44 = vpop.permute.xlu0 %671 }
  0x98   : > { %1096 = vperm.xlu1 %3923, %v4088_v12  }
  0x99   : > { %1236 = vperm.xlu0 %3943, %v4232_v42   ;;  %v5214_v42 = vmov 1  }
  0x9b   : > { %v4244_v46 = vpop.permute.xlu1 %296  ;;  %v4246_v47 = vpop.permute.xlu0 %675 }
  0x9c   : > { %1104 = vperm.xlu1 %3923, %v4219_v38  }
  0x9d   : > { %1244 = vperm.xlu0 %3943, %v4242_v45  }
  0x9f   : > { %v4253_v49 = vpop.permute.xlu1 %306  ;;  %v4255_v50 = vpop.permute.xlu0 %687 }
  0xa0   : > { %1108 = vperm.xlu1 %3923, %v4093_v13  }
  0xa1   : > { %1256 = vperm.xlu0 %3943, %v4251_v48  }
  0xa3   : > { %v4260_v52 = vpop.permute.xlu1 %316  ;;  %v4262_v53 = vpop.permute.xlu0 %691 }
  0xa4   : > { %3924 = vset.pattern.permute.xlu1 %v5173_v0 }
  0xa5   : > { %727 = vperm.xlu1 %3924, %v4098_v14   ;;  %1268 = vperm.xlu0 %3943, %v259_v51  }
  0xa7   : > { %v4270_v56 = vpop.permute.xlu1 %326  ;;  %v4272_v57 = vpop.permute.xlu0 %703 }
  0xa9   : > { %731 = vperm.xlu1 %3924, %v222_v54   ;;  %1276 = vperm.xlu0 %3943, %v4268_v55  }
  0xab   : > { %v4275_v58 = vpop.permute.xlu1 %336  ;;  %v4277_v59 = vpop.permute.xlu0 %707 }
  0xad   : > { %3925 = vset.pattern.permute.xlu1 %v5171_v27  ;;  %3971 = vset.pattern.permute.xlu0 %v5175_v1 }
  0xae   : > { %1112 = vperm.xlu1 %3925, %v4101_v15   ;;  %271 = vperm.xlu0 %3971, %v4053_v3   ;;  %v3981_v3 = vld [vmem:[%s5168_s2 + $0x10] sm:$0xff]  }
  0xaf   : > { %v4286_v61 = vpop.permute.xlu1 %346  ;;  %v4288_v62 = vpop.permute.xlu0 %719  ;;  %3763 = vmatprep.subr.bf16.mxu0 %v3981_v3 }
  0xb0   : > { %3764 = vmatpush3.bf16.msra.mxu0 %v3981_v3 }
  0xb1   : > { %3765 = vmatprep.subr.bf16.mxu0 %v3982_v8 }
  0xb2   : > { %1120 = vperm.xlu1 %3925, %v222_v54   ;;  %276 = vperm.xlu0 %3971, %v4140_v24  }
  0xb3   : > { %v4294_v2 = vpop.permute.xlu1 %356  ;;  %v4296_v4 = vpop.permute.xlu0 %723 }
  0xb4   : > { %3766 = vmatpush3.bf16.msra.mxu0 %v3982_v8 }
  0xb6   : > { %1124 = vperm.xlu1 %3925, %v4106_v16   ;;  %291 = vperm.xlu0 %3971, %v4062_v6   ;;  %v226_v6 = vld [vmem:[%s4047_s21 + $0xb0] sm:$0xff] }
  0xb7   : > { %v4303_v5 = vpop.permute.xlu1 %366  ;;  %v4305_v7 = vpop.permute.xlu0 %735 }
  0xb8   : > { %5195 = vst [vmem:[#allocation5_spill] sm:$0xff] %v4303_v5  ;;  %5196 = vst [vmem:[#allocation6_spill] sm:$0xff] %v4305_v7 }
  0xba   : > { %3926 = vset.pattern.permute.xlu1 %v5173_v0  ;;  %301 = vperm.xlu0 %3971, %v4170_v30  }
  0xbb   : > { %v4312_v10 = vpop.permute.xlu1 %376  ;;  %743 = vperm.xlu1 %3926, %v4111_v17   ;;  %v4315_v11 = vpop.permute.xlu0 %739 }
  0xbc   : > { %5197 = vst [vmem:[#allocation7_spill] sm:$0xff] %v4312_v10  ;;  %5198 = vst [vmem:[#allocation8_spill] sm:$0xff] %v4315_v11 }
  0xbe   : > { %311 = vperm.xlu0 %3971, %v4075_v9  }
  0xbf   : > { %v4319_v13 = vpop.permute.xlu1 %386  ;;  %747 = vperm.xlu1 %3926, %v226_v6   ;;  %v4321_v14 = vpop.permute.xlu0 %751 }
  0xc0   : > { %5199 = vst [vmem:[#allocation9_spill] sm:$0xff] %v4319_v13  ;;  %5200 = vst [vmem:[#allocation10_spill] sm:$0xff] %v4321_v14  ;;  %v4455_v14 = vld [vmem:[%s4047_s21 + $0x1e0] sm:$0xff]  ;;  %v4473_v13 = vld [vmem:[%s4047_s21 + $0x168] sm:$0xff] }
  0xc1   : > { %5224 = vst [vmem:[#allocation31_spill] sm:$0xff] %v4455_v14  ;;  %5229 = vst [vmem:[#allocation36_spill] sm:$0xff] %v4473_v13 }
  0xc2   : > { %321 = vperm.xlu0 %3971, %v4186_v31  }
  0xc3   : > { %v4324_v16 = vpop.permute.xlu1 %396  ;;  %3927 = vset.pattern.permute.xlu1 %v5171_v27  ;;  %v4327_v24 = vpop.permute.xlu0 %755 }
  0xc4   : > { %5201 = vst [vmem:[#allocation11_spill] sm:$0xff] %v4324_v16  ;;  %5202 = vst [vmem:[#allocation12_spill] sm:$0xff] %v4327_v24  ;;  %1128 = vperm.xlu1 %3927, %v4114_v18   ;;  %v236_v16 = vld [vmem:[%s4047_s21 + $0x100] sm:$0xff] }
  0xc6   : > { %331 = vperm.xlu0 %3971, %v4088_v12   ;;  %v230_v12 = vld [vmem:[%s4047_s21 + $0xd0] sm:$0xff] }
  0xc7   : > { %v4331_v17 = vpop.permute.xlu1 %406  ;;  %v4333_v9 = vpop.permute.xlu0 %767 }
  0xc8   : > { %5203 = vst [vmem:[#allocation13_spill] sm:$0xff] %v4331_v17  ;;  %5204 = vst [vmem:[#allocation14_spill] sm:$0xff] %v4333_v9  ;;  %1136 = vperm.xlu1 %3927, %v226_v6   ;;  %v5216_v9 = vmov 2  }
  0xca   : > { %341 = vperm.xlu0 %3971, %v4219_v38  }
  0xcb   : > { %v4336_v30 = vpop.permute.xlu0 %775 }
  0xcc   : > { %5205 = vst [vmem:[#allocation15_spill] sm:$0xff] %v4336_v30  ;;  %v4338_v31 = vpop.permute.xlu1 %663  ;;  %1140 = vperm.xlu1 %3927, %v4119_v19  }
  0xce   : > { %351 = vperm.xlu0 %3971, %v4101_v15  }
  0xcf   : > { %v4342_v51 = vpop.permute.xlu0 %779 }
  0xd0   : > { %5206 = vst [vmem:[#allocation16_spill] sm:$0xff] %v4342_v51  ;;  %v4344_v60 = vpop.permute.xlu1 %667  ;;  %3928 = vset.pattern.permute.xlu1 %v5173_v0 }
  0xd1   : > { %759 = vperm.xlu1 %3928, %v4124_v20  }
  0xd2   : > { %361 = vperm.xlu0 %3971, %v222_v54  }
  0xd3   : > { %v4349_v63 = vpop.permute.xlu0 %795 }
  0xd4   : > { %5207 = vst [vmem:[#allocation17_spill] sm:$0xff] %v4349_v63 }
  0xd5   : > { %763 = vperm.xlu1 %3928, %v230_v12   ;;  %v4351_v38 = vpop.permute.xlu1 %1048 }
  0xd6   : > { %371 = vperm.xlu0 %3971, %v4114_v18  }
  0xd7   : > { %v4354_v19 = vpop.permute.xlu0 %807 }
  0xd8   : > { %5208 = vst [vmem:[#allocation18_spill] sm:$0xff] %v4354_v19 }
  0xd9   : > { %3929 = vset.pattern.permute.xlu1 %v5171_v27  ;;  %v4357_v15 = vpop.permute.xlu1 %1056 }
  0xda   : > { %1144 = vperm.xlu1 %3929, %v4127_v21   ;;  %381 = vperm.xlu0 %3971, %v226_v6  }
  0xdb   : > { %v4360_v3 = vpop.permute.xlu0 %811 }
  0xdc   : > { %5209 = vst [vmem:[#allocation19_spill] sm:$0xff] %v4360_v3 }
  0xdd   : > { %v4362_v20 = vpop.permute.xlu1 %1060 }
  0xde   : > { %1152 = vperm.xlu1 %3929, %v230_v12   ;;  %391 = vperm.xlu0 %3971, %v4127_v21  }
  0xe0   : > { %v4365_v54 = vpop.permute.xlu0 %1052 }
  0xe2   : > { %1156 = vperm.xlu1 %3929, %v4132_v22   ;;  %v4368_v18 = vpop.permute.xlu1 %679  ;;  %401 = vperm.xlu0 %3971, %v230_v12  }
  0xe4   : > { %v4370_v8 = vpop.permute.xlu0 %1068 }
  0xe6   : > { %3930 = vset.pattern.permute.xlu1 %v5175_v1  ;;  %v4373_v27 = vpop.permute.xlu1 %683  ;;  %411 = vperm.xlu0 %3971, %v4189_v32  }
  0xe7   : > { %416 = vperm.xlu1 %3930, %v4137_v23  }
  0xe8   : > { %v4377_v6 = vpop.permute.xlu0 %1084 }
  0xea   : > { %436 = vperm.xlu0 %3971, %v4200_v34  }
  0xeb   : > { %3931 = vset.pattern.permute.xlu1 %v5173_v0  ;;  %v4381_v21 = vpop.permute.xlu1 %1064 }
  0xec   : > { %771 = vperm.xlu1 %3931, %v4189_v32   ;;  %v4384_v22 = vpop.permute.xlu0 %1100  ;;  %v4401_v32 = vld [vmem:[%s4047_s21 + $0x150] sm:$0xff] }
  0xed   : > { %5212 = vst [vmem:[#allocation22_spill] sm:$0xff] %v4401_v32 }
  0xee   : > { %441 = vperm.xlu0 %3971, %v4151_v26  }
  0xef   : > { %v4387_v12 = vpop.permute.xlu1 %1072 }
  0xf0   : > { %3932 = vset.pattern.permute.xlu1 %v5175_v1  ;;  %v4390_v3 = vpop.permute.xlu0 %1116 }
  0xf1   : > { %5210 = vst [vmem:[#allocation20_spill] sm:$0xff] %v4390_v3  ;;  %421 = vperm.xlu1 %3932, %v4146_v25  }
  0xf2   : > { %451 = vperm.xlu0 %3971, %v4205_v35  }
  0xf3   : > { %v4394_v19 = vpop.permute.xlu1 %1076 }
  0xf4   : > { %v4396_v0 = vpop.permute.xlu0 %1132 }
  0xf5   : > { %5211 = vst [vmem:[#allocation21_spill] sm:$0xff] %v4396_v0  ;;  %426 = vperm.xlu1 %3932, %v4194_v33   ;;  %v4482_v0 = vld [vmem:[%s4047_s21 + $0x170] sm:$0xff] }
  0xf6   : > { %476 = vperm.xlu0 %3971, %v4215_v37   ;;  %5231 = vst [vmem:[#allocation38_spill] sm:$0xff] %v4482_v0 }
  0xf8   : > { %v4403_v63 = vpop.permute.xlu1 %695  ;;  %v4405_v1 = vpop.permute.xlu0 %1148 }
  0xf9   : > { %5213 = vst [vmem:[#allocation23_spill] sm:$0xff] %v4405_v1  ;;  %3933 = vset.pattern.permute.xlu1 %v5214_v42 }
  0xfa   : > { %783 = vperm.xlu1 %3933, %v4194_v33   ;;  %481 = vperm.xlu0 %3971, %v4401_v32   ;;  %v4424_v33 = vld [vmem:[%s4047_s21 + $0x190] sm:$0xff] }
  0xfb   : > { %5218 = vst [vmem:[#allocation26_spill] sm:$0xff] %v4424_v33 }
  0xfc   : > { %v4410_v51 = vpop.permute.xlu1 %699  ;;  %v4412_v30 = vpop.permute.xlu0 %1160 }
  0xfd   : > { %5215 = vst [vmem:[#allocation24_spill] sm:$0xff] %v4412_v30 }
  0xfe   : > { %3934 = vset.pattern.permute.xlu1 %v5216_v9  ;;  %491 = vperm.xlu0 %3971, %v4223_v39   ;;  %v5220_v39 = vmov 0  }
  0xff   : > { %1164 = vperm.xlu1 %3934, %v4137_v23  }
 0x100   : > { %v4417_v17 = vpop.permute.xlu0 %1172 }
 0x101   : > { %5217 = vst [vmem:[#allocation25_spill] sm:$0xff] %v4417_v17  ;;  %v4419_v1 = vpop.permute.xlu1 %1080  ;;  %v4445_v17 = vld [vmem:[%s4047_s21 + $0x1d0] sm:$0xff] }
 0x102   : > { %516 = vperm.xlu0 %3971, %v4242_v45  }
 0x103   : > { %1168 = vperm.xlu1 %3934, %v4146_v25  }
 0x104   : > { %v4426_v24 = vpop.permute.xlu0 %1180 }
 0x105   : > { %5219 = vst [vmem:[#allocation27_spill] sm:$0xff] %v4426_v24  ;;  %v4428_v30 = vpop.permute.xlu1 %1088 }
 0x106   : > { %521 = vperm.xlu0 %3971, %v4424_v33  }
 0x107   : > { %3935 = vset.pattern.permute.xlu1 %v5220_v39 }
 0x108   : > { %431 = vperm.xlu1 %3935, %v236_v16   ;;  %v4433_v23 = vpop.permute.xlu0 %1192 }
 0x109   : > { %5221 = vst [vmem:[#allocation28_spill] sm:$0xff] %v4433_v23  ;;  %v4435_v45 = vpop.permute.xlu1 %1092 }
 0x10a   : > { %531 = vperm.xlu0 %3971, %v4251_v48   ;;  %v239_v48 = vld [vmem:[%s4047_s21 + $0x118] sm:$0xff] }
 0x10c   : > { %3936 = vset.pattern.permute.xlu1 %v5214_v42  ;;  %v4439_v25 = vpop.permute.xlu0 %1204 }
 0x10d   : > { %5222 = vst [vmem:[#allocation29_spill] sm:$0xff] %v4439_v25  ;;  %787 = vperm.xlu1 %3936, %v236_v16  }
 0x10e   : > { %v4441_v24 = vpop.permute.xlu1 %711  ;;  %556 = vperm.xlu0 %3971, %v4268_v55  }
 0x110   : > { %v4447_v37 = vpop.permute.xlu0 %1212 }
 0x111   : > { %5223 = vst [vmem:[#allocation30_spill] sm:$0xff] %v4447_v37  ;;  %791 = vperm.xlu1 %3936, %v4200_v34  }
 0x112   : > { %v4450_v23 = vpop.permute.xlu1 %715  ;;  %561 = vperm.xlu0 %3971, %v4445_v17  }
 0x114   : > { %v4457_v25 = vpop.permute.xlu0 %1224 }
 0x115   : > { %5225 = vst [vmem:[#allocation32_spill] sm:$0xff] %v4457_v25  ;;  %3937 = vset.pattern.permute.xlu1 %v5220_v39 }
 0x116   : > { %446 = vperm.xlu1 %3937, %v239_v48   ;;  %571 = vperm.xlu0 %3971, %v4455_v14  }
 0x117   : > { %v4461_v55 = vpop.permute.xlu1 %1096 }
 0x118   : > { %v4463_v37 = vpop.permute.xlu0 %1236 }
 0x119   : > { %5226 = vst [vmem:[#allocation33_spill] sm:$0xff] %v4463_v37 }
 0x11a   : > { %3938 = vset.pattern.permute.xlu1 %v5214_v42  ;;  %3972 = vset.pattern.permute.xlu0 %v5214_v42 }
 0x11b   : > { %799 = vperm.xlu1 %3938, %v239_v48   ;;  %v4467_v34 = vpop.permute.xlu1 %1104  ;;  %827 = vperm.xlu0 %3972, %v4401_v32  }
 0x11c   : > { %5227 = vst [vmem:[#allocation34_spill] sm:$0xff] %v4467_v34  ;;  %v4470_v25 = vpop.permute.xlu0 %1244 }
 0x11d   : > { %5228 = vst [vmem:[#allocation35_spill] sm:$0xff] %v4470_v25 }
 0x11f   : > { %3939 = vset.pattern.permute.xlu1 %v5216_v9  ;;  %v4476_v14 = vpop.permute.xlu1 %1108  ;;  %839 = vperm.xlu0 %3972, %v4473_v13  }
 0x120   : > { %1176 = vperm.xlu1 %3939, %v236_v16   ;;  %v4479_v37 = vpop.permute.xlu0 %1256  ;;  %v4496_v16 = vld [vmem:[%s4047_s21 + $0x1a8] sm:$0xff] }
 0x121   : > { %5230 = vst [vmem:[#allocation37_spill] sm:$0xff] %v4479_v37  ;;  %5235 = vst [vmem:[#allocation42_spill] sm:$0xff] %v4496_v16  ;;  %v4501_v37 = vld [vmem:[%s5167_s1 + $0x1] ss:$0 sm:$0xff] }
 0x122   : > { %v923_v10 = vmul.f32 %v4501_v37, %v4368_v18 }
 0x123   : > { %843 = vperm.xlu0 %3972, %v4482_v0  }
 0x124   : > { %1184 = vperm.xlu1 %3939, %v4151_v26   ;;  %v4486_v25 = vpop.permute.xlu1 %727  ;;  %v4488_v32 = vpop.permute.xlu0 %1268  ;;  %v4506_v26 = vld [vmem:[%s5167_s1] ss:$0 sm:$0xff] }
 0x125   : > { %5232 = vst [vmem:[#allocation39_spill] sm:$0xff] %v4488_v32  ;;  %v921_v32 = vmul.f32 %v4501_v37, %v4237_v44  ;;  %v598_v34 = vmul.f32 %v4506_v26, %v4244_v46 }
 0x127   : > { %859 = vperm.xlu0 %3972, %v4424_v33   ;;  %v4517_v33 = vld [vmem:[%s4047_s21 + $0x1b0] sm:$0xff] }
 0x128   : > { %1188 = vperm.xlu1 %3939, %v239_v48   ;;  %v4491_v11 = vpop.permute.xlu1 %731  ;;  %v4493_v13 = vpop.permute.xlu0 %1276  ;;  %v918_v48 = vmul.f32 %v4501_v37, %v4228_v41  ;;  %5236 = vst [vmem:[#allocation43_spill] sm:$0xff] %v4517_v33 }
 0x129   : > { %5233 = vst [vmem:[#allocation40_spill] sm:$0xff] %v4491_v11  ;;  %5234 = vst [vmem:[#allocation41_spill] sm:$0xff] %v4493_v13  ;;  %v596_v13 = vmul.f32 %v4506_v26, %v4234_v43  ;;  %v920_v43 = vmul.f32 %v4501_v37, %v4344_v60  ;;  %v925_v60 = vmul.f32 %v4501_v37, %v4255_v50 }
 0x12b   : > { %871 = vperm.xlu0 %3972, %v4496_v16   ;;  %v4525_v16 = vld [vmem:[%s5167_s1 + $0x2] ss:$0 sm:$0xff]  ;;  %v985_v7 = vadd.f32 %v921_v32, %v596_v13  ;;  %v987_v32 = vadd.f32 %v923_v10, %v598_v34 }
 0x12c   : > { %3940 = vset.pattern.permute.xlu1 %v5220_v39  ;;  %v1310_v44 = vmul.f32 %v4525_v16, %v4362_v20  ;;  %v1309_v20 = vmul.f32 %v4525_v16, %v4357_v15  ;;  %v1307_v46 = vmul.f32 %v4525_v16, %v4351_v38 }
 0x12d   : > { %456 = vperm.xlu1 %3940, %v4156_v28   ;;  %v4520_v0 = vpop.permute.xlu1 %1112  ;;  %v272_v11 = vpop.permute.xlu0 %271 }
 0x12e   : > { %5237 = vst [vmem:[#allocation44_spill] sm:$0xff] %v4520_v0  ;;  %v593_v41 = vmul.f32 %v4506_v26, %v272_v11  ;;  %v595_v0 = vmul.f32 %v4506_v26, %v4225_v40  ;;  %v600_v11 = vmul.f32 %v4506_v26, %v4253_v49  ;;  %v919_v40 = vmul.f32 %v4501_v37, %v4338_v31 }
 0x12f   : > { %875 = vperm.xlu0 %3972, %v4517_v33   ;;  %v1308_v49 = vmul.f32 %v4525_v16, %v4365_v54  ;;  %v1374_v15 = vadd.f32 %v1310_v44, %v985_v7  ;;  %v922_v31 = vmul.f32 %v4501_v37, %v4246_v47  ;;  %v1314_v47 = vmul.f32 %v4525_v16, %v4394_v19 }
 0x130   : > { %v982_v5 = vadd.f32 %v918_v48, %v593_v41  ;;  %v984_v50 = vadd.f32 %v920_v43, %v595_v0  ;;  %v1312_v48 = vmul.f32 %v4525_v16, %v4370_v8  ;;  %v602_v44 = vmul.f32 %v4506_v26, %v4260_v52 }
 0x131   : > { %3941 = vset.pattern.permute.xlu1 %v5214_v42  ;;  %v4546_v18 = vpop.permute.xlu1 %1120  ;;  %v277_v33 = vpop.permute.xlu0 %276  ;;  %v1438_v7 = vmax.f32 %v1374_v15, 0.0  ;;  %v924_v19 = vmul.f32 %v4501_v37, %v4373_v27  ;;  %v1316_v52 = vmul.f32 %v4525_v16, %v4377_v6 }
 0x132   : > { %5238 = vst [vmem:[#allocation45_spill] sm:$0xff] %v4546_v18  ;;  %v594_v13 = vmul.f32 %v4506_v26, %v277_v33  ;;  %803 = vperm.xlu1 %3941, %v4205_v35   ;;  %v1371_v38 = vadd.f32 %v1307_v46, %v982_v5  ;;  %v1373_v18 = vadd.f32 %v1309_v20, %v984_v50 }
 0x133   : > { %891 = vperm.xlu0 %3972, %v4445_v17   ;;  %v989_v33 = vadd.f32 %v925_v60, %v600_v11  ;;  %v1376_v10 = vadd.f32 %v1312_v48, %v987_v32  ;;  %v1311_v17 = vmul.f32 %v4525_v16, %v4381_v21  ;;  %v927_v5 = vmul.f32 %v4501_v37, %v4403_v63 }
 0x134   : > { %v983_v41 = vadd.f32 %v919_v40, %v594_v13  ;;  %v1435_v34 = vmax.f32 %v1371_v38, 0.0  ;;  %v926_v11 = vmul.f32 %v4501_v37, %v4262_v53  ;;  %v1437_v60 = vmax.f32 %v1373_v18, 0.0 }
 0x135   : > { %v4561_v3 = vpop.permute.xlu1 %1124  ;;  %v292_v54 = vpop.permute.xlu0 %291  ;;  %v1440_v13 = vmax.f32 %v1376_v10, 0.0  ;;  %v1378_v50 = vadd.f32 %v1314_v47, %v989_v33  ;;  %v1313_v53 = vmul.f32 %v4525_v16, %v4387_v12  ;;  %v991_v18 = vadd.f32 %v927_v5, %v602_v44 }
 0x136   : > { %v597_v35 = vmul.f32 %v4506_v26, %v292_v54  ;;  %3942 = vset.pattern.permute.xlu1 %v5220_v39  ;;  %v1372_v0 = vadd.f32 %v1308_v49, %v983_v41  ;;  %v1500_v49 = vpack.c.bf16 %v1438_v7, %v1437_v60  ;;  %v604_v32 = vmul.f32 %v4506_v26, %v4270_v56 }
 0x137   : > { %461 = vperm.xlu1 %3942, %v4161_v29   ;;  %v929_v48 = vmul.f32 %v4501_v37, %v4272_v57  ;;  %v1442_v12 = vmax.f32 %v1378_v50, 0.0  ;;  %v1318_v33 = vmul.f32 %v4525_v16, %v4435_v45  ;;  %v1380_v56 = vadd.f32 %v1316_v52, %v991_v18 }
 0x138   : > { %v986_v8 = vadd.f32 %v922_v31, %v597_v35  ;;  %v1436_v43 = vmax.f32 %v1372_v0, 0.0  ;;  %v931_v35 = vmul.f32 %v4501_v37, %v4441_v24  ;;  %v1315_v57 = vmul.f32 %v4525_v16, %v4419_v1 }
 0x139   : > { %v302_v20 = vpop.permute.xlu0 %301  ;;  %v993_v10 = vadd.f32 %v929_v48, %v604_v32  ;;  %v928_v24 = vmul.f32 %v4501_v37, %v4410_v51  ;;  %v930_v1 = vmul.f32 %v4501_v37, %v4277_v59  ;;  %v933_v59 = vmul.f32 %v4501_v37, %v4288_v62  ;;  %v5239_v32 = vld [vmem:[#allocation20_spill] sm:$0xff] }
 0x13a   : > { %v1375_v21 = vadd.f32 %v1311_v17, %v986_v8  ;;  %v599_v40 = vmul.f32 %v4506_v26, %v302_v20  ;;  %v4579_v46 = vpop.permute.xlu1 %743  ;;  %v1499_v63 = vpack.c.bf16 %v1436_v43, %v1435_v34  ;;  %v606_v17 = vmul.f32 %v4506_v26, %v4275_v58 }
 0x13b   : > { %466 = vperm.xlu1 %3942, %v4210_v36   ;;  %v1382_v34 = vadd.f32 %v1318_v33, %v993_v10  ;;  %v1317_v58 = vmul.f32 %v4525_v16, %v4428_v30  ;;  %v608_v20 = vmul.f32 %v4506_v26, %v4286_v61  ;;  %v1319_v61 = vmul.f32 %v4525_v16, %v4461_v55 }
 0x13c   : > { %v1439_v15 = vmax.f32 %v1375_v21, 0.0  ;;  %v988_v27 = vadd.f32 %v924_v19, %v599_v40  ;;  %3767 = vmatprep.mubr.msk.bf16.mxu0 %vm1563_vm0, %v1499_v63  ;;  %v995_v43 = vadd.f32 %v931_v35, %v606_v17  ;;  %v932_v18 = vmul.f32 %v4501_v37, %v4450_v23  ;;  %v5241_v35 = vld [vmem:[#allocation5_spill] sm:$0xff] }
 0x13d   : > { %3768 = vmatmul.mubr.msk.bf16.vlgmr.msra.gmra.mrb[0].mxu0 %vm1563_vm0, %v1500_v49  ;;  %v312_v6 = vpop.permute.xlu0 %311  ;;  %v1446_v30 = vmax.f32 %v1382_v34, 0.0  ;;  %v1322_v49 = vmul.f32 %v4525_v16, %v4476_v14  ;;  %v997_v50 = vadd.f32 %v933_v59, %v608_v20  ;;  %v1324_v48 = vmul.f32 %v4525_v16, %v5239_v32  ;;  %v5245_v20 = vld [vmem:[#allocation40_spill] sm:$0xff] }
 0x13e   : > { %v1501_v31 = vpack.c.bf16 %v1440_v13, %v1439_v15  ;;  %v1377_v41 = vadd.f32 %v1313_v53, %v988_v27  ;;  %v601_v38 = vmul.f32 %v4506_v26, %v312_v6  ;;  %v4593_v54 = vpop.permute.xlu1 %747  ;;  %v610_v53 = vmul.f32 %v4506_v26, %v4294_v2  ;;  %v4645_v2 = vld [vmem:[%s4047_s21 + $0x140] sm:$0xff] }
 0x13f   : > { %3944 = vset.pattern.permute.xlu1 %v5214_v42 }
 0x140   : > { %v1441_v0 = vmax.f32 %v1377_v41, 0.0  ;;  %v990_v7 = vadd.f32 %v926_v11, %v601_v38  ;;  %815 = vperm.xlu1 %3944, %v4210_v36   ;;  %3771 = vmatprep.mubr.msk.bf16.mxu0 %vm1563_vm0, %v1501_v31  ;;  %v1320_v36 = vmul.f32 %v4525_v16, %v4384_v22  ;;  %v1444_v11 = vmax.f32 %v1380_v56, 0.0 }
 0x141   : > { %v322_v45 = vpop.permute.xlu0 %321  ;;  %v1386_v31 = vadd.f32 %v1322_v49, %v997_v50  ;;  %v612_v56 = vmul.f32 %v4506_v26, %v5241_v35 }
 0x142   : > { %v1502_v47 = vpack.c.bf16 %v1442_v12, %v1441_v0  ;;  %v1379_v5 = vadd.f32 %v1315_v57, %v990_v7  ;;  %v603_v8 = vmul.f32 %v4506_v26, %v322_v45  ;;  %v1384_v63 = vadd.f32 %v1320_v36, %v995_v43  ;;  %v5242_v57 = vld [vmem:[#allocation6_spill] sm:$0xff] }
 0x143   : > { %v4613_v44 = vpop.permute.xlu1 %1128  ;;  %v1450_v45 = vmax.f32 %v1386_v31, 0.0 }
 0x144   : > { %v1443_v60 = vmax.f32 %v1379_v5, 0.0  ;;  %v992_v51 = vadd.f32 %v928_v24, %v603_v8  ;;  %3945 = vset.pattern.permute.xlu1 %v5216_v9  ;;  %v1448_v6 = vmax.f32 %v1384_v63, 0.0  ;;  %v1326_v24 = vmul.f32 %v4525_v16, %v4561_v3  ;;  %v5243_v8 = vld [vmem:[#allocation44_spill] sm:$0xff] }
 0x145   : > { %1196 = vperm.xlu1 %3945, %v4156_v28   ;;  %3772 = vmatmul.mubr.msk.bf16.gmra.mrb[4].mxu0 %vm1563_vm0, %v1502_v47  ;;  %v332_v22 = vpop.permute.xlu0 %331  ;;  %v935_v28 = vmul.f32 %v4501_v37, %v4486_v25  ;;  %v934_v25 = vmul.f32 %v4501_v37, %v4296_v4  ;;  %v937_v4 = vmul.f32 %v4501_v37, %v5242_v57  ;;  %v5252_v57 = vld [vmem:[#allocation11_spill] sm:$0xff] }
 0x146   : > { %v1503_v19 = vpack.c.bf16 %v1444_v11, %v1443_v60  ;;  %v1381_v21 = vadd.f32 %v1317_v58, %v992_v51  ;;  %v605_v40 = vmul.f32 %v4506_v26, %v332_v22  ;;  %v939_v47 = vmul.f32 %v4501_v37, %v4579_v46  ;;  %v5244_v58 = vld [vmem:[#allocation7_spill] sm:$0xff] }
 0x147   : > { %v4627_v13 = vpop.permute.xlu1 %1136  ;;  %v999_v12 = vadd.f32 %v935_v28, %v610_v53  ;;  %v1001_v11 = vadd.f32 %v937_v4, %v612_v56  ;;  %v614_v60 = vmul.f32 %v4506_v26, %v5244_v58  ;;  %v936_v3 = vmul.f32 %v4501_v37, %v5245_v20  ;;  %v5248_v28 = vld [vmem:[#allocation45_spill] sm:$0xff] }
 0x148   : > { %v1445_v62 = vmax.f32 %v1381_v21, 0.0  ;;  %v994_v52 = vadd.f32 %v930_v1, %v605_v40  ;;  %3775 = vmatprep.mubr.msk.bf16.mxu0 %vm1563_vm0, %v1503_v19  ;;  %v1323_v1 = vmul.f32 %v4525_v16, %v5243_v8  ;;  %v5246_v19 = vld [vmem:[#allocation8_spill] sm:$0xff]  ;;  %v5247_v40 = vld [vmem:[#allocation21_spill] sm:$0xff]  ;;  %v618_v4 = vmul.f32 %v4506_v26, %v5252_v57 }
 0x149   : > { %1200 = vperm.xlu1 %3945, %v4161_v29   ;;  %v342_v14 = vpop.permute.xlu0 %341  ;;  %v5240_v29 = vld [vmem:[#allocation34_spill] sm:$0xff]  ;;  %v1388_v5 = vadd.f32 %v1324_v48, %v999_v12  ;;  %v938_v21 = vmul.f32 %v4501_v37, %v5246_v19  ;;  %v1390_v63 = vadd.f32 %v1326_v24, %v1001_v11  ;;  %v1003_v49 = vadd.f32 %v939_v47, %v614_v60  ;;  %v5253_v47 = vld [vmem:[#allocation12_spill] sm:$0xff]  ;;  %v5255_v58 = vld [vmem:[#allocation13_spill] sm:$0xff] }
 0x14a   : > { %v1504_v15 = vpack.c.bf16 %v1446_v30, %v1445_v62  ;;  %v1383_v55 = vadd.f32 %v1319_v61, %v994_v52  ;;  %v607_v27 = vmul.f32 %v4506_v26, %v342_v14  ;;  %v1321_v38 = vmul.f32 %v4525_v16, %v5240_v29  ;;  %v5249_v14 = vld [vmem:[#allocation9_spill] sm:$0xff] }
 0x14b   : > { %v1141_v41 = vpop.permute.xlu1 %1140  ;;  %v1328_v30 = vmul.f32 %v4525_v16, %v5247_v40  ;;  %v1452_v61 = vmax.f32 %v1388_v5, 0.0  ;;  %v1325_v62 = vmul.f32 %v4525_v16, %v5248_v28  ;;  %v1327_v12 = vmul.f32 %v4525_v16, %v4613_v44  ;;  %v5254_v5 = vld [vmem:[#allocation23_spill] sm:$0xff] }
 0x14c   : > { %v1447_v23 = vmax.f32 %v1383_v55, 0.0  ;;  %v996_v33 = vadd.f32 %v932_v18, %v607_v27  ;;  %v616_v18 = vmul.f32 %v4506_v26, %v5249_v14  ;;  %v1332_v8 = vmul.f32 %v4525_v16, %v5254_v5 }
 0x14d   : > { %3946 = vset.pattern.permute.xlu1 %v5220_v39  ;;  %3776 = vmatmul.mubr.msk.bf16.gmra.mrb[8].mxu0 %vm1563_vm0, %v1504_v15  ;;  %v352_v0 = vpop.permute.xlu0 %351  ;;  %v5250_v15 = vld [vmem:[#allocation10_spill] sm:$0xff]  ;;  %v1392_v31 = vadd.f32 %v1328_v30, %v1003_v49  ;;  %v620_v60 = vmul.f32 %v4506_v26, %v5255_v58 }
 0x14e   : > { %v1505_v7 = vpack.c.bf16 %v1448_v6, %v1447_v23  ;;  %v1385_v10 = vadd.f32 %v1321_v38, %v996_v33  ;;  %v609_v17 = vmul.f32 %v4506_v26, %v352_v0  ;;  %471 = vperm.xlu1 %3946, %v4645_v2   ;;  %v941_v55 = vmul.f32 %v4501_v37, %v5250_v15  ;;  %v5251_v38 = vld [vmem:[#allocation2_spill] sm:$0xff] }
 0x14f   : > { %v1454_v6 = vmax.f32 %v1390_v63, 0.0  ;;  %v1330_v23 = vmul.f32 %v4525_v16, %v1141_v41  ;;  %v942_v41 = vmul.f32 %v4501_v37, %v5253_v47 }
 0x150   : > { %v1449_v36 = vmax.f32 %v1385_v10, 0.0  ;;  %v998_v34 = vadd.f32 %v934_v25, %v609_v17  ;;  %v760_v43 = vpop.permute.xlu1 %759  ;;  %3779 = vmatprep.mubr.msk.bf16.mxu0 %vm1563_vm0, %v1505_v7  ;;  %v1005_v56 = vadd.f32 %v941_v55, %v616_v18  ;;  %v247_v10 = vld [vmem:[%s4047_s21 + $0x158] sm:$0xff]  ;;  %v940_v17 = vmul.f32 %v4501_v37, %v4593_v54 }
 0x151   : > { %v362_v51 = vpop.permute.xlu0 %361  ;;  %v943_v29 = vmul.f32 %v4501_v37, %v760_v43 }
 0x152   : > { %v1506_v59 = vpack.c.bf16 %v1450_v45, %v1449_v36  ;;  %v1387_v22 = vadd.f32 %v1323_v1, %v998_v34  ;;  %v611_v46 = vmul.f32 %v4506_v26, %v362_v51  ;;  %3947 = vset.pattern.permute.xlu1 %v5214_v42  ;;  %v1456_v1 = vmax.f32 %v1392_v31, 0.0  ;;  %v5256_v51 = vld [vmem:[#allocation14_spill] sm:$0xff] }
 0x153   : > { %819 = vperm.xlu1 %3947, %v4645_v2   ;;  %v1007_v36 = vadd.f32 %v943_v29, %v618_v4  ;;  %v1329_v34 = vmul.f32 %v4525_v16, %v4627_v13  ;;  %v1394_v43 = vadd.f32 %v1330_v23, %v1005_v56  ;;  %v945_v20 = vmul.f32 %v4501_v37, %v5256_v51  ;;  %v4726_v56 = vld [vmem:[%s4047_s21 + $0x1f0] sm:$0xff] }
 0x154   : > { %v1451_v52 = vmax.f32 %v1387_v22, 0.0  ;;  %v1000_v50 = vadd.f32 %v936_v3, %v611_v46  ;;  %v764_v53 = vpop.permute.xlu1 %763 }
 0x155   : > { %3780 = vmatmul.mubr.msk.bf16.gmra.mrb[12].mxu0 %vm1563_vm0, %v1506_v59  ;;  %v372_v27 = vpop.permute.xlu0 %371  ;;  %v1458_v13 = vmax.f32 %v1394_v43, 0.0  ;;  %v1009_v49 = vadd.f32 %v945_v20, %v620_v60  ;;  %v5264_v43 = vld [vmem:[#allocation25_spill] sm:$0xff] }
 0x156   : > { %v1507_v25 = vpack.c.bf16 %v1452_v61, %v1451_v52  ;;  %v1389_v32 = vadd.f32 %v1325_v62, %v1000_v50  ;;  %v613_v48 = vmul.f32 %v4506_v26, %v372_v27  ;;  %v944_v61 = vmul.f32 %v4501_v37, %v764_v53 }
 0x157   : > { %823 = vperm.xlu1 %3947, %v5251_v38  }
 0x158   : > { %v1453_v33 = vmax.f32 %v1389_v32, 0.0  ;;  %v1002_v35 = vadd.f32 %v938_v21, %v613_v48  ;;  %3783 = vmatprep.mubr.msk.bf16.mxu0 %vm1563_vm0, %v1507_v25  ;;  %v1396_v21 = vadd.f32 %v1332_v8, %v1007_v36 }
 0x159   : > { %v1145_v0 = vpop.permute.xlu1 %1144  ;;  %v382_v7 = vpop.permute.xlu0 %381 }
 0x15a   : > { %v1508_v45 = vpack.c.bf16 %v1454_v6, %v1453_v33  ;;  %v1391_v24 = vadd.f32 %v1327_v12, %v1002_v35  ;;  %v615_v44 = vmul.f32 %v4506_v26, %v382_v7  ;;  %v1331_v40 = vmul.f32 %v4525_v16, %v1145_v0  ;;  %v5257_v12 = vld [vmem:[#allocation22_spill] sm:$0xff]  ;;  %v4721_v33 = vld [vmem:[%s4047_s21 + $0x1e8] sm:$0xff] }
 0x15b   : > { %3948 = vset.pattern.permute.xlu1 %v5220_v39  ;;  %v1460_v15 = vmax.f32 %v1396_v21, 0.0  ;;  %903 = vperm.xlu0 %3972, %v4721_v33  }
 0x15c   : > { %v1455_v11 = vmax.f32 %v1391_v24, 0.0  ;;  %v1004_v54 = vadd.f32 %v940_v17, %v615_v44  ;;  %486 = vperm.xlu1 %3948, %v247_v10   ;;  %v5259_v17 = vld [vmem:[#allocation31_spill] sm:$0xff]  ;;  %v5261_v24 = vld [vmem:[#allocation24_spill] sm:$0xff] }
 0x15d   : > { %v1153_v3 = vpop.permute.xlu1 %1152  ;;  %3784 = vmatmul.mubr.msk.bf16.gmra.mrb[16].mxu0 %vm1563_vm0, %v1508_v45  ;;  %v392_v59 = vpop.permute.xlu0 %391  ;;  %v1335_v44 = vmul.f32 %v4525_v16, %v5261_v24 }
 0x15e   : > { %v1509_v22 = vpack.c.bf16 %v1456_v1, %v1455_v11  ;;  %v1393_v46 = vadd.f32 %v1329_v34, %v1004_v54  ;;  %v617_v19 = vmul.f32 %v4506_v26, %v392_v59  ;;  %v1333_v55 = vmul.f32 %v4525_v16, %v1153_v3  ;;  %v5263_v34 = vld [vmem:[#allocation38_spill] sm:$0xff]  ;;  %v5265_v59 = vld [vmem:[#allocation16_spill] sm:$0xff] }
 0x15f   : > { %907 = vperm.xlu0 %3972, %v4726_v56   ;;  %v1338_v11 = vmul.f32 %v4525_v16, %v5264_v43 }
 0x160   : > { %v1457_v30 = vmax.f32 %v1393_v46, 0.0  ;;  %v1006_v63 = vadd.f32 %v942_v41, %v617_v19  ;;  %3949 = vset.pattern.permute.xlu1 %v5214_v42  ;;  %3787 = vmatprep.mubr.msk.bf16.mxu0 %vm1563_vm0, %v1509_v22  ;;  %v5262_v41 = vld [vmem:[#allocation15_spill] sm:$0xff]  ;;  %v948_v22 = vmul.f32 %v4501_v37, %v5265_v59  ;;  %v5266_v19 = vld [vmem:[#allocation4_spill] sm:$0xff] }
 0x161   : > { %831 = vperm.xlu1 %3949, %v247_v10   ;;  %v1157_v28 = vpop.permute.xlu1 %1156  ;;  %v402_v62 = vpop.permute.xlu0 %401  ;;  %v947_v5 = vmul.f32 %v4501_v37, %v5262_v41 }
 0x162   : > { %v1510_v52 = vpack.c.bf16 %v1458_v13, %v1457_v30  ;;  %v1395_v50 = vadd.f32 %v1331_v40, %v1006_v63  ;;  %v1334_v14 = vmul.f32 %v4525_v16, %v1157_v28  ;;  %v619_v18 = vmul.f32 %v4506_v26, %v402_v62 }
 0x163   : > { %3977 = vset.pattern.permute.xlu0 %v5216_v9 }
 0x164   : > { %v1459_v27 = vmax.f32 %v1395_v50, 0.0  ;;  %v1398_v25 = vadd.f32 %v1334_v14, %v1009_v49  ;;  %v1008_v32 = vadd.f32 %v944_v61, %v619_v18  ;;  %1288 = vperm.xlu0 %3977, %v5259_v17   ;;  %v3983_v14 = vld [vmem:[%s5169_s3] sm:$0xff]  }
 0x165   : > { %3950 = vset.pattern.permute.xlu1 %v5216_v9  ;;  %3788 = vmatmul.mubr.msk.bf16.gmra.mrb[20].mxu0 %vm1563_vm0, %v1510_v52  ;;  %v412_v4 = vpop.permute.xlu0 %411 }
 0x166   : > { %v1511_v53 = vpack.c.bf16 %v1460_v15, %v1459_v27  ;;  %v1397_v48 = vadd.f32 %v1333_v55, %v1008_v32  ;;  %1208 = vperm.xlu1 %3950, %v4645_v2   ;;  %v417_v6 = vpop.permute.xlu1 %416  ;;  %v1462_v31 = vmax.f32 %v1398_v25, 0.0  ;;  %v5258_v2 = vld [vmem:[#allocation36_spill] sm:$0xff]  ;;  %v621_v0 = vmul.f32 %v4506_v26, %v412_v4  ;;  %3831 = vmatprep.subr.bf16.mxu1 %v3983_v14  ;;  %v3984_v15 = vld [vmem:[%s5169_s3 + $0x8] sm:$0xff]   ;;  %v4767_v27 = vld [vmem:[%s4047_s21 + $0x1f8] sm:$0xff] }
 0x167   : > { %v622_v8 = vmul.f32 %v4506_v26, %v417_v6  ;;  %3832 = vmatpush3.bf16.msra.mxu1 %v3983_v14  ;;  %v3985_v25 = vld [vmem:[%s5169_s3 + $0x10] sm:$0xff]   ;;  %v3987_v4 = vld [vmem:[%s4047_s21 + $0x188] sm:$0xff] }
 0x168   : > { %v1461_v29 = vmax.f32 %v1397_v48, 0.0  ;;  %3791 = vmatprep.mubr.msk.bf16.mxu0 %vm1563_vm0, %v1511_v53  ;;  %3833 = vmatprep.subr.bf16.mxu1 %v3984_v15  ;;  %v252_v53 = vld [vmem:[%s4047_s21 + $0x180] sm:$0xff]  ;;  %v3986_v48 = vld [vmem:[%s5169_s3 + $0x18] sm:$0xff]  }
 0x169   : > { %v1011_v60 = vadd.f32 %v947_v5, %v622_v8  ;;  %1300 = vperm.xlu0 %3977, %v4767_v27   ;;  %v5268_v5 = vld [vmem:[#allocation17_spill] sm:$0xff] }
 0x16a   : > { %v1512_v38 = vpack.c.bf16 %v1462_v31, %v1461_v29  ;;  %1216 = vperm.xlu1 %3950, %v5257_v12   ;;  %v437_v31 = vpop.permute.xlu0 %436  ;;  %v952_v8 = vmul.f32 %v4501_v37, %v5268_v5 }
 0x16b   : > { %v772_v23 = vpop.permute.xlu1 %771  ;;  %3834 = vmatpush3.bf16.msra.mxu1 %v3984_v15  ;;  %v626_v29 = vmul.f32 %v4506_v26, %v437_v31  ;;  %v3988_v15 = vld [vmem:[%s4047_s21 + $0x1a0] sm:$0xff] }
 0x16c   : > { %v946_v7 = vmul.f32 %v4501_v37, %v772_v23  ;;  %3835 = vmatprep.subr.bf16.mxu1 %v3985_v25  ;;  %v5267_v23 = vld [vmem:[#allocation27_spill] sm:$0xff] }
 0x16d   : > { %3792 = vmatmul.mubr.msk.bf16.gmra.mrb[24].mxu0 %vm1563_vm0, %v1512_v38 }
 0x16e   : > { %1220 = vperm.xlu1 %3950, %v247_v10   ;;  %v5260_v10 = vld [vmem:[#allocation3_spill] sm:$0xff]  ;;  %v1010_v47 = vadd.f32 %v946_v7, %v621_v0  ;;  %v442_v7 = vpop.permute.xlu0 %441 }
 0x16f   : > { %3836 = vmatpush3.bf16.msra.mxu1 %v3985_v25 }
 0x170   : > { %v422_v35 = vpop.permute.xlu1 %421  ;;  %v1399_v54 = vadd.f32 %v1335_v44, %v1010_v47  ;;  %3837 = vmatprep.subr.bf16.mxu1 %v3986_v48  ;;  %v627_v47 = vmul.f32 %v4506_v26, %v442_v7 }
 0x171   : > { %v623_v51 = vmul.f32 %v4506_v26, %v422_v35  ;;  %v1340_v35 = vmul.f32 %v4525_v16, %v5267_v23  ;;  %v5273_v23 = vld [vmem:[#allocation43_spill] sm:$0xff] }
 0x172   : > { %3951 = vset.pattern.permute.xlu1 %v5220_v39  ;;  %v1463_v21 = vmax.f32 %v1399_v54, 0.0  ;;  %v1016_v54 = vadd.f32 %v952_v8, %v627_v47 }
 0x173   : > { %496 = vperm.xlu1 %3951, %v5258_v2   ;;  %v1012_v40 = vadd.f32 %v948_v22, %v623_v51  ;;  %3838 = vmatpush3.bf16.msra.mxu1 %v3986_v48  ;;  %v452_v22 = vpop.permute.xlu0 %451 }
 0x174   : > { %v427_v57 = vpop.permute.xlu1 %426 }
 0x175   : > { %v624_v36 = vmul.f32 %v4506_v26, %v427_v57 }
 0x177   : > { %3952 = vset.pattern.permute.xlu1 %v5214_v42 }
 0x178   : > { %835 = vperm.xlu1 %3952, %v5260_v10   ;;  %v255_v10 = vld [vmem:[%s4047_s21 + $0x198] sm:$0xff] }
 0x179   : > { %v784_v45 = vpop.permute.xlu1 %783 }
 0x17a   : > { %v949_v1 = vmul.f32 %v4501_v37, %v784_v45 }
 0x17c   : > { %3953 = vset.pattern.permute.xlu1 %v5220_v39  ;;  %v1013_v20 = vadd.f32 %v949_v1, %v624_v36 }
 0x17d   : > { %501 = vperm.xlu1 %3953, %v5263_v34  }
 0x17e   : > { %v1165_v58 = vpop.permute.xlu1 %1164  ;;  %v1402_v30 = vadd.f32 %v1338_v11, %v1013_v20 }
 0x17f   : > { %v1336_v3 = vmul.f32 %v4525_v16, %v1165_v58 }
 0x180   : > { %v1466_v62 = vmax.f32 %v1402_v30, 0.0 }
 0x181   : > { %v1400_v46 = vadd.f32 %v1336_v3, %v1011_v60  ;;  %506 = vperm.xlu1 %3953, %v5266_v19  }
 0x182   : > { %v1169_v13 = vpop.permute.xlu1 %1168 }
 0x183   : > { %v1464_v63 = vmax.f32 %v1400_v46, 0.0  ;;  %v1337_v49 = vmul.f32 %v4525_v16, %v1169_v13 }
 0x185   : > { %v1513_v61 = vpack.c.bf16 %v1464_v63, %v1463_v21  ;;  %v1401_v28 = vadd.f32 %v1337_v49, %v1012_v40  ;;  %3954 = vset.pattern.permute.xlu1 %v5214_v42  ;;  %v4800_v40 = vpop.permute.xlu0 %476  ;;  %v5269_v63 = vld [vmem:[#allocation26_spill] sm:$0xff] }
 0x186   : > { %847 = vperm.xlu1 %3954, %v5266_v19  }
 0x187   : > { %v1465_v52 = vmax.f32 %v1401_v28, 0.0  ;;  %v432_v50 = vpop.permute.xlu1 %431  ;;  %3795 = vmatprep.mubr.msk.bf16.mxu0 %vm1563_vm0, %v1513_v61 }
 0x188   : > { %v625_v0 = vmul.f32 %v4506_v26, %v432_v50 }
 0x189   : > { %v1514_v18 = vpack.c.bf16 %v1466_v62, %v1465_v52  ;;  %v4804_v61 = vpop.permute.xlu0 %481  ;;  %v5270_v52 = vld [vmem:[#allocation42_spill] sm:$0xff] }
 0x18a   : > { %3955 = vset.pattern.permute.xlu1 %v5216_v9 }
 0x18b   : > { %1228 = vperm.xlu1 %3955, %v5258_v2   ;;  %3796 = vmatmul.mubr.msk.bf16.gmra.mrb[28].mxu0 %vm1563_vm0, %v1514_v18  ;;  %v629_v18 = vmul.f32 %v4506_v26, %v452_v22 }
 0x18c   : > { %v788_v55 = vpop.permute.xlu1 %787 }
 0x18d   : > { %v950_v2 = vmul.f32 %v4501_v37, %v788_v55  ;;  %v4807_v62 = vpop.permute.xlu0 %491 }
 0x18f   : > { %1232 = vperm.xlu1 %3955, %v5263_v34   ;;  %v1014_v45 = vadd.f32 %v950_v2, %v625_v0 }
 0x190   : > { %v792_v32 = vpop.permute.xlu1 %791 }
 0x191   : > { %v951_v38 = vmul.f32 %v4501_v37, %v792_v32  ;;  %v4814_v55 = vpop.permute.xlu0 %516  ;;  %v5271_v32 = vld [vmem:[#allocation28_spill] sm:$0xff] }
 0x193   : > { %3956 = vset.pattern.permute.xlu1 %v5220_v39  ;;  %v1015_v57 = vadd.f32 %v951_v38, %v626_v29  ;;  %v5272_v29 = vld [vmem:[#allocation18_spill] sm:$0xff] }
 0x194   : > { %511 = vperm.xlu1 %3956, %v252_v53   ;;  %v955_v38 = vmul.f32 %v4501_v37, %v5272_v29 }
 0x195   : > { %v447_v6 = vpop.permute.xlu1 %446  ;;  %v1404_v24 = vadd.f32 %v1340_v35, %v1015_v57  ;;  %v4825_v57 = vpop.permute.xlu0 %521 }
 0x196   : > { %v628_v58 = vmul.f32 %v4506_v26, %v447_v6 }
 0x197   : > { %v1468_v36 = vmax.f32 %v1404_v24, 0.0  ;;  %v5275_v24 = vld [vmem:[#allocation29_spill] sm:$0xff] }
 0x198   : > { %3957 = vset.pattern.permute.xlu1 %v5214_v42 }
 0x199   : > { %851 = vperm.xlu1 %3957, %v252_v53  }
 0x19a   : > { %v800_v12 = vpop.permute.xlu1 %799 }
 0x19b   : > { %v953_v34 = vmul.f32 %v4501_v37, %v800_v12 }
 0x19d   : > { %855 = vperm.xlu1 %3957, %v3987_v4   ;;  %v1017_v20 = vadd.f32 %v953_v34, %v628_v58 }
 0x19f   : > { %v1177_v17 = vpop.permute.xlu1 %1176 }
 0x1a0   : > { %v1339_v44 = vmul.f32 %v4525_v16, %v1177_v17 }
 0x1a1   : > { %3958 = vset.pattern.permute.xlu1 %v5220_v39 }
 0x1a2   : > { %v1403_v41 = vadd.f32 %v1339_v44, %v1014_v45  ;;  %526 = vperm.xlu1 %3958, %v255_v10   ;;  %v1346_v44 = vmul.f32 %v4525_v16, %v5275_v24 }
 0x1a3   : > { %v1185_v1 = vpop.permute.xlu1 %1184 }
 0x1a4   : > { %v1467_v43 = vmax.f32 %v1403_v41, 0.0  ;;  %v1341_v11 = vmul.f32 %v4525_v16, %v1185_v1  ;;  %v3989_v41 = vld [vmem:[%s4047_s21 + $0x1b8] sm:$0xff] }
 0x1a6   : > { %v1515_v60 = vpack.c.bf16 %v1468_v36, %v1467_v43  ;;  %3959 = vset.pattern.permute.xlu1 %v5214_v42  ;;  %v1405_v3 = vadd.f32 %v1341_v11, %v1016_v54  ;;  %v4835_v11 = vpop.permute.xlu0 %531 }
 0x1a7   : > { %863 = vperm.xlu1 %3959, %v255_v10   ;;  %v1189_v51 = vpop.permute.xlu1 %1188 }
 0x1a8   : > { %v1342_v59 = vmul.f32 %v4525_v16, %v1189_v51  ;;  %3799 = vmatprep.mubr.msk.bf16.mxu0 %vm1563_vm0, %v1515_v60  ;;  %v1469_v19 = vmax.f32 %v1405_v3, 0.0 }
 0x1aa   : > { %v1406_v46 = vadd.f32 %v1342_v59, %v1017_v20  ;;  %v4840_v59 = vpop.permute.xlu0 %556 }
 0x1ab   : > { %3960 = vset.pattern.permute.xlu1 %v5216_v9 }
 0x1ac   : > { %v1470_v21 = vmax.f32 %v1406_v46, 0.0  ;;  %1240 = vperm.xlu1 %3960, %v252_v53   ;;  %v457_v13 = vpop.permute.xlu1 %456  ;;  %v1343_v53 = vmul.f32 %v4525_v16, %v5271_v32 }
 0x1ad   : > { %v630_v6 = vmul.f32 %v4506_v26, %v457_v13 }
 0x1ae   : > { %v1516_v30 = vpack.c.bf16 %v1470_v21, %v1469_v19  ;;  %v4845_v19 = vpop.permute.xlu0 %561  ;;  %v260_v21 = vld [vmem:[%s4047_s21 + $0x1c0] sm:$0xff] }
 0x1af   : > { %v1019_v4 = vadd.f32 %v955_v38, %v630_v6  ;;  %v263_v6 = vld [vmem:[%s4047_s21 + $0x1d8] sm:$0xff] }
 0x1b0   : > { %1248 = vperm.xlu1 %3960, %v5269_v63   ;;  %3800 = vmatmul.mubr.msk.bf16.gmra.mrb[32].mxu0 %vm1563_vm0, %v1516_v30  ;;  %v634_v63 = vmul.f32 %v4506_v26, %v4800_v40  ;;  %v635_v40 = vmul.f32 %v4506_v26, %v4804_v61 }
 0x1b1   : > { %v804_v49 = vpop.permute.xlu1 %803 }
 0x1b2   : > { %v954_v14 = vmul.f32 %v4501_v37, %v804_v49  ;;  %v4849_v30 = vpop.permute.xlu0 %571 }
 0x1b4   : > { %1252 = vperm.xlu1 %3960, %v255_v10   ;;  %v1018_v48 = vadd.f32 %v954_v14, %v629_v18  ;;  %v5274_v10 = vld [vmem:[#allocation19_spill] sm:$0xff] }
 0x1b5   : > { %v956_v45 = vmul.f32 %v4501_v37, %v5274_v10  ;;  %v3990_v18 = vld [vmem:[%s4047_s21 + $0x1c8] sm:$0xff] }
 0x1b6   : > { %v462_v28 = vpop.permute.xlu1 %461  ;;  %v1407_v35 = vadd.f32 %v1343_v53, %v1018_v48  ;;  %v828_v14 = vpop.permute.xlu0 %827 }
 0x1b7   : > { %v631_v0 = vmul.f32 %v4506_v26, %v462_v28  ;;  %v960_v48 = vmul.f32 %v4501_v37, %v828_v14 }
 0x1b8   : > { %3961 = vset.pattern.permute.xlu1 %v5220_v39  ;;  %v1471_v5 = vmax.f32 %v1407_v35, 0.0 }
 0x1b9   : > { %536 = vperm.xlu1 %3961, %v5270_v52   ;;  %v1020_v1 = vadd.f32 %v956_v45, %v631_v0 }
 0x1ba   : > { %v467_v50 = vpop.permute.xlu1 %466 }
 0x1bb   : > { %v632_v12 = vmul.f32 %v4506_v26, %v467_v50 }
 0x1bd   : > { %3962 = vset.pattern.permute.xlu1 %v5214_v42 }
 0x1be   : > { %867 = vperm.xlu1 %3962, %v3988_v15   ;;  %v5276_v15 = vld [vmem:[#allocation30_spill] sm:$0xff] }
 0x1bf   : > { %v816_v25 = vpop.permute.xlu1 %815 }
 0x1c0   : > { %v957_v31 = vmul.f32 %v4501_v37, %v816_v25  ;;  %v1348_v25 = vmul.f32 %v4525_v16, %v5276_v15  ;;  %v4894_v15 = vld [vmem:[%s5167_s1] ss:$0 sm:$0xff] }
 0x1c2   : > { %3963 = vset.pattern.permute.xlu1 %v5220_v39  ;;  %v1021_v7 = vadd.f32 %v957_v31, %v632_v12 }
 0x1c3   : > { %541 = vperm.xlu1 %3963, %v5273_v23  }
 0x1c4   : > { %v1197_v2 = vpop.permute.xlu1 %1196  ;;  %v1410_v36 = vadd.f32 %v1346_v44, %v1021_v7 }
 0x1c5   : > { %v1344_v17 = vmul.f32 %v4525_v16, %v1197_v2 }
 0x1c6   : > { %v1474_v60 = vmax.f32 %v1410_v36, 0.0  ;;  %v3991_v36 = vld [vmem:[%s4047_s21 + $0x1d0] sm:$0xff] }
 0x1c7   : > { %v1408_v47 = vadd.f32 %v1344_v17, %v1019_v4  ;;  %546 = vperm.xlu1 %3963, %v3989_v41  }
 0x1c8   : > { %v1201_v8 = vpop.permute.xlu1 %1200 }
 0x1c9   : > { %v1472_v34 = vmax.f32 %v1408_v47, 0.0  ;;  %v1345_v43 = vmul.f32 %v4525_v16, %v1201_v8 }
 0x1cb   : > { %v1517_v54 = vpack.c.bf16 %v1472_v34, %v1471_v5  ;;  %v1409_v58 = vadd.f32 %v1345_v43, %v1020_v1  ;;  %3964 = vset.pattern.permute.xlu1 %v5214_v42 }
 0x1cc   : > { %879 = vperm.xlu1 %3964, %v3989_v41  }
 0x1cd   : > { %v1473_v51 = vmax.f32 %v1409_v58, 0.0  ;;  %v472_v20 = vpop.permute.xlu1 %471  ;;  %3803 = vmatprep.mubr.msk.bf16.mxu0 %vm1563_vm0, %v1517_v54  ;;  %v637_v58 = vmul.f32 %v4506_v26, %v4807_v62 }
 0x1ce   : > { %v633_v32 = vmul.f32 %v4506_v26, %v472_v20  ;;  %v3992_v20 = vld [vmem:[%s4047_s21 + $0x1e0] sm:$0xff] }
 0x1cf   : > { %v1518_v3 = vpack.c.bf16 %v1474_v60, %v1473_v51  ;;  %v840_v51 = vpop.permute.xlu0 %839 }
 0x1d0   : > { %3965 = vset.pattern.permute.xlu1 %v5216_v9 }
 0x1d1   : > { %1260 = vperm.xlu1 %3965, %v5270_v52   ;;  %3804 = vmatmul.mubr.msk.bf16.gmra.mrb[36].mxu0 %vm1563_vm0, %v1518_v3 }
 0x1d2   : > { %v820_v22 = vpop.permute.xlu1 %819 }
 0x1d3   : > { %v958_v52 = vmul.f32 %v4501_v37, %v820_v22  ;;  %v844_v62 = vpop.permute.xlu0 %843 }
 0x1d5   : > { %1264 = vperm.xlu1 %3965, %v5273_v23   ;;  %v1022_v31 = vadd.f32 %v958_v52, %v633_v32  ;;  %v1024_v23 = vadd.f32 %v960_v48, %v635_v40  ;;  %v964_v52 = vmul.f32 %v4501_v37, %v844_v62  ;;  %v5278_v40 = vld [vmem:[#allocation33_spill] sm:$0xff] }
 0x1d6   : > { %v824_v46 = vpop.permute.xlu1 %823 }
 0x1d7   : > { %v959_v49 = vmul.f32 %v4501_v37, %v824_v46  ;;  %v963_v46 = vmul.f32 %v4501_v37, %v840_v51  ;;  %v4921_v51 = vld [vmem:[%s5167_s1 + $0x1] ss:$0 sm:$0xff] }
 0x1d9   : > { %3966 = vset.pattern.permute.xlu1 %v5220_v39  ;;  %v1023_v50 = vadd.f32 %v959_v49, %v634_v63  ;;  %v5277_v63 = vld [vmem:[#allocation32_spill] sm:$0xff] }
 0x1da   : > { %551 = vperm.xlu1 %3966, %v260_v21   ;;  %v1351_v49 = vmul.f32 %v4525_v16, %v5277_v63 }
 0x1db   : > { %v487_v13 = vpop.permute.xlu1 %486  ;;  %v1412_v29 = vadd.f32 %v1348_v25, %v1023_v50 }
 0x1dc   : > { %v636_v7 = vmul.f32 %v4506_v26, %v487_v13 }
 0x1dd   : > { %v1476_v2 = vmax.f32 %v1412_v29, 0.0 }
 0x1de   : > { %3967 = vset.pattern.permute.xlu1 %v5214_v42 }
 0x1df   : > { %883 = vperm.xlu1 %3967, %v260_v21  }
 0x1e0   : > { %v832_v28 = vpop.permute.xlu1 %831 }
 0x1e1   : > { %v961_v4 = vmul.f32 %v4501_v37, %v832_v28 }
 0x1e3   : > { %887 = vperm.xlu1 %3967, %v3990_v18   ;;  %v1025_v45 = vadd.f32 %v961_v4, %v636_v7 }
 0x1e5   : > { %v1209_v53 = vpop.permute.xlu1 %1208 }
 0x1e6   : > { %v1347_v38 = vmul.f32 %v4525_v16, %v1209_v53 }
 0x1e7   : > { %3968 = vset.pattern.permute.xlu1 %v5220_v39 }
 0x1e8   : > { %v1411_v12 = vadd.f32 %v1347_v38, %v1022_v31  ;;  %566 = vperm.xlu1 %3968, %v263_v6   ;;  %v4904_v38 = vld [vmem:[%s5167_s1 + $0x2] ss:$0 sm:$0xff] }
 0x1e9   : > { %v1217_v35 = vpop.permute.xlu1 %1216 }
 0x1ea   : > { %v1475_v0 = vmax.f32 %v1411_v12, 0.0  ;;  %v1349_v61 = vmul.f32 %v4525_v16, %v1217_v35 }
 0x1ec   : > { %v1519_v17 = vpack.c.bf16 %v1476_v2, %v1475_v0  ;;  %3969 = vset.pattern.permute.xlu1 %v5214_v42  ;;  %v1413_v24 = vadd.f32 %v1349_v61, %v1024_v23 }
 0x1ed   : > { %895 = vperm.xlu1 %3969, %v263_v6   ;;  %v1221_v10 = vpop.permute.xlu1 %1220 }
 0x1ee   : > { %v1350_v44 = vmul.f32 %v4525_v16, %v1221_v10  ;;  %3807 = vmatprep.mubr.msk.bf16.mxu0 %vm1563_vm0, %v1519_v17  ;;  %v1477_v41 = vmax.f32 %v1413_v24, 0.0 }
 0x1f0   : > { %v1414_v47 = vadd.f32 %v1350_v44, %v1025_v45 }
 0x1f1   : > { %3970 = vset.pattern.permute.xlu1 %v5216_v9 }
 0x1f2   : > { %v1478_v5 = vmax.f32 %v1414_v47, 0.0  ;;  %1272 = vperm.xlu1 %3970, %v260_v21   ;;  %v497_v8 = vpop.permute.xlu1 %496 }
 0x1f3   : > { %v638_v21 = vmul.f32 %v4506_v26, %v497_v8 }
 0x1f4   : > { %v1520_v1 = vpack.c.bf16 %v1478_v5, %v1477_v41 }
 0x1f5   : > { %v1027_v18 = vadd.f32 %v963_v46, %v638_v21 }
 0x1f6   : > { %1280 = vperm.xlu1 %3970, %v3991_v36   ;;  %3808 = vmatmul.mubr.msk.bf16.gmra.mrb[40].mxu0 %vm1563_vm0, %v1520_v1 }
 0x1f7   : > { %v836_v34 = vpop.permute.xlu1 %835 }
 0x1f8   : > { %v962_v60 = vmul.f32 %v4501_v37, %v836_v34 }
 0x1fa   : > { %1284 = vperm.xlu1 %3970, %v263_v6   ;;  %v1026_v22 = vadd.f32 %v962_v60, %v637_v58 }
 0x1fc   : > { %v502_v43 = vpop.permute.xlu1 %501  ;;  %v1415_v50 = vadd.f32 %v1351_v49, %v1026_v22  ;;  %v5279_v22 = vld [vmem:[#allocation35_spill] sm:$0xff] }
 0x1fd   : > { %v639_v25 = vmul.f32 %v4894_v15, %v502_v43  ;;  %v1356_v46 = vmul.f32 %v4904_v38, %v5279_v22 }
 0x1fe   : > { %3973 = vset.pattern.permute.xlu1 %v5220_v39 }
 0x1ff   : > { %576 = vperm.xlu1 %3973, %v4721_v33   ;;  %v1028_v6 = vadd.f32 %v964_v52, %v639_v25 }
 0x200   : > { %v507_v54 = vpop.permute.xlu1 %506 }
 0x201   : > { %v640_v28 = vmul.f32 %v4506_v26, %v507_v54  ;;  %v1354_v26 = vmul.f32 %v4525_v16, %v5278_v40 }
 0x203   : > { %3974 = vset.pattern.permute.xlu1 %v5214_v42 }
 0x204   : > { %899 = vperm.xlu1 %3974, %v3992_v20  }
 0x205   : > { %v848_v3 = vpop.permute.xlu1 %847 }
 0x206   : > { %v965_v13 = vmul.f32 %v4501_v37, %v848_v3  ;;  %v1479_v37 = vmax.f32 %v1415_v50, 0.0 }
 0x208   : > { %3975 = vset.pattern.permute.xlu1 %v5220_v39  ;;  %v1029_v32 = vadd.f32 %v965_v13, %v640_v28 }
 0x209   : > { %581 = vperm.xlu1 %3975, %v4726_v56  }
 0x20a   : > { %v1229_v14 = vpop.permute.xlu1 %1228  ;;  %v1418_v31 = vadd.f32 %v1354_v26, %v1029_v32 }
 0x20b   : > { %v1352_v39 = vmul.f32 %v4525_v16, %v1229_v14 }
 0x20c   : > { %v1482_v0 = vmax.f32 %v1418_v31, 0.0 }
 0x20d   : > { %v1416_v53 = vadd.f32 %v1352_v39, %v1027_v18  ;;  %586 = vperm.xlu1 %3975, %v4767_v27  }
 0x20e   : > { %v1233_v48 = vpop.permute.xlu1 %1232 }
 0x20f   : > { %v1480_v29 = vmax.f32 %v1416_v53, 0.0  ;;  %v1353_v12 = vmul.f32 %v4904_v38, %v1233_v48 }
 0x210   : > { %v3769_v23 = vpop.f32.mrb[0].mxu0 }
 0x211   : > { %v1521_v35 = vpack.c.bf16 %v1480_v29, %v1479_v37  ;;  %v1417_v2 = vadd.f32 %v1353_v12, %v1028_v6  ;;  %3976 = vset.pattern.permute.xlu1 %v5214_v42  ;;  %v1694_v16 = vpop.f32.mrb[1].mxu0  ;;  %v1951_v7 = vmax.f32 %v3769_v23, 0.0 }
 0x212   : > { %911 = vperm.xlu1 %3976, %v4767_v27   ;;  %v3770_v4 = vpop.f32.mrb[2].mxu0  ;;  %v1949_v24 = vmax.f32 %v1694_v16, 0.0  ;;  %v860_v16 = vpop.permute.xlu0 %859 }
 0x213   : > { %v1481_v61 = vmax.f32 %v1417_v2, 0.0  ;;  %v1952_v17 = vmax.f32 %v3770_v4, 0.0  ;;  %v512_v10 = vpop.permute.xlu1 %511  ;;  %v1697_v45 = vpop.f32.mrb[3].mxu0  ;;  %3811 = vmatprep.mubr.msk.bf16.mxu0 %vm1563_vm0, %v1521_v35 }
 0x214   : > { %v1950_v44 = vmax.f32 %v1697_v45, 0.0  ;;  %v641_v53 = vmul.f32 %v4894_v15, %v512_v10 }
 0x215   : > { %v1522_v47 = vpack.c.bf16 %v1482_v0, %v1481_v61  ;;  %v2014_v41 = vpack.c.bf16 %v1952_v17, %v1951_v7  ;;  %v643_v0 = vmul.f32 %v4894_v15, %v4825_v57  ;;  %v968_v61 = vmul.f32 %v4921_v51, %v860_v16 }
 0x216   : > { %3978 = vset.pattern.permute.xlu1 %v5216_v9  ;;  %v2013_v5 = vpack.c.bf16 %v1950_v44, %v1949_v24 }
 0x217   : > { %1292 = vperm.xlu1 %3978, %v4721_v33   ;;  %3812 = vmatmul.mubr.msk.bf16.gmra.mrb[44].mxu0 %vm1563_vm0, %v1522_v47  ;;  %v642_v33 = vmul.f32 %v4894_v15, %v4814_v55  ;;  %v1032_v57 = vadd.f32 %v968_v61, %v643_v0 }
 0x218   : > { %v852_v42 = vpop.permute.xlu1 %851  ;;  %v3773_v27 = vpop.f32.mrb[4].mxu0  ;;  %3839 = vmatprep.mubr.msk.bf16.mxu1 %vm1563_vm0, %v2013_v5 }
 0x219   : > { %v1710_v8 = vpop.f32.mrb[5].mxu0  ;;  %3840 = vmatmul.mubr.msk.bf16.vlgmr.msra.gmra.mrb[0].mxu1 %vm1563_vm0, %v2014_v41  ;;  %v1955_v36 = vmax.f32 %v3773_v27, 0.0  ;;  %v966_v39 = vmul.f32 %v4921_v51, %v852_v42 }
 0x21a   : > { %v3774_v1 = vpop.f32.mrb[6].mxu0  ;;  %v1953_v54 = vmax.f32 %v1710_v8, 0.0 }
 0x21b   : > { %v1956_v34 = vmax.f32 %v3774_v1, 0.0  ;;  %1296 = vperm.xlu1 %3978, %v4726_v56   ;;  %v1713_v43 = vpop.f32.mrb[7].mxu0  ;;  %v1030_v12 = vadd.f32 %v966_v39, %v641_v53 }
 0x21c   : > { %v1954_v9 = vmax.f32 %v1713_v43, 0.0  ;;  %v856_v58 = vpop.permute.xlu1 %855 }
 0x21d   : > { %v2016_v60 = vpack.c.bf16 %v1956_v34, %v1955_v36  ;;  %v967_v20 = vmul.f32 %v4921_v51, %v856_v58 }
 0x21e   : > { %v2015_v3 = vpack.c.bf16 %v1954_v9, %v1953_v54 }
 0x21f   : > { %v1031_v56 = vadd.f32 %v967_v20, %v642_v33 }
 0x220   : > { %v3777_v21 = vpop.f32.mrb[8].mxu0  ;;  %3843 = vmatprep.mubr.msk.bf16.mxu1 %vm1563_vm0, %v2015_v3 }
 0x221   : > { %v1420_v13 = vadd.f32 %v1356_v46, %v1031_v56  ;;  %v527_v63 = vpop.permute.xlu1 %526  ;;  %v1726_v49 = vpop.f32.mrb[9].mxu0  ;;  %3844 = vmatmul.mubr.msk.bf16.gmra.mrb[4].mxu1 %vm1563_vm0, %v2016_v60  ;;  %v1959_v62 = vmax.f32 %v3777_v21, 0.0 }
 0x222   : > { %v3778_v55 = vpop.f32.mrb[10].mxu0  ;;  %v1957_v50 = vmax.f32 %v1726_v49, 0.0  ;;  %v644_v5 = vmul.f32 %v4894_v15, %v527_v63 }
 0x223   : > { %v1960_v28 = vmax.f32 %v3778_v55, 0.0  ;;  %v1729_v52 = vpop.f32.mrb[11].mxu0  ;;  %v1484_v24 = vmax.f32 %v1420_v13, 0.0 }
 0x224   : > { %v1958_v14 = vmax.f32 %v1729_v52, 0.0 }
 0x225   : > { %v2018_v18 = vpack.c.bf16 %v1960_v28, %v1959_v62 }
 0x226   : > { %v2017_v25 = vpack.c.bf16 %v1958_v14, %v1957_v50  ;;  %v864_v32 = vpop.permute.xlu1 %863 }
 0x227   : > { %v969_v10 = vmul.f32 %v4921_v51, %v864_v32  ;;  %v645_v32 = vmul.f32 %v4894_v15, %v4835_v11 }
 0x228   : > { %v3781_v40 = vpop.f32.mrb[12].mxu0  ;;  %3847 = vmatprep.mubr.msk.bf16.mxu1 %vm1563_vm0, %v2017_v25 }
 0x229   : > { %v1742_v26 = vpop.f32.mrb[13].mxu0  ;;  %3848 = vmatmul.mubr.msk.bf16.gmra.mrb[8].mxu1 %vm1563_vm0, %v2018_v18  ;;  %v1963_v48 = vmax.f32 %v3781_v40, 0.0  ;;  %v1033_v1 = vadd.f32 %v969_v10, %v644_v5 }
 0x22a   : > { %v3782_v37 = vpop.f32.mrb[14].mxu0  ;;  %v1961_v23 = vmax.f32 %v1742_v26, 0.0  ;;  %v5280_v26 = vld [vmem:[#allocation37_spill] sm:$0xff] }
 0x22b   : > { %v1964_v6 = vmax.f32 %v3782_v37, 0.0  ;;  %v1241_v31 = vpop.permute.xlu1 %1240  ;;  %v1745_v29 = vpop.f32.mrb[15].mxu0  ;;  %v1359_v53 = vmul.f32 %v4904_v38, %v5280_v26  ;;  %v5282_v26 = vld [vmem:[#allocation41_spill] sm:$0xff] }
 0x22c   : > { %v1355_v35 = vmul.f32 %v4904_v38, %v1241_v31  ;;  %v1962_v2 = vmax.f32 %v1745_v29, 0.0 }
 0x22d   : > { %v2020_v4 = vpack.c.bf16 %v1964_v6, %v1963_v48 }
 0x22e   : > { %v1419_v7 = vadd.f32 %v1355_v35, %v1030_v12  ;;  %v2019_v17 = vpack.c.bf16 %v1962_v2, %v1961_v23 }
 0x22f   : > { %v1249_v45 = vpop.permute.xlu1 %1248 }
 0x230   : > { %v1483_v44 = vmax.f32 %v1419_v7, 0.0  ;;  %v1357_v47 = vmul.f32 %v4904_v38, %v1249_v45  ;;  %v3785_v41 = vpop.f32.mrb[16].mxu0  ;;  %3851 = vmatprep.mubr.msk.bf16.mxu1 %vm1563_vm0, %v2019_v17  ;;  %v872_v7 = vpop.permute.xlu0 %871 }
 0x231   : > { %v1758_v42 = vpop.f32.mrb[17].mxu0  ;;  %3852 = vmatmul.mubr.msk.bf16.gmra.mrb[12].mxu1 %vm1563_vm0, %v2020_v4  ;;  %v1967_v36 = vmax.f32 %v3785_v41, 0.0  ;;  %v971_v10 = vmul.f32 %v4921_v51, %v872_v7 }
 0x232   : > { %v1523_v27 = vpack.c.bf16 %v1484_v24, %v1483_v44  ;;  %v3786_v8 = vpop.f32.mrb[18].mxu0  ;;  %v1421_v9 = vadd.f32 %v1357_v47, %v1032_v57  ;;  %v1965_v58 = vmax.f32 %v1758_v42, 0.0 }
 0x233   : > { %v1968_v34 = vmax.f32 %v3786_v8, 0.0  ;;  %v1253_v43 = vpop.permute.xlu1 %1252  ;;  %v1761_v54 = vpop.f32.mrb[19].mxu0 }
 0x234   : > { %v1358_v33 = vmul.f32 %v4904_v38, %v1253_v43  ;;  %v1966_v60 = vmax.f32 %v1761_v54, 0.0  ;;  %3815 = vmatprep.mubr.msk.bf16.mxu0 %vm1563_vm0, %v1523_v27  ;;  %v1485_v46 = vmax.f32 %v1421_v9, 0.0  ;;  %v876_v44 = vpop.permute.xlu0 %875 }
 0x235   : > { %v2022_v20 = vpack.c.bf16 %v1968_v34, %v1967_v36  ;;  %v972_v41 = vmul.f32 %v4921_v51, %v876_v44 }
 0x236   : > { %v1422_v3 = vadd.f32 %v1358_v33, %v1033_v1  ;;  %v2021_v22 = vpack.c.bf16 %v1966_v60, %v1965_v58  ;;  %v5281_v1 = vld [vmem:[#allocation39_spill] sm:$0xff] }
 0x237   : > { %v1362_v36 = vmul.f32 %v4904_v38, %v5281_v1 }
 0x238   : > { %v1486_v56 = vmax.f32 %v1422_v3, 0.0  ;;  %v537_v21 = vpop.permute.xlu1 %536  ;;  %v3789_v13 = vpop.f32.mrb[20].mxu0  ;;  %3855 = vmatprep.mubr.msk.bf16.mxu1 %vm1563_vm0, %v2021_v22 }
 0x239   : > { %v1774_v63 = vpop.f32.mrb[21].mxu0  ;;  %3856 = vmatmul.mubr.msk.bf16.gmra.mrb[16].mxu1 %vm1563_vm0, %v2022_v20  ;;  %v1971_v62 = vmax.f32 %v3789_v13, 0.0  ;;  %v646_v45 = vmul.f32 %v4894_v15, %v537_v21 }
 0x23a   : > { %v1524_v49 = vpack.c.bf16 %v1486_v56, %v1485_v46  ;;  %v3790_v55 = vpop.f32.mrb[22].mxu0  ;;  %v1969_v50 = vmax.f32 %v1774_v63, 0.0 }
 0x23b   : > { %v1972_v28 = vmax.f32 %v3790_v55, 0.0  ;;  %v1777_v52 = vpop.f32.mrb[23].mxu0  ;;  %v1035_v42 = vadd.f32 %v971_v10, %v646_v45 }
 0x23c   : > { %v1970_v14 = vmax.f32 %v1777_v52, 0.0  ;;  %3816 = vmatmul.mubr.msk.bf16.gmra.mrb[48].mxu0 %vm1563_vm0, %v1524_v49 }
 0x23d   : > { %v2024_v18 = vpack.c.bf16 %v1972_v28, %v1971_v62  ;;  %v868_v25 = vpop.permute.xlu1 %867 }
 0x23e   : > { %v2023_v39 = vpack.c.bf16 %v1970_v14, %v1969_v50  ;;  %v970_v40 = vmul.f32 %v4921_v51, %v868_v25  ;;  %v650_v25 = vmul.f32 %v4894_v15, %v4840_v59  ;;  %v892_v59 = vpop.permute.xlu0 %891 }
 0x240   : > { %v1034_v37 = vadd.f32 %v970_v40, %v645_v32  ;;  %v3793_v48 = vpop.f32.mrb[24].mxu0  ;;  %3859 = vmatprep.mubr.msk.bf16.mxu1 %vm1563_vm0, %v2023_v39 }
 0x241   : > { %v1790_v6 = vpop.f32.mrb[25].mxu0  ;;  %3860 = vmatmul.mubr.msk.bf16.gmra.mrb[20].mxu1 %vm1563_vm0, %v2024_v18  ;;  %v1975_v23 = vmax.f32 %v3793_v48, 0.0 }
 0x242   : > { %v1423_v31 = vadd.f32 %v1359_v53, %v1034_v37  ;;  %v542_v29 = vpop.permute.xlu1 %541  ;;  %v3794_v12 = vpop.f32.mrb[26].mxu0  ;;  %v1973_v11 = vmax.f32 %v1790_v6, 0.0  ;;  %v1364_v53 = vmul.f32 %v4904_v38, %v5282_v26 }
 0x243   : > { %v1976_v35 = vmax.f32 %v3794_v12, 0.0  ;;  %v1793_v2 = vpop.f32.mrb[27].mxu0  ;;  %v647_v57 = vmul.f32 %v4894_v15, %v542_v29 }
 0x244   : > { %v1974_v16 = vmax.f32 %v1793_v2, 0.0  ;;  %v1487_v43 = vmax.f32 %v1423_v31, 0.0 }
 0x245   : > { %v2026_v4 = vpack.c.bf16 %v1976_v35, %v1975_v23  ;;  %v1036_v9 = vadd.f32 %v972_v41, %v647_v57 }
 0x246   : > { %v2025_v0 = vpack.c.bf16 %v1974_v16, %v1973_v11  ;;  %v547_v61 = vpop.permute.xlu1 %546  ;;  %v651_v11 = vmul.f32 %v4894_v15, %v4845_v19  ;;  %v976_v16 = vmul.f32 %v4921_v51, %v892_v59 }
 0x247   : > { %v648_v47 = vmul.f32 %v4894_v15, %v547_v61 }
 0x248   : > { %3863 = vmatprep.mubr.msk.bf16.mxu1 %vm1563_vm0, %v2025_v0  ;;  %v1040_v45 = vadd.f32 %v976_v16, %v651_v11 }
 0x249   : > { %3864 = vmatmul.mubr.msk.bf16.gmra.mrb[24].mxu1 %vm1563_vm0, %v2026_v4 }
 0x24b   : > { %v880_v17 = vpop.permute.xlu1 %879 }
 0x24c   : > { %v973_v24 = vmul.f32 %v4921_v51, %v880_v17 }
 0x24e   : > { %v1037_v27 = vadd.f32 %v973_v24, %v648_v47 }
 0x250   : > { %v1261_v5 = vpop.permute.xlu1 %1260  ;;  %v1426_v58 = vadd.f32 %v1362_v36, %v1037_v27 }
 0x251   : > { %v1360_v8 = vmul.f32 %v4904_v38, %v1261_v5 }
 0x252   : > { %v1490_v22 = vmax.f32 %v1426_v58, 0.0 }
 0x253   : > { %v1424_v34 = vadd.f32 %v1360_v8, %v1035_v42 }
 0x254   : > { %v1265_v54 = vpop.permute.xlu1 %1264 }
 0x255   : > { %v1488_v33 = vmax.f32 %v1424_v34, 0.0  ;;  %v1361_v60 = vmul.f32 %v4904_v38, %v1265_v54  ;;  %v904_v54 = vpop.permute.xlu0 %903 }
 0x257   : > { %v1525_v20 = vpack.c.bf16 %v1488_v33, %v1487_v43  ;;  %v1425_v3 = vadd.f32 %v1361_v60, %v1036_v9 }
 0x259   : > { %v1489_v46 = vmax.f32 %v1425_v3, 0.0  ;;  %v552_v56 = vpop.permute.xlu1 %551  ;;  %3819 = vmatprep.mubr.msk.bf16.mxu0 %vm1563_vm0, %v1525_v20 }
 0x25a   : > { %v649_v12 = vmul.f32 %v4894_v15, %v552_v56 }
 0x25b   : > { %v1526_v21 = vpack.c.bf16 %v1490_v22, %v1489_v46 }
 0x25d   : > { %3820 = vmatmul.mubr.msk.bf16.gmra.mrb[52].mxu0 %vm1563_vm0, %v1526_v21  ;;  %v908_v21 = vpop.permute.xlu0 %907 }
 0x25e   : > { %v884_v13 = vpop.permute.xlu1 %883  ;;  %v3797_v63 = vpop.f32.mrb[28].mxu0 }
 0x25f   : > { %v1806_v49 = vpop.f32.mrb[29].mxu0  ;;  %v1979_v62 = vmax.f32 %v3797_v63, 0.0  ;;  %v974_v29 = vmul.f32 %v4921_v51, %v884_v13 }
 0x260   : > { %v3798_v55 = vpop.f32.mrb[30].mxu0  ;;  %v1977_v50 = vmax.f32 %v1806_v49, 0.0 }
 0x261   : > { %v1980_v28 = vmax.f32 %v3798_v55, 0.0  ;;  %v1809_v52 = vpop.f32.mrb[31].mxu0  ;;  %v1038_v35 = vadd.f32 %v974_v29, %v649_v12  ;;  %v1289_v49 = vpop.permute.xlu0 %1288  ;;  %v653_v55 = vmul.f32 %v4894_v15, %v4849_v30 }
 0x262   : > { %v1978_v14 = vmax.f32 %v1809_v52, 0.0  ;;  %v888_v18 = vpop.permute.xlu1 %887  ;;  %v1367_v52 = vmul.f32 %v4904_v38, %v1289_v49 }
 0x263   : > { %v2028_v32 = vpack.c.bf16 %v1980_v28, %v1979_v62  ;;  %v975_v39 = vmul.f32 %v4921_v51, %v888_v18 }
 0x264   : > { %v2027_v40 = vpack.c.bf16 %v1978_v14, %v1977_v50 }
 0x265   : > { %v1039_v37 = vadd.f32 %v975_v39, %v650_v25  ;;  %v1301_v18 = vpop.permute.xlu0 %1300  ;;  %v979_v25 = vmul.f32 %v4921_v51, %v904_v54 }
 0x266   : > { %3867 = vmatprep.mubr.msk.bf16.mxu1 %vm1563_vm0, %v2027_v40  ;;  %v1370_v40 = vmul.f32 %v4904_v38, %v1301_v18 }
 0x267   : > { %v1428_v48 = vadd.f32 %v1364_v53, %v1039_v37  ;;  %v567_v6 = vpop.permute.xlu1 %566  ;;  %3868 = vmatmul.mubr.msk.bf16.gmra.mrb[28].mxu1 %vm1563_vm0, %v2028_v32 }
 0x268   : > { %v652_v24 = vmul.f32 %v4894_v15, %v567_v6  ;;  %v980_v6 = vmul.f32 %v4921_v51, %v908_v21 }
 0x269   : > { %v1492_v61 = vmax.f32 %v1428_v48, 0.0 }
 0x26c   : > { %v896_v31 = vpop.permute.xlu1 %895 }
 0x26d   : > { %v977_v7 = vmul.f32 %v4921_v51, %v896_v31 }
 0x26f   : > { %v1041_v41 = vadd.f32 %v977_v7, %v652_v24 }
 0x271   : > { %v1273_v23 = vpop.permute.xlu1 %1272 }
 0x272   : > { %v1363_v2 = vmul.f32 %v4904_v38, %v1273_v23 }
 0x274   : > { %v1427_v4 = vadd.f32 %v1363_v2, %v1038_v35 }
 0x275   : > { %v1281_v0 = vpop.permute.xlu1 %1280 }
 0x276   : > { %v1491_v17 = vmax.f32 %v1427_v4, 0.0  ;;  %v1365_v10 = vmul.f32 %v4904_v38, %v1281_v0 }
 0x278   : > { %v1527_v44 = vpack.c.bf16 %v1492_v61, %v1491_v17  ;;  %v1429_v5 = vadd.f32 %v1365_v10, %v1040_v45 }
 0x279   : > { %v1285_v47 = vpop.permute.xlu1 %1284 }
 0x27a   : > { %v1366_v42 = vmul.f32 %v4904_v38, %v1285_v47  ;;  %3823 = vmatprep.mubr.msk.bf16.mxu0 %vm1563_vm0, %v1527_v44  ;;  %v1493_v57 = vmax.f32 %v1429_v5, 0.0 }
 0x27c   : > { %v1430_v19 = vadd.f32 %v1366_v42, %v1041_v41 }
 0x27e   : > { %v1494_v27 = vmax.f32 %v1430_v19, 0.0  ;;  %v577_v8 = vpop.permute.xlu1 %576 }
 0x27f   : > { %v654_v50 = vmul.f32 %v4894_v15, %v577_v8 }
 0x280   : > { %v1528_v1 = vpack.c.bf16 %v1494_v27, %v1493_v57 }
 0x281   : > { %v1043_v53 = vadd.f32 %v979_v25, %v654_v50 }
 0x282   : > { %3824 = vmatmul.mubr.msk.bf16.gmra.mrb[56].mxu0 %vm1563_vm0, %v1528_v1 }
 0x283   : > { %v900_v36 = vpop.permute.xlu1 %899  ;;  %v3801_v34 = vpop.f32.mrb[32].mxu0 }
 0x284   : > { %v1822_v43 = vpop.f32.mrb[33].mxu0  ;;  %v1983_v58 = vmax.f32 %v3801_v34, 0.0  ;;  %v978_v63 = vmul.f32 %v4921_v51, %v900_v36 }
 0x285   : > { %v3802_v9 = vpop.f32.mrb[34].mxu0  ;;  %v1981_v20 = vmax.f32 %v1822_v43, 0.0 }
 0x286   : > { %v1984_v33 = vmax.f32 %v3802_v9, 0.0  ;;  %v1825_v60 = vpop.f32.mrb[35].mxu0  ;;  %v1042_v28 = vadd.f32 %v978_v63, %v653_v55 }
 0x287   : > { %v1982_v3 = vmax.f32 %v1825_v60, 0.0 }
 0x288   : > { %v2030_v22 = vpack.c.bf16 %v1984_v33, %v1983_v58  ;;  %v582_v46 = vpop.permute.xlu1 %581  ;;  %v1431_v39 = vadd.f32 %v1367_v52, %v1042_v28 }
 0x289   : > { %v2029_v56 = vpack.c.bf16 %v1982_v3, %v1981_v20  ;;  %v655_v30 = vmul.f32 %v4894_v15, %v582_v46 }
 0x28a   : > { %v1495_v29 = vmax.f32 %v1431_v39, 0.0 }
 0x28b   : > { %3871 = vmatprep.mubr.msk.bf16.mxu1 %vm1563_vm0, %v2029_v56  ;;  %v1044_v59 = vadd.f32 %v980_v6, %v655_v30 }
 0x28c   : > { %v587_v13 = vpop.permute.xlu1 %586  ;;  %3872 = vmatmul.mubr.msk.bf16.gmra.mrb[32].mxu1 %vm1563_vm0, %v2030_v22 }
 0x28d   : > { %v656_v32 = vmul.f32 %v4894_v15, %v587_v13 }
 0x291   : > { %v912_v62 = vpop.permute.xlu1 %911 }
 0x292   : > { %v981_v14 = vmul.f32 %v4921_v51, %v912_v62 }
 0x294   : > { %v1045_v37 = vadd.f32 %v981_v14, %v656_v32 }
 0x296   : > { %v1293_v26 = vpop.permute.xlu1 %1292  ;;  %v1434_v23 = vadd.f32 %v1370_v40, %v1045_v37 }
 0x297   : > { %v1368_v48 = vmul.f32 %v4904_v38, %v1293_v26 }
 0x298   : > { %v1498_v4 = vmax.f32 %v1434_v23, 0.0 }
 0x299   : > { %v1432_v31 = vadd.f32 %v1368_v48, %v1043_v53 }
 0x29a   : > { %v1297_v12 = vpop.permute.xlu1 %1296 }
 0x29b   : > { %v1496_v35 = vmax.f32 %v1432_v31, 0.0  ;;  %v1369_v2 = vmul.f32 %v4904_v38, %v1297_v12 }
 0x29d   : > { %v1529_v11 = vpack.c.bf16 %v1496_v35, %v1495_v29  ;;  %v1433_v16 = vadd.f32 %v1369_v2, %v1044_v59 }
 0x29f   : > { %v1497_v0 = vmax.f32 %v1433_v16, 0.0  ;;  %3827 = vmatprep.mubr.msk.bf16.mxu0 %vm1563_vm0, %v1529_v11 }
 0x2a1   : > { %v1530_v15 = vpack.c.bf16 %v1498_v4, %v1497_v0 }
 0x2a3   : > { %3828 = vmatmul.mubr.msk.bf16.gmra.mrb[60].mxu0 %vm1563_vm0, %v1530_v15 }
 0x2a4   : > { %v3805_v61 = vpop.f32.mrb[36].mxu0 }
 0x2a5   : > { %v1838_v7 = vpop.f32.mrb[37].mxu0  ;;  %v1987_v17 = vmax.f32 %v3805_v61, 0.0 }
 0x2a6   : > { %v3806_v51 = vpop.f32.mrb[38].mxu0  ;;  %v1985_v24 = vmax.f32 %v1838_v7, 0.0 }
 0x2a7   : > { %v1988_v10 = vmax.f32 %v3806_v51, 0.0  ;;  %v1841_v45 = vpop.f32.mrb[39].mxu0 }
 0x2a8   : > { %v1986_v44 = vmax.f32 %v1841_v45, 0.0 }
 0x2a9   : > { %v2032_v47 = vpack.c.bf16 %v1988_v10, %v1987_v17 }
 0x2aa   : > { %v2031_v41 = vpack.c.bf16 %v1986_v44, %v1985_v24 }
 0x2ac   : > { %3875 = vmatprep.mubr.msk.bf16.mxu1 %vm1563_vm0, %v2031_v41 }
 0x2ad   : > { %3876 = vmatmul.mubr.msk.bf16.gmra.mrb[36].mxu1 %vm1563_vm0, %v2032_v47 }
 0x2c9   : > { %v3809_v38 = vpop.f32.mrb[40].mxu0 }
 0x2ca   : > { %v1854_v5 = vpop.f32.mrb[41].mxu0  ;;  %v1991_v19 = vmax.f32 %v3809_v38, 0.0 }
 0x2cb   : > { %v3810_v42 = vpop.f32.mrb[42].mxu0  ;;  %v1989_v8 = vmax.f32 %v1854_v5, 0.0 }
 0x2cc   : > { %v1992_v57 = vmax.f32 %v3810_v42, 0.0  ;;  %v1857_v27 = vpop.f32.mrb[43].mxu0 }
 0x2cd   : > { %v1990_v1 = vmax.f32 %v1857_v27, 0.0 }
 0x2ce   : > { %v2034_v36 = vpack.c.bf16 %v1992_v57, %v1991_v19 }
 0x2cf   : > { %v2033_v34 = vpack.c.bf16 %v1990_v1, %v1989_v8 }
 0x2d1   : > { %3879 = vmatprep.mubr.msk.bf16.mxu1 %vm1563_vm0, %v2033_v34 }
 0x2d2   : > { %3880 = vmatmul.mubr.msk.bf16.gmra.mrb[40].mxu1 %vm1563_vm0, %v2034_v36 }
 0x2ea   : > { %v3813_v43 = vpop.f32.mrb[44].mxu0 }
 0x2eb   : > { %v1870_v54 = vpop.f32.mrb[45].mxu0  ;;  %v1995_v33 = vmax.f32 %v3813_v43, 0.0 }
 0x2ec   : > { %v3814_v9 = vpop.f32.mrb[46].mxu0  ;;  %v3841_v58 = vpop.f32.mrb[0].mxu1  ;;  %v1993_v22 = vmax.f32 %v1870_v54, 0.0 }
 0x2ed   : > { %v1996_v60 = vmax.f32 %v3814_v9, 0.0  ;;  %v1873_v20 = vpop.f32.mrb[47].mxu0  ;;  %v2207_v3 = vpop.f32.mrb[1].mxu1  ;;  %v2464_v13 = vmax.f32 %v3841_v58, 0.0 }
 0x2ee   : > { %v1994_v46 = vmax.f32 %v1873_v20, 0.0  ;;  %v3842_v56 = vpop.f32.mrb[2].mxu1  ;;  %v2462_v62 = vmax.f32 %v2207_v3, 0.0 }
 0x2ef   : > { %v2036_v21 = vpack.c.bf16 %v1996_v60, %v1995_v33  ;;  %v2465_v63 = vmax.f32 %v3842_v56, 0.0  ;;  %v2210_v49 = vpop.f32.mrb[3].mxu1 }
 0x2f0   : > { %v2035_v55 = vpack.c.bf16 %v1994_v46, %v1993_v22  ;;  %v2463_v28 = vmax.f32 %v2210_v49, 0.0 }
 0x2f1   : > { %v2533_v52 = vmax.f32 %v2464_v13, %v2465_v63  ;;  %v2964_v50 = vadd.f32 %v2465_v63, %v2464_v13 }
 0x2f2   : > { %v2526_v14 = vmax.f32 %v2462_v62, %v2463_v28  ;;  %v2957_v18 = vadd.f32 %v2463_v28, %v2462_v62  ;;  %3883 = vmatprep.mubr.msk.bf16.mxu1 %vm1563_vm0, %v2035_v55 }
 0x2f3   : > { %v2534_v25 = vrot.slane %v2533_v52, 4  ;;  %v2965_v32 = vrot.slane %v2964_v50, 4  ;;  %3884 = vmatmul.mubr.msk.bf16.gmra.mrb[44].mxu1 %vm1563_vm0, %v2036_v21 }
 0x2f4   : > { %v2527_v39 = vrot.slane %v2526_v14, 4  ;;  %v2958_v40 = vrot.slane %v2957_v18, 4  ;;  %v3845_v26 = vpop.f32.mrb[4].mxu1 }
 0x2f5   : > { %v2535_v53 = vmax.f32 %v2533_v52, %v2534_v25  ;;  %v2966_v30 = vadd.f32 %v2965_v32, %v2964_v50  ;;  %v2223_v37 = vpop.f32.mrb[5].mxu1  ;;  %v2468_v59 = vmax.f32 %v3845_v26, 0.0 }
 0x2f6   : > { %v2528_v48 = vmax.f32 %v2526_v14, %v2527_v39  ;;  %v2959_v6 = vadd.f32 %v2958_v40, %v2957_v18  ;;  %v3846_v31 = vpop.f32.mrb[6].mxu1  ;;  %v2466_v16 = vmax.f32 %v2223_v37, 0.0 }
 0x2f7   : > { %v2536_v29 = vrot.slane %v2535_v53, 2  ;;  %v2967_v12 = vrot.slane %v2966_v30, 2  ;;  %v2469_v23 = vmax.f32 %v3846_v31, 0.0  ;;  %v2226_v35 = vpop.f32.mrb[7].mxu1 }
 0x2f8   : > { %v2529_v2 = vrot.slane %v2528_v48, 2  ;;  %v2960_v11 = vrot.slane %v2959_v6, 2  ;;  %v2467_v4 = vmax.f32 %v2226_v35, 0.0 }
 0x2f9   : > { %v2537_v0 = vmax.f32 %v2535_v53, %v2536_v29  ;;  %v2968_v15 = vadd.f32 %v2967_v12, %v2966_v30  ;;  %v2547_v61 = vmax.f32 %v2468_v59, %v2469_v23  ;;  %v2978_v7 = vadd.f32 %v2469_v23, %v2468_v59 }
 0x2fa   : > { %v2530_v51 = vmax.f32 %v2528_v48, %v2529_v2  ;;  %v2961_v17 = vadd.f32 %v2960_v11, %v2959_v6  ;;  %v2540_v10 = vmax.f32 %v2466_v16, %v2467_v4  ;;  %v2971_v45 = vadd.f32 %v2467_v4, %v2466_v16 }
 0x2fb   : > { %v2538_v24 = vrot.slane %v2537_v0, 1  ;;  %v2969_v44 = vrot.slane %v2968_v15, 1  ;;  %v2548_v47 = vrot.slane %v2547_v61, 4  ;;  %v2979_v41 = vrot.slane %v2978_v7, 4 }
 0x2fc   : > { %v2531_v38 = vrot.slane %v2530_v51, 1  ;;  %v2962_v5 = vrot.slane %v2961_v17, 1  ;;  %v2541_v42 = vrot.slane %v2540_v10, 4  ;;  %v2972_v19 = vrot.slane %v2971_v45, 4  ;;  %v3849_v57 = vpop.f32.mrb[8].mxu1 }
 0x2fd   : > { %v2539_v27 = vmax.f32 %v2537_v0, %v2538_v24  ;;  %v2970_v8 = vadd.f32 %v2969_v44, %v2968_v15  ;;  %v2549_v1 = vmax.f32 %v2547_v61, %v2548_v47  ;;  %v2980_v36 = vadd.f32 %v2979_v41, %v2978_v7  ;;  %v2239_v34 = vpop.f32.mrb[9].mxu1 }
 0x2fe   : > { %v2532_v43 = vmax.f32 %v2530_v51, %v2531_v38  ;;  %v2963_v54 = vadd.f32 %v2962_v5, %v2961_v17  ;;  %v2542_v9 = vmax.f32 %v2540_v10, %v2541_v42  ;;  %v2973_v58 = vadd.f32 %v2972_v19, %v2971_v45  ;;  %v3850_v33 = vpop.f32.mrb[10].mxu1 }
 0x2ff   : > { %v3624_v60 = vpack.c.bf16 %v2539_v27, %v2539_v27  ;;  %v3182_v20 = vmul.f32 0.0625, %v2970_v8  ;;  %v2550_v3 = vrot.slane %v2549_v1, 2  ;;  %v2981_v22 = vrot.slane %v2980_v36, 2  ;;  %v2242_v46 = vpop.f32.mrb[11].mxu1 }
 0x300   : > { %v3623_v56 = vpack.c.bf16 %v2532_v43, %v2532_v43  ;;  %v3181_v21 = vmul.f32 0.0625, %v2963_v54  ;;  %v2543_v13 = vrot.slane %v2542_v9, 2  ;;  %v2974_v63 = vrot.slane %v2973_v58, 2 }
 0x301   : > { %v2879_v49 = vunpack.c.l.b16 %v3624_v60  ;;  %v3656_v55 = vpack.c.bf16 %v3182_v20, %v3182_v20  ;;  %v2551_v62 = vmax.f32 %v2549_v1, %v2550_v3  ;;  %v2982_v28 = vadd.f32 %v2981_v22, %v2980_v36 }
 0x302   : > { %v2878_v52 = vunpack.c.l.b16 %v3623_v56  ;;  %v3655_v50 = vpack.c.bf16 %v3181_v21, %v3181_v21  ;;  %v2544_v14 = vmax.f32 %v2542_v9, %v2543_v13  ;;  %v2975_v18 = vadd.f32 %v2974_v63, %v2973_v58 }
 0x303   : > { %v3342_v25 = vunpack.c.l.b16 %v3656_v55  ;;  %v2552_v32 = vrot.slane %v2551_v62, 1  ;;  %v2983_v39 = vrot.slane %v2982_v28, 1  ;;  %v2472_v40 = vmax.f32 %v3849_v57, 0.0 }
 0x304   : > { %v2911_v26 = vsel %vm2910_vm1, %v2879_v49, %v2878_v52  ;;  %v3341_v53 = vunpack.c.l.b16 %v3655_v50  ;;  %v2545_v30 = vrot.slane %v2544_v14, 1  ;;  %v2976_v37 = vrot.slane %v2975_v18, 1  ;;  %v3853_v48 = vpop.f32.mrb[12].mxu1 }
 0x305   : > { %v2553_v6 = vmax.f32 %v2551_v62, %v2552_v32  ;;  %v2984_v31 = vadd.f32 %v2983_v39, %v2982_v28  ;;  %v2470_v29 = vmax.f32 %v2239_v34, 0.0  ;;  %v2473_v12 = vmax.f32 %v3850_v33, 0.0  ;;  %v2255_v59 = vpop.f32.mrb[13].mxu1 }
 0x306   : > { %v3373_v23 = vsel %vm2910_vm1, %v3342_v25, %v3341_v53  ;;  %v2546_v35 = vmax.f32 %v2544_v14, %v2545_v30  ;;  %v2977_v2 = vadd.f32 %v2976_v37, %v2975_v18  ;;  %v2471_v11 = vmax.f32 %v2242_v46, 0.0  ;;  %v3854_v16 = vpop.f32.mrb[14].mxu1 }
 0x307   : > { %v3626_v4 = vpack.c.bf16 %v2553_v6, %v2553_v6  ;;  %v3184_v0 = vmul.f32 0.0625, %v2984_v31  ;;  %v2561_v15 = vmax.f32 %v2472_v40, %v2473_v12  ;;  %v2992_v61 = vadd.f32 %v2473_v12, %v2472_v40  ;;  %v2258_v7 = vpop.f32.mrb[15].mxu1 }
 0x308   : > { %v3625_v51 = vpack.c.bf16 %v2546_v35, %v2546_v35  ;;  %v3183_v17 = vmul.f32 0.0625, %v2977_v2  ;;  %v2554_v10 = vmax.f32 %v2470_v29, %v2471_v11  ;;  %v2985_v45 = vadd.f32 %v2471_v11, %v2470_v29 }
 0x309   : > { %v2881_v24 = vunpack.c.l.b16 %v3626_v4  ;;  %v3658_v44 = vpack.c.bf16 %v3184_v0, %v3184_v0  ;;  %v2562_v47 = vrot.slane %v2561_v15, 4  ;;  %v2993_v41 = vrot.slane %v2992_v61, 4 }
 0x30a   : > { %v2880_v38 = vunpack.c.l.b16 %v3625_v51  ;;  %v3657_v5 = vpack.c.bf16 %v3183_v17, %v3183_v17  ;;  %v2555_v42 = vrot.slane %v2554_v10, 4  ;;  %v2986_v19 = vrot.slane %v2985_v45, 4 }
 0x30b   : > { %v3344_v57 = vunpack.c.l.b16 %v3658_v44  ;;  %v2563_v27 = vmax.f32 %v2561_v15, %v2562_v47  ;;  %v2994_v8 = vadd.f32 %v2993_v41, %v2992_v61  ;;  %v2476_v1 = vmax.f32 %v3853_v48, 0.0 }
 0x30c   : > { %v2913_v36 = vsel %vm2912_vm2, %v2880_v38, %v2911_v26  ;;  %v3343_v34 = vunpack.c.l.b16 %v3657_v5  ;;  %v2556_v43 = vmax.f32 %v2554_v10, %v2555_v42  ;;  %v2987_v54 = vadd.f32 %v2986_v19, %v2985_v45  ;;  %v5012_v9 = vpop.f32.mrb[16].mxu1 }
 0x30d   : > { %v2564_v58 = vrot.slane %v2563_v27, 2  ;;  %v2995_v33 = vrot.slane %v2994_v8, 2  ;;  %v5015_v60 = vsel %vm2914_vm3, %v2881_v24, %v2913_v36  ;;  %v2474_v20 = vmax.f32 %v2255_v59, 0.0  ;;  %v5017_v3 = vpop.f32.mrb[17].mxu1 }
 0x30e   : > { %v3374_v22 = vsel %vm2912_vm2, %v3343_v34, %v3373_v23  ;;  %v2557_v46 = vrot.slane %v2556_v43, 2  ;;  %v2988_v56 = vrot.slane %v2987_v54, 2  ;;  %v2477_v21 = vmax.f32 %v3854_v16, 0.0  ;;  %v5020_v13 = vpop.f32.mrb[18].mxu1 }
 0x30f   : > { %v2565_v63 = vmax.f32 %v2563_v27, %v2564_v58  ;;  %v2996_v49 = vadd.f32 %v2995_v33, %v2994_v8  ;;  %v5023_v55 = vsel %vm2914_vm3, %v3344_v57, %v3374_v22  ;;  %v2475_v62 = vmax.f32 %v2258_v7, 0.0  ;;  %v5025_v28 = vpop.f32.mrb[48].mxu0  ;;  %v5027_v52 = vpop.f32.mrb[19].mxu1 }
 0x310   : > { %v2558_v50 = vmax.f32 %v2556_v43, %v2557_v46  ;;  %v2989_v14 = vadd.f32 %v2988_v56, %v2987_v54  ;;  %v2575_v18 = vmax.f32 %v2476_v1, %v2477_v21  ;;  %v3006_v25 = vadd.f32 %v2477_v21, %v2476_v1  ;;  %v5029_v32 = vpop.f32.mrb[49].mxu0 }
 0x311   : > { %v2566_v39 = vrot.slane %v2565_v63, 1  ;;  %v2997_v40 = vrot.slane %v2996_v49, 1  ;;  %v2568_v26 = vmax.f32 %v2474_v20, %v2475_v62  ;;  %v2999_v53 = vadd.f32 %v2475_v62, %v2474_v20  ;;  %v5031_v30 = vpop.f32.mrb[50].mxu0 }
 0x312   : > { %v2559_v37 = vrot.slane %v2558_v50, 1  ;;  %v2990_v48 = vrot.slane %v2989_v14, 1  ;;  %v2576_v6 = vrot.slane %v2575_v18, 4  ;;  %v3007_v31 = vrot.slane %v3006_v25, 4  ;;  %v5033_v29 = vpop.f32.mrb[51].mxu0 }
 0x313   : > { %v2567_v12 = vmax.f32 %v2565_v63, %v2566_v39  ;;  %v2998_v59 = vadd.f32 %v2997_v40, %v2996_v49  ;;  %v2569_v23 = vrot.slane %v2568_v26, 4  ;;  %v3000_v35 = vrot.slane %v2999_v53, 4 }
 0x314   : > { %v2560_v2 = vmax.f32 %v2558_v50, %v2559_v37  ;;  %v2991_v11 = vadd.f32 %v2990_v48, %v2989_v14  ;;  %v2577_v16 = vmax.f32 %v2575_v18, %v2576_v6  ;;  %v3008_v4 = vadd.f32 %v3007_v31, %v3006_v25  ;;  %v5035_v0 = vpop.f32.mrb[20].mxu1 }
 0x315   : > { %v3628_v15 = vpack.c.bf16 %v2567_v12, %v2567_v12  ;;  %v3186_v61 = vmul.f32 0.0625, %v2998_v59  ;;  %v2570_v7 = vmax.f32 %v2568_v26, %v2569_v23  ;;  %v3001_v51 = vadd.f32 %v3000_v35, %v2999_v53  ;;  %v5037_v17 = vpop.f32.mrb[21].mxu1 }
 0x316   : > { %v3627_v10 = vpack.c.bf16 %v2560_v2, %v2560_v2  ;;  %v3185_v45 = vmul.f32 0.0625, %v2991_v11  ;;  %v2578_v24 = vrot.slane %v2577_v16, 2  ;;  %v3009_v44 = vrot.slane %v3008_v4, 2  ;;  %v5043_v47 = vpop.f32.mrb[22].mxu1 }
 0x317   : > { %v2883_v41 = vunpack.c.l.b16 %v3628_v15  ;;  %v3660_v38 = vpack.c.bf16 %v3186_v61, %v3186_v61  ;;  %v2571_v5 = vrot.slane %v2570_v7, 2  ;;  %v3002_v42 = vrot.slane %v3001_v51, 2  ;;  %v5045_v19 = vpop.f32.mrb[23].mxu1 }
 0x318   : > { %v2882_v57 = vunpack.c.l.b16 %v3627_v10  ;;  %v3659_v27 = vpack.c.bf16 %v3185_v45, %v3185_v45  ;;  %v2579_v8 = vmax.f32 %v2577_v16, %v2578_v24  ;;  %v3010_v1 = vadd.f32 %v3009_v44, %v3008_v4 }
 0x319   : > { %v3346_v36 = vunpack.c.l.b16 %v3660_v38  ;;  %v2572_v34 = vmax.f32 %v2570_v7, %v2571_v5  ;;  %v3003_v43 = vadd.f32 %v3002_v42, %v3001_v51  ;;  %v2480_v54 = vmax.f32 %v5012_v9, 0.0 }
 0x31a   : > { %v2917_v58 = vsel %vm2916_vm4, %v2882_v57, %v5015_v60  ;;  %v3345_v33 = vunpack.c.l.b16 %v3659_v27  ;;  %v2580_v20 = vrot.slane %v2579_v8, 1  ;;  %v3011_v22 = vrot.slane %v3010_v1, 1 }
 0x31b   : > { %v2573_v46 = vrot.slane %v2572_v34, 1  ;;  %v2919_v56 = vsel %vm2918_vm5, %v2883_v41, %v2917_v58  ;;  %v3004_v21 = vrot.slane %v3003_v43, 1  ;;  %v2478_v63 = vmax.f32 %v5017_v3, 0.0 }
 0x31c   : > { %v3376_v49 = vsel %vm2916_vm4, %v3345_v33, %v5023_v55  ;;  %v2581_v62 = vmax.f32 %v2579_v8, %v2580_v20  ;;  %v3012_v50 = vadd.f32 %v3011_v22, %v3010_v1  ;;  %v2481_v14 = vmax.f32 %v5020_v13, 0.0  ;;  %v5056_v9 = vpop.f32.mrb[24].mxu1 }
 0x31d   : > { %v2574_v60 = vmax.f32 %v2572_v34, %v2573_v46  ;;  %v3005_v18 = vadd.f32 %v3004_v21, %v3003_v43  ;;  %v3377_v25 = vsel %vm2918_vm5, %v3346_v36, %v3376_v49  ;;  %v1999_v39 = vmax.f32 %v5025_v28, 0.0  ;;  %v5065_v3 = vpop.f32.mrb[25].mxu1 }
 0x31e   : > { %v3630_v40 = vpack.c.bf16 %v2581_v62, %v2581_v62  ;;  %v3188_v55 = vmul.f32 0.0625, %v3012_v50  ;;  %v2589_v26 = vmax.f32 %v2480_v54, %v2481_v14  ;;  %v3020_v53 = vadd.f32 %v2481_v14, %v2480_v54  ;;  %v5067_v37 = vpop.f32.mrb[26].mxu1 }
 0x31f   : > { %v3629_v13 = vpack.c.bf16 %v2574_v60, %v2574_v60  ;;  %v3187_v48 = vmul.f32 0.0625, %v3005_v18  ;;  %v2479_v6 = vmax.f32 %v5027_v52, 0.0  ;;  %v1997_v31 = vmax.f32 %v5029_v32, 0.0  ;;  %v5071_v12 = vpop.f32.mrb[27].mxu1 }
 0x320   : > { %v2885_v59 = vunpack.c.l.b16 %v3630_v40  ;;  %v3662_v23 = vpack.c.bf16 %v3188_v55, %v3188_v55  ;;  %v2590_v28 = vrot.slane %v2589_v26, 4  ;;  %v3021_v35 = vrot.slane %v3020_v53, 4 }
 0x321   : > { %v2884_v2 = vunpack.c.l.b16 %v3629_v13  ;;  %v3661_v11 = vpack.c.bf16 %v3187_v48, %v3187_v48  ;;  %v2582_v16 = vmax.f32 %v2478_v63, %v2479_v6  ;;  %v3013_v4 = vadd.f32 %v2479_v6, %v2478_v63 }
 0x322   : > { %v3348_v15 = vunpack.c.l.b16 %v3662_v23  ;;  %v2591_v61 = vmax.f32 %v2589_v26, %v2590_v28  ;;  %v3022_v7 = vadd.f32 %v3021_v35, %v3020_v53  ;;  %v2000_v51 = vmax.f32 %v5031_v30, 0.0 }
 0x323   : > { %v2921_v52 = vsel %vm2920_vm6, %v2884_v2, %v2919_v56  ;;  %v3347_v10 = vunpack.c.l.b16 %v3661_v11  ;;  %v2583_v32 = vrot.slane %v2582_v16, 4  ;;  %v3014_v45 = vrot.slane %v3013_v4, 4 }
 0x324   : > { %v2923_v24 = vsel %vm2922_vm7, %v2885_v59, %v2921_v52  ;;  %v2592_v44 = vrot.slane %v2591_v61, 2  ;;  %v3023_v41 = vrot.slane %v3022_v7, 2  ;;  %v2038_v38 = vpack.c.bf16 %v2000_v51, %v1999_v39 }
 0x325   : > { %v2945_v5 = vpack.c.b16 %v2923_v24, %v2923_v24  ;;  %v3378_v42 = vsel %vm2920_vm6, %v3347_v10, %v3377_v25  ;;  %v2584_v30 = vmax.f32 %v2582_v16, %v2583_v32  ;;  %v3015_v57 = vadd.f32 %v3014_v45, %v3013_v4 }
 0x326   : > { %v3379_v27 = vsel %vm2922_vm7, %v3348_v15, %v3378_v42  ;;  %v2593_v8 = vmax.f32 %v2591_v61, %v2592_v44  ;;  %v3024_v1 = vadd.f32 %v3023_v41, %v3022_v7  ;;  %v1998_v36 = vmax.f32 %v5033_v29, 0.0 }
 0x327   : > { %2953 = vst [vmem:[%s5079_s29] sm:$0xf] %v2945_v5  ;;  %v3401_v34 = vpack.c.b16 %v3379_v27, %v3379_v27  ;;  %v2585_v43 = vrot.slane %v2584_v30, 2  ;;  %v3016_v54 = vrot.slane %v3015_v57, 2  ;;  %v2484_v58 = vmax.f32 %v5035_v0, 0.0 }
 0x328   : > { %v2594_v33 = vrot.slane %v2593_v8, 1  ;;  %v3025_v20 = vrot.slane %v3024_v1, 1  ;;  %v2037_v22 = vpack.c.bf16 %v1998_v36, %v1997_v31  ;;  %v2482_v46 = vmax.f32 %v5037_v17, 0.0 }
 0x329   : > { %3409 = vst [vmem:[%s5079_s29 + $0x4] sm:$0xf] %v3401_v34  ;;  %v2586_v56 = vmax.f32 %v2584_v30, %v2585_v43  ;;  %v3017_v21 = vadd.f32 %v3016_v54, %v3015_v57  ;;  %v2485_v63 = vmax.f32 %v5043_v47, 0.0  ;;  %v2483_v49 = vmax.f32 %v5045_v19, 0.0 }
 0x32a   : > { %v2595_v62 = vmax.f32 %v2593_v8, %v2594_v33  ;;  %v3026_v29 = vadd.f32 %v3025_v20, %v3024_v1  ;;  %3887 = vmatprep.mubr.msk.bf16.mxu1 %vm1563_vm0, %v2037_v22  ;;  %v2488_v50 = vmax.f32 %v5056_v9, 0.0  ;;  %v2486_v0 = vmax.f32 %v5065_v3, 0.0 }
 0x32b   : > { %v2587_v14 = vrot.slane %v2586_v56, 1  ;;  %v3018_v60 = vrot.slane %v3017_v21, 1  ;;  %v2603_v18 = vmax.f32 %v2484_v58, %v2485_v63  ;;  %v3034_v25 = vadd.f32 %v2485_v63, %v2484_v58  ;;  %3888 = vmatmul.mubr.msk.bf16.gmra.mrb[48].mxu1 %vm1563_vm0, %v2038_v38 }
 0x32c   : > { %v3632_v17 = vpack.c.bf16 %v2595_v62, %v2595_v62  ;;  %v3190_v39 = vmul.f32 0.0625, %v3026_v29  ;;  %v2596_v40 = vmax.f32 %v2482_v46, %v2483_v49  ;;  %v3027_v47 = vadd.f32 %v2483_v49, %v2482_v46 }
 0x32d   : > { %v2588_v55 = vmax.f32 %v2586_v56, %v2587_v14  ;;  %v3019_v19 = vadd.f32 %v3018_v60, %v3017_v21  ;;  %v2604_v26 = vrot.slane %v2603_v18, 4  ;;  %v3035_v53 = vrot.slane %v3034_v25, 4 }
 0x32e   : > { %v2887_v13 = vunpack.c.l.b16 %v3632_v17  ;;  %v3664_v48 = vpack.c.bf16 %v3190_v39, %v3190_v39  ;;  %v2597_v6 = vrot.slane %v2596_v40, 4  ;;  %v3028_v9 = vrot.slane %v3027_v47, 4 }
 0x32f   : > { %v3631_v31 = vpack.c.bf16 %v2588_v55, %v2588_v55  ;;  %v3189_v3 = vmul.f32 0.0625, %v3019_v19  ;;  %v2605_v59 = vmax.f32 %v2603_v18, %v2604_v26  ;;  %v3036_v23 = vadd.f32 %v3035_v53, %v3034_v25 }
 0x330   : > { %v3350_v28 = vunpack.c.l.b16 %v3664_v48  ;;  %v2598_v35 = vmax.f32 %v2596_v40, %v2597_v6  ;;  %v3029_v2 = vadd.f32 %v3028_v9, %v3027_v47  ;;  %v2489_v11 = vmax.f32 %v5067_v37, 0.0  ;;  %v5096_v16 = vpop.f32.mrb[52].mxu0 }
 0x331   : > { %v2886_v4 = vunpack.c.l.b16 %v3631_v31  ;;  %v3663_v15 = vpack.c.bf16 %v3189_v3, %v3189_v3  ;;  %v2606_v61 = vrot.slane %v2605_v59, 2  ;;  %v3037_v7 = vrot.slane %v3036_v23, 2  ;;  %v5098_v51 = vpop.f32.mrb[53].mxu0 }
 0x332   : > { %v2599_v52 = vrot.slane %v2598_v35, 2  ;;  %v3030_v10 = vrot.slane %v3029_v2, 2  ;;  %v2617_v32 = vmax.f32 %v2488_v50, %v2489_v11  ;;  %v3048_v45 = vadd.f32 %v2489_v11, %v2488_v50  ;;  %v5100_v24 = vpop.f32.mrb[54].mxu0 }
 0x333   : > { %v2924_v44 = vsel %vm2910_vm1, %v2887_v13, %v2886_v4  ;;  %v3349_v41 = vunpack.c.l.b16 %v3663_v15  ;;  %v2607_v38 = vmax.f32 %v2605_v59, %v2606_v61  ;;  %v3038_v5 = vadd.f32 %v3037_v7, %v3036_v23  ;;  %v5103_v37 = vpop.f32.mrb[55].mxu0 }
 0x334   : > { %v2600_v42 = vmax.f32 %v2598_v35, %v2599_v52  ;;  %v3031_v30 = vadd.f32 %v3030_v10, %v3029_v2  ;;  %v2618_v57 = vrot.slane %v2617_v32, 4  ;;  %v3049_v27 = vrot.slane %v3048_v45, 4 }
 0x335   : > { %v3380_v8 = vsel %vm2910_vm1, %v3350_v28, %v3349_v41  ;;  %v2608_v1 = vrot.slane %v2607_v38, 1  ;;  %v3039_v36 = vrot.slane %v3038_v5, 1  ;;  %v2487_v34 = vmax.f32 %v5071_v12, 0.0 }
 0x336   : > { %v2601_v43 = vrot.slane %v2600_v42, 1  ;;  %v3032_v54 = vrot.slane %v3031_v30, 1  ;;  %v2619_v58 = vmax.f32 %v2617_v32, %v2618_v57  ;;  %v3050_v33 = vadd.f32 %v3049_v27, %v3048_v45 }
 0x337   : > { %v2609_v20 = vmax.f32 %v2607_v38, %v2608_v1  ;;  %v3040_v22 = vadd.f32 %v3039_v36, %v3038_v5  ;;  %v2610_v46 = vmax.f32 %v2486_v0, %v2487_v34  ;;  %v3041_v56 = vadd.f32 %v2487_v34, %v2486_v0 }
 0x338   : > { %v2602_v21 = vmax.f32 %v2600_v42, %v2601_v43  ;;  %v3033_v63 = vadd.f32 %v3032_v54, %v3031_v30  ;;  %v2620_v49 = vrot.slane %v2619_v58, 2  ;;  %v3051_v62 = vrot.slane %v3050_v33, 2 }
 0x339   : > { %v3634_v29 = vpack.c.bf16 %v2609_v20, %v2609_v20  ;;  %v3192_v50 = vmul.f32 0.0625, %v3040_v22  ;;  %v2611_v14 = vrot.slane %v2610_v46, 4  ;;  %v3042_v60 = vrot.slane %v3041_v56, 4 }
 0x33a   : > { %v3633_v18 = vpack.c.bf16 %v2602_v21, %v2602_v21  ;;  %v3191_v25 = vmul.f32 0.0625, %v3033_v63  ;;  %v2621_v17 = vmax.f32 %v2619_v58, %v2620_v49  ;;  %v3052_v12 = vadd.f32 %v3051_v62, %v3050_v33  ;;  %v3869_v39 = vpop.f32.mrb[28].mxu1 }
 0x33b   : > { %v3666_v40 = vpack.c.bf16 %v3192_v50, %v3192_v50  ;;  %v2612_v47 = vmax.f32 %v2610_v46, %v2611_v14  ;;  %v3043_v55 = vadd.f32 %v3042_v60, %v3041_v56  ;;  %v2319_v19 = vpop.f32.mrb[29].mxu1  ;;  %v2889_v6 = vunpack.c.l.b16 %v3634_v29 }
 0x33c   : > { %v2888_v26 = vunpack.c.l.b16 %v3633_v18  ;;  %v3665_v53 = vpack.c.bf16 %v3191_v25, %v3191_v25  ;;  %v2622_v0 = vrot.slane %v2621_v17, 1  ;;  %v3053_v13 = vrot.slane %v3052_v12, 1  ;;  %v3870_v48 = vpop.f32.mrb[30].mxu1 }
 0x33d   : > { %v3352_v9 = vunpack.c.l.b16 %v3666_v40  ;;  %v2613_v31 = vrot.slane %v2612_v47, 2  ;;  %v3044_v3 = vrot.slane %v3043_v55, 2  ;;  %v2322_v59 = vpop.f32.mrb[31].mxu1  ;;  %v2003_v2 = vmax.f32 %v5096_v16, 0.0 }
 0x33e   : > { %v2925_v23 = vsel %vm2912_vm2, %v2888_v26, %v2924_v44  ;;  %v3351_v28 = vunpack.c.l.b16 %v3665_v53  ;;  %v3054_v35 = vadd.f32 %v3053_v13, %v3052_v12  ;;  %v2623_v11 = vmax.f32 %v2621_v17, %v2622_v0 }
 0x33f   : > { %v2614_v4 = vmax.f32 %v2612_v47, %v2613_v31  ;;  %v2926_v15 = vsel %vm2914_vm3, %v2889_v6, %v2925_v23  ;;  %v3045_v61 = vadd.f32 %v3044_v3, %v3043_v55  ;;  %v2001_v10 = vmax.f32 %v5098_v51, 0.0 }
 0x340   : > { %v3381_v7 = vsel %vm2912_vm2, %v3351_v28, %v3380_v8  ;;  %v3194_v52 = vmul.f32 0.0625, %v3054_v35  ;;  %v2004_v32 = vmax.f32 %v5100_v24, 0.0  ;;  %v2002_v38 = vmax.f32 %v5103_v37, 0.0 }
 0x341   : > { %v2615_v45 = vrot.slane %v2614_v4, 1  ;;  %v3046_v41 = vrot.slane %v3045_v61, 1  ;;  %v3382_v44 = vsel %vm2914_vm3, %v3352_v9, %v3381_v7  ;;  %v3636_v16 = vpack.c.bf16 %v2623_v11, %v2623_v11 }
 0x342   : > { %v2040_v5 = vpack.c.bf16 %v2004_v32, %v2003_v2  ;;  %v2039_v57 = vpack.c.bf16 %v2002_v38, %v2001_v10  ;;  %v2492_v27 = vmax.f32 %v3869_v39, 0.0  ;;  %v2490_v1 = vmax.f32 %v2319_v19, 0.0 }
 0x343   : > { %v2616_v42 = vmax.f32 %v2614_v4, %v2615_v45  ;;  %v3047_v30 = vadd.f32 %v3046_v41, %v3045_v61  ;;  %v2493_v36 = vmax.f32 %v3870_v48, 0.0  ;;  %v2491_v8 = vmax.f32 %v2322_v59, 0.0 }
 0x344   : > { %v3668_v34 = vpack.c.bf16 %v3194_v52, %v3194_v52  ;;  %3891 = vmatprep.mubr.msk.bf16.mxu1 %vm1563_vm0, %v2039_v57  ;;  %v2891_v33 = vunpack.c.l.b16 %v3636_v16 }
 0x345   : > { %v3635_v43 = vpack.c.bf16 %v2616_v42, %v2616_v42  ;;  %v3193_v51 = vmul.f32 0.0625, %v3047_v30  ;;  %3892 = vmatmul.mubr.msk.bf16.gmra.mrb[52].mxu1 %vm1563_vm0, %v2040_v5  ;;  %v2631_v24 = vmax.f32 %v2492_v27, %v2493_v36  ;;  %v3062_v54 = vadd.f32 %v2493_v36, %v2492_v27 }
 0x346   : > { %v2624_v58 = vmax.f32 %v2490_v1, %v2491_v8  ;;  %v3055_v37 = vadd.f32 %v2491_v8, %v2490_v1  ;;  %v3354_v49 = vunpack.c.l.b16 %v3668_v34 }
 0x347   : > { %v2890_v20 = vunpack.c.l.b16 %v3635_v43  ;;  %v3667_v22 = vpack.c.bf16 %v3193_v51, %v3193_v51  ;;  %v2632_v46 = vrot.slane %v2631_v24, 4  ;;  %v3063_v56 = vrot.slane %v3062_v54, 4 }
 0x348   : > { %v2625_v21 = vrot.slane %v2624_v58, 4  ;;  %v3056_v63 = vrot.slane %v3055_v37, 4 }
 0x349   : > { %v2927_v62 = vsel %vm2916_vm4, %v2890_v20, %v2926_v15  ;;  %v3353_v29 = vunpack.c.l.b16 %v3667_v22  ;;  %v2633_v50 = vmax.f32 %v2631_v24, %v2632_v46  ;;  %v3064_v14 = vadd.f32 %v3063_v56, %v3062_v54 }
 0x34a   : > { %v2626_v60 = vmax.f32 %v2624_v58, %v2625_v21  ;;  %v2928_v18 = vsel %vm2918_vm5, %v2891_v33, %v2927_v62  ;;  %v3057_v17 = vadd.f32 %v3056_v63, %v3055_v37 }
 0x34b   : > { %v3383_v25 = vsel %vm2916_vm4, %v3353_v29, %v3382_v44  ;;  %v2634_v12 = vrot.slane %v2633_v50, 2  ;;  %v3065_v39 = vrot.slane %v3064_v14, 2 }
 0x34c   : > { %v2627_v40 = vrot.slane %v2626_v60, 2  ;;  %v3384_v47 = vsel %vm2918_vm5, %v3354_v49, %v3383_v25  ;;  %v3058_v55 = vrot.slane %v3057_v17, 2 }
 0x34d   : > { %v2635_v19 = vmax.f32 %v2633_v50, %v2634_v12  ;;  %v3066_v26 = vadd.f32 %v3065_v39, %v3064_v14 }
 0x34e   : > { %v2628_v53 = vmax.f32 %v2626_v60, %v2627_v40  ;;  %v3059_v0 = vadd.f32 %v3058_v55, %v3057_v17 }
 0x34f   : > { %v2636_v13 = vrot.slane %v2635_v19, 1  ;;  %v3067_v48 = vrot.slane %v3066_v26, 1 }
 0x350   : > { %v2629_v6 = vrot.slane %v2628_v53, 1  ;;  %v3060_v9 = vrot.slane %v3059_v0, 1 }
 0x351   : > { %v2637_v31 = vmax.f32 %v2635_v19, %v2636_v13  ;;  %v3068_v3 = vadd.f32 %v3067_v48, %v3066_v26 }
 0x352   : > { %v2630_v59 = vmax.f32 %v2628_v53, %v2629_v6  ;;  %v3061_v23 = vadd.f32 %v3060_v9, %v3059_v0 }
 0x353   : > { %v3638_v28 = vpack.c.bf16 %v2637_v31, %v2637_v31  ;;  %v3196_v35 = vmul.f32 0.0625, %v3068_v3 }
 0x354   : > { %v3637_v2 = vpack.c.bf16 %v2630_v59, %v2630_v59  ;;  %v3195_v11 = vmul.f32 0.0625, %v3061_v23 }
 0x355   : > { %v3825_v4 = vpop.f32.mrb[56].mxu0  ;;  %v3670_v15 = vpack.c.bf16 %v3196_v35, %v3196_v35  ;;  %v2893_v52 = vunpack.c.l.b16 %v3638_v28 }
 0x356   : > { %v2892_v61 = vunpack.c.l.b16 %v3637_v2  ;;  %v1918_v7 = vpop.f32.mrb[57].mxu0  ;;  %v3669_v10 = vpack.c.bf16 %v3195_v11, %v3195_v11  ;;  %v2007_v41 = vmax.f32 %v3825_v4, 0.0 }
 0x357   : > { %v3826_v32 = vpop.f32.mrb[58].mxu0  ;;  %v2005_v42 = vmax.f32 %v1918_v7, 0.0  ;;  %v3356_v57 = vunpack.c.l.b16 %v3670_v15 }
 0x358   : > { %v2929_v45 = vsel %vm2920_vm6, %v2892_v61, %v2928_v18  ;;  %v2008_v44 = vmax.f32 %v3826_v32, 0.0  ;;  %v1921_v38 = vpop.f32.mrb[59].mxu0  ;;  %v3355_v16 = vunpack.c.l.b16 %v3669_v10 }
 0x359   : > { %v2930_v5 = vsel %vm2922_vm7, %v2893_v52, %v2929_v45  ;;  %v2006_v30 = vmax.f32 %v1921_v38, 0.0 }
 0x35a   : > { %v2946_v27 = vpack.c.b16 %v2930_v5, %v2930_v5  ;;  %v2042_v1 = vpack.c.bf16 %v2008_v44, %v2007_v41  ;;  %v3385_v36 = vsel %vm2920_vm6, %v3355_v16, %v3384_v47 }
 0x35b   : > { %v2041_v8 = vpack.c.bf16 %v2006_v30, %v2005_v42  ;;  %v3386_v34 = vsel %vm2922_vm7, %v3356_v57, %v3385_v36 }
 0x35c   : > { %2954 = vst [vmem:[%s5079_s29 + $0x8] sm:$0xf] %v2946_v27  ;;  %v3402_v43 = vpack.c.b16 %v3386_v34, %v3386_v34 }
 0x35d   : > { %3895 = vmatprep.mubr.msk.bf16.mxu1 %vm1563_vm0, %v2041_v8 }
 0x35e   : > { %3896 = vmatmul.mubr.msk.bf16.gmra.mrb[56].mxu1 %vm1563_vm0, %v2042_v1  ;;  %3410 = vst [vmem:[%s5079_s29 + $0xc] sm:$0xf] %v3402_v43 }
 0x35f   : > { %v3873_v51 = vpop.f32.mrb[32].mxu1 }
 0x360   : > { %v2335_v24 = vpop.f32.mrb[33].mxu1  ;;  %v2496_v58 = vmax.f32 %v3873_v51, 0.0 }
 0x361   : > { %v3874_v54 = vpop.f32.mrb[34].mxu1  ;;  %v2494_v20 = vmax.f32 %v2335_v24, 0.0 }
 0x362   : > { %v2497_v37 = vmax.f32 %v3874_v54, 0.0  ;;  %v2338_v33 = vpop.f32.mrb[35].mxu1 }
 0x363   : > { %v2495_v22 = vmax.f32 %v2338_v33, 0.0 }
 0x364   : > { %v2645_v46 = vmax.f32 %v2496_v58, %v2497_v37  ;;  %v3076_v56 = vadd.f32 %v2497_v37, %v2496_v58 }
 0x365   : > { %v2638_v21 = vmax.f32 %v2494_v20, %v2495_v22  ;;  %v3069_v63 = vadd.f32 %v2495_v22, %v2494_v20 }
 0x366   : > { %v2646_v49 = vrot.slane %v2645_v46, 4  ;;  %v3077_v62 = vrot.slane %v3076_v56, 4 }
 0x367   : > { %v2639_v29 = vrot.slane %v2638_v21, 4  ;;  %v3070_v50 = vrot.slane %v3069_v63, 4 }
 0x368   : > { %v2647_v14 = vmax.f32 %v2645_v46, %v2646_v49  ;;  %v3078_v60 = vadd.f32 %v3077_v62, %v3076_v56 }
 0x369   : > { %v2640_v18 = vmax.f32 %v2638_v21, %v2639_v29  ;;  %v3071_v25 = vadd.f32 %v3070_v50, %v3069_v63 }
 0x36a   : > { %v2648_v17 = vrot.slane %v2647_v14, 2  ;;  %v3079_v12 = vrot.slane %v3078_v60, 2 }
 0x36b   : > { %v2641_v39 = vrot.slane %v2640_v18, 2  ;;  %v3072_v40 = vrot.slane %v3071_v25, 2 }
 0x36c   : > { %v2649_v47 = vmax.f32 %v2647_v14, %v2648_v17  ;;  %v3080_v55 = vadd.f32 %v3079_v12, %v3078_v60 }
 0x36d   : > { %v2642_v19 = vmax.f32 %v2640_v18, %v2641_v39  ;;  %v3073_v26 = vadd.f32 %v3072_v40, %v3071_v25 }
 0x36e   : > { %v2650_v53 = vrot.slane %v2649_v47, 1  ;;  %v3081_v0 = vrot.slane %v3080_v55, 1 }
 0x36f   : > { %v2643_v13 = vrot.slane %v2642_v19, 1  ;;  %v3074_v48 = vrot.slane %v3073_v26, 1 }
 0x370   : > { %v2651_v6 = vmax.f32 %v2649_v47, %v2650_v53  ;;  %v3082_v9 = vadd.f32 %v3081_v0, %v3080_v55 }
 0x371   : > { %v2644_v31 = vmax.f32 %v2642_v19, %v2643_v13  ;;  %v3075_v3 = vadd.f32 %v3074_v48, %v3073_v26 }
 0x372   : > { %v3640_v59 = vpack.c.bf16 %v2651_v6, %v2651_v6  ;;  %v3198_v23 = vmul.f32 0.0625, %v3082_v9 }
 0x373   : > { %v3639_v28 = vpack.c.bf16 %v2644_v31, %v2644_v31  ;;  %v3197_v35 = vmul.f32 0.0625, %v3075_v3 }
 0x374   : > { %v2895_v2 = vunpack.c.l.b16 %v3640_v59  ;;  %v3672_v11 = vpack.c.bf16 %v3198_v23, %v3198_v23 }
 0x375   : > { %v2894_v4 = vunpack.c.l.b16 %v3639_v28  ;;  %v3671_v15 = vpack.c.bf16 %v3197_v35, %v3197_v35 }
 0x376   : > { %v3358_v61 = vunpack.c.l.b16 %v3672_v11  ;;  %v3829_v7 = vpop.f32.mrb[60].mxu0 }
 0x377   : > { %v2931_v52 = vsel %vm2910_vm1, %v2895_v2, %v2894_v4  ;;  %v3357_v10 = vunpack.c.l.b16 %v3671_v15  ;;  %v1934_v32 = vpop.f32.mrb[61].mxu0  ;;  %v2011_v44 = vmax.f32 %v3829_v7, 0.0 }
 0x378   : > { %v3830_v45 = vpop.f32.mrb[62].mxu0  ;;  %v2009_v16 = vmax.f32 %v1934_v32, 0.0 }
 0x379   : > { %v3387_v41 = vsel %vm2910_vm1, %v3358_v61, %v3357_v10  ;;  %v2012_v38 = vmax.f32 %v3830_v45, 0.0  ;;  %v1937_v5 = vpop.f32.mrb[63].mxu0 }
 0x37a   : > { %v2010_v42 = vmax.f32 %v1937_v5, 0.0 }
 0x37b   : > { %v2044_v30 = vpack.c.bf16 %v2012_v38, %v2011_v44 }
 0x37c   : > { %v2043_v57 = vpack.c.bf16 %v2010_v42, %v2009_v16 }
 0x37e   : > { %3899 = vmatprep.mubr.msk.bf16.mxu1 %vm1563_vm0, %v2043_v57 }
 0x37f   : > { %3900 = vmatmul.mubr.msk.bf16.gmra.mrb[60].mxu1 %vm1563_vm0, %v2044_v30 }
 0x380   : > { %v3877_v27 = vpop.f32.mrb[36].mxu1 }
 0x381   : > { %v2351_v1 = vpop.f32.mrb[37].mxu1  ;;  %v2500_v8 = vmax.f32 %v3877_v27, 0.0 }
 0x382   : > { %v3878_v36 = vpop.f32.mrb[38].mxu1  ;;  %v2498_v51 = vmax.f32 %v2351_v1, 0.0 }
 0x383   : > { %v2501_v34 = vmax.f32 %v3878_v36, 0.0  ;;  %v2354_v43 = vpop.f32.mrb[39].mxu1 }
 0x384   : > { %v2499_v24 = vmax.f32 %v2354_v43, 0.0 }
 0x385   : > { %v2659_v54 = vmax.f32 %v2500_v8, %v2501_v34  ;;  %v3090_v58 = vadd.f32 %v2501_v34, %v2500_v8 }
 0x386   : > { %v2652_v37 = vmax.f32 %v2498_v51, %v2499_v24  ;;  %v3083_v33 = vadd.f32 %v2499_v24, %v2498_v51 }
 0x387   : > { %v2660_v20 = vrot.slane %v2659_v54, 4  ;;  %v3091_v22 = vrot.slane %v3090_v58, 4 }
 0x388   : > { %v2653_v46 = vrot.slane %v2652_v37, 4  ;;  %v3084_v56 = vrot.slane %v3083_v33, 4 }
 0x389   : > { %v2661_v21 = vmax.f32 %v2659_v54, %v2660_v20  ;;  %v3092_v63 = vadd.f32 %v3091_v22, %v3090_v58 }
 0x38a   : > { %v2654_v49 = vmax.f32 %v2652_v37, %v2653_v46  ;;  %v3085_v62 = vadd.f32 %v3084_v56, %v3083_v33 }
 0x38b   : > { %v2662_v29 = vrot.slane %v2661_v21, 2  ;;  %v3093_v50 = vrot.slane %v3092_v63, 2 }
 0x38c   : > { %v2655_v14 = vrot.slane %v2654_v49, 2  ;;  %v3086_v60 = vrot.slane %v3085_v62, 2 }
 0x38d   : > { %v2663_v18 = vmax.f32 %v2661_v21, %v2662_v29  ;;  %v3094_v25 = vadd.f32 %v3093_v50, %v3092_v63 }
 0x38e   : > { %v2656_v17 = vmax.f32 %v2654_v49, %v2655_v14  ;;  %v3087_v12 = vadd.f32 %v3086_v60, %v3085_v62 }
 0x38f   : > { %v2664_v39 = vrot.slane %v2663_v18, 1  ;;  %v3095_v40 = vrot.slane %v3094_v25, 1 }
 0x390   : > { %v2657_v47 = vrot.slane %v2656_v17, 1  ;;  %v3088_v55 = vrot.slane %v3087_v12, 1 }
 0x391   : > { %v2665_v19 = vmax.f32 %v2663_v18, %v2664_v39  ;;  %v3096_v26 = vadd.f32 %v3095_v40, %v3094_v25 }
 0x392   : > { %v2658_v53 = vmax.f32 %v2656_v17, %v2657_v47  ;;  %v3089_v0 = vadd.f32 %v3088_v55, %v3087_v12 }
 0x393   : > { %v3642_v13 = vpack.c.bf16 %v2665_v19, %v2665_v19  ;;  %v3200_v48 = vmul.f32 0.0625, %v3096_v26 }
 0x394   : > { %v3641_v6 = vpack.c.bf16 %v2658_v53, %v2658_v53  ;;  %v3199_v9 = vmul.f32 0.0625, %v3089_v0 }
 0x395   : > { %v3674_v31 = vpack.c.bf16 %v3200_v48, %v3200_v48  ;;  %v2897_v23 = vunpack.c.l.b16 %v3642_v13 }
 0x396   : > { %v2896_v3 = vunpack.c.l.b16 %v3641_v6  ;;  %v3673_v59 = vpack.c.bf16 %v3199_v9, %v3199_v9 }
 0x397   : > { %v3360_v2 = vunpack.c.l.b16 %v3674_v31 }
 0x398   : > { %v2932_v28 = vsel %vm2912_vm2, %v2896_v3, %v2931_v52  ;;  %v3359_v35 = vunpack.c.l.b16 %v3673_v59 }
 0x399   : > { %v2933_v11 = vsel %vm2914_vm3, %v2897_v23, %v2932_v28 }
 0x39a   : > { %v3388_v4 = vsel %vm2912_vm2, %v3359_v35, %v3387_v41 }
 0x39b   : > { %v3389_v15 = vsel %vm2914_vm3, %v3360_v2, %v3388_v4 }
 0x3a5   : > { %v3881_v61 = vpop.f32.mrb[40].mxu1 }
 0x3a6   : > { %v2367_v7 = vpop.f32.mrb[41].mxu1  ;;  %v2504_v32 = vmax.f32 %v3881_v61, 0.0 }
 0x3a7   : > { %v3882_v10 = vpop.f32.mrb[42].mxu1  ;;  %v2502_v38 = vmax.f32 %v2367_v7, 0.0 }
 0x3a8   : > { %v2505_v45 = vmax.f32 %v3882_v10, 0.0  ;;  %v2370_v44 = vpop.f32.mrb[43].mxu1 }
 0x3a9   : > { %v2503_v5 = vmax.f32 %v2370_v44, 0.0 }
 0x3aa   : > { %v2673_v16 = vmax.f32 %v2504_v32, %v2505_v45  ;;  %v3104_v42 = vadd.f32 %v2505_v45, %v2504_v32 }
 0x3ab   : > { %v2666_v30 = vmax.f32 %v2502_v38, %v2503_v5  ;;  %v3097_v52 = vadd.f32 %v2503_v5, %v2502_v38 }
 0x3ac   : > { %v2674_v57 = vrot.slane %v2673_v16, 4  ;;  %v3105_v27 = vrot.slane %v3104_v42, 4 }
 0x3ad   : > { %v2667_v1 = vrot.slane %v2666_v30, 4  ;;  %v3098_v36 = vrot.slane %v3097_v52, 4 }
 0x3ae   : > { %v2675_v8 = vmax.f32 %v2673_v16, %v2674_v57  ;;  %v3106_v41 = vadd.f32 %v3105_v27, %v3104_v42 }
 0x3af   : > { %v2668_v34 = vmax.f32 %v2666_v30, %v2667_v1  ;;  %v3099_v43 = vadd.f32 %v3098_v36, %v3097_v52 }
 0x3b0   : > { %v2676_v51 = vrot.slane %v2675_v8, 2  ;;  %v3107_v24 = vrot.slane %v3106_v41, 2 }
 0x3b1   : > { %v2669_v54 = vrot.slane %v2668_v34, 2  ;;  %v3100_v58 = vrot.slane %v3099_v43, 2 }
 0x3b2   : > { %v2677_v37 = vmax.f32 %v2675_v8, %v2676_v51  ;;  %v3108_v33 = vadd.f32 %v3107_v24, %v3106_v41 }
 0x3b3   : > { %v2670_v20 = vmax.f32 %v2668_v34, %v2669_v54  ;;  %v3101_v22 = vadd.f32 %v3100_v58, %v3099_v43 }
 0x3b4   : > { %v2678_v46 = vrot.slane %v2677_v37, 1  ;;  %v3109_v56 = vrot.slane %v3108_v33, 1 }
 0x3b5   : > { %v2671_v21 = vrot.slane %v2670_v20, 1  ;;  %v3102_v63 = vrot.slane %v3101_v22, 1 }
 0x3b6   : > { %v2679_v49 = vmax.f32 %v2677_v37, %v2678_v46  ;;  %v3110_v62 = vadd.f32 %v3109_v56, %v3108_v33 }
 0x3b7   : > { %v2672_v29 = vmax.f32 %v2670_v20, %v2671_v21  ;;  %v3103_v50 = vadd.f32 %v3102_v63, %v3101_v22 }
 0x3b8   : > { %v3644_v14 = vpack.c.bf16 %v2679_v49, %v2679_v49  ;;  %v3202_v60 = vmul.f32 0.0625, %v3110_v62 }
 0x3b9   : > { %v3643_v18 = vpack.c.bf16 %v2672_v29, %v2672_v29  ;;  %v3201_v25 = vmul.f32 0.0625, %v3103_v50 }
 0x3ba   : > { %v3676_v17 = vpack.c.bf16 %v3202_v60, %v3202_v60  ;;  %v2899_v40 = vunpack.c.l.b16 %v3644_v14 }
 0x3bb   : > { %v2898_v12 = vunpack.c.l.b16 %v3643_v18  ;;  %v3675_v39 = vpack.c.bf16 %v3201_v25, %v3201_v25 }
 0x3bc   : > { %v3362_v19 = vunpack.c.l.b16 %v3676_v17 }
 0x3bd   : > { %v2934_v47 = vsel %vm2916_vm4, %v2898_v12, %v2933_v11  ;;  %v3361_v55 = vunpack.c.l.b16 %v3675_v39 }
 0x3be   : > { %v2935_v26 = vsel %vm2918_vm5, %v2899_v40, %v2934_v47 }
 0x3bf   : > { %v3390_v53 = vsel %vm2916_vm4, %v3361_v55, %v3389_v15 }
 0x3c0   : > { %v3391_v0 = vsel %vm2918_vm5, %v3362_v19, %v3390_v53 }
 0x3c6   : > { %v3885_v13 = vpop.f32.mrb[44].mxu1 }
 0x3c7   : > { %v2383_v48 = vpop.f32.mrb[45].mxu1  ;;  %v2508_v9 = vmax.f32 %v3885_v13, 0.0 }
 0x3c8   : > { %v3886_v6 = vpop.f32.mrb[46].mxu1  ;;  %v2506_v59 = vmax.f32 %v2383_v48, 0.0 }
 0x3c9   : > { %v2509_v31 = vmax.f32 %v3886_v6, 0.0  ;;  %v2386_v3 = vpop.f32.mrb[47].mxu1 }
 0x3ca   : > { %v2507_v23 = vmax.f32 %v2386_v3, 0.0 }
 0x3cb   : > { %v2687_v28 = vmax.f32 %v2508_v9, %v2509_v31  ;;  %v3118_v35 = vadd.f32 %v2509_v31, %v2508_v9 }
 0x3cc   : > { %v2680_v2 = vmax.f32 %v2506_v59, %v2507_v23  ;;  %v3111_v11 = vadd.f32 %v2507_v23, %v2506_v59 }
 0x3cd   : > { %v2688_v4 = vrot.slane %v2687_v28, 4  ;;  %v3119_v61 = vrot.slane %v3118_v35, 4 }
 0x3ce   : > { %v2681_v7 = vrot.slane %v2680_v2, 4  ;;  %v3112_v10 = vrot.slane %v3111_v11, 4 }
 0x3cf   : > { %v2689_v32 = vmax.f32 %v2687_v28, %v2688_v4  ;;  %v3120_v15 = vadd.f32 %v3119_v61, %v3118_v35 }
 0x3d0   : > { %v2682_v45 = vmax.f32 %v2680_v2, %v2681_v7  ;;  %v3113_v44 = vadd.f32 %v3112_v10, %v3111_v11 }
 0x3d1   : > { %v2690_v38 = vrot.slane %v2689_v32, 2  ;;  %v3121_v5 = vrot.slane %v3120_v15, 2 }
 0x3d2   : > { %v2683_v16 = vrot.slane %v2682_v45, 2  ;;  %v3114_v42 = vrot.slane %v3113_v44, 2 }
 0x3d3   : > { %v2691_v30 = vmax.f32 %v2689_v32, %v2690_v38  ;;  %v3122_v52 = vadd.f32 %v3121_v5, %v3120_v15 }
 0x3d4   : > { %v2684_v57 = vmax.f32 %v2682_v45, %v2683_v16  ;;  %v3115_v27 = vadd.f32 %v3114_v42, %v3113_v44 }
 0x3d5   : > { %v2692_v1 = vrot.slane %v2691_v30, 1  ;;  %v3123_v36 = vrot.slane %v3122_v52, 1 }
 0x3d6   : > { %v2685_v8 = vrot.slane %v2684_v57, 1  ;;  %v3116_v41 = vrot.slane %v3115_v27, 1 }
 0x3d7   : > { %v2693_v34 = vmax.f32 %v2691_v30, %v2692_v1  ;;  %v3124_v43 = vadd.f32 %v3123_v36, %v3122_v52 }
 0x3d8   : > { %v2686_v51 = vmax.f32 %v2684_v57, %v2685_v8  ;;  %v3117_v24 = vadd.f32 %v3116_v41, %v3115_v27 }
 0x3d9   : > { %v3646_v54 = vpack.c.bf16 %v2693_v34, %v2693_v34  ;;  %v3204_v58 = vmul.f32 0.0625, %v3124_v43 }
 0x3da   : > { %v3645_v37 = vpack.c.bf16 %v2686_v51, %v2686_v51  ;;  %v3203_v33 = vmul.f32 0.0625, %v3117_v24 }
 0x3db   : > { %v3678_v20 = vpack.c.bf16 %v3204_v58, %v3204_v58  ;;  %v2901_v56 = vunpack.c.l.b16 %v3646_v54 }
 0x3dc   : > { %v2900_v22 = vunpack.c.l.b16 %v3645_v37  ;;  %v3677_v46 = vpack.c.bf16 %v3203_v33, %v3203_v33 }
 0x3dd   : > { %v3364_v49 = vunpack.c.l.b16 %v3678_v20 }
 0x3de   : > { %v2936_v21 = vsel %vm2920_vm6, %v2900_v22, %v2935_v26  ;;  %v3363_v63 = vunpack.c.l.b16 %v3677_v46 }
 0x3df   : > { %v2937_v62 = vsel %vm2922_vm7, %v2901_v56, %v2936_v21 }
 0x3e0   : > { %v2947_v29 = vpack.c.b16 %v2937_v62, %v2937_v62  ;;  %v3392_v50 = vsel %vm2920_vm6, %v3363_v63, %v3391_v0 }
 0x3e1   : > { %v3393_v14 = vsel %vm2922_vm7, %v3364_v49, %v3392_v50 }
 0x3e2   : > { %2955 = vst [vmem:[%s5079_s29 + $0x10] sm:$0xf] %v2947_v29  ;;  %v3403_v60 = vpack.c.b16 %v3393_v14, %v3393_v14 }
 0x3e4   : > { %3411 = vst [vmem:[%s5079_s29 + $0x14] sm:$0xf] %v3403_v60 }
 0x3fe   : > { %v3889_v18 = vpop.f32.mrb[48].mxu1 }
 0x3ff   : > { %v2399_v25 = vpop.f32.mrb[49].mxu1  ;;  %v2512_v12 = vmax.f32 %v3889_v18, 0.0 }
 0x400   : > { %v3890_v17 = vpop.f32.mrb[50].mxu1  ;;  %v2510_v47 = vmax.f32 %v2399_v25, 0.0 }
 0x401   : > { %v2513_v39 = vmax.f32 %v3890_v17, 0.0  ;;  %v2402_v40 = vpop.f32.mrb[51].mxu1 }
 0x402   : > { %v2511_v55 = vmax.f32 %v2402_v40, 0.0 }
 0x403   : > { %v2701_v19 = vmax.f32 %v2512_v12, %v2513_v39  ;;  %v3132_v26 = vadd.f32 %v2513_v39, %v2512_v12 }
 0x404   : > { %v2694_v53 = vmax.f32 %v2510_v47, %v2511_v55  ;;  %v3125_v13 = vadd.f32 %v2511_v55, %v2510_v47 }
 0x405   : > { %v2702_v48 = vrot.slane %v2701_v19, 4  ;;  %v3133_v6 = vrot.slane %v3132_v26, 4 }
 0x406   : > { %v2695_v0 = vrot.slane %v2694_v53, 4  ;;  %v3126_v9 = vrot.slane %v3125_v13, 4 }
 0x407   : > { %v2703_v31 = vmax.f32 %v2701_v19, %v2702_v48  ;;  %v3134_v3 = vadd.f32 %v3133_v6, %v3132_v26 }
 0x408   : > { %v2696_v59 = vmax.f32 %v2694_v53, %v2695_v0  ;;  %v3127_v23 = vadd.f32 %v3126_v9, %v3125_v13 }
 0x409   : > { %v2704_v28 = vrot.slane %v2703_v31, 2  ;;  %v3135_v35 = vrot.slane %v3134_v3, 2 }
 0x40a   : > { %v2697_v2 = vrot.slane %v2696_v59, 2  ;;  %v3128_v11 = vrot.slane %v3127_v23, 2 }
 0x40b   : > { %v2705_v4 = vmax.f32 %v2703_v31, %v2704_v28  ;;  %v3136_v61 = vadd.f32 %v3135_v35, %v3134_v3 }
 0x40c   : > { %v2698_v7 = vmax.f32 %v2696_v59, %v2697_v2  ;;  %v3129_v10 = vadd.f32 %v3128_v11, %v3127_v23 }
 0x40d   : > { %v2706_v32 = vrot.slane %v2705_v4, 1  ;;  %v3137_v15 = vrot.slane %v3136_v61, 1 }
 0x40e   : > { %v2699_v45 = vrot.slane %v2698_v7, 1  ;;  %v3130_v44 = vrot.slane %v3129_v10, 1 }
 0x40f   : > { %v2707_v38 = vmax.f32 %v2705_v4, %v2706_v32  ;;  %v3138_v5 = vadd.f32 %v3137_v15, %v3136_v61 }
 0x410   : > { %v2700_v16 = vmax.f32 %v2698_v7, %v2699_v45  ;;  %v3131_v42 = vadd.f32 %v3130_v44, %v3129_v10 }
 0x411   : > { %v3648_v30 = vpack.c.bf16 %v2707_v38, %v2707_v38  ;;  %v3206_v52 = vmul.f32 0.0625, %v3138_v5 }
 0x412   : > { %v3647_v57 = vpack.c.bf16 %v2700_v16, %v2700_v16  ;;  %v3205_v27 = vmul.f32 0.0625, %v3131_v42 }
 0x413   : > { %v2903_v1 = vunpack.c.l.b16 %v3648_v30  ;;  %v3680_v36 = vpack.c.bf16 %v3206_v52, %v3206_v52 }
 0x414   : > { %v2902_v8 = vunpack.c.l.b16 %v3647_v57  ;;  %v3679_v41 = vpack.c.bf16 %v3205_v27, %v3205_v27 }
 0x415   : > { %v3366_v34 = vunpack.c.l.b16 %v3680_v36 }
 0x416   : > { %v2938_v43 = vsel %vm2910_vm1, %v2903_v1, %v2902_v8  ;;  %v3365_v51 = vunpack.c.l.b16 %v3679_v41 }
 0x418   : > { %v3394_v24 = vsel %vm2910_vm1, %v3366_v34, %v3365_v51  ;;  %v3893_v54 = vpop.f32.mrb[52].mxu1 }
 0x419   : > { %v2415_v58 = vpop.f32.mrb[53].mxu1  ;;  %v2516_v33 = vmax.f32 %v3893_v54, 0.0 }
 0x41a   : > { %v3894_v37 = vpop.f32.mrb[54].mxu1  ;;  %v2514_v46 = vmax.f32 %v2415_v58, 0.0 }
 0x41b   : > { %v2517_v20 = vmax.f32 %v3894_v37, 0.0  ;;  %v2418_v22 = vpop.f32.mrb[55].mxu1 }
 0x41c   : > { %v2515_v56 = vmax.f32 %v2418_v22, 0.0 }
 0x41d   : > { %v2715_v21 = vmax.f32 %v2516_v33, %v2517_v20  ;;  %v3146_v63 = vadd.f32 %v2517_v20, %v2516_v33 }
 0x41e   : > { %v2708_v49 = vmax.f32 %v2514_v46, %v2515_v56  ;;  %v3139_v62 = vadd.f32 %v2515_v56, %v2514_v46 }
 0x41f   : > { %v2716_v29 = vrot.slane %v2715_v21, 4  ;;  %v3147_v50 = vrot.slane %v3146_v63, 4 }
 0x420   : > { %v2709_v14 = vrot.slane %v2708_v49, 4  ;;  %v3140_v60 = vrot.slane %v3139_v62, 4 }
 0x421   : > { %v2717_v18 = vmax.f32 %v2715_v21, %v2716_v29  ;;  %v3148_v25 = vadd.f32 %v3147_v50, %v3146_v63 }
 0x422   : > { %v2710_v17 = vmax.f32 %v2708_v49, %v2709_v14  ;;  %v3141_v12 = vadd.f32 %v3140_v60, %v3139_v62 }
 0x423   : > { %v2718_v39 = vrot.slane %v2717_v18, 2  ;;  %v3149_v40 = vrot.slane %v3148_v25, 2 }
 0x424   : > { %v2711_v47 = vrot.slane %v2710_v17, 2  ;;  %v3142_v55 = vrot.slane %v3141_v12, 2 }
 0x425   : > { %v2719_v19 = vmax.f32 %v2717_v18, %v2718_v39  ;;  %v3150_v26 = vadd.f32 %v3149_v40, %v3148_v25 }
 0x426   : > { %v2712_v53 = vmax.f32 %v2710_v17, %v2711_v47  ;;  %v3143_v13 = vadd.f32 %v3142_v55, %v3141_v12 }
 0x427   : > { %v2720_v48 = vrot.slane %v2719_v19, 1  ;;  %v3151_v6 = vrot.slane %v3150_v26, 1 }
 0x428   : > { %v2713_v0 = vrot.slane %v2712_v53, 1  ;;  %v3144_v9 = vrot.slane %v3143_v13, 1 }
 0x429   : > { %v2721_v31 = vmax.f32 %v2719_v19, %v2720_v48  ;;  %v3152_v3 = vadd.f32 %v3151_v6, %v3150_v26 }
 0x42a   : > { %v2714_v59 = vmax.f32 %v2712_v53, %v2713_v0  ;;  %v3145_v23 = vadd.f32 %v3144_v9, %v3143_v13 }
 0x42b   : > { %v3650_v28 = vpack.c.bf16 %v2721_v31, %v2721_v31  ;;  %v3208_v35 = vmul.f32 0.0625, %v3152_v3 }
 0x42c   : > { %v3649_v2 = vpack.c.bf16 %v2714_v59, %v2714_v59  ;;  %v3207_v11 = vmul.f32 0.0625, %v3145_v23 }
 0x42d   : > { %v3682_v4 = vpack.c.bf16 %v3208_v35, %v3208_v35  ;;  %v2905_v10 = vunpack.c.l.b16 %v3650_v28 }
 0x42e   : > { %v2904_v61 = vunpack.c.l.b16 %v3649_v2  ;;  %v3681_v7 = vpack.c.bf16 %v3207_v11, %v3207_v11 }
 0x42f   : > { %v3368_v44 = vunpack.c.l.b16 %v3682_v4 }
 0x430   : > { %v2939_v32 = vsel %vm2912_vm2, %v2904_v61, %v2938_v43  ;;  %v3367_v15 = vunpack.c.l.b16 %v3681_v7 }
 0x431   : > { %v3897_v45 = vpop.f32.mrb[56].mxu1  ;;  %v2940_v5 = vsel %vm2914_vm3, %v2905_v10, %v2939_v32 }
 0x432   : > { %v2431_v38 = vpop.f32.mrb[57].mxu1  ;;  %v3395_v16 = vsel %vm2912_vm2, %v3367_v15, %v3394_v24  ;;  %v2520_v30 = vmax.f32 %v3897_v45, 0.0 }
 0x433   : > { %v3898_v42 = vpop.f32.mrb[58].mxu1  ;;  %v3396_v27 = vsel %vm2914_vm3, %v3368_v44, %v3395_v16  ;;  %v2518_v1 = vmax.f32 %v2431_v38, 0.0 }
 0x434   : > { %v2521_v52 = vmax.f32 %v3898_v42, 0.0  ;;  %v2434_v57 = vpop.f32.mrb[59].mxu1 }
 0x435   : > { %v2519_v36 = vmax.f32 %v2434_v57, 0.0 }
 0x436   : > { %v2729_v8 = vmax.f32 %v2520_v30, %v2521_v52  ;;  %v3160_v41 = vadd.f32 %v2521_v52, %v2520_v30 }
 0x437   : > { %v2722_v34 = vmax.f32 %v2518_v1, %v2519_v36  ;;  %v3153_v43 = vadd.f32 %v2519_v36, %v2518_v1 }
 0x438   : > { %v2730_v51 = vrot.slane %v2729_v8, 4  ;;  %v3161_v54 = vrot.slane %v3160_v41, 4 }
 0x439   : > { %v2723_v58 = vrot.slane %v2722_v34, 4  ;;  %v3154_v37 = vrot.slane %v3153_v43, 4 }
 0x43a   : > { %v2731_v33 = vmax.f32 %v2729_v8, %v2730_v51  ;;  %v3162_v20 = vadd.f32 %v3161_v54, %v3160_v41 }
 0x43b   : > { %v2724_v22 = vmax.f32 %v2722_v34, %v2723_v58  ;;  %v3155_v24 = vadd.f32 %v3154_v37, %v3153_v43 }
 0x43c   : > { %v2732_v46 = vrot.slane %v2731_v33, 2  ;;  %v3163_v56 = vrot.slane %v3162_v20, 2 }
 0x43d   : > { %v2725_v21 = vrot.slane %v2724_v22, 2  ;;  %v3156_v63 = vrot.slane %v3155_v24, 2 }
 0x43e   : > { %v2733_v49 = vmax.f32 %v2731_v33, %v2732_v46  ;;  %v3164_v62 = vadd.f32 %v3163_v56, %v3162_v20 }
 0x43f   : > { %v2726_v29 = vmax.f32 %v2724_v22, %v2725_v21  ;;  %v3157_v50 = vadd.f32 %v3156_v63, %v3155_v24 }
 0x440   : > { %v2734_v14 = vrot.slane %v2733_v49, 1  ;;  %v3165_v60 = vrot.slane %v3164_v62, 1 }
 0x441   : > { %v2727_v18 = vrot.slane %v2726_v29, 1  ;;  %v3158_v25 = vrot.slane %v3157_v50, 1 }
 0x442   : > { %v2735_v17 = vmax.f32 %v2733_v49, %v2734_v14  ;;  %v3166_v12 = vadd.f32 %v3165_v60, %v3164_v62 }
 0x443   : > { %v2728_v39 = vmax.f32 %v2726_v29, %v2727_v18  ;;  %v3159_v40 = vadd.f32 %v3158_v25, %v3157_v50 }
 0x444   : > { %v3652_v47 = vpack.c.bf16 %v2735_v17, %v2735_v17  ;;  %v3210_v55 = vmul.f32 0.0625, %v3166_v12 }
 0x445   : > { %v3651_v19 = vpack.c.bf16 %v2728_v39, %v2728_v39  ;;  %v3209_v26 = vmul.f32 0.0625, %v3159_v40 }
 0x446   : > { %v3684_v53 = vpack.c.bf16 %v3210_v55, %v3210_v55  ;;  %v2907_v6 = vunpack.c.l.b16 %v3652_v47 }
 0x447   : > { %v2906_v13 = vunpack.c.l.b16 %v3651_v19  ;;  %v3683_v48 = vpack.c.bf16 %v3209_v26, %v3209_v26 }
 0x448   : > { %v3370_v31 = vunpack.c.l.b16 %v3684_v53 }
 0x449   : > { %v2941_v0 = vsel %vm2916_vm4, %v2906_v13, %v2940_v5  ;;  %v3369_v9 = vunpack.c.l.b16 %v3683_v48 }
 0x44a   : > { %v2942_v3 = vsel %vm2918_vm5, %v2907_v6, %v2941_v0 }
 0x44b   : > { %v3397_v59 = vsel %vm2916_vm4, %v3369_v9, %v3396_v27 }
 0x44c   : > { %v3398_v23 = vsel %vm2918_vm5, %v3370_v31, %v3397_v59 }
 0x452   : > { %v3901_v28 = vpop.f32.mrb[60].mxu1 }
 0x453   : > { %v2447_v35 = vpop.f32.mrb[61].mxu1  ;;  %v2524_v11 = vmax.f32 %v3901_v28, 0.0 }
 0x454   : > { %v3902_v2 = vpop.f32.mrb[62].mxu1  ;;  %v2522_v7 = vmax.f32 %v2447_v35, 0.0 }
 0x455   : > { %v2525_v4 = vmax.f32 %v3902_v2, 0.0  ;;  %v2450_v61 = vpop.f32.mrb[63].mxu1 }
 0x456   : > { %v2523_v10 = vmax.f32 %v2450_v61, 0.0 }
 0x457   : > { %v2743_v32 = vmax.f32 %v2524_v11, %v2525_v4  ;;  %v3174_v15 = vadd.f32 %v2525_v4, %v2524_v11 }
 0x458   : > { %v2736_v45 = vmax.f32 %v2522_v7, %v2523_v10  ;;  %v3167_v44 = vadd.f32 %v2523_v10, %v2522_v7 }
 0x459   : > { %v2744_v38 = vrot.slane %v2743_v32, 4  ;;  %v3175_v5 = vrot.slane %v3174_v15, 4 }
 0x45a   : > { %v2737_v16 = vrot.slane %v2736_v45, 4  ;;  %v3168_v42 = vrot.slane %v3167_v44, 4 }
 0x45b   : > { %v2745_v30 = vmax.f32 %v2743_v32, %v2744_v38  ;;  %v3176_v52 = vadd.f32 %v3175_v5, %v3174_v15 }
 0x45c   : > { %v2738_v57 = vmax.f32 %v2736_v45, %v2737_v16  ;;  %v3169_v27 = vadd.f32 %v3168_v42, %v3167_v44 }
 0x45d   : > { %v2746_v1 = vrot.slane %v2745_v30, 2  ;;  %v3177_v36 = vrot.slane %v3176_v52, 2 }
 0x45e   : > { %v2739_v8 = vrot.slane %v2738_v57, 2  ;;  %v3170_v41 = vrot.slane %v3169_v27, 2 }
 0x45f   : > { %v2747_v34 = vmax.f32 %v2745_v30, %v2746_v1  ;;  %v3178_v43 = vadd.f32 %v3177_v36, %v3176_v52 }
 0x460   : > { %v2740_v51 = vmax.f32 %v2738_v57, %v2739_v8  ;;  %v3171_v54 = vadd.f32 %v3170_v41, %v3169_v27 }
 0x461   : > { %v2748_v58 = vrot.slane %v2747_v34, 1  ;;  %v3179_v37 = vrot.slane %v3178_v43, 1 }
 0x462   : > { %v2741_v33 = vrot.slane %v2740_v51, 1  ;;  %v3172_v20 = vrot.slane %v3171_v54, 1 }
 0x463   : > { %v2749_v22 = vmax.f32 %v2747_v34, %v2748_v58  ;;  %v3180_v24 = vadd.f32 %v3179_v37, %v3178_v43 }
 0x464   : > { %v2742_v46 = vmax.f32 %v2740_v51, %v2741_v33  ;;  %v3173_v56 = vadd.f32 %v3172_v20, %v3171_v54 }
 0x465   : > { %v3654_v21 = vpack.c.bf16 %v2749_v22, %v2749_v22  ;;  %v3212_v63 = vmul.f32 0.0625, %v3180_v24 }
 0x466   : > { %v3653_v49 = vpack.c.bf16 %v2742_v46, %v2742_v46  ;;  %v3211_v62 = vmul.f32 0.0625, %v3173_v56 }
 0x467   : > { %v3686_v29 = vpack.c.bf16 %v3212_v63, %v3212_v63  ;;  %v2909_v60 = vunpack.c.l.b16 %v3654_v21 }
 0x468   : > { %v2908_v50 = vunpack.c.l.b16 %v3653_v49  ;;  %v3685_v14 = vpack.c.bf16 %v3211_v62, %v3211_v62 }
 0x469   : > { %v3372_v17 = vunpack.c.l.b16 %v3686_v29 }
 0x46a   : > { %v2943_v18 = vsel %vm2920_vm6, %v2908_v50, %v2942_v3  ;;  %v3371_v25 = vunpack.c.l.b16 %v3685_v14 }
 0x46b   : > { %v2944_v12 = vsel %vm2922_vm7, %v2909_v60, %v2943_v18 }
 0x46c   : > { %v2948_v39 = vpack.c.b16 %v2944_v12, %v2944_v12  ;;  %v3399_v40 = vsel %vm2920_vm6, %v3371_v25, %v3398_v23 }
 0x46d   : > { %v3400_v47 = vsel %vm2922_vm7, %v3372_v17, %v3399_v40 }
 0x46e   : > { %2956 = vst [vmem:[%s5079_s29 + $0x18] sm:$0xf] %v2948_v39  ;;  %v3404_v55 = vpack.c.b16 %v3400_v47, %v3400_v47 }
 0x470   : > { %3412 = vst [vmem:[%s5079_s29 + $0x1c] sm:$0xf] %v3404_v55 }
 0x471 PF: > { %s14_s15 = sadd.s32 1, %s4002_s15  }
 0x472   : > { %p11_p5 = scmp.ge.s32.totalorder %s14_s15, 4  }
 0x474   :  { %13 = sbr.rel (!%p11_p5) target bundleno = 1 (0x1), region = 66 }

// kernel: backbone_forward.11
= control target key start
LH: loop header
LB: loop body
LE: loop exit
PB: predicated region body
PF: predicated region fallthrough
CT: control target
= control target key end

     0   :  { %s1808_s18 = smov 0   ;;  %s2072_s0 = inlined_call_operand.vmem [shape: f32[256,3], index: 0, kind: input, shape index: {}]   ;;  %s2073_s1 = inlined_call_operand.vmem [shape: bf16[256,128], index: 1, kind: input, shape index: {}]   ;;  %s2074_s2 = inlined_call_operand.vmem [shape: f32[3,128], index: 2, kind: input, shape index: {}]   ;;  %s2075_s3 = inlined_call_operand.vmem [shape: bf16[128,128], index: 3, kind: input, shape index: {}]   ;;  %s2076_s4 = inlined_call_operand.vmem [shape: bf16[128,128], index: 4, kind: input, shape index: {}]   ;;  %s2077_s5 = inlined_call_operand.vmem [shape: bf16[32,256], index: 5, kind: output, shape index: {}]  }
   0x1 LB: > { %s1491_s19 = sadd.s32 4294967295, %s1773_s18   ;;  %p1495_p0 = scmp.ge.s32.totalorder %s1773_s18, 1  ;;  %s1773_s18 = sphi %s1808_s18, %s15_s18  }
   0x2   : > { %p199_p1 = scmp.lt.s32.totalorder %s1773_s18, 3 }
   0x4   : > { %p200_p2 = pnand %p1495_p0, %p199_p1 }
   0x5   : > { %s1496_s20 = sshll.u32 (!%p200_p2), %s1491_s19, 4  ;;  %v1775_v0 = vmov (!%p200_p2), 2   ;;  %v1776_v1 = vmov (!%p200_p2), 0   ;;  %v1777_v7 = vmov (!%p200_p2), 1   ;;  %v1751_v10 = vld [vmem:[%s2075_s3] sm:$0xff] (!%p200_p2)   ;;  %v1752_v12 = vld [vmem:[%s2075_s3 + $0x8] sm:$0xff] (!%p200_p2)  }
   0x6   : > { %203 = sbr.rel (%p200_p2) target bundleno = 737 (0x2e1), region = 40  ;;  %1738 = vset.pattern.permute.xlu0 (!%p200_p2), %v1775_v0  ;;  %1735 = vset.pattern.permute.xlu1 (!%p200_p2), %v1776_v1  ;;  %p234_p3 = scmp.lt.s32.totalorder (!%p200_p2), %s1496_s20, 31  ;;  %v1753_v15 = vld [vmem:[%s2075_s3 + $0x10] sm:$0xff] (!%p200_p2)   ;;  %v1754_v17 = vld [vmem:[%s2075_s3 + $0x18] sm:$0xff] (!%p200_p2)   ;;  %v1755_v18 = vld [vmem:[%s2075_s3 + $0x20] sm:$0xff] (!%p200_p2)   ;;  %vm1182_vm0 = vcmask (!%p200_p2), 1041409  }
   0x7   : > { %1660 = vmatprep.subr.bf16.mxu0 (!%p200_p2), %v1751_v10  ;;  %v1756_v19 = vld [vmem:[%s2075_s3 + $0x28] sm:$0xff] (!%p200_p2)   ;;  %v1757_v20 = vld [vmem:[%s2075_s3 + $0x30] sm:$0xff] (!%p200_p2)   ;;  %v1758_v21 = vld [vmem:[%s2075_s3 + $0x38] sm:$0xff] (!%p200_p2)   ;;  %vm1184_vm1 = vcmask (!%p200_p2), 1042434   ;;  %vm1186_vm2 = vcmask (!%p200_p2), 1043459   ;;  %s1500_s22 = sshll.u32 (!%p200_p2), %s1491_s19, 1 }
   0x8   : > { %1661 = vmatpush3.bf16.msra.mxu0 (!%p200_p2), %v1751_v10  ;;  %v1759_v31 = vld [vmem:[%s2076_s4] sm:$0xff] (!%p200_p2)   ;;  %v1760_v32 = vld [vmem:[%s2076_s4 + $0x8] sm:$0xff] (!%p200_p2)   ;;  %v1761_v34 = vld [vmem:[%s2076_s4 + $0x10] sm:$0xff] (!%p200_p2)   ;;  %p246_p4 = scmp.lt.s32.totalorder (!%p200_p2), %s1500_s22, 3  ;;  %vm1188_vm3 = vcmask (!%p200_p2), 1044484   ;;  %vm1190_vm4 = vcmask (!%p200_p2), 1045509  }
   0x9   : > { %1662 = vmatprep.subr.bf16.mxu0 (!%p200_p2), %v1752_v12  ;;  %1692 = vmatprep.subr.bf16.mxu1 (!%p200_p2), %v1759_v31  ;;  %v1762_v37 = vld [vmem:[%s2076_s4 + $0x18] sm:$0xff] (!%p200_p2)   ;;  %v1763_v39 = vld [vmem:[%s2076_s4 + $0x20] sm:$0xff] (!%p200_p2)   ;;  %v1764_v42 = vld [vmem:[%s2076_s4 + $0x28] sm:$0xff] (!%p200_p2)   ;;  %vm1192_vm5 = vcmask (!%p200_p2), 1046534   ;;  %vm1194_vm6 = vcmask (!%p200_p2), 1047559  }
   0xa   : > { %1693 = vmatpush3.bf16.msra.mxu1 (!%p200_p2), %v1759_v31  ;;  %v1930_v52 = vld [vmem:[%s2074_s2] ss:$0 sm:$0xff] (!%p200_p2)  ;;  %v1941_v60 = vld [vmem:[%s2074_s2 + $0x1] ss:$0 sm:$0xff] (!%p200_p2)  ;;  %v1955_v10 = vld [vmem:[%s2074_s2 + $0x2] ss:$0 sm:$0xff] (!%p200_p2) }
   0xb   : > { %1694 = vmatprep.subr.bf16.mxu1 (!%p200_p2), %v1760_v32 }
   0xc   : > { %1663 = vmatpush3.bf16.msra.mxu0 (!%p200_p2), %v1752_v12 }
   0xd   : > { %s2079_s20 = smov (!%p234_p3, %s1496_s20), 31  ;;  %1664 = vmatprep.subr.bf16.mxu0 %v1753_v15  ;;  %s2081_s22 = smov (!%p246_p4, %s1500_s22), 3 }
   0xe   : > { %s1497_s21 = sshll.u32 %s2079_s20, 3  ;;  %1695 = vmatpush3.bf16.msra.mxu1 %v1760_v32  ;;  %s1499_s6 = sshll.u32 %s2079_s20, 2 }
   0xf   : > { %s1826_s24 = scalar_lea.vmem %s2072_s0, %s1497_s21  ;;  %1696 = vmatprep.subr.bf16.mxu1 %v1761_v34  ;;  %s1919_s9 = scalar_lea.vmem %s2073_s1, %s1499_s6 }
  0x10   : > { %v255_v2 = vld [vmem:[%s1826_s24 + $0x10] sm:$0xff]  ;;  %v254_v3 = vld [vmem:[%s1826_s24 + $0x8] sm:$0xff]  ;;  %v256_v4 = vld [vmem:[%s1826_s24 + $0x18] sm:$0xff]  ;;  %1665 = vmatpush3.bf16.msra.mxu0 %v1753_v15  ;;  %s1556_s19 = sshll.u32 %s2081_s22, 3 }
  0x11   : > { %314 = vperm.xlu1 %1735, %v255_v2   ;;  %525 = vperm.xlu0 %1738, %v254_v3   ;;  %v257_v5 = vld [vmem:[%s1826_s24 + $0x20] sm:$0xff]  ;;  %v260_v6 = vld [vmem:[%s1826_s24 + $0x38] sm:$0xff]  ;;  %v1835_v8 = vld [vmem:[%s1826_s24 + $0x48] sm:$0xff]  ;;  %s2039_s25 = scalar_lea.vmem %s2077_s5, %s1556_s19 }
  0x12   : > { %v253_v9 = vld [vmem:[%s1826_s24] sm:$0xff]  ;;  %v258_v11 = vld [vmem:[%s1826_s24 + $0x28] sm:$0xff]  ;;  %v259_v13 = vld [vmem:[%s1826_s24 + $0x30] sm:$0xff]  ;;  %1666 = vmatprep.subr.bf16.mxu0 %v1754_v17  ;;  %1697 = vmatpush3.bf16.msra.mxu1 %v1761_v34 }
  0x13   : > { %v265_v14 = vld [vmem:[%s1826_s24 + $0x60] sm:$0xff]  ;;  %v268_v16 = vld [vmem:[%s1826_s24 + $0x78] sm:$0xff]  ;;  %v263_v24 = vld [vmem:[%s1826_s24 + $0x50] sm:$0xff]  ;;  %1698 = vmatprep.subr.bf16.mxu1 %v1762_v37 }
  0x14   : > { %1667 = vmatpush3.bf16.msra.mxu0 %v1754_v17  ;;  %v261_v22 = vld [vmem:[%s1826_s24 + $0x40] sm:$0xff]  ;;  %v264_v23 = vld [vmem:[%s1826_s24 + $0x58] sm:$0xff]  ;;  %v266_v25 = vld [vmem:[%s1826_s24 + $0x68] sm:$0xff] }
  0x15   : > { %319 = vperm.xlu1 %1735, %v256_v4   ;;  %537 = vperm.xlu0 %1738, %v257_v5   ;;  %v267_v26 = vld [vmem:[%s1826_s24 + $0x70] sm:$0xff]  ;;  %v1590_v49 = vld [vmem:[%s1919_s9] sm:$0xff]   ;;  %v1935_v58 = vld [vmem:[%s1919_s9 + $0x38] sm:$0xff]  }
  0x16   : > { %1668 = vmatprep.subr.bf16.mxu0 %v1755_v18  ;;  %1699 = vmatpush3.bf16.msra.mxu1 %v1762_v37  ;;  %v1925_v51 = vld [vmem:[%s1919_s9 + $0x30] sm:$0xff]   ;;  %v1592_v54 = vunpack.c.h.bf16 %v1590_v49  ;;  %v1621_v61 = vld [vmem:[%s1919_s9 + $0x8] sm:$0xff]  }
  0x17   : > { %1700 = vmatprep.subr.bf16.mxu1 %v1763_v39  ;;  %v1615_v56 = vunpack.c.l.bf16 %v1925_v51 }
  0x18   : > { %1669 = vmatpush3.bf16.msra.mxu0 %v1755_v18 }
  0x19   : > { %1736 = vset.pattern.permute.xlu1 %v1777_v7  ;;  %549 = vperm.xlu0 %1738, %v260_v6  }
  0x1a   : > { %424 = vperm.xlu1 %1736, %v254_v3   ;;  %1670 = vmatprep.subr.bf16.mxu0 %v1756_v19 }
  0x1b   : > { %1701 = vmatpush3.bf16.msra.mxu1 %v1763_v39 }
  0x1c   : > { %1671 = vmatpush3.bf16.msra.mxu0 %v1756_v19  ;;  %1702 = vmatprep.subr.bf16.mxu1 %v1764_v42  ;;  %v1596_v19 = vunpack.c.h.bf16 %v1621_v61 }
  0x1d   : > { %557 = vperm.xlu0 %1738, %v1835_v8   ;;  %1672 = vmatprep.subr.bf16.mxu0 %v1757_v20 }
  0x1e   : > { %428 = vperm.xlu1 %1736, %v255_v2  }
  0x1f   : > { %1703 = vmatpush3.bf16.msra.mxu1 %v1764_v42 }
  0x20   : > { %1673 = vmatpush3.bf16.msra.mxu0 %v1757_v20 }
  0x21   : > { %1745 = vset.pattern.permute.xlu0 %v1776_v1  ;;  %1674 = vmatprep.subr.bf16.mxu0 %v1758_v21 }
  0x22   : > { %1737 = vset.pattern.permute.xlu1 %v1775_v0  ;;  %304 = vperm.xlu0 %1745, %v253_v9  }
  0x23   : > { %521 = vperm.xlu1 %1737, %v253_v9  }
  0x24   : > { %1675 = vmatpush3.bf16.msra.mxu0 %v1758_v21 }
  0x26   : > { %309 = vperm.xlu0 %1745, %v254_v3  }
  0x27   : > { %529 = vperm.xlu1 %1737, %v255_v2   ;;  %v1591_v2 = vunpack.c.l.bf16 %v1590_v49 }
  0x2a   : > { %324 = vperm.xlu0 %1745, %v257_v5  }
  0x2b   : > { %533 = vperm.xlu1 %1737, %v256_v4  }
  0x2e   : > { %339 = vperm.xlu0 %1745, %v260_v6  }
  0x2f   : > { %1739 = vset.pattern.permute.xlu1 %v1776_v1 }
  0x30   : > { %329 = vperm.xlu1 %1739, %v258_v11  }
  0x32   : > { %349 = vperm.xlu0 %1745, %v1835_v8  }
  0x34   : > { %334 = vperm.xlu1 %1739, %v259_v13  }
  0x36   : > { %364 = vperm.xlu0 %1745, %v265_v14  }
  0x38   : > { %1740 = vset.pattern.permute.xlu1 %v1777_v7 }
  0x39   : > { %436 = vperm.xlu1 %1740, %v257_v5  }
  0x3a   : > { %379 = vperm.xlu0 %1745, %v268_v16  }
  0x3d   : > { %444 = vperm.xlu1 %1740, %v259_v13  }
  0x3e   : > { %1747 = vset.pattern.permute.xlu0 %v1777_v7 }
  0x3f   : > { %420 = vperm.xlu0 %1747, %v253_v9  }
  0x41   : > { %448 = vperm.xlu1 %1740, %v260_v6   ;;  %v1622_v6 = vld [vmem:[%s1919_s9 + $0x10] sm:$0xff]  }
  0x43   : > { %432 = vperm.xlu0 %1747, %v256_v4  }
  0x45   : > { %1741 = vset.pattern.permute.xlu1 %v1775_v0 }
  0x46   : > { %541 = vperm.xlu1 %1741, %v258_v11  }
  0x47   : > { %440 = vperm.xlu0 %1747, %v258_v11   ;;  %v1599_v11 = vunpack.c.l.bf16 %v1622_v6 }
  0x4a   : > { %545 = vperm.xlu1 %1741, %v259_v13  }
  0x4b   : > { %452 = vperm.xlu0 %1747, %v261_v22  }
  0x4e   : > { %1742 = vset.pattern.permute.xlu1 %v1776_v1 }
  0x4f   : > { %344 = vperm.xlu1 %1742, %v261_v22   ;;  %464 = vperm.xlu0 %1747, %v264_v23  }
  0x53   : > { %354 = vperm.xlu1 %1742, %v263_v24   ;;  %472 = vperm.xlu0 %1747, %v266_v25  }
  0x57   : > { %359 = vperm.xlu1 %1742, %v264_v23   ;;  %1749 = vset.pattern.permute.xlu0 %v1775_v0 }
  0x58   : > { %569 = vperm.xlu0 %1749, %v265_v14  }
  0x5b   : > { %1743 = vset.pattern.permute.xlu1 %v1777_v7 }
  0x5c   : > { %456 = vperm.xlu1 %1743, %v1835_v8   ;;  %581 = vperm.xlu0 %1749, %v268_v16   ;;  %v1595_v8 = vunpack.c.l.bf16 %v1621_v61 }
  0x60   : > { %460 = vperm.xlu1 %1743, %v263_v24  }
  0x64   : > { %1744 = vset.pattern.permute.xlu1 %v1775_v0 }
  0x65   : > { %553 = vperm.xlu1 %1744, %v261_v22  }
  0x69   : > { %561 = vperm.xlu1 %1744, %v263_v24   ;;  %v1623_v24 = vld [vmem:[%s1919_s9 + $0x18] sm:$0xff]  }
  0x6a   : > { %v1603_v42 = vunpack.c.l.bf16 %v1623_v24 }
  0x6d   : > { %565 = vperm.xlu1 %1744, %v264_v23  }
  0x71   : > { %1746 = vset.pattern.permute.xlu1 %v1776_v1  ;;  %v1620_v1 = vunpack.c.h.bf16 %v1935_v58 }
  0x72   : > { %369 = vperm.xlu1 %1746, %v266_v25  }
  0x76   : > { %374 = vperm.xlu1 %1746, %v267_v26  }
  0x7a   : > { %1748 = vset.pattern.permute.xlu1 %v1777_v7 }
  0x7b   : > { %468 = vperm.xlu1 %1748, %v265_v14  }
  0x7f   : > { %476 = vperm.xlu1 %1748, %v267_v26  }
  0x83   : > { %480 = vperm.xlu1 %1748, %v268_v16  }
  0x87   : > { %1750 = vset.pattern.permute.xlu1 %v1775_v0 }
  0x88   : > { %573 = vperm.xlu1 %1750, %v266_v25  }
  0x8c   : > { %577 = vperm.xlu1 %1750, %v267_v26  }
  0x90   : > { %v315_v27 = vpop.permute.xlu1 %314  ;;  %v526_v28 = vpop.permute.xlu0 %525 }
  0x91   : > { %v388_v9 = vmul.f32 %v1930_v52, %v315_v27  ;;  %v589_v12 = vmul.f32 %v1955_v10, %v526_v28  ;;  %v1604_v27 = vunpack.c.h.bf16 %v1623_v24 }
  0x93   : > { %v404_v22 = vadd.f32 %v1595_v8, %v388_v9 }
  0x94   : > { %v1887_v29 = vpop.permute.xlu1 %319  ;;  %v1889_v30 = vpop.permute.xlu0 %537 }
  0x95   : > { %v389_v20 = vmul.f32 %v1930_v52, %v1887_v29  ;;  %v592_v39 = vmul.f32 %v1955_v10, %v1889_v30 }
  0x97   : > { %v405_v29 = vadd.f32 %v1596_v19, %v389_v20 }
  0x98   : > { %v1897_v33 = vpop.permute.xlu0 %549 }
  0x99   : > { %v425_v35 = vpop.permute.xlu1 %424 }
  0x9a   : > { %v488_v5 = vmul.f32 %v1941_v60, %v425_v35 }
  0x9c   : > { %v1902_v36 = vpop.permute.xlu0 %557 }
  0x9d   : > { %v429_v38 = vpop.permute.xlu1 %428 }
  0x9e   : > { %v489_v17 = vmul.f32 %v1941_v60, %v429_v38 }
  0xa0   : > { %v505_v34 = vadd.f32 %v489_v17, %v404_v22 }
  0xa1   : > { %v305_v40 = vpop.permute.xlu0 %304 }
  0xa2   : > { %v522_v41 = vpop.permute.xlu1 %521  ;;  %v386_v3 = vmul.f32 %v1930_v52, %v305_v40  ;;  %v1600_v40 = vunpack.c.h.bf16 %v1622_v6 }
  0xa3   : > { %v588_v35 = vmul.f32 %v1955_v10, %v522_v41 }
  0xa4   : > { %v402_v18 = vadd.f32 %v1591_v2, %v386_v3 }
  0xa5   : > { %v310_v43 = vpop.permute.xlu0 %309 }
  0xa6   : > { %v530_v44 = vpop.permute.xlu1 %529  ;;  %v387_v55 = vmul.f32 %v1930_v52, %v310_v43 }
  0xa7   : > { %v590_v23 = vmul.f32 %v1955_v10, %v530_v44 }
  0xa8   : > { %v403_v62 = vadd.f32 %v1592_v54, %v387_v55 }
  0xa9   : > { %v325_v45 = vpop.permute.xlu0 %324  ;;  %v606_v44 = vadd.f32 %v590_v23, %v505_v34 }
  0xaa   : > { %v1913_v46 = vpop.permute.xlu1 %533  ;;  %v390_v13 = vmul.f32 %v1930_v52, %v325_v45  ;;  %v504_v16 = vadd.f32 %v488_v5, %v403_v62 }
  0xab   : > { %v591_v55 = vmul.f32 %v1955_v10, %v1913_v46  ;;  %v622_v5 = vmax.f32 %v606_v44, 0.0 }
  0xac   : > { %v406_v26 = vadd.f32 %v1599_v11, %v390_v13  ;;  %v605_v32 = vadd.f32 %v589_v12, %v504_v16 }
  0xad   : > { %v340_v47 = vpop.permute.xlu0 %339 }
  0xae   : > { %v393_v37 = vmul.f32 %v1930_v52, %v340_v47 }
  0xaf   : > { %v330_v48 = vpop.permute.xlu1 %329 }
  0xb0   : > { %v391_v45 = vmul.f32 %v1930_v52, %v330_v48 }
  0xb1   : > { %v1922_v50 = vpop.permute.xlu0 %349 }
  0xb2   : > { %v407_v48 = vadd.f32 %v1600_v40, %v391_v45 }
  0xb3   : > { %v335_v53 = vpop.permute.xlu1 %334 }
  0xb4   : > { %v392_v41 = vmul.f32 %v1930_v52, %v335_v53 }
  0xb5   : > { %v365_v57 = vpop.permute.xlu0 %364 }
  0xb6   : > { %v398_v59 = vmul.f32 %v1930_v52, %v365_v57  ;;  %v409_v57 = vadd.f32 %v1604_v27, %v393_v37  ;;  %v408_v46 = vadd.f32 %v1603_v42, %v392_v41 }
  0xb8   : > { %v1944_v63 = vadd.f32 %v1615_v56, %v398_v59  ;;  %v437_v0 = vpop.permute.xlu1 %436  ;;  %v621_v56 = vmax.f32 %v605_v32, 0.0  ;;  %v395_v32 = vmul.f32 %v1930_v52, %v1922_v50 }
  0xb9   : > { %v380_v4 = vpop.permute.xlu0 %379  ;;  %v491_v28 = vmul.f32 %v1941_v60, %v437_v0 }
  0xba   : > { %v401_v7 = vmul.f32 %v1930_v52, %v380_v4 }
  0xbb   : > { %v507_v47 = vadd.f32 %v491_v28, %v406_v26 }
  0xbc   : > { %v1959_v14 = vadd.f32 %v1620_v1, %v401_v7  ;;  %v445_v15 = vpop.permute.xlu1 %444 }
  0xbd   : > { %v493_v0 = vmul.f32 %v1941_v60, %v445_v15  ;;  %v608_v6 = vadd.f32 %v592_v39, %v507_v47  ;;  %v595_v15 = vmul.f32 %v1955_v10, %v1897_v33  ;;  %v597_v39 = vmul.f32 %v1955_v10, %v1902_v36 }
  0xbe   : > { %v421_v21 = vpop.permute.xlu0 %420 }
  0xbf   : > { %v487_v25 = vmul.f32 %v1941_v60, %v421_v21  ;;  %v509_v12 = vadd.f32 %v493_v0, %v408_v46  ;;  %v624_v19 = vmax.f32 %v608_v6, 0.0 }
  0xc0   : > { %v449_v31 = vpop.permute.xlu1 %448 }
  0xc1   : > { %v503_v38 = vadd.f32 %v487_v25, %v402_v18  ;;  %v494_v59 = vmul.f32 %v1941_v60, %v449_v31  ;;  %v1624_v31 = vld [vmem:[%s1919_s9 + $0x20] sm:$0xff]  }
  0xc2   : > { %v433_v43 = vpop.permute.xlu0 %432  ;;  %v1608_v33 = vunpack.c.h.bf16 %v1624_v31 }
  0xc3   : > { %v490_v49 = vmul.f32 %v1941_v60, %v433_v43  ;;  %v604_v54 = vadd.f32 %v588_v35, %v503_v38  ;;  %v510_v53 = vadd.f32 %v494_v59, %v409_v57  ;;  %v1607_v38 = vunpack.c.l.bf16 %v1624_v31 }
  0xc4   : > { %v411_v35 = vadd.f32 %v1608_v33, %v395_v32  ;;  %v1619_v32 = vunpack.c.l.bf16 %v1935_v58 }
  0xc5   : > { %v506_v30 = vadd.f32 %v490_v49, %v405_v29  ;;  %v542_v61 = vpop.permute.xlu1 %541  ;;  %v620_v62 = vmax.f32 %v604_v54, 0.0  ;;  %v611_v20 = vadd.f32 %v595_v15, %v510_v53  ;;  %v1625_v54 = vld [vmem:[%s1919_s9 + $0x28] sm:$0xff]  }
  0xc6   : > { %v441_v1 = vpop.permute.xlu0 %440  ;;  %v593_v8 = vmul.f32 %v1955_v10, %v542_v61 }
  0xc7   : > { %v607_v2 = vadd.f32 %v591_v55, %v506_v30  ;;  %v492_v3 = vmul.f32 %v1941_v60, %v441_v1  ;;  %v636_v4 = vpack.c.bf16 %v621_v56, %v620_v62  ;;  %v627_v25 = vmax.f32 %v611_v20, 0.0 }
  0xc8   : > { %v1611_v55 = vunpack.c.l.bf16 %v1625_v54  ;;  %v1612_v56 = vunpack.c.h.bf16 %v1625_v54 }
  0xc9   : > { %v623_v7 = vmax.f32 %v607_v2, 0.0  ;;  %v508_v9 = vadd.f32 %v492_v3, %v407_v48  ;;  %1676 = vmatprep.mubr.bf16.mxu0 %v636_v4  ;;  %v546_v11 = vpop.permute.xlu1 %545 }
  0xca   : > { %v594_v13 = vmul.f32 %v1955_v10, %v546_v11  ;;  %v453_v40 = vpop.permute.xlu0 %452 }
  0xcb   : > { %v609_v16 = vadd.f32 %v593_v8, %v508_v9  ;;  %v637_v17 = vpack.c.bf16 %v623_v7, %v622_v5  ;;  %v495_v49 = vmul.f32 %v1941_v60, %v453_v40 }
  0xcc   : > { %v610_v18 = vadd.f32 %v594_v13, %v509_v12 }
  0xcd   : > { %v625_v21 = vmax.f32 %v609_v16, 0.0  ;;  %1677 = vmatmul.mubr.bf16.vlgmr.msra.gmra.mrb[0].mxu0 %v637_v17 }
  0xce   : > { %v345_v22 = vpop.permute.xlu1 %344  ;;  %v626_v23 = vmax.f32 %v610_v18, 0.0  ;;  %v465_v59 = vpop.permute.xlu0 %464 }
  0xcf   : > { %v638_v24 = vpack.c.bf16 %v625_v21, %v624_v19  ;;  %v394_v29 = vmul.f32 %v1930_v52, %v345_v22  ;;  %v498_v0 = vmul.f32 %v1941_v60, %v465_v59  ;;  %v1616_v21 = vunpack.c.h.bf16 %v1925_v51 }
  0xd0   : > { %v639_v27 = vpack.c.bf16 %v627_v25, %v626_v23 }
  0xd1   : > { %1680 = vmatprep.mubr.bf16.mxu0 %v638_v24  ;;  %v410_v45 = vadd.f32 %v1607_v38, %v394_v29 }
  0xd2   : > { %v355_v26 = vpop.permute.xlu1 %354  ;;  %v473_v18 = vpop.permute.xlu0 %472 }
  0xd3   : > { %v396_v50 = vmul.f32 %v1930_v52, %v355_v26  ;;  %v511_v47 = vadd.f32 %v495_v49, %v410_v45  ;;  %v500_v33 = vmul.f32 %v1941_v60, %v473_v18 }
  0xd5   : > { %1681 = vmatmul.mubr.bf16.gmra.mrb[4].mxu0 %v639_v27  ;;  %v412_v62 = vadd.f32 %v1611_v55, %v396_v50 }
  0xd6   : > { %v360_v28 = vpop.permute.xlu1 %359 }
  0xd7   : > { %v397_v57 = vmul.f32 %v1930_v52, %v360_v28  ;;  %v570_v23 = vpop.permute.xlu0 %569 }
  0xd8   : > { %v600_v26 = vmul.f32 %v1955_v10, %v570_v23 }
  0xd9   : > { %v413_v48 = vadd.f32 %v1612_v56, %v397_v57 }
  0xdb   : > { %v457_v34 = vpop.permute.xlu1 %456  ;;  %v514_v53 = vadd.f32 %v498_v0, %v413_v48  ;;  %v582_v31 = vpop.permute.xlu0 %581 }
  0xdc   : > { %v496_v37 = vmul.f32 %v1941_v60, %v457_v34  ;;  %v603_v51 = vmul.f32 %v1955_v10, %v582_v31 }
  0xde   : > { %v512_v42 = vadd.f32 %v496_v37, %v411_v35 }
  0xdf   : > { %v461_v43 = vpop.permute.xlu1 %460 }
  0xe0   : > { %v613_v44 = vadd.f32 %v597_v39, %v512_v42  ;;  %v497_v36 = vmul.f32 %v1941_v60, %v461_v43 }
  0xe2   : > { %v629_v2 = vmax.f32 %v613_v44, 0.0  ;;  %v513_v5 = vadd.f32 %v497_v36, %v412_v62 }
  0xe4   : > { %v554_v41 = vpop.permute.xlu1 %553 }
  0xe5   : > { %v596_v30 = vmul.f32 %v1955_v10, %v554_v41 }
  0xe7   : > { %v612_v61 = vadd.f32 %v596_v30, %v511_v47  ;;  %v1766_v47 = vld [vmem:[%s2076_s4 + $0x38] sm:$0xff]  }
  0xe8   : > { %v562_v1 = vpop.permute.xlu1 %561 }
  0xe9   : > { %v628_v3 = vmax.f32 %v612_v61, 0.0  ;;  %v598_v4 = vmul.f32 %v1955_v10, %v562_v1 }
  0xeb   : > { %v640_v46 = vpack.c.bf16 %v629_v2, %v628_v3  ;;  %v614_v7 = vadd.f32 %v598_v4, %v513_v5 }
  0xec   : > { %v566_v6 = vpop.permute.xlu1 %565 }
  0xed   : > { %v599_v8 = vmul.f32 %v1955_v10, %v566_v6  ;;  %1684 = vmatprep.mubr.bf16.mxu0 %v640_v46  ;;  %v630_v11 = vmax.f32 %v614_v7, 0.0 }
  0xef   : > { %v615_v9 = vadd.f32 %v599_v8, %v514_v53 }
  0xf1   : > { %v631_v12 = vmax.f32 %v615_v9, 0.0  ;;  %v370_v13 = vpop.permute.xlu1 %369 }
  0xf2   : > { %v399_v22 = vmul.f32 %v1930_v52, %v370_v13 }
  0xf3   : > { %v641_v15 = vpack.c.bf16 %v631_v12, %v630_v11 }
  0xf4   : > { %v415_v27 = vadd.f32 %v1616_v21, %v399_v22 }
  0xf5   : > { %1685 = vmatmul.mubr.bf16.gmra.mrb[8].mxu0 %v641_v15  ;;  %v375_v16 = vpop.permute.xlu1 %374 }
  0xf6   : > { %v400_v34 = vmul.f32 %v1930_v52, %v375_v16  ;;  %v516_v29 = vadd.f32 %v500_v33, %v415_v27 }
  0xf8   : > { %v416_v40 = vadd.f32 %v1619_v32, %v400_v34 }
  0xfa   : > { %v469_v17 = vpop.permute.xlu1 %468 }
  0xfb   : > { %v499_v20 = vmul.f32 %v1941_v60, %v469_v17 }
  0xfd   : > { %v515_v25 = vadd.f32 %v499_v20, %v1944_v63 }
  0xfe   : > { %v477_v19 = vpop.permute.xlu1 %476 }
  0xff   : > { %v616_v35 = vadd.f32 %v600_v26, %v515_v25  ;;  %v501_v38 = vmul.f32 %v1941_v60, %v477_v19 }
 0x101   : > { %v632_v43 = vmax.f32 %v616_v35, 0.0  ;;  %v517_v45 = vadd.f32 %v501_v38, %v416_v40 }
 0x102   : > { %v481_v24 = vpop.permute.xlu1 %480 }
 0x103   : > { %v502_v28 = vmul.f32 %v1941_v60, %v481_v24 }
 0x105   : > { %v518_v63 = vadd.f32 %v502_v28, %v1959_v14  ;;  %v1765_v14 = vld [vmem:[%s2076_s4 + $0x30] sm:$0xff]  }
 0x106   : > { %1704 = vmatprep.subr.bf16.mxu1 %v1765_v14 }
 0x107   : > { %v574_v37 = vpop.permute.xlu1 %573  ;;  %v619_v49 = vadd.f32 %v603_v51, %v518_v63  ;;  %1705 = vmatpush3.bf16.msra.mxu1 %v1765_v14 }
 0x108   : > { %v601_v39 = vmul.f32 %v1955_v10, %v574_v37  ;;  %1706 = vmatprep.subr.bf16.mxu1 %v1766_v47 }
 0x109   : > { %v635_v50 = vmax.f32 %v619_v49, 0.0 }
 0x10a   : > { %v617_v42 = vadd.f32 %v601_v39, %v516_v29 }
 0x10b   : > { %v578_v44 = vpop.permute.xlu1 %577  ;;  %1707 = vmatpush3.bf16.msra.mxu1 %v1766_v47 }
 0x10c   : > { %v633_v58 = vmax.f32 %v617_v42, 0.0  ;;  %v602_v52 = vmul.f32 %v1955_v10, %v578_v44 }
 0x10e   : > { %v618_v54 = vadd.f32 %v602_v52, %v517_v45  ;;  %v642_v55 = vpack.c.bf16 %v633_v58, %v632_v43 }
 0x110   : > { %v634_v41 = vmax.f32 %v618_v54, 0.0  ;;  %1688 = vmatprep.mubr.bf16.mxu0 %v642_v55 }
 0x112   : > { %v643_v60 = vpack.c.bf16 %v635_v50, %v634_v41 }
 0x114   : > { %1689 = vmatmul.mubr.bf16.gmra.mrb[12].mxu0 %v643_v60 }
 0x1a0   : > { %v1678_v10 = vpop.f32.mrb[0].mxu0 }
 0x1a1   : > { %v742_v56 = vpop.f32.mrb[1].mxu0  ;;  %v807_v59 = vmax.f32 %v1678_v10, 0.0 }
 0x1a2   : > { %v1679_v57 = vpop.f32.mrb[2].mxu0  ;;  %v805_v61 = vmax.f32 %v742_v56, 0.0 }
 0x1a3   : > { %v808_v30 = vmax.f32 %v1679_v57, 0.0  ;;  %v745_v36 = vpop.f32.mrb[3].mxu0 }
 0x1a4   : > { %v806_v62 = vmax.f32 %v745_v36, 0.0 }
 0x1a5   : > { %v822_v0 = vpack.c.bf16 %v808_v30, %v807_v59 }
 0x1a6   : > { %v821_v1 = vpack.c.bf16 %v806_v62, %v805_v61 }
 0x1a8   : > { %v1682_v48 = vpop.f32.mrb[4].mxu0  ;;  %1708 = vmatprep.mubr.bf16.mxu1 %v821_v1 }
 0x1a9   : > { %v758_v2 = vpop.f32.mrb[5].mxu0  ;;  %1709 = vmatmul.mubr.bf16.vlgmr.msra.gmra.mrb[0].mxu1 %v822_v0  ;;  %v811_v4 = vmax.f32 %v1682_v48, 0.0 }
 0x1aa   : > { %v1683_v3 = vpop.f32.mrb[6].mxu0  ;;  %v809_v6 = vmax.f32 %v758_v2, 0.0 }
 0x1ab   : > { %v812_v5 = vmax.f32 %v1683_v3, 0.0  ;;  %v761_v46 = vpop.f32.mrb[7].mxu0 }
 0x1ac   : > { %v810_v53 = vmax.f32 %v761_v46, 0.0 }
 0x1ad   : > { %v824_v7 = vpack.c.bf16 %v812_v5, %v811_v4 }
 0x1ae   : > { %v823_v8 = vpack.c.bf16 %v810_v53, %v809_v6 }
 0x1b0   : > { %1712 = vmatprep.mubr.bf16.mxu1 %v823_v8 }
 0x1b1   : > { %1713 = vmatmul.mubr.bf16.gmra.mrb[4].mxu1 %v824_v7 }
 0x1c8   : > { %v1686_v9 = vpop.f32.mrb[8].mxu0 }
 0x1c9   : > { %v774_v11 = vpop.f32.mrb[9].mxu0  ;;  %v815_v13 = vmax.f32 %v1686_v9, 0.0 }
 0x1ca   : > { %v1687_v12 = vpop.f32.mrb[10].mxu0  ;;  %v813_v17 = vmax.f32 %v774_v11, 0.0 }
 0x1cb   : > { %v816_v15 = vmax.f32 %v1687_v12, 0.0  ;;  %v777_v16 = vpop.f32.mrb[11].mxu0 }
 0x1cc   : > { %v814_v18 = vmax.f32 %v777_v16, 0.0 }
 0x1cd   : > { %v826_v19 = vpack.c.bf16 %v816_v15, %v815_v13 }
 0x1ce   : > { %v825_v20 = vpack.c.bf16 %v814_v18, %v813_v17 }
 0x1d0   : > { %1716 = vmatprep.mubr.bf16.mxu1 %v825_v20 }
 0x1d1   : > { %1717 = vmatmul.mubr.bf16.gmra.mrb[8].mxu1 %v826_v19 }
 0x1e7   : > { %v1690_v21 = vpop.f32.mrb[12].mxu0 }
 0x1e8   : > { %v790_v22 = vpop.f32.mrb[13].mxu0  ;;  %v819_v24 = vmax.f32 %v1690_v21, 0.0 }
 0x1e9   : > { %v1691_v23 = vpop.f32.mrb[14].mxu0  ;;  %v817_v27 = vmax.f32 %v790_v22, 0.0 }
 0x1ea   : > { %v820_v25 = vmax.f32 %v1691_v23, 0.0  ;;  %v793_v26 = vpop.f32.mrb[15].mxu0 }
 0x1eb   : > { %v818_v28 = vmax.f32 %v793_v26, 0.0 }
 0x1ec   : > { %v828_v31 = vpack.c.bf16 %v820_v25, %v819_v24 }
 0x1ed   : > { %v827_v33 = vpack.c.bf16 %v818_v28, %v817_v27 }
 0x1ef   : > { %1720 = vmatprep.mubr.bf16.mxu1 %v827_v33 }
 0x1f0   : > { %1721 = vmatmul.mubr.bf16.gmra.mrb[12].mxu1 %v828_v31 }
 0x27c   : > { %v1710_v32 = vpop.f32.mrb[0].mxu1 }
 0x27d   : > { %v992_v34 = vmax.f32 %v1710_v32, 0.0  ;;  %v927_v35 = vpop.f32.mrb[1].mxu1 }
 0x27e   : > { %v990_v51 = vmax.f32 %v927_v35, 0.0  ;;  %v1711_v37 = vpop.f32.mrb[2].mxu1 }
 0x27f   : > { %v1018_v38 = vrot.slane %v992_v34, 4  ;;  %v993_v63 = vmax.f32 %v1711_v37, 0.0  ;;  %v930_v29 = vpop.f32.mrb[3].mxu1 }
 0x280   : > { %v1006_v39 = vrot.slane %v990_v51, 4  ;;  %v991_v40 = vmax.f32 %v930_v29, 0.0 }
 0x281   : > { %v1019_v42 = vmax.f32 %v992_v34, %v1018_v38  ;;  %v1222_v43 = vadd.f32 %v1018_v38, %v992_v34  ;;  %v1024_v44 = vrot.slane %v993_v63, 4 }
 0x282   : > { %v1007_v45 = vmax.f32 %v990_v51, %v1006_v39  ;;  %v1210_v49 = vadd.f32 %v1006_v39, %v990_v51  ;;  %v1012_v58 = vrot.slane %v991_v40, 4 }
 0x283   : > { %v1020_v52 = vrot.slane %v1019_v42, 2  ;;  %v1223_v54 = vrot.slane %v1222_v43, 2  ;;  %v1025_v55 = vmax.f32 %v993_v63, %v1024_v44  ;;  %v1228_v50 = vadd.f32 %v1024_v44, %v993_v63 }
 0x284   : > { %v1008_v41 = vrot.slane %v1007_v45, 2  ;;  %v1211_v60 = vrot.slane %v1210_v49, 2  ;;  %v1013_v14 = vmax.f32 %v991_v40, %v1012_v58  ;;  %v1216_v47 = vadd.f32 %v1012_v58, %v991_v40  ;;  %v1714_v10 = vpop.f32.mrb[4].mxu1 }
 0x285   : > { %v1021_v56 = vmax.f32 %v1019_v42, %v1020_v52  ;;  %v1224_v57 = vadd.f32 %v1223_v54, %v1222_v43  ;;  %v1026_v59 = vrot.slane %v1025_v55, 2  ;;  %v1229_v30 = vrot.slane %v1228_v50, 2  ;;  %v943_v36 = vpop.f32.mrb[5].mxu1 }
 0x286   : > { %v1009_v61 = vmax.f32 %v1007_v45, %v1008_v41  ;;  %v1212_v62 = vadd.f32 %v1211_v60, %v1210_v49  ;;  %v1014_v0 = vrot.slane %v1013_v14, 2  ;;  %v1217_v1 = vrot.slane %v1216_v47, 2  ;;  %v1715_v48 = vpop.f32.mrb[6].mxu1 }
 0x287   : > { %v1022_v2 = vrot.slane %v1021_v56, 1  ;;  %v1225_v3 = vrot.slane %v1224_v57, 1  ;;  %v1027_v4 = vmax.f32 %v1025_v55, %v1026_v59  ;;  %v1230_v5 = vadd.f32 %v1229_v30, %v1228_v50  ;;  %v946_v46 = vpop.f32.mrb[7].mxu1 }
 0x288   : > { %v1010_v6 = vrot.slane %v1009_v61, 1  ;;  %v1213_v53 = vrot.slane %v1212_v62, 1  ;;  %v1015_v7 = vmax.f32 %v1013_v14, %v1014_v0  ;;  %v1218_v8 = vadd.f32 %v1217_v1, %v1216_v47 }
 0x289   : > { %v1023_v9 = vmax.f32 %v1021_v56, %v1022_v2  ;;  %v1226_v11 = vadd.f32 %v1225_v3, %v1224_v57  ;;  %v1028_v12 = vrot.slane %v1027_v4, 1  ;;  %v1231_v13 = vrot.slane %v1230_v5, 1 }
 0x28a   : > { %v1011_v15 = vmax.f32 %v1009_v61, %v1010_v6  ;;  %v1214_v16 = vadd.f32 %v1213_v53, %v1212_v62  ;;  %v1016_v17 = vrot.slane %v1015_v7, 1  ;;  %v1219_v18 = vrot.slane %v1218_v8, 1 }
 0x28b   : > { %v1559_v19 = vpack.c.bf16 %v1023_v9, %v1023_v9  ;;  %v1307_v20 = vmul.f32 0.125, %v1226_v11  ;;  %v1029_v21 = vmax.f32 %v1027_v4, %v1028_v12  ;;  %v1232_v22 = vadd.f32 %v1231_v13, %v1230_v5 }
 0x28c   : > { %v1557_v23 = vpack.c.bf16 %v1011_v15, %v1011_v15  ;;  %v1305_v24 = vmul.f32 0.125, %v1214_v16  ;;  %v1017_v25 = vmax.f32 %v1015_v7, %v1016_v17  ;;  %v1220_v26 = vadd.f32 %v1219_v18, %v1218_v8 }
 0x28d   : > { %v1575_v27 = vpack.c.bf16 %v1307_v20, %v1307_v20  ;;  %v1560_v28 = vpack.c.bf16 %v1029_v21, %v1029_v21  ;;  %v1308_v31 = vmul.f32 0.125, %v1232_v22  ;;  %v1168_v33 = vunpack.c.l.b16 %v1559_v19 }
 0x28e   : > { %v1573_v32 = vpack.c.bf16 %v1305_v24, %v1305_v24  ;;  %v1558_v34 = vpack.c.bf16 %v1017_v25, %v1017_v25  ;;  %v1306_v35 = vmul.f32 0.125, %v1220_v26  ;;  %v1166_v37 = vunpack.c.l.b16 %v1557_v23 }
 0x28f   : > { %v1387_v51 = vunpack.c.l.b16 %v1575_v27  ;;  %v1576_v38 = vpack.c.bf16 %v1308_v31, %v1308_v31  ;;  %v996_v63 = vmax.f32 %v1714_v10, 0.0  ;;  %v1169_v29 = vunpack.c.l.b16 %v1560_v28 }
 0x290   : > { %v1167_v39 = vunpack.c.l.b16 %v1558_v34  ;;  %v1574_v40 = vpack.c.bf16 %v1306_v35, %v1306_v35  ;;  %v994_v42 = vmax.f32 %v943_v36, 0.0  ;;  %v1385_v43 = vunpack.c.l.b16 %v1573_v32 }
 0x291   : > { %v1388_v44 = vunpack.c.l.b16 %v1576_v38  ;;  %v1042_v45 = vrot.slane %v996_v63, 4  ;;  %v997_v49 = vmax.f32 %v1715_v48, 0.0  ;;  %v995_v55 = vmax.f32 %v946_v46, 0.0 }
 0x292   : > { %v1183_v58 = vsel %vm1182_vm0, %v1167_v39, %v1166_v37  ;;  %v1386_v52 = vunpack.c.l.b16 %v1574_v40  ;;  %v1030_v54 = vrot.slane %v994_v42, 4 }
 0x293   : > { %v1185_v50 = vsel %vm1184_vm1, %v1168_v33, %v1183_v58  ;;  %v1043_v41 = vmax.f32 %v996_v63, %v1042_v45  ;;  %v1246_v60 = vadd.f32 %v1042_v45, %v996_v63  ;;  %v1048_v14 = vrot.slane %v997_v49, 4 }
 0x294   : > { %v1401_v47 = vsel %vm1182_vm0, %v1386_v52, %v1385_v43  ;;  %v1031_v10 = vmax.f32 %v994_v42, %v1030_v54  ;;  %v1187_v56 = vsel %vm1186_vm2, %v1169_v29, %v1185_v50  ;;  %v1234_v57 = vadd.f32 %v1030_v54, %v994_v42 }
 0x295   : > { %v1402_v59 = vsel %vm1184_vm1, %v1387_v51, %v1401_v47  ;;  %v1044_v30 = vrot.slane %v1043_v41, 2  ;;  %v1247_v36 = vrot.slane %v1246_v60, 2  ;;  %v1049_v61 = vmax.f32 %v997_v49, %v1048_v14 }
 0x296   : > { %v1032_v62 = vrot.slane %v1031_v10, 2  ;;  %v1235_v0 = vrot.slane %v1234_v57, 2  ;;  %v1403_v1 = vsel %vm1186_vm2, %v1388_v44, %v1402_v59  ;;  %v1252_v48 = vadd.f32 %v1048_v14, %v997_v49 }
 0x297   : > { %v1045_v2 = vmax.f32 %v1043_v41, %v1044_v30  ;;  %v1248_v3 = vadd.f32 %v1247_v36, %v1246_v60  ;;  %v1050_v4 = vrot.slane %v1049_v61, 2  ;;  %v1036_v5 = vrot.slane %v995_v55, 4 }
 0x298   : > { %v1033_v46 = vmax.f32 %v1031_v10, %v1032_v62  ;;  %v1236_v6 = vadd.f32 %v1235_v0, %v1234_v57  ;;  %v1253_v53 = vrot.slane %v1252_v48, 2 }
 0x299   : > { %v1046_v7 = vrot.slane %v1045_v2, 1  ;;  %v1249_v8 = vrot.slane %v1248_v3, 1  ;;  %v1051_v9 = vmax.f32 %v1049_v61, %v1050_v4  ;;  %v1037_v11 = vmax.f32 %v995_v55, %v1036_v5 }
 0x29a   : > { %v1034_v12 = vrot.slane %v1033_v46, 1  ;;  %v1237_v13 = vrot.slane %v1236_v6, 1  ;;  %v1254_v15 = vadd.f32 %v1253_v53, %v1252_v48  ;;  %v1240_v16 = vadd.f32 %v1036_v5, %v995_v55 }
 0x29b   : > { %v1250_v17 = vadd.f32 %v1249_v8, %v1248_v3  ;;  %v1052_v18 = vrot.slane %v1051_v9, 1  ;;  %v1038_v19 = vrot.slane %v1037_v11, 2  ;;  %v1047_v24 = vmax.f32 %v1045_v2, %v1046_v7 }
 0x29c   : > { %v1035_v20 = vmax.f32 %v1033_v46, %v1034_v12  ;;  %v1238_v21 = vadd.f32 %v1237_v13, %v1236_v6  ;;  %v1255_v22 = vrot.slane %v1254_v15, 1  ;;  %v1241_v23 = vrot.slane %v1240_v16, 2 }
 0x29d   : > { %v1311_v25 = vmul.f32 0.125, %v1250_v17  ;;  %v1053_v26 = vmax.f32 %v1051_v9, %v1052_v18  ;;  %v1039_v27 = vmax.f32 %v1037_v11, %v1038_v19  ;;  %v1563_v63 = vpack.c.bf16 %v1047_v24, %v1047_v24 }
 0x29e   : > { %v1561_v28 = vpack.c.bf16 %v1035_v20, %v1035_v20  ;;  %v1309_v31 = vmul.f32 0.125, %v1238_v21  ;;  %v1256_v33 = vadd.f32 %v1255_v22, %v1254_v15  ;;  %v1242_v32 = vadd.f32 %v1241_v23, %v1240_v16 }
 0x29f   : > { %v1040_v34 = vrot.slane %v1039_v27, 1  ;;  %v1579_v29 = vpack.c.bf16 %v1311_v25, %v1311_v25  ;;  %v1564_v43 = vpack.c.bf16 %v1053_v26, %v1053_v26  ;;  %v1172_v55 = vunpack.c.l.b16 %v1563_v63 }
 0x2a0   : > { %v1170_v35 = vunpack.c.l.b16 %v1561_v28  ;;  %v1577_v51 = vpack.c.bf16 %v1309_v31, %v1309_v31  ;;  %v1312_v37 = vmul.f32 0.125, %v1256_v33  ;;  %v1243_v38 = vrot.slane %v1242_v32, 1 }
 0x2a1   : > { %v1041_v39 = vmax.f32 %v1039_v27, %v1040_v34  ;;  %v1391_v14 = vunpack.c.l.b16 %v1579_v29  ;;  %v1173_v47 = vunpack.c.l.b16 %v1564_v43 }
 0x2a2   : > { %v1189_v40 = vsel %vm1188_vm3, %v1170_v35, %v1187_v56  ;;  %v1389_v42 = vunpack.c.l.b16 %v1577_v51  ;;  %v1244_v44 = vadd.f32 %v1243_v38, %v1242_v32  ;;  %v1580_v45 = vpack.c.bf16 %v1312_v37, %v1312_v37 }
 0x2a3   : > { %v1562_v49 = vpack.c.bf16 %v1041_v39, %v1041_v39 }
 0x2a4   : > { %v1404_v58 = vsel %vm1188_vm3, %v1389_v42, %v1403_v1  ;;  %v1310_v52 = vmul.f32 0.125, %v1244_v44  ;;  %v1718_v54 = vpop.f32.mrb[8].mxu1  ;;  %v1392_v59 = vunpack.c.l.b16 %v1580_v45 }
 0x2a5   : > { %v1171_v50 = vunpack.c.l.b16 %v1562_v49  ;;  %v1000_v41 = vmax.f32 %v1718_v54, 0.0  ;;  %v959_v60 = vpop.f32.mrb[9].mxu1 }
 0x2a6   : > { %v1578_v10 = vpack.c.bf16 %v1310_v52, %v1310_v52  ;;  %v998_v56 = vmax.f32 %v959_v60, 0.0  ;;  %v1719_v57 = vpop.f32.mrb[10].mxu1 }
 0x2a7   : > { %v1191_v30 = vsel %vm1190_vm4, %v1171_v50, %v1189_v40  ;;  %v1066_v36 = vrot.slane %v1000_v41, 4  ;;  %v1001_v61 = vmax.f32 %v1719_v57, 0.0  ;;  %v962_v62 = vpop.f32.mrb[11].mxu1 }
 0x2a8   : > { %v1193_v0 = vsel %vm1192_vm5, %v1172_v55, %v1191_v30  ;;  %v1390_v1 = vunpack.c.l.b16 %v1578_v10  ;;  %v1054_v48 = vrot.slane %v998_v56, 4  ;;  %v999_v2 = vmax.f32 %v962_v62, 0.0 }
 0x2a9   : > { %v1195_v3 = vsel %vm1194_vm6, %v1173_v47, %v1193_v0  ;;  %v1067_v4 = vmax.f32 %v1000_v41, %v1066_v36  ;;  %v1270_v5 = vadd.f32 %v1066_v36, %v1000_v41  ;;  %v1072_v46 = vrot.slane %v1001_v61, 4 }
 0x2aa   : > { %v1203_v6 = vpack.c.b16 %v1195_v3, %v1195_v3  ;;  %v1405_v53 = vsel %vm1190_vm4, %v1390_v1, %v1404_v58  ;;  %v1055_v7 = vmax.f32 %v998_v56, %v1054_v48  ;;  %v1258_v8 = vadd.f32 %v1054_v48, %v998_v56 }
 0x2ab   : > { %v1406_v9 = vsel %vm1192_vm5, %v1391_v14, %v1405_v53  ;;  %v1068_v11 = vrot.slane %v1067_v4, 2  ;;  %v1271_v12 = vrot.slane %v1270_v5, 2  ;;  %v1073_v13 = vmax.f32 %v1001_v61, %v1072_v46 }
 0x2ac   : > { %1207 = vst [vmem:[%s2039_s25] sm:$0xf] %v1203_v6  ;;  %v1407_v15 = vsel %vm1194_vm6, %v1392_v59, %v1406_v9  ;;  %v1056_v16 = vrot.slane %v1055_v7, 2  ;;  %v1259_v17 = vrot.slane %v1258_v8, 2  ;;  %v1276_v18 = vadd.f32 %v1072_v46, %v1001_v61 }
 0x2ad   : > { %v1415_v19 = vpack.c.b16 %v1407_v15, %v1407_v15  ;;  %v1069_v20 = vmax.f32 %v1067_v4, %v1068_v11  ;;  %v1272_v21 = vadd.f32 %v1271_v12, %v1270_v5  ;;  %v1074_v22 = vrot.slane %v1073_v13, 2 }
 0x2ae   : > { %v1057_v23 = vmax.f32 %v1055_v7, %v1056_v16  ;;  %v1260_v24 = vadd.f32 %v1259_v17, %v1258_v8  ;;  %v1277_v25 = vrot.slane %v1276_v18, 2  ;;  %v1060_v26 = vrot.slane %v999_v2, 4 }
 0x2af   : > { %1419 = vst [vmem:[%s2039_s25 + $0x4] sm:$0xf] %v1415_v19  ;;  %v1273_v27 = vrot.slane %v1272_v21, 1  ;;  %v1075_v28 = vmax.f32 %v1073_v13, %v1074_v22  ;;  %v1070_v35 = vrot.slane %v1069_v20, 1 }
 0x2b0   : > { %v1058_v31 = vrot.slane %v1057_v23, 1  ;;  %v1261_v33 = vrot.slane %v1260_v24, 1  ;;  %v1278_v32 = vadd.f32 %v1277_v25, %v1276_v18  ;;  %v1061_v34 = vmax.f32 %v999_v2, %v1060_v26 }
 0x2b1   : > { %v1264_v51 = vadd.f32 %v1060_v26, %v999_v2  ;;  %v1076_v37 = vrot.slane %v1075_v28, 1  ;;  %v1274_v40 = vadd.f32 %v1273_v27, %v1272_v21  ;;  %v1071_v44 = vmax.f32 %v1069_v20, %v1070_v35 }
 0x2b2   : > { %v1279_v38 = vrot.slane %v1278_v32, 1  ;;  %v1062_v63 = vrot.slane %v1061_v34, 2  ;;  %v1262_v29 = vadd.f32 %v1261_v33, %v1260_v24  ;;  %v1059_v42 = vmax.f32 %v1057_v23, %v1058_v31 }
 0x2b3   : > { %v1265_v39 = vrot.slane %v1264_v51, 2  ;;  %v1077_v58 = vmax.f32 %v1075_v28, %v1076_v37  ;;  %v1315_v50 = vmul.f32 0.125, %v1274_v40  ;;  %v1567_v14 = vpack.c.bf16 %v1071_v44, %v1071_v44 }
 0x2b4   : > { %v1063_v43 = vmax.f32 %v1061_v34, %v1062_v63  ;;  %v1280_v45 = vadd.f32 %v1279_v38, %v1278_v32  ;;  %v1313_v54 = vmul.f32 0.125, %v1262_v29  ;;  %v1565_v41 = vpack.c.bf16 %v1059_v42, %v1059_v42 }
 0x2b5   : > { %v1266_v49 = vadd.f32 %v1265_v39, %v1264_v51  ;;  %v1568_v56 = vpack.c.bf16 %v1077_v58, %v1077_v58  ;;  %v1583_v36 = vpack.c.bf16 %v1315_v50, %v1315_v50  ;;  %v1176_v0 = vunpack.c.l.b16 %v1567_v14 }
 0x2b6   : > { %v1064_v52 = vrot.slane %v1063_v43, 1  ;;  %v1316_v47 = vmul.f32 0.125, %v1280_v45  ;;  %v1581_v59 = vpack.c.bf16 %v1313_v54, %v1313_v54  ;;  %v1174_v61 = vunpack.c.l.b16 %v1565_v41 }
 0x2b7   : > { %v1267_v55 = vrot.slane %v1266_v49, 1  ;;  %v1177_v2 = vunpack.c.l.b16 %v1568_v56  ;;  %v1395_v6 = vunpack.c.l.b16 %v1583_v36 }
 0x2b8   : > { %v1065_v60 = vmax.f32 %v1063_v43, %v1064_v52  ;;  %v1584_v1 = vpack.c.bf16 %v1316_v47, %v1316_v47  ;;  %v1393_v4 = vunpack.c.l.b16 %v1581_v59 }
 0x2b9   : > { %v1268_v10 = vadd.f32 %v1267_v55, %v1266_v49 }
 0x2ba   : > { %v1566_v57 = vpack.c.bf16 %v1065_v60, %v1065_v60  ;;  %v1396_v7 = vunpack.c.l.b16 %v1584_v1 }
 0x2bb   : > { %v1314_v30 = vmul.f32 0.125, %v1268_v10 }
 0x2bc   : > { %v1175_v62 = vunpack.c.l.b16 %v1566_v57 }
 0x2bd   : > { %v1582_v48 = vpack.c.bf16 %v1314_v30, %v1314_v30 }
 0x2be   : > { %v1196_v3 = vsel %vm1182_vm0, %v1175_v62, %v1174_v61 }
 0x2bf   : > { %v1197_v5 = vsel %vm1184_vm1, %v1176_v0, %v1196_v3  ;;  %v1394_v46 = vunpack.c.l.b16 %v1582_v48 }
 0x2c0   : > { %v2050_v53 = vsel %vm1186_vm2, %v1177_v2, %v1197_v5 }
 0x2c1   : > { %v1408_v8 = vsel %vm1182_vm0, %v1394_v46, %v1393_v4 }
 0x2c2   : > { %v1409_v9 = vsel %vm1184_vm1, %v1395_v6, %v1408_v8 }
 0x2c3   : > { %v1722_v11 = vpop.f32.mrb[12].mxu1  ;;  %v2055_v12 = vsel %vm1186_vm2, %v1396_v7, %v1409_v9 }
 0x2c4   : > { %v1004_v13 = vmax.f32 %v1722_v11, 0.0  ;;  %v975_v15 = vpop.f32.mrb[13].mxu1 }
 0x2c5   : > { %v1002_v16 = vmax.f32 %v975_v15, 0.0  ;;  %v1723_v17 = vpop.f32.mrb[14].mxu1 }
 0x2c6   : > { %v1090_v18 = vrot.slane %v1004_v13, 4  ;;  %v1005_v19 = vmax.f32 %v1723_v17, 0.0  ;;  %v978_v20 = vpop.f32.mrb[15].mxu1 }
 0x2c7   : > { %v1078_v21 = vrot.slane %v1002_v16, 4  ;;  %v1003_v22 = vmax.f32 %v978_v20, 0.0 }
 0x2c8   : > { %v1091_v23 = vmax.f32 %v1004_v13, %v1090_v18  ;;  %v1294_v24 = vadd.f32 %v1090_v18, %v1004_v13  ;;  %v1096_v25 = vrot.slane %v1005_v19, 4 }
 0x2c9   : > { %v1079_v26 = vmax.f32 %v1002_v16, %v1078_v21  ;;  %v1282_v27 = vadd.f32 %v1078_v21, %v1002_v16  ;;  %v1084_v28 = vrot.slane %v1003_v22, 4 }
 0x2ca   : > { %v1092_v31 = vrot.slane %v1091_v23, 2  ;;  %v1295_v33 = vrot.slane %v1294_v24, 2  ;;  %v1097_v32 = vmax.f32 %v1005_v19, %v1096_v25  ;;  %v1300_v34 = vadd.f32 %v1096_v25, %v1005_v19 }
 0x2cb   : > { %v1080_v35 = vrot.slane %v1079_v26, 2  ;;  %v1283_v51 = vrot.slane %v1282_v27, 2  ;;  %v1085_v37 = vmax.f32 %v1003_v22, %v1084_v28  ;;  %v1288_v38 = vadd.f32 %v1084_v28, %v1003_v22 }
 0x2cc   : > { %v1093_v63 = vmax.f32 %v1091_v23, %v1092_v31  ;;  %v1296_v29 = vadd.f32 %v1295_v33, %v1294_v24  ;;  %v1098_v39 = vrot.slane %v1097_v32, 2  ;;  %v1301_v40 = vrot.slane %v1300_v34, 2 }
 0x2cd   : > { %v1081_v42 = vmax.f32 %v1079_v26, %v1080_v35  ;;  %v1284_v43 = vadd.f32 %v1283_v51, %v1282_v27  ;;  %v1086_v44 = vrot.slane %v1085_v37, 2  ;;  %v1289_v45 = vrot.slane %v1288_v38, 2 }
 0x2ce   : > { %v1094_v49 = vrot.slane %v1093_v63, 1  ;;  %v1297_v58 = vrot.slane %v1296_v29, 1  ;;  %v1099_v52 = vmax.f32 %v1097_v32, %v1098_v39  ;;  %v1302_v54 = vadd.f32 %v1301_v40, %v1300_v34 }
 0x2cf   : > { %v1082_v55 = vrot.slane %v1081_v42, 1  ;;  %v1285_v50 = vrot.slane %v1284_v43, 1  ;;  %v1087_v41 = vmax.f32 %v1085_v37, %v1086_v44  ;;  %v1290_v60 = vadd.f32 %v1289_v45, %v1288_v38 }
 0x2d0   : > { %v1095_v14 = vmax.f32 %v1093_v63, %v1094_v49  ;;  %v1298_v47 = vadd.f32 %v1297_v58, %v1296_v29  ;;  %v1100_v10 = vrot.slane %v1099_v52, 1  ;;  %v1303_v56 = vrot.slane %v1302_v54, 1 }
 0x2d1   : > { %v1083_v57 = vmax.f32 %v1081_v42, %v1082_v55  ;;  %v1286_v59 = vadd.f32 %v1285_v50, %v1284_v43  ;;  %v1088_v30 = vrot.slane %v1087_v41, 1  ;;  %v1291_v36 = vrot.slane %v1290_v60, 1 }
 0x2d2   : > { %v1319_v61 = vmul.f32 0.125, %v1298_v47  ;;  %v1101_v62 = vmax.f32 %v1099_v52, %v1100_v10  ;;  %v1304_v0 = vadd.f32 %v1303_v56, %v1302_v54  ;;  %v1571_v4 = vpack.c.bf16 %v1095_v14, %v1095_v14 }
 0x2d3   : > { %v1569_v1 = vpack.c.bf16 %v1083_v57, %v1083_v57  ;;  %v1317_v48 = vmul.f32 0.125, %v1286_v59  ;;  %v1089_v2 = vmax.f32 %v1087_v41, %v1088_v30  ;;  %v1292_v3 = vadd.f32 %v1291_v36, %v1290_v60 }
 0x2d4   : > { %v1572_v5 = vpack.c.bf16 %v1101_v62, %v1101_v62  ;;  %v1320_v46 = vmul.f32 0.125, %v1304_v0  ;;  %v1587_v11 = vpack.c.bf16 %v1319_v61, %v1319_v61  ;;  %v1180_v19 = vunpack.c.l.b16 %v1571_v4 }
 0x2d5   : > { %v1178_v6 = vunpack.c.l.b16 %v1569_v1  ;;  %v1585_v7 = vpack.c.bf16 %v1317_v48, %v1317_v48  ;;  %v1570_v8 = vpack.c.bf16 %v1089_v2, %v1089_v2  ;;  %v1318_v9 = vmul.f32 0.125, %v1292_v3 }
 0x2d6   : > { %v1588_v13 = vpack.c.bf16 %v1320_v46, %v1320_v46  ;;  %v1181_v21 = vunpack.c.l.b16 %v1572_v5  ;;  %v1399_v24 = vunpack.c.l.b16 %v1587_v11 }
 0x2d7   : > { %v1199_v15 = vsel %vm1188_vm3, %v1178_v6, %v2050_v53  ;;  %v1397_v16 = vunpack.c.l.b16 %v1585_v7  ;;  %v1179_v17 = vunpack.c.l.b16 %v1570_v8  ;;  %v1586_v18 = vpack.c.bf16 %v1318_v9, %v1318_v9 }
 0x2d8   : > { %v1400_v26 = vunpack.c.l.b16 %v1588_v13 }
 0x2d9   : > { %v1411_v20 = vsel %vm1188_vm3, %v1397_v16, %v2055_v12  ;;  %v1200_v22 = vsel %vm1190_vm4, %v1179_v17, %v1199_v15  ;;  %v1398_v23 = vunpack.c.l.b16 %v1586_v18 }
 0x2da   : > { %v1201_v25 = vsel %vm1192_vm5, %v1180_v19, %v1200_v22 }
 0x2db   : > { %v1202_v27 = vsel %vm1194_vm6, %v1181_v21, %v1201_v25  ;;  %v1412_v53 = vsel %vm1190_vm4, %v1398_v23, %v1411_v20 }
 0x2dc   : > { %v1204_v28 = vpack.c.b16 %v1202_v27, %v1202_v27  ;;  %v1413_v31 = vsel %vm1192_vm5, %v1399_v24, %v1412_v53 }
 0x2dd   : > { %v1414_v33 = vsel %vm1194_vm6, %v1400_v26, %v1413_v31 }
 0x2de   : > { %1208 = vst [vmem:[%s2039_s25 + $0x8] sm:$0xf] %v1204_v28  ;;  %v1416_v32 = vpack.c.b16 %v1414_v33, %v1414_v33 }
 0x2e0   : > { %1420 = vst [vmem:[%s2039_s25 + $0xc] sm:$0xf] %v1416_v32 }
 0x2e1 PF: > { %s15_s18 = sadd.s32 1, %s1773_s18  }
 0x2e2   : > { %p12_p5 = scmp.ge.s32.totalorder %s15_s18, 4  }
 0x2e4   :  { %14 = sbr.rel (!%p12_p5) target bundleno = 1 (0x1), region = 73 }

// kernel: backbone_forward.12
= control target key start
LH: loop header
LB: loop body
LE: loop exit
PB: predicated region body
PF: predicated region fallthrough
CT: control target
= control target key end

     0   :  { %s510_s9 = smov 0   ;;  %s579_s0 = inlined_call_operand.vmem [shape: bf16[32,256], index: 0, kind: input, shape index: {}]   ;;  %s580_s1 = inlined_call_operand.vmem [shape: bf16[256,128], index: 1, kind: input, shape index: {}]   ;;  %s581_s2 = inlined_call_operand.vmem [shape: bf16[32,128], index: 2, kind: output, shape index: {}]  }
   0x1 LB: > { %s398_s10 = sadd.s32 4294967295, %s493_s9   ;;  %p402_p0 = scmp.ge.s32.totalorder %s493_s9, 1  ;;  %s493_s9 = sphi %s510_s9, %s12_s9  }
   0x2   : > { %p114_p1 = scmp.lt.s32.totalorder %s493_s9, 3 }
   0x4   : > { %p115_p2 = pnand %p402_p0, %p114_p1 }
   0x5   : > { %v468_v0 = vld [vmem:[%s580_s1 + $0x40] sm:$0xff] (!%p115_p2)   ;;  %s403_s13 = sshll.u32 (!%p115_p2), %s398_s10, 1  ;;  %v470_v2 = vld [vmem:[%s580_s1 + $0x48] sm:$0xff] (!%p115_p2)   ;;  %v472_v4 = vld [vmem:[%s580_s1 + $0x50] sm:$0xff] (!%p115_p2)  }
   0x6   : > { %118 = sbr.rel (%p115_p2) target bundleno = 258 (0x102), region = 28  ;;  %v469_v1 = vld [vmem:[%s580_s1] sm:$0xff] (!%p115_p2)   ;;  %438 = vmatprep.subr.bf16.mxu0 (!%p115_p2), %v468_v0  ;;  %v471_v3 = vld [vmem:[%s580_s1 + $0x8] sm:$0xff] (!%p115_p2)   ;;  %p138_p3 = scmp.lt.s32.totalorder (!%p115_p2), %s403_s13, 3  ;;  %v473_v5 = vld [vmem:[%s580_s1 + $0x10] sm:$0xff] (!%p115_p2)  }
   0x7   : > { %439 = vmatpush3.bf16.msra.mxu0 (!%p115_p2), %v469_v1  ;;  %v474_v6 = vld [vmem:[%s580_s1 + $0x58] sm:$0xff] (!%p115_p2)   ;;  %v476_v8 = vld [vmem:[%s580_s1 + $0x60] sm:$0xff] (!%p115_p2)   ;;  %v478_v10 = vld [vmem:[%s580_s1 + $0x68] sm:$0xff] (!%p115_p2)  }
   0x8   : > { %440 = vmatprep.subr.bf16.mxu0 (!%p115_p2), %v470_v2  ;;  %v475_v7 = vld [vmem:[%s580_s1 + $0x18] sm:$0xff] (!%p115_p2)   ;;  %v477_v9 = vld [vmem:[%s580_s1 + $0x20] sm:$0xff] (!%p115_p2)   ;;  %v479_v12 = vld [vmem:[%s580_s1 + $0x28] sm:$0xff] (!%p115_p2)  }
   0x9   : > { %v480_v13 = vld [vmem:[%s580_s1 + $0x70] sm:$0xff] (!%p115_p2)   ;;  %v482_v15 = vld [vmem:[%s580_s1 + $0x78] sm:$0xff] (!%p115_p2)  }
   0xa   : > { %v481_v14 = vld [vmem:[%s580_s1 + $0x30] sm:$0xff] (!%p115_p2)   ;;  %v483_v16 = vld [vmem:[%s580_s1 + $0x38] sm:$0xff] (!%p115_p2)  }
   0xb   : > { %441 = vmatpush3.bf16.msra.mxu0 (!%p115_p2), %v471_v3 }
   0xc   : > { %442 = vmatprep.subr.bf16.mxu0 (!%p115_p2), %v472_v4 }
   0xd   : > { %s583_s13 = smov (!%p138_p3, %s403_s13), 3 }
   0xe   : > { %s430_s28 = sshll.u32 %s583_s13, 3  ;;  %s407_s22 = sshll.u32 %s583_s13, 2 }
   0xf   : > { %443 = vmatpush3.bf16.msra.mxu0 %v473_v5  ;;  %s142_s5 = scalar_lea.vmem %s579_s0, %s430_s28  ;;  %s148_s25 = scalar_lea.vmem %s581_s2, %s407_s22 }
  0x10   : > { %444 = vmatprep.subr.bf16.mxu0 %v474_v6  ;;  %v486_v11 = vld [vmem:[%s142_s5 + $0x4] ss:$8 sps:$4 sm:$0xff]   ;;  %v484_v17 = vld [vmem:[%s142_s5] ss:$8 sps:$4 sm:$0xff]  }
  0x11   : > { %323 = vmatprep.mubr.bf16.mxu0 %v486_v11 }
  0x13   : > { %445 = vmatpush3.bf16.msra.mxu0 %v475_v7 }
  0x14   : > { %446 = vmatprep.subr.bf16.mxu0 %v476_v8 }
  0x17   : > { %447 = vmatpush3.bf16.msra.mxu0 %v477_v9 }
  0x18   : > { %448 = vmatprep.subr.bf16.mxu0 %v478_v10 }
  0x1b   : > { %449 = vmatpush3.bf16.msra.mxu0 %v479_v12 }
  0x1c   : > { %450 = vmatprep.subr.bf16.mxu0 %v480_v13 }
  0x1f   : > { %451 = vmatpush3.bf16.msra.mxu0 %v481_v14 }
  0x20   : > { %452 = vmatprep.subr.bf16.mxu0 %v482_v15 }
  0x23   : > { %453 = vmatpush3.bf16.msra.mxu0 %v483_v16 }
  0x26   : > { %324 = vmatmul.mubr.bf16.vlgmr.msra.gmra.mrb[0].mxu0 %v484_v17 }
  0xf9   : > { %v454_v18 = vpop.f32.mrb[0].mxu0 }
  0xfa   : > { %v455_v19 = vpop.f32.mrb[1].mxu0 }
  0xfb   : > { %v456_v20 = vadd.f32 %v455_v19, %v454_v18  ;;  %v457_v21 = vpop.f32.mrb[2].mxu0 }
  0xfc   : > { %v458_v22 = vpop.f32.mrb[3].mxu0 }
  0xfd   : > { %v459_v23 = vadd.f32 %v458_v22, %v457_v21 }
  0xff   : > { %v436_v24 = vpack.c.bf16 %v459_v23, %v456_v20 }
 0x101   : > { %437 = vst [vmem:[%s148_s25] sm:$0xff] %v436_v24  }
 0x102 PF: > { %s12_s9 = sadd.s32 1, %s493_s9  }
 0x103   : > { %p9_p4 = scmp.ge.s32.totalorder %s12_s9, 4  }
 0x105   :  { %11 = sbr.rel (!%p9_p4) target bundleno = 1 (0x1), region = 58 }

// kernel: backbone_forward.13
= control target key start
LH: loop header
LB: loop body
LE: loop exit
PB: predicated region body
PF: predicated region fallthrough
CT: control target
= control target key end

     0   :  { %v1446_v0 = vmov 2   ;;  %v1447_v1 = vmov 0   ;;  %v1448_v7 = vmov 1   ;;  %vm950_vm0 = vcmask 1041409   ;;  %s1764_s0 = inlined_call_operand.vmem [shape: f32[128,3], index: 0, kind: input, shape index: {}]   ;;  %s1765_s3 = inlined_call_operand.vmem [shape: bf16[128,128], index: 3, kind: input, shape index: {}]   ;;  %s1766_s4 = inlined_call_operand.vmem [shape: bf16[128,128], index: 4, kind: input, shape index: {}]   ;;  %s1767_s1 = inlined_call_operand.vmem [shape: bf16[128,128], index: 1, kind: input, shape index: {}]   ;;  %s1768_s2 = inlined_call_operand.vmem [shape: f32[3,128], index: 2, kind: input, shape index: {}]   ;;  %s1769_s5 = inlined_call_operand.vmem [shape: bf16[16,256], index: 5, kind: output, shape index: {}]  }
   0x1   :  { %1417 = vset.pattern.permute.xlu0 %v1446_v0  ;;  %1414 = vset.pattern.permute.xlu1 %v1447_v1  ;;  %v23_v2 = vld [vmem:[%s1764_s0 + $0x10] sm:$0xff]  ;;  %v22_v3 = vld [vmem:[%s1764_s0 + $0x8] sm:$0xff]  ;;  %v24_v4 = vld [vmem:[%s1764_s0 + $0x18] sm:$0xff]  ;;  %vm952_vm1 = vcmask 1042434   ;;  %vm954_vm2 = vcmask 1043459   ;;  %vm956_vm3 = vcmask 1044484  }
   0x2   :  { %82 = vperm.xlu1 %1414, %v23_v2   ;;  %293 = vperm.xlu0 %1417, %v22_v3   ;;  %v25_v5 = vld [vmem:[%s1764_s0 + $0x20] sm:$0xff]  ;;  %v28_v6 = vld [vmem:[%s1764_s0 + $0x38] sm:$0xff]  ;;  %v1500_v8 = vld [vmem:[%s1764_s0 + $0x48] sm:$0xff]  ;;  %vm958_vm4 = vcmask 1045509   ;;  %vm960_vm5 = vcmask 1046534   ;;  %vm962_vm6 = vcmask 1047559  }
   0x3   :  { %v21_v9 = vld [vmem:[%s1764_s0] sm:$0xff]  ;;  %v26_v10 = vld [vmem:[%s1764_s0 + $0x28] sm:$0xff]  ;;  %v27_v13 = vld [vmem:[%s1764_s0 + $0x30] sm:$0xff] }
   0x4   :  { %v1430_v11 = vld [vmem:[%s1765_s3] sm:$0xff]   ;;  %v1431_v12 = vld [vmem:[%s1765_s3 + $0x8] sm:$0xff]   ;;  %v1432_v15 = vld [vmem:[%s1765_s3 + $0x10] sm:$0xff]  }
   0x5   :  { %1347 = vmatprep.subr.bf16.mxu0 %v1430_v11  ;;  %v33_v14 = vld [vmem:[%s1764_s0 + $0x60] sm:$0xff]  ;;  %v36_v16 = vld [vmem:[%s1764_s0 + $0x78] sm:$0xff]  ;;  %v1435_v19 = vld [vmem:[%s1765_s3 + $0x28] sm:$0xff]  }
   0x6   :  { %87 = vperm.xlu1 %1414, %v24_v4   ;;  %305 = vperm.xlu0 %1417, %v25_v5   ;;  %v1433_v17 = vld [vmem:[%s1765_s3 + $0x18] sm:$0xff]   ;;  %v1434_v18 = vld [vmem:[%s1765_s3 + $0x20] sm:$0xff]   ;;  %v1436_v20 = vld [vmem:[%s1765_s3 + $0x30] sm:$0xff]  }
   0x7   :  { %1348 = vmatpush3.bf16.msra.mxu0 %v1430_v11  ;;  %v1437_v21 = vld [vmem:[%s1765_s3 + $0x38] sm:$0xff]   ;;  %v29_v22 = vld [vmem:[%s1764_s0 + $0x40] sm:$0xff]  ;;  %v31_v24 = vld [vmem:[%s1764_s0 + $0x50] sm:$0xff] }
   0x8   :  { %1349 = vmatprep.subr.bf16.mxu0 %v1431_v12  ;;  %v32_v23 = vld [vmem:[%s1764_s0 + $0x58] sm:$0xff]  ;;  %v34_v25 = vld [vmem:[%s1764_s0 + $0x68] sm:$0xff]  ;;  %v35_v26 = vld [vmem:[%s1764_s0 + $0x70] sm:$0xff] }
   0x9   :  { %v1438_v31 = vld [vmem:[%s1766_s4] sm:$0xff]   ;;  %v1439_v32 = vld [vmem:[%s1766_s4 + $0x8] sm:$0xff]   ;;  %v1440_v35 = vld [vmem:[%s1766_s4 + $0x10] sm:$0xff]  }
   0xa   :  { %1415 = vset.pattern.permute.xlu1 %v1448_v7  ;;  %317 = vperm.xlu0 %1417, %v28_v6   ;;  %v1441_v38 = vld [vmem:[%s1766_s4 + $0x18] sm:$0xff]   ;;  %v1442_v40 = vld [vmem:[%s1766_s4 + $0x20] sm:$0xff]   ;;  %v1443_v43 = vld [vmem:[%s1766_s4 + $0x28] sm:$0xff]  }
   0xb   :  { %192 = vperm.xlu1 %1415, %v22_v3   ;;  %1350 = vmatpush3.bf16.msra.mxu0 %v1431_v12  ;;  %v1277_v49 = vld [vmem:[%s1767_s1] sm:$0xff]   ;;  %v1610_v51 = vld [vmem:[%s1767_s1 + $0x30] sm:$0xff]   ;;  %v1622_v58 = vld [vmem:[%s1767_s1 + $0x38] sm:$0xff]  }
   0xc   :  { %1351 = vmatprep.subr.bf16.mxu0 %v1432_v15  ;;  %1379 = vmatprep.subr.bf16.mxu1 %v1438_v31  ;;  %v1615_v52 = vld [vmem:[%s1768_s2] ss:$0 sm:$0xff]  ;;  %v1279_v54 = vunpack.c.h.bf16 %v1277_v49  ;;  %v1302_v56 = vunpack.c.l.bf16 %v1610_v51  ;;  %v1628_v60 = vld [vmem:[%s1768_s2 + $0x1] ss:$0 sm:$0xff]  ;;  %v1308_v61 = vld [vmem:[%s1767_s1 + $0x8] sm:$0xff]  }
   0xd   :  { %1380 = vmatpush3.bf16.msra.mxu1 %v1438_v31 }
   0xe   :  { %325 = vperm.xlu0 %1417, %v1500_v8   ;;  %1381 = vmatprep.subr.bf16.mxu1 %v1439_v32 }
   0xf   :  { %196 = vperm.xlu1 %1415, %v23_v2   ;;  %1352 = vmatpush3.bf16.msra.mxu0 %v1432_v15 }
  0x10   :  { %1353 = vmatprep.subr.bf16.mxu0 %v1433_v17 }
  0x11   :  { %1382 = vmatpush3.bf16.msra.mxu1 %v1439_v32 }
  0x12   :  { %1424 = vset.pattern.permute.xlu0 %v1447_v1  ;;  %1383 = vmatprep.subr.bf16.mxu1 %v1440_v35 }
  0x13   :  { %1416 = vset.pattern.permute.xlu1 %v1446_v0  ;;  %72 = vperm.xlu0 %1424, %v21_v9  }
  0x14   :  { %289 = vperm.xlu1 %1416, %v21_v9   ;;  %1354 = vmatpush3.bf16.msra.mxu0 %v1433_v17 }
  0x15   :  { %1355 = vmatprep.subr.bf16.mxu0 %v1434_v18  ;;  %1384 = vmatpush3.bf16.msra.mxu1 %v1440_v35 }
  0x16   :  { %1385 = vmatprep.subr.bf16.mxu1 %v1441_v38 }
  0x17   :  { %77 = vperm.xlu0 %1424, %v22_v3  }
  0x18   :  { %297 = vperm.xlu1 %1416, %v23_v2   ;;  %1356 = vmatpush3.bf16.msra.mxu0 %v1434_v18  ;;  %v1278_v2 = vunpack.c.l.bf16 %v1277_v49 }
  0x19   :  { %1357 = vmatprep.subr.bf16.mxu0 %v1435_v19  ;;  %1386 = vmatpush3.bf16.msra.mxu1 %v1441_v38 }
  0x1a   :  { %1387 = vmatprep.subr.bf16.mxu1 %v1442_v40 }
  0x1b   :  { %92 = vperm.xlu0 %1424, %v25_v5  }
  0x1c   :  { %301 = vperm.xlu1 %1416, %v24_v4   ;;  %1358 = vmatpush3.bf16.msra.mxu0 %v1435_v19  ;;  %v1283_v19 = vunpack.c.h.bf16 %v1308_v61 }
  0x1d   :  { %1359 = vmatprep.subr.bf16.mxu0 %v1436_v20  ;;  %1388 = vmatpush3.bf16.msra.mxu1 %v1442_v40 }
  0x1e   :  { %1389 = vmatprep.subr.bf16.mxu1 %v1443_v43 }
  0x1f   :  { %107 = vperm.xlu0 %1424, %v28_v6  }
  0x20   :  { %1418 = vset.pattern.permute.xlu1 %v1447_v1  ;;  %1360 = vmatpush3.bf16.msra.mxu0 %v1436_v20 }
  0x21   :  { %97 = vperm.xlu1 %1418, %v26_v10   ;;  %1361 = vmatprep.subr.bf16.mxu0 %v1437_v21 }
  0x22   :  { %1390 = vmatpush3.bf16.msra.mxu1 %v1443_v43 }
  0x23   :  { %117 = vperm.xlu0 %1424, %v1500_v8  }
  0x24   :  { %1362 = vmatpush3.bf16.msra.mxu0 %v1437_v21 }
  0x25   :  { %102 = vperm.xlu1 %1418, %v27_v13  }
  0x27   :  { %132 = vperm.xlu0 %1424, %v33_v14  }
  0x29   :  { %1419 = vset.pattern.permute.xlu1 %v1448_v7 }
  0x2a   :  { %204 = vperm.xlu1 %1419, %v25_v5  }
  0x2b   :  { %147 = vperm.xlu0 %1424, %v36_v16  }
  0x2e   :  { %212 = vperm.xlu1 %1419, %v27_v13  }
  0x2f   :  { %1426 = vset.pattern.permute.xlu0 %v1448_v7 }
  0x30   :  { %188 = vperm.xlu0 %1426, %v21_v9  }
  0x32   :  { %216 = vperm.xlu1 %1419, %v28_v6   ;;  %v1309_v6 = vld [vmem:[%s1767_s1 + $0x10] sm:$0xff]  }
  0x33   :  { %v1286_v11 = vunpack.c.l.bf16 %v1309_v6  ;;  %v1287_v40 = vunpack.c.h.bf16 %v1309_v6 }
  0x34   :  { %200 = vperm.xlu0 %1426, %v24_v4  }
  0x36   :  { %1420 = vset.pattern.permute.xlu1 %v1446_v0 }
  0x37   :  { %309 = vperm.xlu1 %1420, %v26_v10  }
  0x38   :  { %208 = vperm.xlu0 %1426, %v26_v10   ;;  %v1646_v10 = vld [vmem:[%s1768_s2 + $0x2] ss:$0 sm:$0xff] }
  0x3b   :  { %313 = vperm.xlu1 %1420, %v27_v13  }
  0x3c   :  { %220 = vperm.xlu0 %1426, %v29_v22  }
  0x3f   :  { %1421 = vset.pattern.permute.xlu1 %v1447_v1 }
  0x40   :  { %112 = vperm.xlu1 %1421, %v29_v22   ;;  %232 = vperm.xlu0 %1426, %v32_v23  }
  0x44   :  { %122 = vperm.xlu1 %1421, %v31_v24   ;;  %240 = vperm.xlu0 %1426, %v34_v25  }
  0x48   :  { %127 = vperm.xlu1 %1421, %v32_v23   ;;  %1428 = vset.pattern.permute.xlu0 %v1446_v0 }
  0x49   :  { %337 = vperm.xlu0 %1428, %v33_v14  }
  0x4c   :  { %1422 = vset.pattern.permute.xlu1 %v1448_v7 }
  0x4d   :  { %224 = vperm.xlu1 %1422, %v1500_v8   ;;  %349 = vperm.xlu0 %1428, %v36_v16   ;;  %v1282_v8 = vunpack.c.l.bf16 %v1308_v61 }
  0x51   :  { %228 = vperm.xlu1 %1422, %v31_v24  }
  0x55   :  { %1423 = vset.pattern.permute.xlu1 %v1446_v0 }
  0x56   :  { %321 = vperm.xlu1 %1423, %v29_v22  }
  0x5a   :  { %329 = vperm.xlu1 %1423, %v31_v24   ;;  %v1310_v24 = vld [vmem:[%s1767_s1 + $0x18] sm:$0xff]  }
  0x5e   :  { %333 = vperm.xlu1 %1423, %v32_v23  }
  0x62   :  { %1425 = vset.pattern.permute.xlu1 %v1447_v1  ;;  %v1307_v1 = vunpack.c.h.bf16 %v1622_v58 }
  0x63   :  { %137 = vperm.xlu1 %1425, %v34_v25  }
  0x67   :  { %142 = vperm.xlu1 %1425, %v35_v26  }
  0x6b   :  { %1427 = vset.pattern.permute.xlu1 %v1448_v7 }
  0x6c   :  { %236 = vperm.xlu1 %1427, %v33_v14  }
  0x70   :  { %244 = vperm.xlu1 %1427, %v35_v26  }
  0x74   :  { %248 = vperm.xlu1 %1427, %v36_v16  }
  0x78   :  { %1429 = vset.pattern.permute.xlu1 %v1446_v0 }
  0x79   :  { %341 = vperm.xlu1 %1429, %v34_v25  }
  0x7d   :  { %345 = vperm.xlu1 %1429, %v35_v26  }
  0x81   :  { %v83_v27 = vpop.permute.xlu1 %82  ;;  %v1572_v28 = vpop.permute.xlu0 %293 }
  0x82   :  { %v156_v9 = vmul.f32 %v1615_v52, %v83_v27  ;;  %v357_v12 = vmul.f32 %v1646_v10, %v1572_v28  ;;  %v1291_v27 = vunpack.c.h.bf16 %v1310_v24 }
  0x84   :  { %v172_v22 = vadd.f32 %v1282_v8, %v156_v9 }
  0x85   :  { %v1574_v29 = vpop.permute.xlu1 %87  ;;  %v1576_v30 = vpop.permute.xlu0 %305 }
  0x86   :  { %v157_v20 = vmul.f32 %v1615_v52, %v1574_v29 }
  0x88   :  { %v173_v38 = vadd.f32 %v1283_v19, %v157_v20 }
  0x89   :  { %v1584_v33 = vpop.permute.xlu0 %317 }
  0x8a   :  { %v193_v34 = vpop.permute.xlu1 %192 }
  0x8b   :  { %v256_v5 = vmul.f32 %v1628_v60, %v193_v34 }
  0x8d   :  { %v1589_v36 = vpop.permute.xlu0 %325 }
  0x8e   :  { %v197_v37 = vpop.permute.xlu1 %196 }
  0x8f   :  { %v257_v17 = vmul.f32 %v1628_v60, %v197_v37 }
  0x91   :  { %v273_v34 = vadd.f32 %v257_v17, %v172_v22 }
  0x92   :  { %v73_v39 = vpop.permute.xlu0 %72 }
  0x93   :  { %v290_v41 = vpop.permute.xlu1 %289  ;;  %v154_v3 = vmul.f32 %v1615_v52, %v73_v39  ;;  %v360_v39 = vmul.f32 %v1646_v10, %v1576_v30 }
  0x94   :  { %v356_v35 = vmul.f32 %v1646_v10, %v290_v41 }
  0x95   :  { %v170_v18 = vadd.f32 %v1278_v2, %v154_v3 }
  0x96   :  { %v78_v42 = vpop.permute.xlu0 %77 }
  0x97   :  { %v298_v44 = vpop.permute.xlu1 %297  ;;  %v155_v55 = vmul.f32 %v1615_v52, %v78_v42  ;;  %v1290_v42 = vunpack.c.l.bf16 %v1310_v24 }
  0x98   :  { %v358_v23 = vmul.f32 %v1646_v10, %v298_v44 }
  0x99   :  { %v171_v62 = vadd.f32 %v1279_v54, %v155_v55 }
  0x9a   :  { %v93_v45 = vpop.permute.xlu0 %92  ;;  %v374_v44 = vadd.f32 %v358_v23, %v273_v34 }
  0x9b   :  { %v1600_v46 = vpop.permute.xlu1 %301  ;;  %v158_v13 = vmul.f32 %v1615_v52, %v93_v45  ;;  %v272_v16 = vadd.f32 %v256_v5, %v171_v62 }
  0x9c   :  { %v359_v55 = vmul.f32 %v1646_v10, %v1600_v46  ;;  %v390_v5 = vmax.f32 %v374_v44, 0.0  ;;  %v1312_v44 = vld [vmem:[%s1767_s1 + $0x28] sm:$0xff]  }
  0x9d   :  { %v174_v26 = vadd.f32 %v1286_v11, %v158_v13  ;;  %v373_v32 = vadd.f32 %v357_v12, %v272_v16 }
  0x9e   :  { %v108_v47 = vpop.permute.xlu0 %107 }
  0x9f   :  { %v161_v29 = vmul.f32 %v1615_v52, %v108_v47 }
  0xa0   :  { %v98_v48 = vpop.permute.xlu1 %97 }
  0xa1   :  { %v159_v45 = vmul.f32 %v1615_v52, %v98_v48 }
  0xa2   :  { %v1605_v50 = vpop.permute.xlu0 %117 }
  0xa3   :  { %v175_v48 = vadd.f32 %v1287_v40, %v159_v45 }
  0xa4   :  { %v103_v53 = vpop.permute.xlu1 %102 }
  0xa5   :  { %v160_v41 = vmul.f32 %v1615_v52, %v103_v53 }
  0xa6   :  { %v133_v57 = vpop.permute.xlu0 %132 }
  0xa7   :  { %v166_v59 = vmul.f32 %v1615_v52, %v133_v57  ;;  %v177_v57 = vadd.f32 %v1291_v27, %v161_v29  ;;  %v176_v46 = vadd.f32 %v1290_v42, %v160_v41 }
  0xa9   :  { %v1633_v63 = vadd.f32 %v1302_v56, %v166_v59  ;;  %v205_v0 = vpop.permute.xlu1 %204  ;;  %v389_v56 = vmax.f32 %v373_v32, 0.0  ;;  %v163_v32 = vmul.f32 %v1615_v52, %v1605_v50  ;;  %v365_v50 = vmul.f32 %v1646_v10, %v1589_v36 }
  0xaa   :  { %v148_v4 = vpop.permute.xlu0 %147  ;;  %v259_v28 = vmul.f32 %v1628_v60, %v205_v0 }
  0xab   :  { %v169_v7 = vmul.f32 %v1615_v52, %v148_v4 }
  0xac   :  { %v275_v47 = vadd.f32 %v259_v28, %v174_v26 }
  0xad   :  { %v1651_v14 = vadd.f32 %v1307_v1, %v169_v7  ;;  %v213_v15 = vpop.permute.xlu1 %212 }
  0xae   :  { %v261_v0 = vmul.f32 %v1628_v60, %v213_v15  ;;  %v376_v6 = vadd.f32 %v360_v39, %v275_v47  ;;  %v363_v15 = vmul.f32 %v1646_v10, %v1584_v33  ;;  %v1311_v33 = vld [vmem:[%s1767_s1 + $0x20] sm:$0xff]  }
  0xaf   :  { %v189_v21 = vpop.permute.xlu0 %188 }
  0xb0   :  { %v255_v25 = vmul.f32 %v1628_v60, %v189_v21  ;;  %v277_v12 = vadd.f32 %v261_v0, %v176_v46  ;;  %v392_v19 = vmax.f32 %v376_v6, 0.0 }
  0xb1   :  { %v217_v31 = vpop.permute.xlu1 %216 }
  0xb2   :  { %v271_v37 = vadd.f32 %v255_v25, %v170_v18  ;;  %v262_v59 = vmul.f32 %v1628_v60, %v217_v31  ;;  %v1295_v31 = vunpack.c.h.bf16 %v1311_v33 }
  0xb3   :  { %v201_v43 = vpop.permute.xlu0 %200 }
  0xb4   :  { %v258_v49 = vmul.f32 %v1628_v60, %v201_v43  ;;  %v372_v54 = vadd.f32 %v356_v35, %v271_v37  ;;  %v278_v53 = vadd.f32 %v262_v59, %v177_v57  ;;  %v1294_v35 = vunpack.c.l.bf16 %v1311_v33 }
  0xb5   :  { %v179_v39 = vadd.f32 %v1295_v31, %v163_v32  ;;  %v1306_v32 = vunpack.c.l.bf16 %v1622_v58 }
  0xb6   :  { %v274_v30 = vadd.f32 %v258_v49, %v173_v38  ;;  %v310_v61 = vpop.permute.xlu1 %309  ;;  %v388_v62 = vmax.f32 %v372_v54, 0.0  ;;  %v379_v20 = vadd.f32 %v363_v15, %v278_v53  ;;  %v1298_v49 = vunpack.c.l.bf16 %v1312_v44 }
  0xb7   :  { %v209_v1 = vpop.permute.xlu0 %208  ;;  %v361_v8 = vmul.f32 %v1646_v10, %v310_v61 }
  0xb8   :  { %v375_v2 = vadd.f32 %v359_v55, %v274_v30  ;;  %v260_v3 = vmul.f32 %v1628_v60, %v209_v1  ;;  %v404_v4 = vpack.c.bf16 %v389_v56, %v388_v62  ;;  %v395_v25 = vmax.f32 %v379_v20, 0.0 }
  0xb9   :  { %v1299_v55 = vunpack.c.h.bf16 %v1312_v44 }
  0xba   :  { %v391_v7 = vmax.f32 %v375_v2, 0.0  ;;  %v276_v9 = vadd.f32 %v260_v3, %v175_v48  ;;  %1363 = vmatprep.mubr.bf16.mxu0 %v404_v4  ;;  %v314_v11 = vpop.permute.xlu1 %313 }
  0xbb   :  { %v362_v13 = vmul.f32 %v1646_v10, %v314_v11  ;;  %v221_v38 = vpop.permute.xlu0 %220 }
  0xbc   :  { %v377_v16 = vadd.f32 %v361_v8, %v276_v9  ;;  %v405_v17 = vpack.c.bf16 %v391_v7, %v390_v5  ;;  %v263_v43 = vmul.f32 %v1628_v60, %v221_v38 }
  0xbd   :  { %v378_v18 = vadd.f32 %v362_v13, %v277_v12 }
  0xbe   :  { %v393_v21 = vmax.f32 %v377_v16, 0.0  ;;  %1364 = vmatmul.mubr.bf16.vlgmr.msra.gmra.mrb[0].mxu0 %v405_v17 }
  0xbf   :  { %v113_v22 = vpop.permute.xlu1 %112  ;;  %v394_v23 = vmax.f32 %v378_v18, 0.0  ;;  %v233_v57 = vpop.permute.xlu0 %232 }
  0xc0   :  { %v406_v24 = vpack.c.bf16 %v393_v21, %v392_v19  ;;  %v162_v29 = vmul.f32 %v1615_v52, %v113_v22  ;;  %v266_v1 = vmul.f32 %v1628_v60, %v233_v57  ;;  %v1303_v21 = vunpack.c.h.bf16 %v1610_v51 }
  0xc1   :  { %v407_v27 = vpack.c.bf16 %v395_v25, %v394_v23 }
  0xc2   :  { %1367 = vmatprep.mubr.bf16.mxu0 %v406_v24  ;;  %v178_v42 = vadd.f32 %v1294_v35, %v162_v29 }
  0xc3   :  { %v123_v26 = vpop.permute.xlu1 %122  ;;  %v241_v18 = vpop.permute.xlu0 %240 }
  0xc4   :  { %v164_v54 = vmul.f32 %v1615_v52, %v123_v26  ;;  %v279_v47 = vadd.f32 %v263_v43, %v178_v42  ;;  %v268_v31 = vmul.f32 %v1628_v60, %v241_v18 }
  0xc6   :  { %1368 = vmatmul.mubr.bf16.gmra.mrb[4].mxu0 %v407_v27  ;;  %v180_v0 = vadd.f32 %v1298_v49, %v164_v54 }
  0xc7   :  { %v128_v28 = vpop.permute.xlu1 %127 }
  0xc8   :  { %v165_v56 = vmul.f32 %v1615_v52, %v128_v28  ;;  %v338_v23 = vpop.permute.xlu0 %337 }
  0xc9   :  { %v368_v26 = vmul.f32 %v1646_v10, %v338_v23 }
  0xca   :  { %v181_v36 = vadd.f32 %v1299_v55, %v165_v56 }
  0xcc   :  { %v225_v34 = vpop.permute.xlu1 %224  ;;  %v282_v53 = vadd.f32 %v266_v1, %v181_v36  ;;  %v350_v33 = vpop.permute.xlu0 %349 }
  0xcd   :  { %v264_v37 = vmul.f32 %v1628_v60, %v225_v34  ;;  %v371_v51 = vmul.f32 %v1646_v10, %v350_v33 }
  0xcf   :  { %v280_v45 = vadd.f32 %v264_v37, %v179_v39 }
  0xd0   :  { %v229_v40 = vpop.permute.xlu1 %228 }
  0xd1   :  { %v381_v59 = vadd.f32 %v365_v50, %v280_v45  ;;  %v265_v61 = vmul.f32 %v1628_v60, %v229_v40 }
  0xd3   :  { %v397_v2 = vmax.f32 %v381_v59, 0.0  ;;  %v281_v5 = vadd.f32 %v265_v61, %v180_v0 }
  0xd5   :  { %v322_v41 = vpop.permute.xlu1 %321 }
  0xd6   :  { %v364_v30 = vmul.f32 %v1646_v10, %v322_v41 }
  0xd8   :  { %v380_v62 = vadd.f32 %v364_v30, %v279_v47  ;;  %v1445_v47 = vld [vmem:[%s1766_s4 + $0x38] sm:$0xff]  }
  0xd9   :  { %v330_v48 = vpop.permute.xlu1 %329 }
  0xda   :  { %v396_v3 = vmax.f32 %v380_v62, 0.0  ;;  %v366_v4 = vmul.f32 %v1646_v10, %v330_v48 }
  0xdc   :  { %v408_v46 = vpack.c.bf16 %v397_v2, %v396_v3  ;;  %v382_v7 = vadd.f32 %v366_v4, %v281_v5 }
  0xdd   :  { %v334_v6 = vpop.permute.xlu1 %333 }
  0xde   :  { %v367_v8 = vmul.f32 %v1646_v10, %v334_v6  ;;  %1371 = vmatprep.mubr.bf16.mxu0 %v408_v46  ;;  %v398_v11 = vmax.f32 %v382_v7, 0.0 }
  0xe0   :  { %v383_v9 = vadd.f32 %v367_v8, %v282_v53 }
  0xe2   :  { %v399_v12 = vmax.f32 %v383_v9, 0.0  ;;  %v138_v13 = vpop.permute.xlu1 %137 }
  0xe3   :  { %v167_v22 = vmul.f32 %v1615_v52, %v138_v13 }
  0xe4   :  { %v409_v15 = vpack.c.bf16 %v399_v12, %v398_v11 }
  0xe5   :  { %v183_v27 = vadd.f32 %v1303_v21, %v167_v22 }
  0xe6   :  { %1372 = vmatmul.mubr.bf16.gmra.mrb[8].mxu0 %v409_v15  ;;  %v143_v16 = vpop.permute.xlu1 %142 }
  0xe7   :  { %v168_v34 = vmul.f32 %v1615_v52, %v143_v16  ;;  %v284_v38 = vadd.f32 %v268_v31, %v183_v27 }
  0xe9   :  { %v184_v40 = vadd.f32 %v1306_v32, %v168_v34 }
  0xeb   :  { %v237_v17 = vpop.permute.xlu1 %236 }
  0xec   :  { %v267_v20 = vmul.f32 %v1628_v60, %v237_v17 }
  0xee   :  { %v283_v25 = vadd.f32 %v267_v20, %v1633_v63 }
  0xef   :  { %v245_v19 = vpop.permute.xlu1 %244 }
  0xf0   :  { %v384_v35 = vadd.f32 %v368_v26, %v283_v25  ;;  %v269_v37 = vmul.f32 %v1628_v60, %v245_v19 }
  0xf2   :  { %v400_v43 = vmax.f32 %v384_v35, 0.0  ;;  %v285_v45 = vadd.f32 %v269_v37, %v184_v40 }
  0xf3   :  { %v249_v24 = vpop.permute.xlu1 %248 }
  0xf4   :  { %v270_v28 = vmul.f32 %v1628_v60, %v249_v24 }
  0xf6   :  { %v286_v63 = vadd.f32 %v270_v28, %v1651_v14  ;;  %v1444_v14 = vld [vmem:[%s1766_s4 + $0x30] sm:$0xff]  }
  0xf7   :  { %1391 = vmatprep.subr.bf16.mxu1 %v1444_v14 }
  0xf8   :  { %v342_v29 = vpop.permute.xlu1 %341  ;;  %v387_v50 = vadd.f32 %v371_v51, %v286_v63  ;;  %1392 = vmatpush3.bf16.msra.mxu1 %v1444_v14 }
  0xf9   :  { %v369_v39 = vmul.f32 %v1646_v10, %v342_v29  ;;  %1393 = vmatprep.subr.bf16.mxu1 %v1445_v47 }
  0xfa   :  { %v403_v55 = vmax.f32 %v387_v50, 0.0 }
  0xfb   :  { %v385_v42 = vadd.f32 %v369_v39, %v284_v38 }
  0xfc   :  { %v346_v44 = vpop.permute.xlu1 %345  ;;  %1394 = vmatpush3.bf16.msra.mxu1 %v1445_v47 }
  0xfd   :  { %v401_v58 = vmax.f32 %v385_v42, 0.0  ;;  %v370_v52 = vmul.f32 %v1646_v10, %v346_v44 }
  0xff   :  { %v386_v49 = vadd.f32 %v370_v52, %v285_v45  ;;  %v410_v54 = vpack.c.bf16 %v401_v58, %v400_v43 }
 0x101   :  { %v402_v41 = vmax.f32 %v386_v49, 0.0  ;;  %1375 = vmatprep.mubr.bf16.mxu0 %v410_v54 }
 0x103   :  { %v411_v60 = vpack.c.bf16 %v403_v55, %v402_v41 }
 0x105   :  { %1376 = vmatmul.mubr.bf16.gmra.mrb[12].mxu0 %v411_v60 }
 0x191   :  { %v1365_v10 = vpop.f32.mrb[0].mxu0 }
 0x192   :  { %v510_v56 = vpop.f32.mrb[1].mxu0  ;;  %v575_v59 = vmax.f32 %v1365_v10, 0.0 }
 0x193   :  { %v1366_v57 = vpop.f32.mrb[2].mxu0  ;;  %v573_v62 = vmax.f32 %v510_v56, 0.0 }
 0x194   :  { %v576_v30 = vmax.f32 %v1366_v57, 0.0  ;;  %v513_v61 = vpop.f32.mrb[3].mxu0 }
 0x195   :  { %v574_v0 = vmax.f32 %v513_v61, 0.0 }
 0x196   :  { %v590_v1 = vpack.c.bf16 %v576_v30, %v575_v59 }
 0x197   :  { %v589_v48 = vpack.c.bf16 %v574_v0, %v573_v62 }
 0x199   :  { %v1369_v36 = vpop.f32.mrb[4].mxu0  ;;  %1395 = vmatprep.mubr.bf16.mxu1 %v589_v48 }
 0x19a   :  { %v526_v2 = vpop.f32.mrb[5].mxu0  ;;  %1396 = vmatmul.mubr.bf16.vlgmr.msra.gmra.mrb[0].mxu1 %v590_v1  ;;  %v579_v4 = vmax.f32 %v1369_v36, 0.0 }
 0x19b   :  { %v1370_v3 = vpop.f32.mrb[6].mxu0  ;;  %v577_v6 = vmax.f32 %v526_v2, 0.0 }
 0x19c   :  { %v580_v5 = vmax.f32 %v1370_v3, 0.0  ;;  %v529_v46 = vpop.f32.mrb[7].mxu0 }
 0x19d   :  { %v578_v53 = vmax.f32 %v529_v46, 0.0 }
 0x19e   :  { %v592_v7 = vpack.c.bf16 %v580_v5, %v579_v4 }
 0x19f   :  { %v591_v8 = vpack.c.bf16 %v578_v53, %v577_v6 }
 0x1a1   :  { %1399 = vmatprep.mubr.bf16.mxu1 %v591_v8 }
 0x1a2   :  { %1400 = vmatmul.mubr.bf16.gmra.mrb[4].mxu1 %v592_v7 }
 0x1b9   :  { %v1373_v9 = vpop.f32.mrb[8].mxu0 }
 0x1ba   :  { %v542_v11 = vpop.f32.mrb[9].mxu0  ;;  %v583_v13 = vmax.f32 %v1373_v9, 0.0 }
 0x1bb   :  { %v1374_v12 = vpop.f32.mrb[10].mxu0  ;;  %v581_v17 = vmax.f32 %v542_v11, 0.0 }
 0x1bc   :  { %v584_v15 = vmax.f32 %v1374_v12, 0.0  ;;  %v545_v16 = vpop.f32.mrb[11].mxu0 }
 0x1bd   :  { %v582_v18 = vmax.f32 %v545_v16, 0.0 }
 0x1be   :  { %v594_v19 = vpack.c.bf16 %v584_v15, %v583_v13 }
 0x1bf   :  { %v593_v20 = vpack.c.bf16 %v582_v18, %v581_v17 }
 0x1c1   :  { %1403 = vmatprep.mubr.bf16.mxu1 %v593_v20 }
 0x1c2   :  { %1404 = vmatmul.mubr.bf16.gmra.mrb[8].mxu1 %v594_v19 }
 0x1d8   :  { %v1377_v21 = vpop.f32.mrb[12].mxu0 }
 0x1d9   :  { %v558_v22 = vpop.f32.mrb[13].mxu0  ;;  %v587_v24 = vmax.f32 %v1377_v21, 0.0 }
 0x1da   :  { %v1378_v23 = vpop.f32.mrb[14].mxu0  ;;  %v585_v27 = vmax.f32 %v558_v22, 0.0 }
 0x1db   :  { %v588_v25 = vmax.f32 %v1378_v23, 0.0  ;;  %v561_v26 = vpop.f32.mrb[15].mxu0 }
 0x1dc   :  { %v586_v28 = vmax.f32 %v561_v26, 0.0 }
 0x1dd   :  { %v596_v33 = vpack.c.bf16 %v588_v25, %v587_v24 }
 0x1de   :  { %v595_v31 = vpack.c.bf16 %v586_v28, %v585_v27 }
 0x1e0   :  { %1407 = vmatprep.mubr.bf16.mxu1 %v595_v31 }
 0x1e1   :  { %1408 = vmatmul.mubr.bf16.gmra.mrb[12].mxu1 %v596_v33 }
 0x26d   :  { %v1397_v32 = vpop.f32.mrb[0].mxu1 }
 0x26e   :  { %v760_v34 = vmax.f32 %v1397_v32, 0.0  ;;  %v695_v35 = vpop.f32.mrb[1].mxu1 }
 0x26f   :  { %v758_v51 = vmax.f32 %v695_v35, 0.0  ;;  %v1398_v29 = vpop.f32.mrb[2].mxu1 }
 0x270   :  { %v786_v37 = vrot.slane %v760_v34, 4  ;;  %v761_v63 = vmax.f32 %v1398_v29, 0.0  ;;  %v698_v38 = vpop.f32.mrb[3].mxu1 }
 0x271   :  { %v774_v39 = vrot.slane %v758_v51, 4  ;;  %v759_v40 = vmax.f32 %v698_v38, 0.0 }
 0x272   :  { %v787_v42 = vmax.f32 %v760_v34, %v786_v37  ;;  %v990_v43 = vadd.f32 %v786_v37, %v760_v34  ;;  %v792_v44 = vrot.slane %v761_v63, 4 }
 0x273   :  { %v775_v45 = vmax.f32 %v758_v51, %v774_v39  ;;  %v978_v50 = vadd.f32 %v774_v39, %v758_v51  ;;  %v780_v58 = vrot.slane %v759_v40, 4 }
 0x274   :  { %v788_v52 = vrot.slane %v787_v42, 2  ;;  %v991_v49 = vrot.slane %v990_v43, 2  ;;  %v793_v54 = vmax.f32 %v761_v63, %v792_v44  ;;  %v996_v55 = vadd.f32 %v792_v44, %v761_v63 }
 0x275   :  { %v776_v41 = vrot.slane %v775_v45, 2  ;;  %v979_v60 = vrot.slane %v978_v50, 2  ;;  %v781_v14 = vmax.f32 %v759_v40, %v780_v58  ;;  %v984_v47 = vadd.f32 %v780_v58, %v759_v40  ;;  %v1401_v10 = vpop.f32.mrb[4].mxu1 }
 0x276   :  { %v789_v56 = vmax.f32 %v787_v42, %v788_v52  ;;  %v992_v57 = vadd.f32 %v991_v49, %v990_v43  ;;  %v794_v59 = vrot.slane %v793_v54, 2  ;;  %v997_v30 = vrot.slane %v996_v55, 2  ;;  %v711_v61 = vpop.f32.mrb[5].mxu1 }
 0x277   :  { %v777_v62 = vmax.f32 %v775_v45, %v776_v41  ;;  %v980_v0 = vadd.f32 %v979_v60, %v978_v50  ;;  %v782_v1 = vrot.slane %v781_v14, 2  ;;  %v985_v48 = vrot.slane %v984_v47, 2  ;;  %v1402_v36 = vpop.f32.mrb[6].mxu1 }
 0x278   :  { %v790_v2 = vrot.slane %v789_v56, 1  ;;  %v993_v3 = vrot.slane %v992_v57, 1  ;;  %v795_v4 = vmax.f32 %v793_v54, %v794_v59  ;;  %v998_v5 = vadd.f32 %v997_v30, %v996_v55  ;;  %v714_v46 = vpop.f32.mrb[7].mxu1 }
 0x279   :  { %v778_v6 = vrot.slane %v777_v62, 1  ;;  %v981_v53 = vrot.slane %v980_v0, 1  ;;  %v783_v7 = vmax.f32 %v781_v14, %v782_v1  ;;  %v986_v8 = vadd.f32 %v985_v48, %v984_v47 }
 0x27a   :  { %v791_v9 = vmax.f32 %v789_v56, %v790_v2  ;;  %v994_v11 = vadd.f32 %v993_v3, %v992_v57  ;;  %v796_v12 = vrot.slane %v795_v4, 1  ;;  %v999_v13 = vrot.slane %v998_v5, 1 }
 0x27b   :  { %v779_v15 = vmax.f32 %v777_v62, %v778_v6  ;;  %v982_v16 = vadd.f32 %v981_v53, %v980_v0  ;;  %v784_v17 = vrot.slane %v783_v7, 1  ;;  %v987_v18 = vrot.slane %v986_v8, 1 }
 0x27c   :  { %v1246_v19 = vpack.c.bf16 %v791_v9, %v791_v9  ;;  %v1075_v20 = vmul.f32 0.125, %v994_v11  ;;  %v797_v21 = vmax.f32 %v795_v4, %v796_v12  ;;  %v1000_v22 = vadd.f32 %v999_v13, %v998_v5 }
 0x27d   :  { %v1244_v23 = vpack.c.bf16 %v779_v15, %v779_v15  ;;  %v1073_v24 = vmul.f32 0.125, %v982_v16  ;;  %v785_v25 = vmax.f32 %v783_v7, %v784_v17  ;;  %v988_v26 = vadd.f32 %v987_v18, %v986_v8 }
 0x27e   :  { %v1262_v27 = vpack.c.bf16 %v1075_v20, %v1075_v20  ;;  %v1247_v28 = vpack.c.bf16 %v797_v21, %v797_v21  ;;  %v1076_v33 = vmul.f32 0.125, %v1000_v22  ;;  %v936_v31 = vunpack.c.l.b16 %v1246_v19 }
 0x27f   :  { %v1260_v32 = vpack.c.bf16 %v1073_v24, %v1073_v24  ;;  %v1245_v34 = vpack.c.bf16 %v785_v25, %v785_v25  ;;  %v1074_v35 = vmul.f32 0.125, %v988_v26  ;;  %v934_v29 = vunpack.c.l.b16 %v1244_v23 }
 0x280   :  { %v1155_v51 = vunpack.c.l.b16 %v1262_v27  ;;  %v1263_v37 = vpack.c.bf16 %v1076_v33, %v1076_v33  ;;  %v764_v63 = vmax.f32 %v1401_v10, 0.0  ;;  %v937_v38 = vunpack.c.l.b16 %v1247_v28 }
 0x281   :  { %v935_v39 = vunpack.c.l.b16 %v1245_v34  ;;  %v1261_v40 = vpack.c.bf16 %v1074_v35, %v1074_v35  ;;  %v762_v42 = vmax.f32 %v711_v61, 0.0  ;;  %v1153_v43 = vunpack.c.l.b16 %v1260_v32 }
 0x282   :  { %v1156_v44 = vunpack.c.l.b16 %v1263_v37  ;;  %v810_v45 = vrot.slane %v764_v63, 4  ;;  %v765_v50 = vmax.f32 %v1402_v36, 0.0  ;;  %v763_v54 = vmax.f32 %v714_v46, 0.0 }
 0x283   :  { %v951_v58 = vsel %vm950_vm0, %v935_v39, %v934_v29  ;;  %v1154_v52 = vunpack.c.l.b16 %v1261_v40  ;;  %v798_v49 = vrot.slane %v762_v42, 4 }
 0x284   :  { %v953_v55 = vsel %vm952_vm1, %v936_v31, %v951_v58  ;;  %v811_v41 = vmax.f32 %v764_v63, %v810_v45  ;;  %v1014_v60 = vadd.f32 %v810_v45, %v764_v63  ;;  %v816_v14 = vrot.slane %v765_v50, 4 }
 0x285   :  { %v1169_v47 = vsel %vm950_vm0, %v1154_v52, %v1153_v43  ;;  %v799_v10 = vmax.f32 %v762_v42, %v798_v49  ;;  %v955_v56 = vsel %vm954_vm2, %v937_v38, %v953_v55  ;;  %v1002_v57 = vadd.f32 %v798_v49, %v762_v42 }
 0x286   :  { %v1170_v59 = vsel %vm952_vm1, %v1155_v51, %v1169_v47  ;;  %v812_v30 = vrot.slane %v811_v41, 2  ;;  %v1015_v61 = vrot.slane %v1014_v60, 2  ;;  %v817_v62 = vmax.f32 %v765_v50, %v816_v14 }
 0x287   :  { %v800_v0 = vrot.slane %v799_v10, 2  ;;  %v1003_v1 = vrot.slane %v1002_v57, 2  ;;  %v1171_v48 = vsel %vm954_vm2, %v1156_v44, %v1170_v59  ;;  %v1020_v36 = vadd.f32 %v816_v14, %v765_v50 }
 0x288   :  { %v813_v2 = vmax.f32 %v811_v41, %v812_v30  ;;  %v1016_v3 = vadd.f32 %v1015_v61, %v1014_v60  ;;  %v818_v4 = vrot.slane %v817_v62, 2  ;;  %v804_v5 = vrot.slane %v763_v54, 4 }
 0x289   :  { %v801_v46 = vmax.f32 %v799_v10, %v800_v0  ;;  %v1004_v6 = vadd.f32 %v1003_v1, %v1002_v57  ;;  %v1021_v53 = vrot.slane %v1020_v36, 2 }
 0x28a   :  { %v814_v7 = vrot.slane %v813_v2, 1  ;;  %v1017_v8 = vrot.slane %v1016_v3, 1  ;;  %v819_v9 = vmax.f32 %v817_v62, %v818_v4  ;;  %v805_v11 = vmax.f32 %v763_v54, %v804_v5 }
 0x28b   :  { %v802_v12 = vrot.slane %v801_v46, 1  ;;  %v1005_v13 = vrot.slane %v1004_v6, 1  ;;  %v1022_v15 = vadd.f32 %v1021_v53, %v1020_v36  ;;  %v1008_v16 = vadd.f32 %v804_v5, %v763_v54 }
 0x28c   :  { %v1018_v17 = vadd.f32 %v1017_v8, %v1016_v3  ;;  %v820_v18 = vrot.slane %v819_v9, 1  ;;  %v806_v19 = vrot.slane %v805_v11, 2  ;;  %v815_v24 = vmax.f32 %v813_v2, %v814_v7 }
 0x28d   :  { %v803_v20 = vmax.f32 %v801_v46, %v802_v12  ;;  %v1006_v21 = vadd.f32 %v1005_v13, %v1004_v6  ;;  %v1023_v22 = vrot.slane %v1022_v15, 1  ;;  %v1009_v23 = vrot.slane %v1008_v16, 2 }
 0x28e   :  { %v1079_v25 = vmul.f32 0.125, %v1018_v17  ;;  %v821_v26 = vmax.f32 %v819_v9, %v820_v18  ;;  %v807_v27 = vmax.f32 %v805_v11, %v806_v19  ;;  %v1250_v63 = vpack.c.bf16 %v815_v24, %v815_v24 }
 0x28f   :  { %v1248_v28 = vpack.c.bf16 %v803_v20, %v803_v20  ;;  %v1077_v33 = vmul.f32 0.125, %v1006_v21  ;;  %v1024_v31 = vadd.f32 %v1023_v22, %v1022_v15  ;;  %v1010_v32 = vadd.f32 %v1009_v23, %v1008_v16 }
 0x290   :  { %v808_v34 = vrot.slane %v807_v27, 1  ;;  %v1266_v38 = vpack.c.bf16 %v1079_v25, %v1079_v25  ;;  %v1251_v43 = vpack.c.bf16 %v821_v26, %v821_v26  ;;  %v940_v54 = vunpack.c.l.b16 %v1250_v63 }
 0x291   :  { %v938_v35 = vunpack.c.l.b16 %v1248_v28  ;;  %v1264_v51 = vpack.c.bf16 %v1077_v33, %v1077_v33  ;;  %v1080_v29 = vmul.f32 0.125, %v1024_v31  ;;  %v1011_v37 = vrot.slane %v1010_v32, 1 }
 0x292   :  { %v809_v39 = vmax.f32 %v807_v27, %v808_v34  ;;  %v1159_v14 = vunpack.c.l.b16 %v1266_v38  ;;  %v941_v47 = vunpack.c.l.b16 %v1251_v43 }
 0x293   :  { %v957_v40 = vsel %vm956_vm3, %v938_v35, %v955_v56  ;;  %v1157_v42 = vunpack.c.l.b16 %v1264_v51  ;;  %v1012_v44 = vadd.f32 %v1011_v37, %v1010_v32  ;;  %v1267_v45 = vpack.c.bf16 %v1080_v29, %v1080_v29 }
 0x294   :  { %v1249_v50 = vpack.c.bf16 %v809_v39, %v809_v39 }
 0x295   :  { %v1172_v58 = vsel %vm956_vm3, %v1157_v42, %v1171_v48  ;;  %v1078_v52 = vmul.f32 0.125, %v1012_v44  ;;  %v1405_v49 = vpop.f32.mrb[8].mxu1  ;;  %v1160_v59 = vunpack.c.l.b16 %v1267_v45 }
 0x296   :  { %v939_v55 = vunpack.c.l.b16 %v1249_v50  ;;  %v768_v41 = vmax.f32 %v1405_v49, 0.0  ;;  %v727_v60 = vpop.f32.mrb[9].mxu1 }
 0x297   :  { %v1265_v10 = vpack.c.bf16 %v1078_v52, %v1078_v52  ;;  %v766_v56 = vmax.f32 %v727_v60, 0.0  ;;  %v1406_v57 = vpop.f32.mrb[10].mxu1 }
 0x298   :  { %v959_v30 = vsel %vm958_vm4, %v939_v55, %v957_v40  ;;  %v834_v61 = vrot.slane %v768_v41, 4  ;;  %v769_v62 = vmax.f32 %v1406_v57, 0.0  ;;  %v730_v0 = vpop.f32.mrb[11].mxu1 }
 0x299   :  { %v961_v1 = vsel %vm960_vm5, %v940_v54, %v959_v30  ;;  %v1158_v48 = vunpack.c.l.b16 %v1265_v10  ;;  %v822_v36 = vrot.slane %v766_v56, 4  ;;  %v767_v2 = vmax.f32 %v730_v0, 0.0 }
 0x29a   :  { %v963_v3 = vsel %vm962_vm6, %v941_v47, %v961_v1  ;;  %v835_v4 = vmax.f32 %v768_v41, %v834_v61  ;;  %v1038_v5 = vadd.f32 %v834_v61, %v768_v41  ;;  %v840_v46 = vrot.slane %v769_v62, 4 }
 0x29b   :  { %v971_v6 = vpack.c.b16 %v963_v3, %v963_v3  ;;  %v1173_v53 = vsel %vm958_vm4, %v1158_v48, %v1172_v58  ;;  %v823_v7 = vmax.f32 %v766_v56, %v822_v36  ;;  %v1026_v8 = vadd.f32 %v822_v36, %v766_v56 }
 0x29c   :  { %v1174_v9 = vsel %vm960_vm5, %v1159_v14, %v1173_v53  ;;  %v836_v11 = vrot.slane %v835_v4, 2  ;;  %v1039_v12 = vrot.slane %v1038_v5, 2  ;;  %v841_v13 = vmax.f32 %v769_v62, %v840_v46 }
 0x29d   :  { %975 = vst [vmem:[%s1769_s5] sm:$0xf] %v971_v6  ;;  %v1175_v15 = vsel %vm962_vm6, %v1160_v59, %v1174_v9  ;;  %v824_v16 = vrot.slane %v823_v7, 2  ;;  %v1027_v17 = vrot.slane %v1026_v8, 2  ;;  %v1044_v18 = vadd.f32 %v840_v46, %v769_v62 }
 0x29e   :  { %v1183_v19 = vpack.c.b16 %v1175_v15, %v1175_v15  ;;  %v837_v20 = vmax.f32 %v835_v4, %v836_v11  ;;  %v1040_v21 = vadd.f32 %v1039_v12, %v1038_v5  ;;  %v842_v22 = vrot.slane %v841_v13, 2 }
 0x29f   :  { %v825_v23 = vmax.f32 %v823_v7, %v824_v16  ;;  %v1028_v24 = vadd.f32 %v1027_v17, %v1026_v8  ;;  %v1045_v25 = vrot.slane %v1044_v18, 2  ;;  %v828_v26 = vrot.slane %v767_v2, 4 }
 0x2a0   :  { %1187 = vst [vmem:[%s1769_s5 + $0x4] sm:$0xf] %v1183_v19  ;;  %v1041_v27 = vrot.slane %v1040_v21, 1  ;;  %v843_v28 = vmax.f32 %v841_v13, %v842_v22  ;;  %v838_v35 = vrot.slane %v837_v20, 1 }
 0x2a1   :  { %v826_v33 = vrot.slane %v825_v23, 1  ;;  %v1029_v31 = vrot.slane %v1028_v24, 1  ;;  %v1046_v32 = vadd.f32 %v1045_v25, %v1044_v18  ;;  %v829_v34 = vmax.f32 %v767_v2, %v828_v26 }
 0x2a2   :  { %v1032_v51 = vadd.f32 %v828_v26, %v767_v2  ;;  %v844_v29 = vrot.slane %v843_v28, 1  ;;  %v1042_v40 = vadd.f32 %v1041_v27, %v1040_v21  ;;  %v839_v44 = vmax.f32 %v837_v20, %v838_v35 }
 0x2a3   :  { %v1047_v37 = vrot.slane %v1046_v32, 1  ;;  %v830_v63 = vrot.slane %v829_v34, 2  ;;  %v1030_v38 = vadd.f32 %v1029_v31, %v1028_v24  ;;  %v827_v42 = vmax.f32 %v825_v23, %v826_v33 }
 0x2a4   :  { %v1033_v39 = vrot.slane %v1032_v51, 2  ;;  %v845_v58 = vmax.f32 %v843_v28, %v844_v29  ;;  %v1083_v55 = vmul.f32 0.125, %v1042_v40  ;;  %v1254_v14 = vpack.c.bf16 %v839_v44, %v839_v44 }
 0x2a5   :  { %v831_v43 = vmax.f32 %v829_v34, %v830_v63  ;;  %v1048_v45 = vadd.f32 %v1047_v37, %v1046_v32  ;;  %v1081_v49 = vmul.f32 0.125, %v1030_v38  ;;  %v1252_v41 = vpack.c.bf16 %v827_v42, %v827_v42 }
 0x2a6   :  { %v1034_v50 = vadd.f32 %v1033_v39, %v1032_v51  ;;  %v1255_v56 = vpack.c.bf16 %v845_v58, %v845_v58  ;;  %v1270_v61 = vpack.c.bf16 %v1083_v55, %v1083_v55  ;;  %v944_v1 = vunpack.c.l.b16 %v1254_v14 }
 0x2a7   :  { %v832_v52 = vrot.slane %v831_v43, 1  ;;  %v1084_v47 = vmul.f32 0.125, %v1048_v45  ;;  %v1268_v59 = vpack.c.bf16 %v1081_v49, %v1081_v49  ;;  %v942_v62 = vunpack.c.l.b16 %v1252_v41 }
 0x2a8   :  { %v1035_v54 = vrot.slane %v1034_v50, 1  ;;  %v945_v2 = vunpack.c.l.b16 %v1255_v56  ;;  %v1163_v6 = vunpack.c.l.b16 %v1270_v61 }
 0x2a9   :  { %v833_v60 = vmax.f32 %v831_v43, %v832_v52  ;;  %v1271_v48 = vpack.c.bf16 %v1084_v47, %v1084_v47  ;;  %v1161_v4 = vunpack.c.l.b16 %v1268_v59 }
 0x2aa   :  { %v1036_v10 = vadd.f32 %v1035_v54, %v1034_v50 }
 0x2ab   :  { %v1253_v57 = vpack.c.bf16 %v833_v60, %v833_v60  ;;  %v1164_v7 = vunpack.c.l.b16 %v1271_v48 }
 0x2ac   :  { %v1082_v30 = vmul.f32 0.125, %v1036_v10 }
 0x2ad   :  { %v943_v0 = vunpack.c.l.b16 %v1253_v57 }
 0x2ae   :  { %v1269_v36 = vpack.c.bf16 %v1082_v30, %v1082_v30 }
 0x2af   :  { %v964_v3 = vsel %vm950_vm0, %v943_v0, %v942_v62 }
 0x2b0   :  { %v965_v5 = vsel %vm952_vm1, %v944_v1, %v964_v3  ;;  %v1162_v46 = vunpack.c.l.b16 %v1269_v36 }
 0x2b1   :  { %v1741_v53 = vsel %vm954_vm2, %v945_v2, %v965_v5 }
 0x2b2   :  { %v1176_v8 = vsel %vm950_vm0, %v1162_v46, %v1161_v4 }
 0x2b3   :  { %v1177_v9 = vsel %vm952_vm1, %v1163_v6, %v1176_v8 }
 0x2b4   :  { %v1409_v11 = vpop.f32.mrb[12].mxu1  ;;  %v1746_v12 = vsel %vm954_vm2, %v1164_v7, %v1177_v9 }
 0x2b5   :  { %v772_v13 = vmax.f32 %v1409_v11, 0.0  ;;  %v743_v15 = vpop.f32.mrb[13].mxu1 }
 0x2b6   :  { %v770_v16 = vmax.f32 %v743_v15, 0.0  ;;  %v1410_v17 = vpop.f32.mrb[14].mxu1 }
 0x2b7   :  { %v858_v18 = vrot.slane %v772_v13, 4  ;;  %v773_v19 = vmax.f32 %v1410_v17, 0.0  ;;  %v746_v20 = vpop.f32.mrb[15].mxu1 }
 0x2b8   :  { %v846_v21 = vrot.slane %v770_v16, 4  ;;  %v771_v22 = vmax.f32 %v746_v20, 0.0 }
 0x2b9   :  { %v859_v23 = vmax.f32 %v772_v13, %v858_v18  ;;  %v1062_v24 = vadd.f32 %v858_v18, %v772_v13  ;;  %v864_v25 = vrot.slane %v773_v19, 4 }
 0x2ba   :  { %v847_v26 = vmax.f32 %v770_v16, %v846_v21  ;;  %v1050_v27 = vadd.f32 %v846_v21, %v770_v16  ;;  %v852_v28 = vrot.slane %v771_v22, 4 }
 0x2bb   :  { %v860_v33 = vrot.slane %v859_v23, 2  ;;  %v1063_v31 = vrot.slane %v1062_v24, 2  ;;  %v865_v32 = vmax.f32 %v773_v19, %v864_v25  ;;  %v1068_v34 = vadd.f32 %v864_v25, %v773_v19 }
 0x2bc   :  { %v848_v35 = vrot.slane %v847_v26, 2  ;;  %v1051_v51 = vrot.slane %v1050_v27, 2  ;;  %v853_v29 = vmax.f32 %v771_v22, %v852_v28  ;;  %v1056_v37 = vadd.f32 %v852_v28, %v771_v22 }
 0x2bd   :  { %v861_v63 = vmax.f32 %v859_v23, %v860_v33  ;;  %v1064_v38 = vadd.f32 %v1063_v31, %v1062_v24  ;;  %v866_v39 = vrot.slane %v865_v32, 2  ;;  %v1069_v40 = vrot.slane %v1068_v34, 2 }
 0x2be   :  { %v849_v42 = vmax.f32 %v847_v26, %v848_v35  ;;  %v1052_v43 = vadd.f32 %v1051_v51, %v1050_v27  ;;  %v854_v44 = vrot.slane %v853_v29, 2  ;;  %v1057_v45 = vrot.slane %v1056_v37, 2 }
 0x2bf   :  { %v862_v50 = vrot.slane %v861_v63, 1  ;;  %v1065_v58 = vrot.slane %v1064_v38, 1  ;;  %v867_v52 = vmax.f32 %v865_v32, %v866_v39  ;;  %v1070_v49 = vadd.f32 %v1069_v40, %v1068_v34 }
 0x2c0   :  { %v850_v54 = vrot.slane %v849_v42, 1  ;;  %v1053_v55 = vrot.slane %v1052_v43, 1  ;;  %v855_v41 = vmax.f32 %v853_v29, %v854_v44  ;;  %v1058_v60 = vadd.f32 %v1057_v45, %v1056_v37 }
 0x2c1   :  { %v863_v14 = vmax.f32 %v861_v63, %v862_v50  ;;  %v1066_v47 = vadd.f32 %v1065_v58, %v1064_v38  ;;  %v868_v10 = vrot.slane %v867_v52, 1  ;;  %v1071_v56 = vrot.slane %v1070_v49, 1 }
 0x2c2   :  { %v851_v57 = vmax.f32 %v849_v42, %v850_v54  ;;  %v1054_v59 = vadd.f32 %v1053_v55, %v1052_v43  ;;  %v856_v30 = vrot.slane %v855_v41, 1  ;;  %v1059_v61 = vrot.slane %v1058_v60, 1 }
 0x2c3   :  { %v1087_v62 = vmul.f32 0.125, %v1066_v47  ;;  %v869_v0 = vmax.f32 %v867_v52, %v868_v10  ;;  %v1072_v1 = vadd.f32 %v1071_v56, %v1070_v49  ;;  %v1258_v4 = vpack.c.bf16 %v863_v14, %v863_v14 }
 0x2c4   :  { %v1256_v48 = vpack.c.bf16 %v851_v57, %v851_v57  ;;  %v1085_v36 = vmul.f32 0.125, %v1054_v59  ;;  %v857_v2 = vmax.f32 %v855_v41, %v856_v30  ;;  %v1060_v3 = vadd.f32 %v1059_v61, %v1058_v60 }
 0x2c5   :  { %v1259_v5 = vpack.c.bf16 %v869_v0, %v869_v0  ;;  %v1088_v46 = vmul.f32 0.125, %v1072_v1  ;;  %v1274_v11 = vpack.c.bf16 %v1087_v62, %v1087_v62  ;;  %v948_v19 = vunpack.c.l.b16 %v1258_v4 }
 0x2c6   :  { %v946_v6 = vunpack.c.l.b16 %v1256_v48  ;;  %v1272_v7 = vpack.c.bf16 %v1085_v36, %v1085_v36  ;;  %v1257_v8 = vpack.c.bf16 %v857_v2, %v857_v2  ;;  %v1086_v9 = vmul.f32 0.125, %v1060_v3 }
 0x2c7   :  { %v1275_v13 = vpack.c.bf16 %v1088_v46, %v1088_v46  ;;  %v949_v21 = vunpack.c.l.b16 %v1259_v5  ;;  %v1167_v24 = vunpack.c.l.b16 %v1274_v11 }
 0x2c8   :  { %v967_v15 = vsel %vm956_vm3, %v946_v6, %v1741_v53  ;;  %v1165_v16 = vunpack.c.l.b16 %v1272_v7  ;;  %v947_v17 = vunpack.c.l.b16 %v1257_v8  ;;  %v1273_v18 = vpack.c.bf16 %v1086_v9, %v1086_v9 }
 0x2c9   :  { %v1168_v26 = vunpack.c.l.b16 %v1275_v13 }
 0x2ca   :  { %v1179_v20 = vsel %vm956_vm3, %v1165_v16, %v1746_v12  ;;  %v968_v22 = vsel %vm958_vm4, %v947_v17, %v967_v15  ;;  %v1166_v23 = vunpack.c.l.b16 %v1273_v18 }
 0x2cb   :  { %v969_v25 = vsel %vm960_vm5, %v948_v19, %v968_v22 }
 0x2cc   :  { %v970_v27 = vsel %vm962_vm6, %v949_v21, %v969_v25  ;;  %v1180_v28 = vsel %vm958_vm4, %v1166_v23, %v1179_v20 }
 0x2cd   :  { %v972_v53 = vpack.c.b16 %v970_v27, %v970_v27  ;;  %v1181_v33 = vsel %vm960_vm5, %v1167_v24, %v1180_v28 }
 0x2ce   :  { %v1182_v31 = vsel %vm962_vm6, %v1168_v26, %v1181_v33 }
 0x2cf   :  { %976 = vst [vmem:[%s1769_s5 + $0x8] sm:$0xf] %v972_v53  ;;  %v1184_v12 = vpack.c.b16 %v1182_v31, %v1182_v31 }
 0x2d1   :  { %1188 = vst [vmem:[%s1769_s5 + $0xc] sm:$0xf] %v1184_v12 }

// kernel: custom-call.37
= control target key start
LH: loop header
LB: loop body
LE: loop exit
PB: predicated region body
PF: predicated region fallthrough
CT: control target
= control target key end

     0   :  { %s6_s0 = inlined_call_operand.vmem [shape: f32[2,8], index: 0, kind: output, shape index: {}]  }

// kernel: backbone_forward.14
= control target key start
LH: loop header
LB: loop body
LE: loop exit
PB: predicated region body
PF: predicated region fallthrough
CT: control target
= control target key end

     0   :  { %s347_s1 = inlined_call_operand.vmem [shape: bf16[256,128], index: 1, kind: input, shape index: {}]   ;;  %s348_s0 = inlined_call_operand.vmem [shape: bf16[16,256], index: 0, kind: input, shape index: {}]   ;;  %s349_s2 = inlined_call_operand.vmem [shape: bf16[16,128], index: 2, kind: output, shape index: {}]  }
   0x1   :  { %v256_v0 = vld [vmem:[%s347_s1 + $0x40] sm:$0xff]   ;;  %v258_v2 = vld [vmem:[%s347_s1 + $0x48] sm:$0xff]   ;;  %v260_v4 = vld [vmem:[%s347_s1 + $0x50] sm:$0xff]  }
   0x2   :  { %v257_v1 = vld [vmem:[%s347_s1] sm:$0xff]   ;;  %234 = vmatprep.subr.bf16.mxu0 %v256_v0  ;;  %v259_v3 = vld [vmem:[%s347_s1 + $0x8] sm:$0xff]   ;;  %v261_v5 = vld [vmem:[%s347_s1 + $0x10] sm:$0xff]  }
   0x3   :  { %235 = vmatpush3.bf16.msra.mxu0 %v257_v1  ;;  %v262_v6 = vld [vmem:[%s347_s1 + $0x58] sm:$0xff]   ;;  %v264_v8 = vld [vmem:[%s347_s1 + $0x60] sm:$0xff]   ;;  %v266_v10 = vld [vmem:[%s347_s1 + $0x68] sm:$0xff]  }
   0x4   :  { %236 = vmatprep.subr.bf16.mxu0 %v258_v2  ;;  %v263_v7 = vld [vmem:[%s347_s1 + $0x18] sm:$0xff]   ;;  %v265_v9 = vld [vmem:[%s347_s1 + $0x20] sm:$0xff]   ;;  %v267_v12 = vld [vmem:[%s347_s1 + $0x28] sm:$0xff]  }
   0x5   :  { %v274_v11 = vld [vmem:[%s348_s0 + $0x4] ss:$8 sps:$4 sm:$0xff]   ;;  %v268_v13 = vld [vmem:[%s347_s1 + $0x70] sm:$0xff]   ;;  %v270_v15 = vld [vmem:[%s347_s1 + $0x78] sm:$0xff]  }
   0x6   :  { %184 = vmatprep.mubr.bf16.mxu0 %v274_v11  ;;  %v269_v14 = vld [vmem:[%s347_s1 + $0x30] sm:$0xff]   ;;  %v271_v16 = vld [vmem:[%s347_s1 + $0x38] sm:$0xff]   ;;  %v272_v17 = vld [vmem:[%s348_s0] ss:$8 sps:$4 sm:$0xff]  }
   0x7   :  { %237 = vmatpush3.bf16.msra.mxu0 %v259_v3 }
   0x8   :  { %238 = vmatprep.subr.bf16.mxu0 %v260_v4 }
   0xb   :  { %239 = vmatpush3.bf16.msra.mxu0 %v261_v5 }
   0xc   :  { %240 = vmatprep.subr.bf16.mxu0 %v262_v6 }
   0xf   :  { %241 = vmatpush3.bf16.msra.mxu0 %v263_v7 }
  0x10   :  { %242 = vmatprep.subr.bf16.mxu0 %v264_v8 }
  0x13   :  { %243 = vmatpush3.bf16.msra.mxu0 %v265_v9 }
  0x14   :  { %244 = vmatprep.subr.bf16.mxu0 %v266_v10 }
  0x17   :  { %245 = vmatpush3.bf16.msra.mxu0 %v267_v12 }
  0x18   :  { %246 = vmatprep.subr.bf16.mxu0 %v268_v13 }
  0x1b   :  { %247 = vmatpush3.bf16.msra.mxu0 %v269_v14 }
  0x1c   :  { %248 = vmatprep.subr.bf16.mxu0 %v270_v15 }
  0x1f   :  { %249 = vmatpush3.bf16.msra.mxu0 %v271_v16 }
  0x22   :  { %185 = vmatmul.mubr.bf16.vlgmr.msra.gmra.mrb[0].mxu0 %v272_v17 }
  0xf5   :  { %v250_v18 = vpop.f32.mrb[0].mxu0 }
  0xf6   :  { %v251_v19 = vpop.f32.mrb[1].mxu0 }
  0xf7   :  { %v252_v20 = vadd.f32 %v251_v19, %v250_v18  ;;  %v253_v21 = vpop.f32.mrb[2].mxu0 }
  0xf8   :  { %v254_v22 = vpop.f32.mrb[3].mxu0 }
  0xf9   :  { %v255_v23 = vadd.f32 %v254_v22, %v253_v21 }
  0xfb   :  { %v232_v24 = vpack.c.bf16 %v255_v23, %v252_v20 }
  0xfd   :  { %233 = vst [vmem:[%s349_s2] sm:$0xff] %v232_v24  }

// kernel: neg.20
= control target key start
LH: loop header
LB: loop body
LE: loop exit
PB: predicated region body
PF: predicated region fallthrough
CT: control target
= control target key end

     0   :  { %s40_s0 = inlined_call_operand.vmem [shape: f32[2,8,4], index: 0, kind: input, shape index: {}]   ;;  %s41_s1 = inlined_call_operand.vmem [shape: f32[2,8,4], index: 1, kind: output, shape index: {}]  }
   0x1   :  { %v2_v0 = vld [vmem:[%s40_s0] sm:$0xf]  ;;  %v16_v1 = vld [vmem:[%s40_s0 + $0x4] sm:$0xf] }
   0x2   :  { %v5_v2 = vxor.u32 2147483648, %v2_v0  ;;  %v12_v3 = vxor.u32 2147483648, %v16_v1 }
   0x4   :  { %7 = vst [vmem:[%s41_s1] sm:$0xf] %v5_v2  ;;  %17 = vst [vmem:[%s41_s1 + $0x4] sm:$0xf] %v12_v3 }

// kernel: neg.22
= control target key start
LH: loop header
LB: loop body
LE: loop exit
PB: predicated region body
PF: predicated region fallthrough
CT: control target
= control target key end

     0   :  { %s40_s0 = inlined_call_operand.vmem [shape: f32[2,16,8], index: 0, kind: input, shape index: {}]   ;;  %s41_s1 = inlined_call_operand.vmem [shape: f32[2,16,8], index: 1, kind: output, shape index: {}]  }
   0x1   :  { %v2_v0 = vld [vmem:[%s40_s0] sm:$0xff]  ;;  %v16_v1 = vld [vmem:[%s40_s0 + $0x8] sm:$0xff] }
   0x2   :  { %v5_v2 = vxor.u32 2147483648, %v2_v0  ;;  %v12_v3 = vxor.u32 2147483648, %v16_v1 }
   0x4   :  { %7 = vst [vmem:[%s41_s1] sm:$0xff] %v5_v2  ;;  %17 = vst [vmem:[%s41_s1 + $0x8] sm:$0xff] %v12_v3 }

// kernel: backbone_forward.16
= control target key start
LH: loop header
LB: loop body
LE: loop exit
PB: predicated region body
PF: predicated region fallthrough
CT: control target
= control target key end

     0   :  { %s1347_s1 = inlined_call_operand.vmem [shape: bf16[512,256], index: 1, kind: input, shape index: {}]   ;;  %s1348_s0 = inlined_call_operand.vmem [shape: bf16[16,512], index: 0, kind: input, shape index: {}]   ;;  %s1349_s2 = inlined_call_operand.vmem [shape: bf16[256,256], index: 2, kind: input, shape index: {}]   ;;  %s1350_s3 = inlined_call_operand.vmem [shape: f32[16,256], index: 3, kind: output, shape index: {}]  }
   0x1   :  { %v865_v0 = vld [vmem:[%s1347_s1 + $0x4] ss:$8 sps:$4 sm:$0xff]   ;;  %v867_v1 = vld [vmem:[%s1347_s1] ss:$8 sps:$4 sm:$0xff]   ;;  %v868_v2 = vld [vmem:[%s1347_s1 + $0x14] ss:$8 sps:$4 sm:$0xff]  }
   0x2   :  { %422 = vmatprep.subr.bf16.mxu0 %v865_v0  ;;  %v870_v3 = vld [vmem:[%s1347_s1 + $0x10] ss:$8 sps:$4 sm:$0xff]   ;;  %v871_v4 = vld [vmem:[%s1347_s1 + $0x24] ss:$8 sps:$4 sm:$0xff]   ;;  %v873_v5 = vld [vmem:[%s1347_s1 + $0x20] ss:$8 sps:$4 sm:$0xff]  }
   0x3   :  { %423 = vmatpush1.bf16.msra.mxu0 %v867_v1  ;;  %v874_v6 = vld [vmem:[%s1347_s1 + $0x34] ss:$8 sps:$4 sm:$0xff]   ;;  %v876_v7 = vld [vmem:[%s1347_s1 + $0x30] ss:$8 sps:$4 sm:$0xff]   ;;  %v877_v8 = vld [vmem:[%s1347_s1 + $0x44] ss:$8 sps:$4 sm:$0xff]  }
   0x4   :  { %424 = vmatprep.subr.bf16.mxu0 %v868_v2  ;;  %v879_v9 = vld [vmem:[%s1347_s1 + $0x40] ss:$8 sps:$4 sm:$0xff]   ;;  %v880_v10 = vld [vmem:[%s1347_s1 + $0x54] ss:$8 sps:$4 sm:$0xff]   ;;  %v882_v11 = vld [vmem:[%s1347_s1 + $0x50] ss:$8 sps:$4 sm:$0xff]  }
   0x5   :  { %v883_v12 = vld [vmem:[%s1347_s1 + $0x64] ss:$8 sps:$4 sm:$0xff]   ;;  %v885_v14 = vld [vmem:[%s1347_s1 + $0x60] ss:$8 sps:$4 sm:$0xff]   ;;  %v886_v15 = vld [vmem:[%s1347_s1 + $0x74] ss:$8 sps:$4 sm:$0xff]  }
   0x6   :  { %v915_v13 = vld [vmem:[%s1348_s0 + $0x4] ss:$16 sps:$4 sm:$0xff]   ;;  %v888_v16 = vld [vmem:[%s1347_s1 + $0x70] ss:$8 sps:$4 sm:$0xff]   ;;  %v891_v18 = vld [vmem:[%s1347_s1 + $0x80] ss:$8 sps:$4 sm:$0xff]  }
   0x7   :  { %425 = vmatpush1.bf16.msra.mxu0 %v870_v3  ;;  %454 = vmatprep.mubr.bf16.mxu0 %v915_v13  ;;  %v889_v17 = vld [vmem:[%s1347_s1 + $0x84] ss:$8 sps:$4 sm:$0xff]   ;;  %v892_v19 = vld [vmem:[%s1347_s1 + $0x94] ss:$8 sps:$4 sm:$0xff]   ;;  %v894_v20 = vld [vmem:[%s1347_s1 + $0x90] ss:$8 sps:$4 sm:$0xff]  }
   0x8   :  { %426 = vmatprep.subr.bf16.mxu0 %v871_v4  ;;  %v895_v21 = vld [vmem:[%s1347_s1 + $0xa4] ss:$8 sps:$4 sm:$0xff]   ;;  %v897_v22 = vld [vmem:[%s1347_s1 + $0xa0] ss:$8 sps:$4 sm:$0xff]   ;;  %v898_v23 = vld [vmem:[%s1347_s1 + $0xb4] ss:$8 sps:$4 sm:$0xff]  }
   0x9   :  { %v900_v24 = vld [vmem:[%s1347_s1 + $0xb0] ss:$8 sps:$4 sm:$0xff]   ;;  %v901_v25 = vld [vmem:[%s1347_s1 + $0xc4] ss:$8 sps:$4 sm:$0xff]   ;;  %v969_v27 = vld [vmem:[%s1349_s2] ss:$8 sps:$4 sm:$0xff]  }
   0xa   :  { %v967_v26 = vld [vmem:[%s1349_s2 + $0x4] ss:$8 sps:$4 sm:$0xff]   ;;  %v903_v28 = vld [vmem:[%s1347_s1 + $0xc0] ss:$8 sps:$4 sm:$0xff]   ;;  %v970_v29 = vld [vmem:[%s1349_s2 + $0x14] ss:$8 sps:$4 sm:$0xff]  }
   0xb   :  { %427 = vmatpush1.bf16.msra.mxu0 %v873_v5  ;;  %v904_v30 = vld [vmem:[%s1347_s1 + $0xd4] ss:$8 sps:$4 sm:$0xff]   ;;  %706 = vmatprep.subr.bf16.mxu1 %v967_v26  ;;  %v972_v31 = vld [vmem:[%s1349_s2 + $0x10] ss:$8 sps:$4 sm:$0xff]   ;;  %v973_v32 = vld [vmem:[%s1349_s2 + $0x24] ss:$8 sps:$4 sm:$0xff]  }
   0xc   :  { %428 = vmatprep.subr.bf16.mxu0 %v874_v6  ;;  %707 = vmatpush1.bf16.msra.mxu1 %v969_v27  ;;  %v906_v33 = vld [vmem:[%s1347_s1 + $0xd0] ss:$8 sps:$4 sm:$0xff]   ;;  %v907_v34 = vld [vmem:[%s1347_s1 + $0xe4] ss:$8 sps:$4 sm:$0xff]   ;;  %v975_v35 = vld [vmem:[%s1349_s2 + $0x20] ss:$8 sps:$4 sm:$0xff]  }
   0xd   :  { %708 = vmatprep.subr.bf16.mxu1 %v970_v29  ;;  %v976_v36 = vld [vmem:[%s1349_s2 + $0x34] ss:$8 sps:$4 sm:$0xff]   ;;  %v909_v37 = vld [vmem:[%s1347_s1 + $0xe0] ss:$8 sps:$4 sm:$0xff]   ;;  %v978_v39 = vld [vmem:[%s1349_s2 + $0x30] ss:$8 sps:$4 sm:$0xff]  }
   0xe   :  { %v910_v38 = vld [vmem:[%s1347_s1 + $0xf4] ss:$8 sps:$4 sm:$0xff]   ;;  %v979_v40 = vld [vmem:[%s1349_s2 + $0x44] ss:$8 sps:$4 sm:$0xff]   ;;  %v912_v41 = vld [vmem:[%s1347_s1 + $0xf0] ss:$8 sps:$4 sm:$0xff]  }
   0xf   :  { %429 = vmatpush1.bf16.msra.mxu0 %v876_v7  ;;  %v913_v42 = vld [vmem:[%s1348_s0] ss:$16 sps:$4 sm:$0xff]   ;;  %v918_v43 = vld [vmem:[%s1347_s1 + $0x104] ss:$8 sps:$4 sm:$0xff]   ;;  %v982_v46 = vld [vmem:[%s1349_s2 + $0x54] ss:$8 sps:$4 sm:$0xff]  }
  0x10   :  { %430 = vmatprep.subr.bf16.mxu0 %v877_v8  ;;  %709 = vmatpush1.bf16.msra.mxu1 %v972_v31  ;;  %v981_v44 = vld [vmem:[%s1349_s2 + $0x40] ss:$8 sps:$4 sm:$0xff]   ;;  %v921_v47 = vld [vmem:[%s1347_s1 + $0x114] ss:$8 sps:$4 sm:$0xff]   ;;  %v984_v49 = vld [vmem:[%s1349_s2 + $0x50] ss:$8 sps:$4 sm:$0xff]  }
  0x11   :  { %710 = vmatprep.subr.bf16.mxu1 %v973_v32  ;;  %v916_v45 = vld [vmem:[%s1347_s1 + $0x100] ss:$8 sps:$4 sm:$0xff]   ;;  %v966_v48 = vld [vmem:[%s1348_s0 + $0xc] ss:$16 sps:$4 sm:$0xff]   ;;  %v919_v51 = vld [vmem:[%s1347_s1 + $0x110] ss:$8 sps:$4 sm:$0xff]  }
  0x12   :  { %v985_v50 = vld [vmem:[%s1349_s2 + $0x64] ss:$8 sps:$4 sm:$0xff]   ;;  %v987_v53 = vld [vmem:[%s1349_s2 + $0x60] ss:$8 sps:$4 sm:$0xff]   ;;  %v988_v54 = vld [vmem:[%s1349_s2 + $0x74] ss:$8 sps:$4 sm:$0xff]  }
  0x13   :  { %431 = vmatpush1.bf16.msra.mxu0 %v879_v9  ;;  %v924_v52 = vld [vmem:[%s1347_s1 + $0x124] ss:$8 sps:$4 sm:$0xff]   ;;  %v922_v55 = vld [vmem:[%s1347_s1 + $0x120] ss:$8 sps:$4 sm:$0xff]   ;;  %v927_v56 = vld [vmem:[%s1347_s1 + $0x134] ss:$8 sps:$4 sm:$0xff]  }
  0x14   :  { %432 = vmatprep.subr.bf16.mxu0 %v880_v10  ;;  %711 = vmatpush1.bf16.msra.mxu1 %v975_v35  ;;  %v990_v57 = vld [vmem:[%s1349_s2 + $0x70] ss:$8 sps:$4 sm:$0xff]   ;;  %v991_v58 = vld [vmem:[%s1349_s2 + $0x84] ss:$8 sps:$4 sm:$0xff]   ;;  %v993_v61 = vld [vmem:[%s1349_s2 + $0x80] ss:$8 sps:$4 sm:$0xff]  }
  0x15   :  { %712 = vmatprep.subr.bf16.mxu1 %v976_v36  ;;  %v925_v59 = vld [vmem:[%s1347_s1 + $0x130] ss:$8 sps:$4 sm:$0xff]   ;;  %v930_v60 = vld [vmem:[%s1347_s1 + $0x144] ss:$8 sps:$4 sm:$0xff]   ;;  %v994_v62 = vld [vmem:[%s1349_s2 + $0x94] ss:$8 sps:$4 sm:$0xff]  }
  0x16   :  { %v928_v63 = vld [vmem:[%s1347_s1 + $0x140] ss:$8 sps:$4 sm:$0xff]   ;;  %v933_v0 = vld [vmem:[%s1347_s1 + $0x154] ss:$8 sps:$4 sm:$0xff]   ;;  %v996_v1 = vld [vmem:[%s1349_s2 + $0x90] ss:$8 sps:$4 sm:$0xff]  }
  0x17   :  { %433 = vmatpush1.bf16.msra.mxu0 %v882_v11  ;;  %v997_v2 = vld [vmem:[%s1349_s2 + $0xa4] ss:$8 sps:$4 sm:$0xff]   ;;  %v931_v3 = vld [vmem:[%s1347_s1 + $0x150] ss:$8 sps:$4 sm:$0xff]   ;;  %v999_v5 = vld [vmem:[%s1349_s2 + $0xa0] ss:$8 sps:$4 sm:$0xff]  }
  0x18   :  { %434 = vmatprep.subr.bf16.mxu0 %v883_v12  ;;  %713 = vmatpush1.bf16.msra.mxu1 %v978_v39  ;;  %v936_v4 = vld [vmem:[%s1347_s1 + $0x164] ss:$8 sps:$4 sm:$0xff]   ;;  %v1000_v6 = vld [vmem:[%s1349_s2 + $0xb4] ss:$8 sps:$4 sm:$0xff]   ;;  %v934_v7 = vld [vmem:[%s1347_s1 + $0x160] ss:$8 sps:$4 sm:$0xff]  }
  0x19   :  { %714 = vmatprep.subr.bf16.mxu1 %v979_v40  ;;  %v939_v8 = vld [vmem:[%s1347_s1 + $0x174] ss:$8 sps:$4 sm:$0xff]   ;;  %v1002_v9 = vld [vmem:[%s1349_s2 + $0xb0] ss:$8 sps:$4 sm:$0xff]   ;;  %v1003_v10 = vld [vmem:[%s1349_s2 + $0xc4] ss:$8 sps:$4 sm:$0xff]  }
  0x1a   :  { %v937_v11 = vld [vmem:[%s1347_s1 + $0x170] ss:$8 sps:$4 sm:$0xff]   ;;  %v942_v12 = vld [vmem:[%s1347_s1 + $0x184] ss:$8 sps:$4 sm:$0xff]   ;;  %v1005_v13 = vld [vmem:[%s1349_s2 + $0xc0] ss:$8 sps:$4 sm:$0xff]  }
  0x1b   :  { %435 = vmatpush1.bf16.msra.mxu0 %v885_v14  ;;  %v1006_v14 = vld [vmem:[%s1349_s2 + $0xd4] ss:$8 sps:$4 sm:$0xff]   ;;  %v955_v26 = vld [vmem:[%s1347_s1 + $0x1d0] ss:$8 sps:$4 sm:$0xff]   ;;  %v960_v27 = vld [vmem:[%s1347_s1 + $0x1e4] ss:$8 sps:$4 sm:$0xff]  }
  0x1c   :  { %436 = vmatprep.subr.bf16.mxu0 %v886_v15  ;;  %715 = vmatpush1.bf16.msra.mxu1 %v981_v44  ;;  %v940_v15 = vld [vmem:[%s1347_s1 + $0x180] ss:$8 sps:$4 sm:$0xff]   ;;  %v963_v29 = vld [vmem:[%s1347_s1 + $0x1f4] ss:$8 sps:$4 sm:$0xff]   ;;  %v1009_v32 = vld [vmem:[%s1349_s2 + $0xe4] ss:$8 sps:$4 sm:$0xff]  }
  0x1d   :  { %716 = vmatprep.subr.bf16.mxu1 %v982_v46  ;;  %v964_v31 = vld [vmem:[%s1348_s0 + $0x8] ss:$16 sps:$4 sm:$0xff]  }
  0x1e   :  { %v1014_v35 = vld [vmem:[%s1349_s2 + $0xf0] ss:$8 sps:$4 sm:$0xff]  }
  0x1f   :  { %437 = vmatpush1.bf16.msra.mxu0 %v888_v16  ;;  %v945_v16 = vld [vmem:[%s1347_s1 + $0x194] ss:$8 sps:$4 sm:$0xff]  }
  0x20   :  { %438 = vmatprep.subr.bf16.mxu0 %v889_v17  ;;  %717 = vmatpush1.bf16.msra.mxu1 %v984_v49  ;;  %v1008_v17 = vld [vmem:[%s1349_s2 + $0xd0] ss:$8 sps:$4 sm:$0xff]  }
  0x21   :  { %718 = vmatprep.subr.bf16.mxu1 %v985_v50 }
  0x23   :  { %439 = vmatpush1.bf16.msra.mxu0 %v891_v18  ;;  %v943_v18 = vld [vmem:[%s1347_s1 + $0x190] ss:$8 sps:$4 sm:$0xff]  }
  0x24   :  { %440 = vmatprep.subr.bf16.mxu0 %v892_v19  ;;  %719 = vmatpush1.bf16.msra.mxu1 %v987_v53  ;;  %v948_v19 = vld [vmem:[%s1347_s1 + $0x1a4] ss:$8 sps:$4 sm:$0xff]  }
  0x25   :  { %720 = vmatprep.subr.bf16.mxu1 %v988_v54 }
  0x27   :  { %441 = vmatpush1.bf16.msra.mxu0 %v894_v20  ;;  %v946_v20 = vld [vmem:[%s1347_s1 + $0x1a0] ss:$8 sps:$4 sm:$0xff]  }
  0x28   :  { %442 = vmatprep.subr.bf16.mxu0 %v895_v21  ;;  %721 = vmatpush1.bf16.msra.mxu1 %v990_v57  ;;  %v951_v21 = vld [vmem:[%s1347_s1 + $0x1b4] ss:$8 sps:$4 sm:$0xff]  }
  0x29   :  { %722 = vmatprep.subr.bf16.mxu1 %v991_v58 }
  0x2b   :  { %443 = vmatpush1.bf16.msra.mxu0 %v897_v22  ;;  %v949_v22 = vld [vmem:[%s1347_s1 + $0x1b0] ss:$8 sps:$4 sm:$0xff]  }
  0x2c   :  { %444 = vmatprep.subr.bf16.mxu0 %v898_v23  ;;  %723 = vmatpush1.bf16.msra.mxu1 %v993_v61  ;;  %v954_v23 = vld [vmem:[%s1347_s1 + $0x1c4] ss:$8 sps:$4 sm:$0xff]  }
  0x2d   :  { %724 = vmatprep.subr.bf16.mxu1 %v994_v62 }
  0x2f   :  { %445 = vmatpush1.bf16.msra.mxu0 %v900_v24  ;;  %v952_v24 = vld [vmem:[%s1347_s1 + $0x1c0] ss:$8 sps:$4 sm:$0xff]  }
  0x30   :  { %446 = vmatprep.subr.bf16.mxu0 %v901_v25  ;;  %725 = vmatpush1.bf16.msra.mxu1 %v996_v1  ;;  %v957_v25 = vld [vmem:[%s1347_s1 + $0x1d4] ss:$8 sps:$4 sm:$0xff]  }
  0x31   :  { %726 = vmatprep.subr.bf16.mxu1 %v997_v2 }
  0x33   :  { %447 = vmatpush1.bf16.msra.mxu0 %v903_v28  ;;  %v958_v28 = vld [vmem:[%s1347_s1 + $0x1e0] ss:$8 sps:$4 sm:$0xff]  }
  0x34   :  { %448 = vmatprep.subr.bf16.mxu0 %v904_v30  ;;  %727 = vmatpush1.bf16.msra.mxu1 %v999_v5  ;;  %v961_v30 = vld [vmem:[%s1347_s1 + $0x1f0] ss:$8 sps:$4 sm:$0xff]  }
  0x35   :  { %728 = vmatprep.subr.bf16.mxu1 %v1000_v6 }
  0x37   :  { %449 = vmatpush1.bf16.msra.mxu0 %v906_v33  ;;  %v1011_v33 = vld [vmem:[%s1349_s2 + $0xe0] ss:$8 sps:$4 sm:$0xff]  }
  0x38   :  { %450 = vmatprep.subr.bf16.mxu0 %v907_v34  ;;  %729 = vmatpush1.bf16.msra.mxu1 %v1002_v9  ;;  %v1012_v34 = vld [vmem:[%s1349_s2 + $0xf4] ss:$8 sps:$4 sm:$0xff]  }
  0x39   :  { %730 = vmatprep.subr.bf16.mxu1 %v1003_v10 }
  0x3b   :  { %451 = vmatpush1.bf16.msra.mxu0 %v909_v37 }
  0x3c   :  { %452 = vmatprep.subr.bf16.mxu0 %v910_v38  ;;  %731 = vmatpush1.bf16.msra.mxu1 %v1005_v13 }
  0x3d   :  { %732 = vmatprep.subr.bf16.mxu1 %v1006_v14 }
  0x3f   :  { %453 = vmatpush1.bf16.msra.mxu0 %v912_v41 }
  0x40   :  { %465 = vmatprep.subr.bf16.mxu0 %v918_v43  ;;  %733 = vmatpush1.bf16.msra.mxu1 %v1008_v17 }
  0x41   :  { %734 = vmatprep.subr.bf16.mxu1 %v1009_v32 }
  0x42   :  { %455 = vmatmul.mubr.bf16.vlgmr.msra.gmra.mrb[0].mxu0 %v913_v42 }
  0x43   :  { %466 = vmatpush1.bf16.msra.mxu0 %v916_v45  ;;  %497 = vmatprep.mubr.bf16.mxu0 %v966_v48 }
  0x44   :  { %467 = vmatprep.subr.bf16.mxu0 %v921_v47  ;;  %735 = vmatpush1.bf16.msra.mxu1 %v1011_v33 }
  0x45   :  { %736 = vmatprep.subr.bf16.mxu1 %v1012_v34 }
  0x47   :  { %468 = vmatpush1.bf16.msra.mxu0 %v919_v51 }
  0x48   :  { %469 = vmatprep.subr.bf16.mxu0 %v924_v52  ;;  %737 = vmatpush1.bf16.msra.mxu1 %v1014_v35 }
  0x4b   :  { %470 = vmatpush1.bf16.msra.mxu0 %v922_v55 }
  0x4c   :  { %471 = vmatprep.subr.bf16.mxu0 %v927_v56 }
  0x4f   :  { %472 = vmatpush1.bf16.msra.mxu0 %v925_v59 }
  0x50   :  { %473 = vmatprep.subr.bf16.mxu0 %v930_v60 }
  0x53   :  { %474 = vmatpush1.bf16.msra.mxu0 %v928_v63 }
  0x54   :  { %475 = vmatprep.subr.bf16.mxu0 %v933_v0 }
  0x57   :  { %476 = vmatpush1.bf16.msra.mxu0 %v931_v3 }
  0x58   :  { %477 = vmatprep.subr.bf16.mxu0 %v936_v4 }
  0x5b   :  { %478 = vmatpush1.bf16.msra.mxu0 %v934_v7 }
  0x5c   :  { %479 = vmatprep.subr.bf16.mxu0 %v939_v8 }
  0x5f   :  { %480 = vmatpush1.bf16.msra.mxu0 %v937_v11 }
  0x60   :  { %481 = vmatprep.subr.bf16.mxu0 %v942_v12 }
  0x63   :  { %482 = vmatpush1.bf16.msra.mxu0 %v940_v15 }
  0x64   :  { %483 = vmatprep.subr.bf16.mxu0 %v945_v16 }
  0x67   :  { %484 = vmatpush1.bf16.msra.mxu0 %v943_v18 }
  0x68   :  { %485 = vmatprep.subr.bf16.mxu0 %v948_v19 }
  0x6b   :  { %486 = vmatpush1.bf16.msra.mxu0 %v946_v20 }
  0x6c   :  { %487 = vmatprep.subr.bf16.mxu0 %v951_v21 }
  0x6f   :  { %488 = vmatpush1.bf16.msra.mxu0 %v949_v22 }
  0x70   :  { %489 = vmatprep.subr.bf16.mxu0 %v954_v23 }
  0x73   :  { %490 = vmatpush1.bf16.msra.mxu0 %v952_v24 }
  0x74   :  { %491 = vmatprep.subr.bf16.mxu0 %v957_v25 }
  0x77   :  { %492 = vmatpush1.bf16.msra.mxu0 %v955_v26 }
  0x78   :  { %493 = vmatprep.subr.bf16.mxu0 %v960_v27 }
  0x7b   :  { %494 = vmatpush1.bf16.msra.mxu0 %v958_v28 }
  0x7c   :  { %495 = vmatprep.subr.bf16.mxu0 %v963_v29 }
  0x7f   :  { %496 = vmatpush1.bf16.msra.mxu0 %v961_v30 }
  0x82   :  { %498 = vmatmul.mubr.bf16.vlgmr.msra.gmra.mrb[0].mxu0 %v964_v31 }
 0x155   :  { %v499_v36 = vpop.f32.mrb[0].mxu0 }
 0x156   :  { %v501_v37 = vpop.f32.mrb[1].mxu0  ;;  %v508_v39 = vmax.f32 %v499_v36, 0.0 }
 0x157   :  { %v503_v38 = vpop.f32.mrb[2].mxu0  ;;  %v509_v42 = vmax.f32 %v501_v37, 0.0 }
 0x158   :  { %v510_v40 = vmax.f32 %v503_v38, 0.0  ;;  %v505_v41 = vpop.f32.mrb[3].mxu0 }
 0x159   :  { %v511_v43 = vmax.f32 %v505_v41, 0.0 }
 0x15a   :  { %v512_v44 = vpack.c.bf16 %v510_v40, %v508_v39 }
 0x15b   :  { %v513_v45 = vpack.c.bf16 %v511_v43, %v509_v42 }
 0x15d   :  { %738 = vmatprep.mubr.bf16.mxu1 %v513_v45 }
 0x15e   :  { %739 = vmatmul.mubr.bf16.vlgmr.msra.gmra.mrb[0].mxu1 %v512_v44 }
 0x231   :  { %v740_v46 = vpop.f32.mrb[0].mxu1 }
 0x232   :  { %v749_v47 = vmax.f32 %v740_v46, 0.0  ;;  %v742_v48 = vpop.f32.mrb[1].mxu1 }
 0x233   :  { %v750_v49 = vmax.f32 %v742_v48, 0.0  ;;  %v744_v50 = vpop.f32.mrb[2].mxu1 }
 0x234   :  { %753 = vst [vmem:[%s1350_s3] sm:$0xff] %v749_v47  ;;  %v751_v51 = vmax.f32 %v744_v50, 0.0  ;;  %v746_v52 = vpop.f32.mrb[3].mxu1 }
 0x235   :  { %754 = vst [vmem:[%s1350_s3 + $0x8] sm:$0xff] %v750_v49  ;;  %v752_v53 = vmax.f32 %v746_v52, 0.0 }
 0x236   :  { %755 = vst [vmem:[%s1350_s3 + $0x10] sm:$0xff] %v751_v51 }
 0x237   :  { %756 = vst [vmem:[%s1350_s3 + $0x18] sm:$0xff] %v752_v53 }

// kernel: backbone_forward.17
= control target key start
LH: loop header
LB: loop body
LE: loop exit
PB: predicated region body
PF: predicated region fallthrough
CT: control target
= control target key end

     0   :  { %8 = vsyncpa [#allocation3], 0  ;;  %s1790_s0 = inlined_call_operand.vmem [shape: bf16[32,512], index: 0, kind: input, shape index: {}]   ;;  %s1791_s1 = inlined_call_operand.vmem [shape: bf16[512,256], index: 1, kind: input, shape index: {}]   ;;  %s1792_s2 = inlined_call_operand.vmem [shape: bf16[256,256], index: 2, kind: input, shape index: {}]   ;;  %s1793_s3 = inlined_call_operand.hbm [shape: f32[32,256], index: 3, kind: output, shape index: {}]  }
   0x1   :  { %10 = vsyncpa [#allocation3 + $0x1], 0  ;;  %s1394_s12 = smov 0   ;;  %s1396_s13 = smov 0  }
   0x2   :  { %s1398_s14 = smov 0   ;;  %s1400_s15 = smov 0  }
   0x3 LB: > { %s1415_s16 = sadd.s32 4294967295, %s1369_s15   ;;  %s995_s17 = sadd.s32 4294967294, %s1369_s15   ;;  %s1369_s15 = sphi %s1400_s15, %s1799_s15   ;;  %s1365_s14 = sphi %s1398_s14, %s1798_s14   ;;  %s1361_s13 = sphi %s1396_s13, %s1797_s13   ;;  %s1357_s12 = sphi %s1394_s12, %s1796_s12  }
   0x4   : > { %s1419_s18 = sadd.s32 1, %s1369_s15   ;;  %s91_s19 = sadd.s32 1, %s1365_s14 }
   0x5   : > { %s88_s20 = ssub.s32 %s1369_s15, %s1419_s18  ;;  %p101_p0 = scmp.ne.s32.totalorder %s1365_s14, %s1361_s13 }
   0x6   : > { %p89_p1 = scmp.eq.s32.totalorder %s88_s20, 0  ;;  %p102_p2 = scmp.eq.s32.totalorder %s1415_s16, 1 }
   0x7   : > { %p107_p3 = scmp.ne.s32.totalorder %s1361_s13, %s1357_s12  ;;  %p108_p4 = scmp.eq.s32.totalorder %s995_s17, 1 }
   0x8   : > { %s1430_s21 = scalar_select %p89_p1, %s1365_s14, %s91_s19  }
   0x9   : > { %p1432_p5 = por %p102_p2, %p101_p0  ;;  %p1436_p6 = por %p108_p4, %p107_p3 }
   0xa   : > { %p998_p7 = scmp.ge.s32.totalorder %s1369_s15, 1  ;;  %p142_p8 = scmp.lt.s32.totalorder %s1369_s15, 3 }
   0xc   : > { %p143_p9 = pnand %p998_p7, %p142_p8 }
   0xd   : > { %v1157_v0 = vld [vmem:[%s1791_s1 + $0x4] ss:$8 sps:$4 sm:$0xff] (!%p143_p9)   ;;  %v1159_v1 = vld [vmem:[%s1791_s1] ss:$8 sps:$4 sm:$0xff] (!%p143_p9)   ;;  %v1160_v2 = vld [vmem:[%s1791_s1 + $0x14] ss:$8 sps:$4 sm:$0xff] (!%p143_p9)  }
   0xe   : > { %146 = sbr.rel (%p143_p9) target bundleno = 594 (0x252), region = 32  ;;  %583 = vmatprep.subr.bf16.mxu0 (!%p143_p9), %v1157_v0  ;;  %v1162_v3 = vld [vmem:[%s1791_s1 + $0x10] ss:$8 sps:$4 sm:$0xff] (!%p143_p9)   ;;  %v1163_v4 = vld [vmem:[%s1791_s1 + $0x24] ss:$8 sps:$4 sm:$0xff] (!%p143_p9)   ;;  %s1000_s7 = sshll.u32 (!%p143_p9), %s1415_s16, 1 }
   0xf   : > { %584 = vmatpush1.bf16.msra.mxu0 (!%p143_p9), %v1159_v1  ;;  %v1165_v5 = vld [vmem:[%s1791_s1 + $0x20] ss:$8 sps:$4 sm:$0xff] (!%p143_p9)   ;;  %v1166_v6 = vld [vmem:[%s1791_s1 + $0x34] ss:$8 sps:$4 sm:$0xff] (!%p143_p9)   ;;  %p168_p10 = scmp.lt.s32.totalorder (!%p143_p9), %s1000_s7, 3  ;;  %s1111_s10 = sshll.u32 (!%p143_p9), %s1415_s16, 9 }
  0x10   : > { %585 = vmatprep.subr.bf16.mxu0 (!%p143_p9), %v1160_v2  ;;  %v1168_v7 = vld [vmem:[%s1791_s1 + $0x30] ss:$8 sps:$4 sm:$0xff] (!%p143_p9)   ;;  %v1169_v8 = vld [vmem:[%s1791_s1 + $0x44] ss:$8 sps:$4 sm:$0xff] (!%p143_p9)   ;;  %v1171_v9 = vld [vmem:[%s1791_s1 + $0x40] ss:$8 sps:$4 sm:$0xff] (!%p143_p9)   ;;  %s1747_s17 = scalar_lea.hbm (!%p143_p9), %s1793_s3, %s1111_s10 }
  0x11   : > { %v1172_v10 = vld [vmem:[%s1791_s1 + $0x54] ss:$8 sps:$4 sm:$0xff] (!%p143_p9)   ;;  %v1174_v11 = vld [vmem:[%s1791_s1 + $0x50] ss:$8 sps:$4 sm:$0xff] (!%p143_p9)   ;;  %v1175_v12 = vld [vmem:[%s1791_s1 + $0x64] ss:$8 sps:$4 sm:$0xff] (!%p143_p9)  }
  0x12   : > { %v1177_v14 = vld [vmem:[%s1791_s1 + $0x60] ss:$8 sps:$4 sm:$0xff] (!%p143_p9)   ;;  %v1178_v15 = vld [vmem:[%s1791_s1 + $0x74] ss:$8 sps:$4 sm:$0xff] (!%p143_p9)   ;;  %v1180_v16 = vld [vmem:[%s1791_s1 + $0x70] ss:$8 sps:$4 sm:$0xff] (!%p143_p9)  }
  0x13   : > { %586 = vmatpush1.bf16.msra.mxu0 (!%p143_p9), %v1162_v3  ;;  %v1181_v17 = vld [vmem:[%s1791_s1 + $0x84] ss:$8 sps:$4 sm:$0xff] (!%p143_p9)   ;;  %v1183_v18 = vld [vmem:[%s1791_s1 + $0x80] ss:$8 sps:$4 sm:$0xff] (!%p143_p9)   ;;  %v1184_v19 = vld [vmem:[%s1791_s1 + $0x94] ss:$8 sps:$4 sm:$0xff] (!%p143_p9)  }
  0x14   : > { %587 = vmatprep.subr.bf16.mxu0 (!%p143_p9), %v1163_v4  ;;  %v1186_v20 = vld [vmem:[%s1791_s1 + $0x90] ss:$8 sps:$4 sm:$0xff] (!%p143_p9)   ;;  %v1187_v21 = vld [vmem:[%s1791_s1 + $0xa4] ss:$8 sps:$4 sm:$0xff] (!%p143_p9)   ;;  %v1189_v22 = vld [vmem:[%s1791_s1 + $0xa0] ss:$8 sps:$4 sm:$0xff] (!%p143_p9)  }
  0x15   : > { %s1801_s7 = smov (!%p168_p10, %s1000_s7), 3  ;;  %v1190_v23 = vld [vmem:[%s1791_s1 + $0xb4] ss:$8 sps:$4 sm:$0xff]   ;;  %v1192_v24 = vld [vmem:[%s1791_s1 + $0xb0] ss:$8 sps:$4 sm:$0xff]   ;;  %s1371_s20 = smov [#allocation2]  }
  0x16   : > { %s1109_s29 = sshll.u32 %s1801_s7, 4  ;;  %v1193_v25 = vld [vmem:[%s1791_s1 + $0xc4] ss:$8 sps:$4 sm:$0xff]   ;;  %v1261_v27 = vld [vmem:[%s1792_s2] ss:$8 sps:$4 sm:$0xff]   ;;  %s1311_s24 = sshll.u32 %s1371_s20, 4  ;;  %s1312_s24 = int_to_ptr.vmem [resolvable:$false] %s1311_s24 }
  0x17   : > { %588 = vmatpush1.bf16.msra.mxu0 %v1165_v5  ;;  %s1482_s8 = scalar_lea.vmem %s1790_s0, %s1109_s29  ;;  %v1259_v26 = vld [vmem:[%s1792_s2 + $0x4] ss:$8 sps:$4 sm:$0xff]   ;;  %v1195_v28 = vld [vmem:[%s1791_s1 + $0xc0] ss:$8 sps:$4 sm:$0xff]   ;;  %v1262_v29 = vld [vmem:[%s1792_s2 + $0x14] ss:$8 sps:$4 sm:$0xff]  }
  0x18   : > { %589 = vmatprep.subr.bf16.mxu0 %v1166_v6  ;;  %v1207_v13 = vld [vmem:[%s1482_s8 + $0x4] ss:$16 sps:$4 sm:$0xff]   ;;  %867 = vmatprep.subr.bf16.mxu1 %v1259_v26  ;;  %v1264_v31 = vld [vmem:[%s1792_s2 + $0x10] ss:$8 sps:$4 sm:$0xff]   ;;  %v1267_v35 = vld [vmem:[%s1792_s2 + $0x20] ss:$8 sps:$4 sm:$0xff]  }
  0x19   : > { %615 = vmatprep.mubr.bf16.mxu0 %v1207_v13  ;;  %v1196_v30 = vld [vmem:[%s1791_s1 + $0xd4] ss:$8 sps:$4 sm:$0xff]   ;;  %868 = vmatpush1.bf16.msra.mxu1 %v1261_v27  ;;  %v1265_v32 = vld [vmem:[%s1792_s2 + $0x24] ss:$8 sps:$4 sm:$0xff]   ;;  %v1198_v33 = vld [vmem:[%s1791_s1 + $0xd0] ss:$8 sps:$4 sm:$0xff]  }
  0x1a   : > { %869 = vmatprep.subr.bf16.mxu1 %v1262_v29  ;;  %v1199_v34 = vld [vmem:[%s1791_s1 + $0xe4] ss:$8 sps:$4 sm:$0xff]   ;;  %v1268_v36 = vld [vmem:[%s1792_s2 + $0x34] ss:$8 sps:$4 sm:$0xff]   ;;  %v1201_v37 = vld [vmem:[%s1791_s1 + $0xe0] ss:$8 sps:$4 sm:$0xff]  }
  0x1b   : > { %590 = vmatpush1.bf16.msra.mxu0 %v1168_v7  ;;  %v1202_v38 = vld [vmem:[%s1791_s1 + $0xf4] ss:$8 sps:$4 sm:$0xff]   ;;  %v1270_v39 = vld [vmem:[%s1792_s2 + $0x30] ss:$8 sps:$4 sm:$0xff]   ;;  %v1271_v40 = vld [vmem:[%s1792_s2 + $0x44] ss:$8 sps:$4 sm:$0xff]  }
  0x1c   : > { %591 = vmatprep.subr.bf16.mxu0 %v1169_v8  ;;  %v1204_v41 = vld [vmem:[%s1791_s1 + $0xf0] ss:$8 sps:$4 sm:$0xff]   ;;  %v1210_v43 = vld [vmem:[%s1791_s1 + $0x104] ss:$8 sps:$4 sm:$0xff]   ;;  %v1273_v44 = vld [vmem:[%s1792_s2 + $0x40] ss:$8 sps:$4 sm:$0xff]  }
  0x1d   : > { %870 = vmatpush1.bf16.msra.mxu1 %v1264_v31  ;;  %v1205_v42 = vld [vmem:[%s1482_s8] ss:$16 sps:$4 sm:$0xff]   ;;  %v1274_v46 = vld [vmem:[%s1792_s2 + $0x54] ss:$8 sps:$4 sm:$0xff]   ;;  %v1277_v50 = vld [vmem:[%s1792_s2 + $0x64] ss:$8 sps:$4 sm:$0xff]  }
  0x1e   : > { %871 = vmatprep.subr.bf16.mxu1 %v1265_v32  ;;  %v1208_v45 = vld [vmem:[%s1791_s1 + $0x100] ss:$8 sps:$4 sm:$0xff]   ;;  %v1213_v47 = vld [vmem:[%s1791_s1 + $0x114] ss:$8 sps:$4 sm:$0xff]   ;;  %v1276_v49 = vld [vmem:[%s1792_s2 + $0x50] ss:$8 sps:$4 sm:$0xff]  }
  0x1f   : > { %592 = vmatpush1.bf16.msra.mxu0 %v1171_v9  ;;  %v1258_v48 = vld [vmem:[%s1482_s8 + $0xc] ss:$16 sps:$4 sm:$0xff]   ;;  %v1211_v51 = vld [vmem:[%s1791_s1 + $0x110] ss:$8 sps:$4 sm:$0xff]   ;;  %v1279_v53 = vld [vmem:[%s1792_s2 + $0x60] ss:$8 sps:$4 sm:$0xff]  }
  0x20   : > { %593 = vmatprep.subr.bf16.mxu0 %v1172_v10  ;;  %v1216_v52 = vld [vmem:[%s1791_s1 + $0x124] ss:$8 sps:$4 sm:$0xff]   ;;  %v1280_v54 = vld [vmem:[%s1792_s2 + $0x74] ss:$8 sps:$4 sm:$0xff]   ;;  %v1214_v55 = vld [vmem:[%s1791_s1 + $0x120] ss:$8 sps:$4 sm:$0xff]  }
  0x21   : > { %872 = vmatpush1.bf16.msra.mxu1 %v1267_v35  ;;  %v1219_v56 = vld [vmem:[%s1791_s1 + $0x134] ss:$8 sps:$4 sm:$0xff]   ;;  %v1282_v57 = vld [vmem:[%s1792_s2 + $0x70] ss:$8 sps:$4 sm:$0xff]   ;;  %v1283_v58 = vld [vmem:[%s1792_s2 + $0x84] ss:$8 sps:$4 sm:$0xff]  }
  0x22   : > { %873 = vmatprep.subr.bf16.mxu1 %v1268_v36  ;;  %v1217_v59 = vld [vmem:[%s1791_s1 + $0x130] ss:$8 sps:$4 sm:$0xff]   ;;  %v1222_v60 = vld [vmem:[%s1791_s1 + $0x144] ss:$8 sps:$4 sm:$0xff]   ;;  %v1285_v61 = vld [vmem:[%s1792_s2 + $0x80] ss:$8 sps:$4 sm:$0xff]  }
  0x23   : > { %594 = vmatpush1.bf16.msra.mxu0 %v1174_v11  ;;  %v1286_v62 = vld [vmem:[%s1792_s2 + $0x94] ss:$8 sps:$4 sm:$0xff]   ;;  %v1220_v63 = vld [vmem:[%s1791_s1 + $0x140] ss:$8 sps:$4 sm:$0xff]   ;;  %v1288_v1 = vld [vmem:[%s1792_s2 + $0x90] ss:$8 sps:$4 sm:$0xff]  }
  0x24   : > { %595 = vmatprep.subr.bf16.mxu0 %v1175_v12  ;;  %v1225_v0 = vld [vmem:[%s1791_s1 + $0x154] ss:$8 sps:$4 sm:$0xff]   ;;  %v1289_v2 = vld [vmem:[%s1792_s2 + $0xa4] ss:$8 sps:$4 sm:$0xff]   ;;  %v1223_v3 = vld [vmem:[%s1791_s1 + $0x150] ss:$8 sps:$4 sm:$0xff]  }
  0x25   : > { %874 = vmatpush1.bf16.msra.mxu1 %v1270_v39  ;;  %v1228_v4 = vld [vmem:[%s1791_s1 + $0x164] ss:$8 sps:$4 sm:$0xff]   ;;  %v1291_v5 = vld [vmem:[%s1792_s2 + $0xa0] ss:$8 sps:$4 sm:$0xff]   ;;  %v1292_v6 = vld [vmem:[%s1792_s2 + $0xb4] ss:$8 sps:$4 sm:$0xff]  }
  0x26   : > { %875 = vmatprep.subr.bf16.mxu1 %v1271_v40  ;;  %v1226_v7 = vld [vmem:[%s1791_s1 + $0x160] ss:$8 sps:$4 sm:$0xff]   ;;  %v1231_v8 = vld [vmem:[%s1791_s1 + $0x174] ss:$8 sps:$4 sm:$0xff]   ;;  %v1294_v9 = vld [vmem:[%s1792_s2 + $0xb0] ss:$8 sps:$4 sm:$0xff]  }
  0x27   : > { %596 = vmatpush1.bf16.msra.mxu0 %v1177_v14  ;;  %v1295_v10 = vld [vmem:[%s1792_s2 + $0xc4] ss:$8 sps:$4 sm:$0xff]   ;;  %v1229_v11 = vld [vmem:[%s1791_s1 + $0x170] ss:$8 sps:$4 sm:$0xff]   ;;  %v1297_v13 = vld [vmem:[%s1792_s2 + $0xc0] ss:$8 sps:$4 sm:$0xff]  }
  0x28   : > { %597 = vmatprep.subr.bf16.mxu0 %v1178_v15  ;;  %v1234_v12 = vld [vmem:[%s1791_s1 + $0x184] ss:$8 sps:$4 sm:$0xff]   ;;  %v1298_v14 = vld [vmem:[%s1792_s2 + $0xd4] ss:$8 sps:$4 sm:$0xff]   ;;  %v1232_v15 = vld [vmem:[%s1791_s1 + $0x180] ss:$8 sps:$4 sm:$0xff]  }
  0x29   : > { %876 = vmatpush1.bf16.msra.mxu1 %v1273_v44  ;;  %v1247_v26 = vld [vmem:[%s1791_s1 + $0x1d0] ss:$8 sps:$4 sm:$0xff]   ;;  %v1252_v27 = vld [vmem:[%s1791_s1 + $0x1e4] ss:$8 sps:$4 sm:$0xff]   ;;  %v1255_v29 = vld [vmem:[%s1791_s1 + $0x1f4] ss:$8 sps:$4 sm:$0xff]  }
  0x2a   : > { %877 = vmatprep.subr.bf16.mxu1 %v1274_v46  ;;  %v1256_v31 = vld [vmem:[%s1482_s8 + $0x8] ss:$16 sps:$4 sm:$0xff]   ;;  %v1301_v32 = vld [vmem:[%s1792_s2 + $0xe4] ss:$8 sps:$4 sm:$0xff]   ;;  %s164_s8 = sand.u32 1, %s1361_s13   ;;  %s1313_s25 = scalar_lea.vmem %s1312_s24, 1024 }
  0x2b   : > { %598 = vmatpush1.bf16.msra.mxu0 %v1180_v16  ;;  %v1237_v16 = vld [vmem:[%s1791_s1 + $0x194] ss:$8 sps:$4 sm:$0xff]   ;;  %v1306_v35 = vld [vmem:[%s1792_s2 + $0xf0] ss:$8 sps:$4 sm:$0xff]   ;;  %s999_s5 = sshll.u32 %s164_s8, 5  ;;  %s1749_s16 = scalar_lea.sflag [#allocation3], %s164_s8 }
  0x2c   : > { %599 = vmatprep.subr.bf16.mxu0 %v1181_v17  ;;  %v1300_v17 = vld [vmem:[%s1792_s2 + $0xd0] ss:$8 sps:$4 sm:$0xff]   ;;  %s166_s6 = scalar_lea.vmem [#allocation2], %s999_s5 }
  0x2d   : > { %878 = vmatpush1.bf16.msra.mxu1 %v1276_v49  ;;  %s933_s9 = sshll.u32 %s166_s6, 4  ;;  %s1742_s9 = int_to_ptr.vmem [resolvable:$true] %s933_s9 }
  0x2e   : > { %879 = vmatprep.subr.bf16.mxu1 %v1277_v50  ;;  %s1307_s19 = scalar_lea.vmem %s1742_s9, 512  ;;  %p1314_p0 = scmp.lt.s32.totalorder %s1742_s9, %s1312_s24 }
  0x2f   : > { %600 = vmatpush1.bf16.msra.mxu0 %v1183_v18  ;;  %v1235_v18 = vld [vmem:[%s1791_s1 + $0x190] ss:$8 sps:$4 sm:$0xff]   ;;  %p1308_p11 = scmp.ne.s32.totalorder %s1742_s9, %s1307_s19  ;;  %p1315_p1 = scmp.lt.s32.totalorder %s1313_s25, %s1307_s19 }
  0x30   : > { %601 = vmatprep.subr.bf16.mxu0 %v1184_v19  ;;  %v1240_v19 = vld [vmem:[%s1791_s1 + $0x1a4] ss:$8 sps:$4 sm:$0xff]  }
  0x31   : > { %880 = vmatpush1.bf16.msra.mxu1 %v1279_v53  ;;  %p1309_p12 = pnand %p1308_p11, %p1432_p5  ;;  %p1316_p2 = por %p1315_p1, %p1314_p0 }
  0x32   : > { %881 = vmatprep.subr.bf16.mxu1 %v1280_v54 }
  0x33   : > { %602 = vmatpush1.bf16.msra.mxu0 %v1186_v20  ;;  %v1238_v20 = vld [vmem:[%s1791_s1 + $0x1a0] ss:$8 sps:$4 sm:$0xff]   ;;  %p1310_p13 = pneg %p1309_p12 }
  0x34   : > { %603 = vmatprep.subr.bf16.mxu0 %v1187_v21  ;;  %v1243_v21 = vld [vmem:[%s1791_s1 + $0x1b4] ss:$8 sps:$4 sm:$0xff]  }
  0x35   : > { %882 = vmatpush1.bf16.msra.mxu1 %v1282_v57  ;;  %p1317_p3 = pnand %p1316_p2, %p1310_p13 }
  0x36   : > { %883 = vmatprep.subr.bf16.mxu1 %v1283_v58 }
  0x37   : > { %604 = vmatpush1.bf16.msra.mxu0 %v1189_v22  ;;  %v1241_v22 = vld [vmem:[%s1791_s1 + $0x1b0] ss:$8 sps:$4 sm:$0xff]  }
  0x38   : > { %605 = vmatprep.subr.bf16.mxu0 %v1190_v23  ;;  %v1246_v23 = vld [vmem:[%s1791_s1 + $0x1c4] ss:$8 sps:$4 sm:$0xff]  }
  0x39   : > { %884 = vmatpush1.bf16.msra.mxu1 %v1285_v61 }
  0x3a   : > { %885 = vmatprep.subr.bf16.mxu1 %v1286_v62 }
  0x3b   : > { %606 = vmatpush1.bf16.msra.mxu0 %v1192_v24  ;;  %v1244_v24 = vld [vmem:[%s1791_s1 + $0x1c0] ss:$8 sps:$4 sm:$0xff]  }
  0x3c   : > { %607 = vmatprep.subr.bf16.mxu0 %v1193_v25  ;;  %v1249_v25 = vld [vmem:[%s1791_s1 + $0x1d4] ss:$8 sps:$4 sm:$0xff]  }
  0x3d   : > { %886 = vmatpush1.bf16.msra.mxu1 %v1288_v1 }
  0x3e   : > { %887 = vmatprep.subr.bf16.mxu1 %v1289_v2 }
  0x3f   : > { %608 = vmatpush1.bf16.msra.mxu0 %v1195_v28  ;;  %v1250_v28 = vld [vmem:[%s1791_s1 + $0x1e0] ss:$8 sps:$4 sm:$0xff]  }
  0x40   : > { %609 = vmatprep.subr.bf16.mxu0 %v1196_v30  ;;  %v1253_v30 = vld [vmem:[%s1791_s1 + $0x1f0] ss:$8 sps:$4 sm:$0xff]  }
  0x41   : > { %888 = vmatpush1.bf16.msra.mxu1 %v1291_v5 }
  0x42   : > { %889 = vmatprep.subr.bf16.mxu1 %v1292_v6 }
  0x43   : > { %610 = vmatpush1.bf16.msra.mxu0 %v1198_v33  ;;  %v1303_v33 = vld [vmem:[%s1792_s2 + $0xe0] ss:$8 sps:$4 sm:$0xff]  }
  0x44   : > { %611 = vmatprep.subr.bf16.mxu0 %v1199_v34  ;;  %v1304_v34 = vld [vmem:[%s1792_s2 + $0xf4] ss:$8 sps:$4 sm:$0xff]  }
  0x45   : > { %890 = vmatpush1.bf16.msra.mxu1 %v1294_v9 }
  0x46   : > { %891 = vmatprep.subr.bf16.mxu1 %v1295_v10 }
  0x47   : > { %612 = vmatpush1.bf16.msra.mxu0 %v1201_v37 }
  0x48   : > { %613 = vmatprep.subr.bf16.mxu0 %v1202_v38 }
  0x49   : > { %892 = vmatpush1.bf16.msra.mxu1 %v1297_v13 }
  0x4a   : > { %893 = vmatprep.subr.bf16.mxu1 %v1298_v14 }
  0x4b   : > { %614 = vmatpush1.bf16.msra.mxu0 %v1204_v41 }
  0x4c   : > { %626 = vmatprep.subr.bf16.mxu0 %v1210_v43 }
  0x4d   : > { %894 = vmatpush1.bf16.msra.mxu1 %v1300_v17 }
  0x4e   : > { %616 = vmatmul.mubr.bf16.vlgmr.msra.gmra.mrb[0].mxu0 %v1205_v42  ;;  %895 = vmatprep.subr.bf16.mxu1 %v1301_v32 }
  0x4f   : > { %627 = vmatpush1.bf16.msra.mxu0 %v1208_v45  ;;  %658 = vmatprep.mubr.bf16.mxu0 %v1258_v48 }
  0x50   : > { %628 = vmatprep.subr.bf16.mxu0 %v1213_v47 }
  0x51   : > { %896 = vmatpush1.bf16.msra.mxu1 %v1303_v33 }
  0x52   : > { %897 = vmatprep.subr.bf16.mxu1 %v1304_v34 }
  0x53   : > { %629 = vmatpush1.bf16.msra.mxu0 %v1211_v51 }
  0x54   : > { %630 = vmatprep.subr.bf16.mxu0 %v1216_v52 }
  0x55   : > { %898 = vmatpush1.bf16.msra.mxu1 %v1306_v35 }
  0x57   : > { %631 = vmatpush1.bf16.msra.mxu0 %v1214_v55 }
  0x58   : > { %632 = vmatprep.subr.bf16.mxu0 %v1219_v56 }
  0x5b   : > { %633 = vmatpush1.bf16.msra.mxu0 %v1217_v59 }
  0x5c   : > { %634 = vmatprep.subr.bf16.mxu0 %v1222_v60 }
  0x5f   : > { %635 = vmatpush1.bf16.msra.mxu0 %v1220_v63 }
  0x60   : > { %636 = vmatprep.subr.bf16.mxu0 %v1225_v0 }
  0x63   : > { %637 = vmatpush1.bf16.msra.mxu0 %v1223_v3 }
  0x64   : > { %638 = vmatprep.subr.bf16.mxu0 %v1228_v4 }
  0x67   : > { %639 = vmatpush1.bf16.msra.mxu0 %v1226_v7 }
  0x68   : > { %640 = vmatprep.subr.bf16.mxu0 %v1231_v8 }
  0x6b   : > { %641 = vmatpush1.bf16.msra.mxu0 %v1229_v11 }
  0x6c   : > { %642 = vmatprep.subr.bf16.mxu0 %v1234_v12 }
  0x6f   : > { %643 = vmatpush1.bf16.msra.mxu0 %v1232_v15 }
  0x70   : > { %644 = vmatprep.subr.bf16.mxu0 %v1237_v16 }
  0x73   : > { %645 = vmatpush1.bf16.msra.mxu0 %v1235_v18 }
  0x74   : > { %646 = vmatprep.subr.bf16.mxu0 %v1240_v19 }
  0x77   : > { %647 = vmatpush1.bf16.msra.mxu0 %v1238_v20 }
  0x78   : > { %648 = vmatprep.subr.bf16.mxu0 %v1243_v21 }
  0x7b   : > { %649 = vmatpush1.bf16.msra.mxu0 %v1241_v22 }
  0x7c   : > { %650 = vmatprep.subr.bf16.mxu0 %v1246_v23 }
  0x7f   : > { %651 = vmatpush1.bf16.msra.mxu0 %v1244_v24 }
  0x80   : > { %652 = vmatprep.subr.bf16.mxu0 %v1249_v25 }
  0x83   : > { %653 = vmatpush1.bf16.msra.mxu0 %v1247_v26 }
  0x84   : > { %654 = vmatprep.subr.bf16.mxu0 %v1252_v27 }
  0x87   : > { %655 = vmatpush1.bf16.msra.mxu0 %v1250_v28 }
  0x88   : > { %656 = vmatprep.subr.bf16.mxu0 %v1255_v29 }
  0x8b   : > { %657 = vmatpush1.bf16.msra.mxu0 %v1253_v30 }
  0x8e   : > { %659 = vmatmul.mubr.bf16.vlgmr.msra.gmra.mrb[0].mxu0 %v1256_v31 }
 0x161   : > { %v660_v36 = vpop.f32.mrb[0].mxu0 }
 0x162   : > { %v662_v37 = vpop.f32.mrb[1].mxu0  ;;  %v669_v39 = vmax.f32 %v660_v36, 0.0 }
 0x163   : > { %v664_v38 = vpop.f32.mrb[2].mxu0  ;;  %v670_v42 = vmax.f32 %v662_v37, 0.0 }
 0x164   : > { %v671_v40 = vmax.f32 %v664_v38, 0.0  ;;  %v666_v41 = vpop.f32.mrb[3].mxu0 }
 0x165   : > { %v672_v43 = vmax.f32 %v666_v41, 0.0 }
 0x166   : > { %v673_v44 = vpack.c.bf16 %v671_v40, %v669_v39 }
 0x167   : > { %v674_v45 = vpack.c.bf16 %v672_v43, %v670_v42 }
 0x169   : > { %899 = vmatprep.mubr.bf16.mxu1 %v674_v45 }
 0x16a   : > { %900 = vmatmul.mubr.bf16.vlgmr.msra.gmra.mrb[0].mxu1 %v673_v44 }
 0x23d   : > { %v901_v46 = vpop.f32.mrb[0].mxu1 }
 0x23e   : > { %v910_v47 = vmax.f32 %v901_v46, 0.0  ;;  %v903_v48 = vpop.f32.mrb[1].mxu1 }
 0x23f   : > { %v911_v49 = vmax.f32 %v903_v48, 0.0  ;;  %v905_v50 = vpop.f32.mrb[2].mxu1 }
 0x240   : > { %914 = vst [vmem:[%s166_s6] sm:$0xff] %v910_v47  ;;  %v912_v51 = vmax.f32 %v905_v50, 0.0  ;;  %v907_v52 = vpop.f32.mrb[3].mxu1 }
 0x241   : > { %915 = vst [vmem:[%s166_s6 + $0x8] sm:$0xff] %v911_v49  ;;  %v913_v53 = vmax.f32 %v907_v52, 0.0 }
 0x242   : > { %916 = vst [vmem:[%s166_s6 + $0x10] sm:$0xff] %v912_v51 }
 0x243   : > { %917 = vst [vmem:[%s166_s6 + $0x18] sm:$0xff] %v913_v53 }
 0x244   : > { %1320 = shalt.err (!%p1317_p3)
}
 0x245   : > { %s1321_s26 = scalar_lea.hbm %s1747_s17, 512  ;;  %s1325_s29 = scalar_lea.hbm %s1793_s3, 1024 }
 0x246   : > { %p1322_p4 = scmp.ne.s32.totalorder %s1747_s17, %s1321_s26  ;;  %p1326_p9 = scmp.lt.u32.totalorder %s1747_s17, %s1793_s3 }
 0x247   : > { %p1327_p10 = scmp.lt.u32.totalorder %s1325_s29, %s1321_s26  ;;  %p1329_p12 = scmp.lt.u32.totalorder %s1321_s26, %s1747_s17 }
 0x248   : > { %p1323_p7 = pnand %p1322_p4, %p1432_p5 }
 0x249   : > { %p1328_p11 = por %p1327_p10, %p1326_p9 }
 0x24a   : > { %p1324_p8 = pneg %p1323_p7 }
 0x24b   : > { %p1330_p13 = por %p1329_p12, %p1328_p11 }
 0x24d   : > { %p1331_p0 = pnand %p1330_p13, %p1324_p8 }
 0x24f   : > { %1334 = shalt.err (!%p1331_p0)
}
 0x250   : > { %s1372_s8 = smov 256   ;;  %s1373_s5 = smov 16  }
 0x251   : > { %1116 = dma.vmem_to_hbm [thread:$0]  (%p1432_p5), %s1742_s9, 512, %s1747_s17, %s1749_s16, %s1372_s8, %s1372_s8, %s1373_s5  }
 0x252 PF: > { %p1122_p1 = scmp.ge.s32.totalorder %s1369_s15, 2  ;;  %s948_s6 = sand.u32 1, %s1357_s12  }
 0x253   : > { %s949_s10 = scalar_lea.sflag [#allocation3], %s948_s6 }
 0x254   : > { %p1119_p2 = pnand %p1122_p1, %p1436_p6 }
 0x256   : > { %1352 = dma.done.wait (!%p1119_p2), %s949_s10, 512  }
 0x257   : > { %1354 = vsyncadd (!%p1119_p2), %s949_s10, 4294966784  ;;  %p13_p3 = scmp.ge.s32.totalorder %s1419_s18, 4   ;;  %s1796_s12 = smov %s1361_s13 }
 0x258   : > { %s1797_s13 = smov %s1365_s14  ;;  %s1798_s14 = smov %s1430_s21 }
 0x259   : > { %s1799_s15 = smov %s1419_s18  ;;  %15 = sbr.rel (!%p13_p3) target bundleno = 3 (0x3), region = 67 }
 0x260   :  { %954 = vsyncpa [#allocation3], 1 }
 0x261   :  { %956 = vsyncpa [#allocation3 + $0x1], 1 }

</bundles_post_ra>
